<compile_context>
chip_gen: v7x
topology: tpu7x:2x2x1
jax: 0.10.0
libtpu: 0.0.40
codegen_flags: <defaults>
</compile_context>

<pallas_src>
import functools

import jax
import jax.numpy as jnp
from jax.experimental import pallas as pl
from jax.experimental.pallas import tpu as pltpu

MARGIN = 128  # zero margin (flat spatial elements) on each side of the scratch


def _fused_resnet_block_kernel(w1_ref, b1_ref, w2_ref, b2_ref, m_ref,
                               x_ref, o_ref, xe_ref, *, C, H, W, KH, KW):
    """One batch element: o = relu(conv2(relu(conv1(x))) + x), SAME padding.

    w?_ref : SMEM (KH*KW*C*C,) f32, flattened as [kh, kw, ci, co]
    b?_ref : SMEM (C,) f32
    m_ref  : VMEM (KW, H*W) f32 column-validity multipliers per horizontal tap
    x_ref  : VMEM (C, H*W) input block (batch dim squeezed by BlockSpec)
    o_ref  : VMEM (C, H*W) output block
    xe_ref : VMEM (C, MARGIN + H*W + MARGIN) scratch; zero margins emulate the
             vertical SAME padding; holds x for conv1, relu(conv1) for conv2.
    """
    HW = H * W
    ph, pw = KH // 2, KW // 2

    # ---- in-kernel zero padding: margins <- 0, center <- x (lane-aligned stores)
    xe_ref[:, 0:MARGIN] = jnp.zeros((C, MARGIN), jnp.float32)
    xe_ref[:, MARGIN + HW:MARGIN + HW + MARGIN] = jnp.zeros((C, MARGIN), jnp.float32)
    xe_ref[:, MARGIN:MARGIN + HW] = x_ref[...].astype(jnp.float32)

    # Hoisted mask rows (one per horizontal tap offset).
    mrows = [m_ref[kw:kw + 1, :] for kw in range(KW)]

    def conv_same(w_ref, b_ref):
        # Returns a list of C rows, each (1, HW) f32: conv(xe center) + bias.
        rows = [jnp.zeros((1, HW), jnp.float32) + b_ref[co] for co in range(C)]
        for kh in range(KH):
            for kw in range(KW):
                s = (kh - ph) * W + (kw - pw)                 # flat lane shift
                t = kh * KW + kw
                slab = xe_ref[:, MARGIN + s:MARGIN + s + HW]  # (C, HW), contiguous
                if kw != pw:                                  # zero wrapped columns
                    slab = slab * mrows[kw]
                for ci in range(C):
                    r = slab[ci:ci + 1, :]                    # (1, HW) lane-dense
                    base = t * C * C + ci * C
                    for co in range(C):
                        rows[co] = rows[co] + w_ref[base + co] * r
        return rows

    # ---- conv1 + bias + relu; intermediate stays in VMEM (scratch center)
    y_rows = conv_same(w1_ref, b1_ref)
    for c in range(C):
        xe_ref[c:c + 1, MARGIN:MARGIN + HW] = jnp.maximum(y_rows[c], 0.0)

    # ---- conv2 + bias + residual + relu, lane-dense stores
    o_rows = conv_same(w2_ref, b2_ref)
    for c in range(C):
        res = x_ref[c:c + 1, :].astype(jnp.float32)
        o_ref[c:c + 1, :] = jnp.maximum(o_rows[c] + res, 0.0).astype(o_ref.dtype)


@jax.jit
def resnet_block(x, w1, b1, w2, b2):
    """x: (N, C, H, W) NCHW;  w?: (C, C, KH, KW) OIHW;  b?: (C,).  Returns NCHW."""
    N, C, H, W = x.shape
    Cout, Cin, KH, KW = w1.shape
    assert Cout == C and Cin == C and w2.shape == w1.shape
    assert KH % 2 == 1 and KW % 2 == 1, "SAME padding assumes odd kernel"
    ph, pw = KH // 2, KW // 2
    HW = H * W
    assert ph * W + pw <= MARGIN, "spatial shift exceeds scratch margin"

    xf = x.reshape(N, C, HW).astype(jnp.float32)
    # OIHW -> flat [kh, kw, ci, co] for scalar SMEM lookups inside the kernel.
    w1f = jnp.transpose(w1, (2, 3, 1, 0)).reshape(-1).astype(jnp.float32)
    w2f = jnp.transpose(w2, (2, 3, 1, 0)).reshape(-1).astype(jnp.float32)
    b1f = b1.reshape(-1).astype(jnp.float32)
    b2f = b2.reshape(-1).astype(jnp.float32)

    # Column-validity multipliers for the horizontal taps (built host-side, so
    # the kernel needs no iota/modulo): mask[kw, p] = 1.0 iff output column
    # (p mod W) has a valid neighbour at horizontal offset (kw - pw).
    w_pos = jnp.arange(HW, dtype=jnp.int32) % W
    cols = []
    for kw in range(KW):
        dw = kw - pw
        if dw < 0:
            valid = w_pos >= -dw
        elif dw > 0:
            valid = w_pos <= (W - 1 - dw)
        else:
            valid = jnp.ones((HW,), dtype=bool)
        cols.append(valid.astype(jnp.float32))
    mask = jnp.stack(cols, axis=0)                            # (KW, HW)

    kernel = functools.partial(_fused_resnet_block_kernel,
                               C=C, H=H, W=W, KH=KH, KW=KW)

    flops = 2 * 2 * N * H * W * KH * KW * C * C               # two convs, MAC = 2 flops
    bytes_accessed = 4 * (2 * N * C * HW + w1f.size + w2f.size
                          + b1f.size + b2f.size + mask.size)

    out = pl.pallas_call(
        kernel,
        out_shape=jax.ShapeDtypeStruct((N, C, HW), jnp.float32),
        grid_spec=pltpu.PrefetchScalarGridSpec(
            num_scalar_prefetch=0,
            grid=(N,),
            in_specs=[
                pl.BlockSpec(memory_space=pltpu.MemorySpace.SMEM),  # w1 flat
                pl.BlockSpec(memory_space=pltpu.MemorySpace.SMEM),  # b1
                pl.BlockSpec(memory_space=pltpu.MemorySpace.SMEM),  # w2 flat
                pl.BlockSpec(memory_space=pltpu.MemorySpace.SMEM),  # b2
                pl.BlockSpec((KW, HW), lambda n: (0, 0)),           # column mask
                pl.BlockSpec((None, C, HW), lambda n: (n, 0, 0)),   # x
            ],
            out_specs=pl.BlockSpec((None, C, HW), lambda n: (n, 0, 0)),
            scratch_shapes=[pltpu.VMEM((C, 2 * MARGIN + HW), jnp.float32)],
        ),
        compiler_params=pltpu.CompilerParams(
            dimension_semantics=("parallel",)),
        cost_estimate=pl.CostEstimate(
            flops=flops, transcendentals=0, bytes_accessed=bytes_accessed),
    )(w1f, b1f, w2f, b2f, mask, xf)

    return out.reshape(N, C, H, W)


# ----------------------- pure-JAX reference (for check) ----------------------
def _ref_conv(x, w, b):
    y = jax.lax.conv_general_dilated(
        x, w, window_strides=(1, 1), padding="SAME",
        dimension_numbers=("NCHW", "OIHW", "NCHW"))
    return y + b.reshape(1, -1, 1, 1)


def _ref_block(x, w1, b1, w2, b2):
    y = jax.nn.relu(_ref_conv(x, w1, b1))
    y = _ref_conv(y, w2, b2)
    return jax.nn.relu(y + x)


if __name__ == "__main__":
    N, C, H, W, K = 2, 4, 16, 16, 3   # batch=2, channels=4, spatial=16, kernel=3

    key = jax.random.PRNGKey(0)
    kx, kw1, kb1, kw2, kb2 = jax.random.split(key, 5)

    bound = 1.0 / (C * K * K) ** 0.5   # PyTorch-style uniform init bound
    x = jax.random.normal(kx, (N, C, H, W), jnp.float32)
    w1 = jax.random.uniform(kw1, (C, C, K, K), jnp.float32, -bound, bound)
    b1 = jax.random.uniform(kb1, (C,), jnp.float32, -bound, bound)
    w2 = jax.random.uniform(kw2, (C, C, K, K), jnp.float32, -bound, bound)
    b2 = jax.random.uniform(kb2, (C,), jnp.float32, -bound, bound)

    out = resnet_block(x, w1, b1, w2, b2)
    out = jax.block_until_ready(out)

    ref = _ref_block(x, w1, b1, w2, b2)
    assert out.shape == (N, C, H, W)
    assert jnp.allclose(out, ref, rtol=1e-5, atol=1e-4), "mismatch vs reference"

    print("KERNEL_OK")
</pallas_src>

<mosaic_0001>
module attributes {stable_mosaic.version = 11 : i64} {
  func.func @_fused_resnet_block_kernel(%arg0: i32, %arg1: memref<144xf32, #tpu.memory_space<smem>>, %arg2: memref<4xf32, #tpu.memory_space<smem>>, %arg3: memref<144xf32, #tpu.memory_space<smem>>, %arg4: memref<4xf32, #tpu.memory_space<smem>>, %arg5: memref<3x256xf32, #tpu.memory_space<vmem>>, %arg6: memref<1x4x256xf32, #tpu.memory_space<vmem>>, %arg7: memref<1x4x256xf32, #tpu.memory_space<vmem>>, %arg8: memref<4x512xf32, #tpu.memory_space<vmem>>) attributes {dimension_semantics = [#tpu.dimension_semantics<parallel>], iteration_bounds = array<i64: 2>, scalar_prefetch = 0 : i64, scratch_operands = 1 : i64, tpu.core_type = #tpu.core_type<tc>, window_params = [{transform_indices = @transform_0, window_bounds = array<i64: 144>}, {transform_indices = @transform_1, window_bounds = array<i64: 4>}, {transform_indices = @transform_2, window_bounds = array<i64: 144>}, {transform_indices = @transform_3, window_bounds = array<i64: 4>}, {pipeline_mode = #tpu.pipeline_mode<synchronous>, transform_indices = @transform_4, window_bounds = array<i64: 3, 256>}, {transform_indices = @transform_5, window_bounds = array<i64: 1, 4, 256>}, {transform_indices = @transform_6, window_bounds = array<i64: 1, 4, 256>}]} {
    %cst = arith.constant 0.000000e+00 : f32
    %0 = vector.broadcast %cst : f32 to vector<4x128xf32>
    %c0 = arith.constant 0 : index
    %c0_0 = arith.constant 0 : index
    %1 = vector.load %arg8[%c0, %c0_0] : memref<4x512xf32, #tpu.memory_space<vmem>>, vector<4x128xf32>
    tpu.vector_store %arg8[%c0, %c0_0], %0 {strides = array<i32>} : memref<4x512xf32, #tpu.memory_space<vmem>>, vector<4x128xf32>,
    %cst_1 = arith.constant 0.000000e+00 : f32
    %2 = vector.broadcast %cst_1 : f32 to vector<4x128xf32>
    %c0_2 = arith.constant 0 : index
    %c384 = arith.constant 384 : index
    %3 = vector.load %arg8[%c0_2, %c384] : memref<4x512xf32, #tpu.memory_space<vmem>>, vector<4x128xf32>
    tpu.vector_store %arg8[%c0_2, %c384], %2 {strides = array<i32>} : memref<4x512xf32, #tpu.memory_space<vmem>>, vector<4x128xf32>,
    %c0_3 = arith.constant 0 : index
    %c0_4 = arith.constant 0 : index
    %c0_5 = arith.constant 0 : index
    %4 = vector.load %arg6[%c0_3, %c0_4, %c0_5] : memref<1x4x256xf32, #tpu.memory_space<vmem>>, vector<1x4x256xf32>
    %5 = vector.shape_cast %4 : vector<1x4x256xf32> to vector<4x256xf32>
    %c0_6 = arith.constant 0 : index
    %c128 = arith.constant 128 : index
    %6 = vector.load %arg8[%c0_6, %c128] : memref<4x512xf32, #tpu.memory_space<vmem>>, vector<4x256xf32>
    tpu.vector_store %arg8[%c0_6, %c128], %5 {strides = array<i32>} : memref<4x512xf32, #tpu.memory_space<vmem>>, vector<4x256xf32>,
    %c0_7 = arith.constant 0 : index
    %c0_8 = arith.constant 0 : index
    %7 = vector.load %arg5[%c0_7, %c0_8] : memref<3x256xf32, #tpu.memory_space<vmem>>, vector<1x256xf32>
    %c2 = arith.constant 2 : index
    %c0_9 = arith.constant 0 : index
    %8 = vector.load %arg5[%c2, %c0_9] : memref<3x256xf32, #tpu.memory_space<vmem>>, vector<1x256xf32>
    %cst_10 = arith.constant 0.000000e+00 : f32
    %9 = vector.broadcast %cst_10 : f32 to vector<1x256xf32>
    %c0_11 = arith.constant 0 : index
    %10 = memref.load %arg2[%c0_11] : memref<4xf32, #tpu.memory_space<smem>>
    %11 = vector.broadcast %10 : f32 to vector<1x256xf32>
    %12 = arith.addf %9, %11 : vector<1x256xf32>
    %cst_12 = arith.constant 0.000000e+00 : f32
    %13 = vector.broadcast %cst_12 : f32 to vector<1x256xf32>
    %c1 = arith.constant 1 : index
    %14 = memref.load %arg2[%c1] : memref<4xf32, #tpu.memory_space<smem>>
    %15 = vector.broadcast %14 : f32 to vector<1x256xf32>
    %16 = arith.addf %13, %15 : vector<1x256xf32>
    %cst_13 = arith.constant 0.000000e+00 : f32
    %17 = vector.broadcast %cst_13 : f32 to vector<1x256xf32>
    %c2_14 = arith.constant 2 : index
    %18 = memref.load %arg2[%c2_14] : memref<4xf32, #tpu.memory_space<smem>>
    %19 = vector.broadcast %18 : f32 to vector<1x256xf32>
    %20 = arith.addf %17, %19 : vector<1x256xf32>
    %cst_15 = arith.constant 0.000000e+00 : f32
    %21 = vector.broadcast %cst_15 : f32 to vector<1x256xf32>
    %c3 = arith.constant 3 : index
    %22 = memref.load %arg2[%c3] : memref<4xf32, #tpu.memory_space<smem>>
    %23 = vector.broadcast %22 : f32 to vector<1x256xf32>
    %24 = arith.addf %21, %23 : vector<1x256xf32>
    %c0_16 = arith.constant 0 : index
    %c111 = arith.constant 111 : index
    %25 = vector.load %arg8[%c0_16, %c111] : memref<4x512xf32, #tpu.memory_space<vmem>>, vector<4x256xf32>
    %26 = vector.broadcast %7 : vector<1x256xf32> to vector<4x256xf32>
    %27 = arith.mulf %25, %26 : vector<4x256xf32>
    %28 = vector.extract_strided_slice %27 {offsets = [0, 0], sizes = [1, 256], strides = [1, 1]} : vector<4x256xf32> to vector<1x256xf32>
    %c0_17 = arith.constant 0 : index
    %29 = memref.load %arg1[%c0_17] : memref<144xf32, #tpu.memory_space<smem>>
    %30 = vector.broadcast %29 : f32 to vector<1x256xf32>
    %31 = arith.mulf %30, %28 : vector<1x256xf32>
    %32 = arith.addf %12, %31 : vector<1x256xf32>
    %c1_18 = arith.constant 1 : index
    %33 = memref.load %arg1[%c1_18] : memref<144xf32, #tpu.memory_space<smem>>
    %34 = vector.broadcast %33 : f32 to vector<1x256xf32>
    %35 = arith.mulf %34, %28 : vector<1x256xf32>
    %36 = arith.addf %16, %35 : vector<1x256xf32>
    %c2_19 = arith.constant 2 : index
    %37 = memref.load %arg1[%c2_19] : memref<144xf32, #tpu.memory_space<smem>>
    %38 = vector.broadcast %37 : f32 to vector<1x256xf32>
    %39 = arith.mulf %38, %28 : vector<1x256xf32>
    %40 = arith.addf %20, %39 : vector<1x256xf32>
    %c3_20 = arith.constant 3 : index
    %41 = memref.load %arg1[%c3_20] : memref<144xf32, #tpu.memory_space<smem>>
    %42 = vector.broadcast %41 : f32 to vector<1x256xf32>
    %43 = arith.mulf %42, %28 : vector<1x256xf32>
    %44 = arith.addf %24, %43 : vector<1x256xf32>
    %45 = vector.extract_strided_slice %27 {offsets = [1, 0], sizes = [1, 256], strides = [1, 1]} : vector<4x256xf32> to vector<1x256xf32>
    %c4 = arith.constant 4 : index
    %46 = memref.load %arg1[%c4] : memref<144xf32, #tpu.memory_space<smem>>
    %47 = vector.broadcast %46 : f32 to vector<1x256xf32>
    %48 = arith.mulf %47, %45 : vector<1x256xf32>
    %49 = arith.addf %32, %48 : vector<1x256xf32>
    %c5 = arith.constant 5 : index
    %50 = memref.load %arg1[%c5] : memref<144xf32, #tpu.memory_space<smem>>
    %51 = vector.broadcast %50 : f32 to vector<1x256xf32>
    %52 = arith.mulf %51, %45 : vector<1x256xf32>
    %53 = arith.addf %36, %52 : vector<1x256xf32>
    %c6 = arith.constant 6 : index
    %54 = memref.load %arg1[%c6] : memref<144xf32, #tpu.memory_space<smem>>
    %55 = vector.broadcast %54 : f32 to vector<1x256xf32>
    %56 = arith.mulf %55, %45 : vector<1x256xf32>
    %57 = arith.addf %40, %56 : vector<1x256xf32>
    %c7 = arith.constant 7 : index
    %58 = memref.load %arg1[%c7] : memref<144xf32, #tpu.memory_space<smem>>
    %59 = vector.broadcast %58 : f32 to vector<1x256xf32>
    %60 = arith.mulf %59, %45 : vector<1x256xf32>
    %61 = arith.addf %44, %60 : vector<1x256xf32>
    %62 = vector.extract_strided_slice %27 {offsets = [2, 0], sizes = [1, 256], strides = [1, 1]} : vector<4x256xf32> to vector<1x256xf32>
    %c8 = arith.constant 8 : index
    %63 = memref.load %arg1[%c8] : memref<144xf32, #tpu.memory_space<smem>>
    %64 = vector.broadcast %63 : f32 to vector<1x256xf32>
    %65 = arith.mulf %64, %62 : vector<1x256xf32>
    %66 = arith.addf %49, %65 : vector<1x256xf32>
    %c9 = arith.constant 9 : index
    %67 = memref.load %arg1[%c9] : memref<144xf32, #tpu.memory_space<smem>>
    %68 = vector.broadcast %67 : f32 to vector<1x256xf32>
    %69 = arith.mulf %68, %62 : vector<1x256xf32>
    %70 = arith.addf %53, %69 : vector<1x256xf32>
    %c10 = arith.constant 10 : index
    %71 = memref.load %arg1[%c10] : memref<144xf32, #tpu.memory_space<smem>>
    %72 = vector.broadcast %71 : f32 to vector<1x256xf32>
    %73 = arith.mulf %72, %62 : vector<1x256xf32>
    %74 = arith.addf %57, %73 : vector<1x256xf32>
    %c11 = arith.constant 11 : index
    %75 = memref.load %arg1[%c11] : memref<144xf32, #tpu.memory_space<smem>>
    %76 = vector.broadcast %75 : f32 to vector<1x256xf32>
    %77 = arith.mulf %76, %62 : vector<1x256xf32>
    %78 = arith.addf %61, %77 : vector<1x256xf32>
    %79 = vector.extract_strided_slice %27 {offsets = [3, 0], sizes = [1, 256], strides = [1, 1]} : vector<4x256xf32> to vector<1x256xf32>
    %c12 = arith.constant 12 : index
    %80 = memref.load %arg1[%c12] : memref<144xf32, #tpu.memory_space<smem>>
    %81 = vector.broadcast %80 : f32 to vector<1x256xf32>
    %82 = arith.mulf %81, %79 : vector<1x256xf32>
    %83 = arith.addf %66, %82 : vector<1x256xf32>
    %c13 = arith.constant 13 : index
    %84 = memref.load %arg1[%c13] : memref<144xf32, #tpu.memory_space<smem>>
    %85 = vector.broadcast %84 : f32 to vector<1x256xf32>
    %86 = arith.mulf %85, %79 : vector<1x256xf32>
    %87 = arith.addf %70, %86 : vector<1x256xf32>
    %c14 = arith.constant 14 : index
    %88 = memref.load %arg1[%c14] : memref<144xf32, #tpu.memory_space<smem>>
    %89 = vector.broadcast %88 : f32 to vector<1x256xf32>
    %90 = arith.mulf %89, %79 : vector<1x256xf32>
    %91 = arith.addf %74, %90 : vector<1x256xf32>
    %c15 = arith.constant 15 : index
    %92 = memref.load %arg1[%c15] : memref<144xf32, #tpu.memory_space<smem>>
    %93 = vector.broadcast %92 : f32 to vector<1x256xf32>
    %94 = arith.mulf %93, %79 : vector<1x256xf32>
    %95 = arith.addf %78, %94 : vector<1x256xf32>
    %c0_21 = arith.constant 0 : index
    %c112 = arith.constant 112 : index
    %96 = vector.load %arg8[%c0_21, %c112] : memref<4x512xf32, #tpu.memory_space<vmem>>, vector<4x256xf32>
    %97 = vector.extract_strided_slice %96 {offsets = [0, 0], sizes = [1, 256], strides = [1, 1]} : vector<4x256xf32> to vector<1x256xf32>
    %c16 = arith.constant 16 : index
    %98 = memref.load %arg1[%c16] : memref<144xf32, #tpu.memory_space<smem>>
    %99 = vector.broadcast %98 : f32 to vector<1x256xf32>
    %100 = arith.mulf %99, %97 : vector<1x256xf32>
    %101 = arith.addf %83, %100 : vector<1x256xf32>
    %c17 = arith.constant 17 : index
    %102 = memref.load %arg1[%c17] : memref<144xf32, #tpu.memory_space<smem>>
    %103 = vector.broadcast %102 : f32 to vector<1x256xf32>
    %104 = arith.mulf %103, %97 : vector<1x256xf32>
    %105 = arith.addf %87, %104 : vector<1x256xf32>
    %c18 = arith.constant 18 : index
    %106 = memref.load %arg1[%c18] : memref<144xf32, #tpu.memory_space<smem>>
    %107 = vector.broadcast %106 : f32 to vector<1x256xf32>
    %108 = arith.mulf %107, %97 : vector<1x256xf32>
    %109 = arith.addf %91, %108 : vector<1x256xf32>
    %c19 = arith.constant 19 : index
    %110 = memref.load %arg1[%c19] : memref<144xf32, #tpu.memory_space<smem>>
    %111 = vector.broadcast %110 : f32 to vector<1x256xf32>
    %112 = arith.mulf %111, %97 : vector<1x256xf32>
    %113 = arith.addf %95, %112 : vector<1x256xf32>
    %114 = vector.extract_strided_slice %96 {offsets = [1, 0], sizes = [1, 256], strides = [1, 1]} : vector<4x256xf32> to vector<1x256xf32>
    %c20 = arith.constant 20 : index
    %115 = memref.load %arg1[%c20] : memref<144xf32, #tpu.memory_space<smem>>
    %116 = vector.broadcast %115 : f32 to vector<1x256xf32>
    %117 = arith.mulf %116, %114 : vector<1x256xf32>
    %118 = arith.addf %101, %117 : vector<1x256xf32>
    %c21 = arith.constant 21 : index
    %119 = memref.load %arg1[%c21] : memref<144xf32, #tpu.memory_space<smem>>
    %120 = vector.broadcast %119 : f32 to vector<1x256xf32>
    %121 = arith.mulf %120, %114 : vector<1x256xf32>
    %122 = arith.addf %105, %121 : vector<1x256xf32>
    %c22 = arith.constant 22 : index
    %123 = memref.load %arg1[%c22] : memref<144xf32, #tpu.memory_space<smem>>
    %124 = vector.broadcast %123 : f32 to vector<1x256xf32>
    %125 = arith.mulf %124, %114 : vector<1x256xf32>
    %126 = arith.addf %109, %125 : vector<1x256xf32>
    %c23 = arith.constant 23 : index
    %127 = memref.load %arg1[%c23] : memref<144xf32, #tpu.memory_space<smem>>
    %128 = vector.broadcast %127 : f32 to vector<1x256xf32>
    %129 = arith.mulf %128, %114 : vector<1x256xf32>
    %130 = arith.addf %113, %129 : vector<1x256xf32>
    %131 = vector.extract_strided_slice %96 {offsets = [2, 0], sizes = [1, 256], strides = [1, 1]} : vector<4x256xf32> to vector<1x256xf32>
    %c24 = arith.constant 24 : index
    %132 = memref.load %arg1[%c24] : memref<144xf32, #tpu.memory_space<smem>>
    %133 = vector.broadcast %132 : f32 to vector<1x256xf32>
    %134 = arith.mulf %133, %131 : vector<1x256xf32>
    %135 = arith.addf %118, %134 : vector<1x256xf32>
    %c25 = arith.constant 25 : index
    %136 = memref.load %arg1[%c25] : memref<144xf32, #tpu.memory_space<smem>>
    %137 = vector.broadcast %136 : f32 to vector<1x256xf32>
    %138 = arith.mulf %137, %131 : vector<1x256xf32>
    %139 = arith.addf %122, %138 : vector<1x256xf32>
    %c26 = arith.constant 26 : index
    %140 = memref.load %arg1[%c26] : memref<144xf32, #tpu.memory_space<smem>>
    %141 = vector.broadcast %140 : f32 to vector<1x256xf32>
    %142 = arith.mulf %141, %131 : vector<1x256xf32>
    %143 = arith.addf %126, %142 : vector<1x256xf32>
    %c27 = arith.constant 27 : index
    %144 = memref.load %arg1[%c27] : memref<144xf32, #tpu.memory_space<smem>>
    %145 = vector.broadcast %144 : f32 to vector<1x256xf32>
    %146 = arith.mulf %145, %131 : vector<1x256xf32>
    %147 = arith.addf %130, %146 : vector<1x256xf32>
    %148 = vector.extract_strided_slice %96 {offsets = [3, 0], sizes = [1, 256], strides = [1, 1]} : vector<4x256xf32> to vector<1x256xf32>
    %c28 = arith.constant 28 : index
    %149 = memref.load %arg1[%c28] : memref<144xf32, #tpu.memory_space<smem>>
    %150 = vector.broadcast %149 : f32 to vector<1x256xf32>
    %151 = arith.mulf %150, %148 : vector<1x256xf32>
    %152 = arith.addf %135, %151 : vector<1x256xf32>
    %c29 = arith.constant 29 : index
    %153 = memref.load %arg1[%c29] : memref<144xf32, #tpu.memory_space<smem>>
    %154 = vector.broadcast %153 : f32 to vector<1x256xf32>
    %155 = arith.mulf %154, %148 : vector<1x256xf32>
    %156 = arith.addf %139, %155 : vector<1x256xf32>
    %c30 = arith.constant 30 : index
    %157 = memref.load %arg1[%c30] : memref<144xf32, #tpu.memory_space<smem>>
    %158 = vector.broadcast %157 : f32 to vector<1x256xf32>
    %159 = arith.mulf %158, %148 : vector<1x256xf32>
    %160 = arith.addf %143, %159 : vector<1x256xf32>
    %c31 = arith.constant 31 : index
    %161 = memref.load %arg1[%c31] : memref<144xf32, #tpu.memory_space<smem>>
    %162 = vector.broadcast %161 : f32 to vector<1x256xf32>
    %163 = arith.mulf %162, %148 : vector<1x256xf32>
    %164 = arith.addf %147, %163 : vector<1x256xf32>
    %c0_22 = arith.constant 0 : index
    %c113 = arith.constant 113 : index
    %165 = vector.load %arg8[%c0_22, %c113] : memref<4x512xf32, #tpu.memory_space<vmem>>, vector<4x256xf32>
    %166 = vector.broadcast %8 : vector<1x256xf32> to vector<4x256xf32>
    %167 = arith.mulf %165, %166 : vector<4x256xf32>
    %168 = vector.extract_strided_slice %167 {offsets = [0, 0], sizes = [1, 256], strides = [1, 1]} : vector<4x256xf32> to vector<1x256xf32>
    %c32 = arith.constant 32 : index
    %169 = memref.load %arg1[%c32] : memref<144xf32, #tpu.memory_space<smem>>
    %170 = vector.broadcast %169 : f32 to vector<1x256xf32>
    %171 = arith.mulf %170, %168 : vector<1x256xf32>
    %172 = arith.addf %152, %171 : vector<1x256xf32>
    %c33 = arith.constant 33 : index
    %173 = memref.load %arg1[%c33] : memref<144xf32, #tpu.memory_space<smem>>
    %174 = vector.broadcast %173 : f32 to vector<1x256xf32>
    %175 = arith.mulf %174, %168 : vector<1x256xf32>
    %176 = arith.addf %156, %175 : vector<1x256xf32>
    %c34 = arith.constant 34 : index
    %177 = memref.load %arg1[%c34] : memref<144xf32, #tpu.memory_space<smem>>
    %178 = vector.broadcast %177 : f32 to vector<1x256xf32>
    %179 = arith.mulf %178, %168 : vector<1x256xf32>
    %180 = arith.addf %160, %179 : vector<1x256xf32>
    %c35 = arith.constant 35 : index
    %181 = memref.load %arg1[%c35] : memref<144xf32, #tpu.memory_space<smem>>
    %182 = vector.broadcast %181 : f32 to vector<1x256xf32>
    %183 = arith.mulf %182, %168 : vector<1x256xf32>
    %184 = arith.addf %164, %183 : vector<1x256xf32>
    %185 = vector.extract_strided_slice %167 {offsets = [1, 0], sizes = [1, 256], strides = [1, 1]} : vector<4x256xf32> to vector<1x256xf32>
    %c36 = arith.constant 36 : index
    %186 = memref.load %arg1[%c36] : memref<144xf32, #tpu.memory_space<smem>>
    %187 = vector.broadcast %186 : f32 to vector<1x256xf32>
    %188 = arith.mulf %187, %185 : vector<1x256xf32>
    %189 = arith.addf %172, %188 : vector<1x256xf32>
    %c37 = arith.constant 37 : index
    %190 = memref.load %arg1[%c37] : memref<144xf32, #tpu.memory_space<smem>>
    %191 = vector.broadcast %190 : f32 to vector<1x256xf32>
    %192 = arith.mulf %191, %185 : vector<1x256xf32>
    %193 = arith.addf %176, %192 : vector<1x256xf32>
    %c38 = arith.constant 38 : index
    %194 = memref.load %arg1[%c38] : memref<144xf32, #tpu.memory_space<smem>>
    %195 = vector.broadcast %194 : f32 to vector<1x256xf32>
    %196 = arith.mulf %195, %185 : vector<1x256xf32>
    %197 = arith.addf %180, %196 : vector<1x256xf32>
    %c39 = arith.constant 39 : index
    %198 = memref.load %arg1[%c39] : memref<144xf32, #tpu.memory_space<smem>>
    %199 = vector.broadcast %198 : f32 to vector<1x256xf32>
    %200 = arith.mulf %199, %185 : vector<1x256xf32>
    %201 = arith.addf %184, %200 : vector<1x256xf32>
    %202 = vector.extract_strided_slice %167 {offsets = [2, 0], sizes = [1, 256], strides = [1, 1]} : vector<4x256xf32> to vector<1x256xf32>
    %c40 = arith.constant 40 : index
    %203 = memref.load %arg1[%c40] : memref<144xf32, #tpu.memory_space<smem>>
    %204 = vector.broadcast %203 : f32 to vector<1x256xf32>
    %205 = arith.mulf %204, %202 : vector<1x256xf32>
    %206 = arith.addf %189, %205 : vector<1x256xf32>
    %c41 = arith.constant 41 : index
    %207 = memref.load %arg1[%c41] : memref<144xf32, #tpu.memory_space<smem>>
    %208 = vector.broadcast %207 : f32 to vector<1x256xf32>
    %209 = arith.mulf %208, %202 : vector<1x256xf32>
    %210 = arith.addf %193, %209 : vector<1x256xf32>
    %c42 = arith.constant 42 : index
    %211 = memref.load %arg1[%c42] : memref<144xf32, #tpu.memory_space<smem>>
    %212 = vector.broadcast %211 : f32 to vector<1x256xf32>
    %213 = arith.mulf %212, %202 : vector<1x256xf32>
    %214 = arith.addf %197, %213 : vector<1x256xf32>
    %c43 = arith.constant 43 : index
    %215 = memref.load %arg1[%c43] : memref<144xf32, #tpu.memory_space<smem>>
    %216 = vector.broadcast %215 : f32 to vector<1x256xf32>
    %217 = arith.mulf %216, %202 : vector<1x256xf32>
    %218 = arith.addf %201, %217 : vector<1x256xf32>
    %219 = vector.extract_strided_slice %167 {offsets = [3, 0], sizes = [1, 256], strides = [1, 1]} : vector<4x256xf32> to vector<1x256xf32>
    %c44 = arith.constant 44 : index
    %220 = memref.load %arg1[%c44] : memref<144xf32, #tpu.memory_space<smem>>
    %221 = vector.broadcast %220 : f32 to vector<1x256xf32>
    %222 = arith.mulf %221, %219 : vector<1x256xf32>
    %223 = arith.addf %206, %222 : vector<1x256xf32>
    %c45 = arith.constant 45 : index
    %224 = memref.load %arg1[%c45] : memref<144xf32, #tpu.memory_space<smem>>
    %225 = vector.broadcast %224 : f32 to vector<1x256xf32>
    %226 = arith.mulf %225, %219 : vector<1x256xf32>
    %227 = arith.addf %210, %226 : vector<1x256xf32>
    %c46 = arith.constant 46 : index
    %228 = memref.load %arg1[%c46] : memref<144xf32, #tpu.memory_space<smem>>
    %229 = vector.broadcast %228 : f32 to vector<1x256xf32>
    %230 = arith.mulf %229, %219 : vector<1x256xf32>
    %231 = arith.addf %214, %230 : vector<1x256xf32>
    %c47 = arith.constant 47 : index
    %232 = memref.load %arg1[%c47] : memref<144xf32, #tpu.memory_space<smem>>
    %233 = vector.broadcast %232 : f32 to vector<1x256xf32>
    %234 = arith.mulf %233, %219 : vector<1x256xf32>
    %235 = arith.addf %218, %234 : vector<1x256xf32>
    %c0_23 = arith.constant 0 : index
    %c127 = arith.constant 127 : index
    %236 = vector.load %arg8[%c0_23, %c127] : memref<4x512xf32, #tpu.memory_space<vmem>>, vector<4x256xf32>
    %237 = vector.broadcast %7 : vector<1x256xf32> to vector<4x256xf32>
    %238 = arith.mulf %236, %237 : vector<4x256xf32>
    %239 = vector.extract_strided_slice %238 {offsets = [0, 0], sizes = [1, 256], strides = [1, 1]} : vector<4x256xf32> to vector<1x256xf32>
    %c48 = arith.constant 48 : index
    %240 = memref.load %arg1[%c48] : memref<144xf32, #tpu.memory_space<smem>>
    %241 = vector.broadcast %240 : f32 to vector<1x256xf32>
    %242 = arith.mulf %241, %239 : vector<1x256xf32>
    %243 = arith.addf %223, %242 : vector<1x256xf32>
    %c49 = arith.constant 49 : index
    %244 = memref.load %arg1[%c49] : memref<144xf32, #tpu.memory_space<smem>>
    %245 = vector.broadcast %244 : f32 to vector<1x256xf32>
    %246 = arith.mulf %245, %239 : vector<1x256xf32>
    %247 = arith.addf %227, %246 : vector<1x256xf32>
    %c50 = arith.constant 50 : index
    %248 = memref.load %arg1[%c50] : memref<144xf32, #tpu.memory_space<smem>>
    %249 = vector.broadcast %248 : f32 to vector<1x256xf32>
    %250 = arith.mulf %249, %239 : vector<1x256xf32>
    %251 = arith.addf %231, %250 : vector<1x256xf32>
    %c51 = arith.constant 51 : index
    %252 = memref.load %arg1[%c51] : memref<144xf32, #tpu.memory_space<smem>>
    %253 = vector.broadcast %252 : f32 to vector<1x256xf32>
    %254 = arith.mulf %253, %239 : vector<1x256xf32>
    %255 = arith.addf %235, %254 : vector<1x256xf32>
    %256 = vector.extract_strided_slice %238 {offsets = [1, 0], sizes = [1, 256], strides = [1, 1]} : vector<4x256xf32> to vector<1x256xf32>
    %c52 = arith.constant 52 : index
    %257 = memref.load %arg1[%c52] : memref<144xf32, #tpu.memory_space<smem>>
    %258 = vector.broadcast %257 : f32 to vector<1x256xf32>
    %259 = arith.mulf %258, %256 : vector<1x256xf32>
    %260 = arith.addf %243, %259 : vector<1x256xf32>
    %c53 = arith.constant 53 : index
    %261 = memref.load %arg1[%c53] : memref<144xf32, #tpu.memory_space<smem>>
    %262 = vector.broadcast %261 : f32 to vector<1x256xf32>
    %263 = arith.mulf %262, %256 : vector<1x256xf32>
    %264 = arith.addf %247, %263 : vector<1x256xf32>
    %c54 = arith.constant 54 : index
    %265 = memref.load %arg1[%c54] : memref<144xf32, #tpu.memory_space<smem>>
    %266 = vector.broadcast %265 : f32 to vector<1x256xf32>
    %267 = arith.mulf %266, %256 : vector<1x256xf32>
    %268 = arith.addf %251, %267 : vector<1x256xf32>
    %c55 = arith.constant 55 : index
    %269 = memref.load %arg1[%c55] : memref<144xf32, #tpu.memory_space<smem>>
    %270 = vector.broadcast %269 : f32 to vector<1x256xf32>
    %271 = arith.mulf %270, %256 : vector<1x256xf32>
    %272 = arith.addf %255, %271 : vector<1x256xf32>
    %273 = vector.extract_strided_slice %238 {offsets = [2, 0], sizes = [1, 256], strides = [1, 1]} : vector<4x256xf32> to vector<1x256xf32>
    %c56 = arith.constant 56 : index
    %274 = memref.load %arg1[%c56] : memref<144xf32, #tpu.memory_space<smem>>
    %275 = vector.broadcast %274 : f32 to vector<1x256xf32>
    %276 = arith.mulf %275, %273 : vector<1x256xf32>
    %277 = arith.addf %260, %276 : vector<1x256xf32>
    %c57 = arith.constant 57 : index
    %278 = memref.load %arg1[%c57] : memref<144xf32, #tpu.memory_space<smem>>
    %279 = vector.broadcast %278 : f32 to vector<1x256xf32>
    %280 = arith.mulf %279, %273 : vector<1x256xf32>
    %281 = arith.addf %264, %280 : vector<1x256xf32>
    %c58 = arith.constant 58 : index
    %282 = memref.load %arg1[%c58] : memref<144xf32, #tpu.memory_space<smem>>
    %283 = vector.broadcast %282 : f32 to vector<1x256xf32>
    %284 = arith.mulf %283, %273 : vector<1x256xf32>
    %285 = arith.addf %268, %284 : vector<1x256xf32>
    %c59 = arith.constant 59 : index
    %286 = memref.load %arg1[%c59] : memref<144xf32, #tpu.memory_space<smem>>
    %287 = vector.broadcast %286 : f32 to vector<1x256xf32>
    %288 = arith.mulf %287, %273 : vector<1x256xf32>
    %289 = arith.addf %272, %288 : vector<1x256xf32>
    %290 = vector.extract_strided_slice %238 {offsets = [3, 0], sizes = [1, 256], strides = [1, 1]} : vector<4x256xf32> to vector<1x256xf32>
    %c60 = arith.constant 60 : index
    %291 = memref.load %arg1[%c60] : memref<144xf32, #tpu.memory_space<smem>>
    %292 = vector.broadcast %291 : f32 to vector<1x256xf32>
    %293 = arith.mulf %292, %290 : vector<1x256xf32>
    %294 = arith.addf %277, %293 : vector<1x256xf32>
    %c61 = arith.constant 61 : index
    %295 = memref.load %arg1[%c61] : memref<144xf32, #tpu.memory_space<smem>>
    %296 = vector.broadcast %295 : f32 to vector<1x256xf32>
    %297 = arith.mulf %296, %290 : vector<1x256xf32>
    %298 = arith.addf %281, %297 : vector<1x256xf32>
    %c62 = arith.constant 62 : index
    %299 = memref.load %arg1[%c62] : memref<144xf32, #tpu.memory_space<smem>>
    %300 = vector.broadcast %299 : f32 to vector<1x256xf32>
    %301 = arith.mulf %300, %290 : vector<1x256xf32>
    %302 = arith.addf %285, %301 : vector<1x256xf32>
    %c63 = arith.constant 63 : index
    %303 = memref.load %arg1[%c63] : memref<144xf32, #tpu.memory_space<smem>>
    %304 = vector.broadcast %303 : f32 to vector<1x256xf32>
    %305 = arith.mulf %304, %290 : vector<1x256xf32>
    %306 = arith.addf %289, %305 : vector<1x256xf32>
    %c0_24 = arith.constant 0 : index
    %c128_25 = arith.constant 128 : index
    %307 = vector.load %arg8[%c0_24, %c128_25] : memref<4x512xf32, #tpu.memory_space<vmem>>, vector<4x256xf32>
    %308 = vector.extract_strided_slice %307 {offsets = [0, 0], sizes = [1, 256], strides = [1, 1]} : vector<4x256xf32> to vector<1x256xf32>
    %c64 = arith.constant 64 : index
    %309 = memref.load %arg1[%c64] : memref<144xf32, #tpu.memory_space<smem>>
    %310 = vector.broadcast %309 : f32 to vector<1x256xf32>
    %311 = arith.mulf %310, %308 : vector<1x256xf32>
    %312 = arith.addf %294, %311 : vector<1x256xf32>
    %c65 = arith.constant 65 : index
    %313 = memref.load %arg1[%c65] : memref<144xf32, #tpu.memory_space<smem>>
    %314 = vector.broadcast %313 : f32 to vector<1x256xf32>
    %315 = arith.mulf %314, %308 : vector<1x256xf32>
    %316 = arith.addf %298, %315 : vector<1x256xf32>
    %c66 = arith.constant 66 : index
    %317 = memref.load %arg1[%c66] : memref<144xf32, #tpu.memory_space<smem>>
    %318 = vector.broadcast %317 : f32 to vector<1x256xf32>
    %319 = arith.mulf %318, %308 : vector<1x256xf32>
    %320 = arith.addf %302, %319 : vector<1x256xf32>
    %c67 = arith.constant 67 : index
    %321 = memref.load %arg1[%c67] : memref<144xf32, #tpu.memory_space<smem>>
    %322 = vector.broadcast %321 : f32 to vector<1x256xf32>
    %323 = arith.mulf %322, %308 : vector<1x256xf32>
    %324 = arith.addf %306, %323 : vector<1x256xf32>
    %325 = vector.extract_strided_slice %307 {offsets = [1, 0], sizes = [1, 256], strides = [1, 1]} : vector<4x256xf32> to vector<1x256xf32>
    %c68 = arith.constant 68 : index
    %326 = memref.load %arg1[%c68] : memref<144xf32, #tpu.memory_space<smem>>
    %327 = vector.broadcast %326 : f32 to vector<1x256xf32>
    %328 = arith.mulf %327, %325 : vector<1x256xf32>
    %329 = arith.addf %312, %328 : vector<1x256xf32>
    %c69 = arith.constant 69 : index
    %330 = memref.load %arg1[%c69] : memref<144xf32, #tpu.memory_space<smem>>
    %331 = vector.broadcast %330 : f32 to vector<1x256xf32>
    %332 = arith.mulf %331, %325 : vector<1x256xf32>
    %333 = arith.addf %316, %332 : vector<1x256xf32>
    %c70 = arith.constant 70 : index
    %334 = memref.load %arg1[%c70] : memref<144xf32, #tpu.memory_space<smem>>
    %335 = vector.broadcast %334 : f32 to vector<1x256xf32>
    %336 = arith.mulf %335, %325 : vector<1x256xf32>
    %337 = arith.addf %320, %336 : vector<1x256xf32>
    %c71 = arith.constant 71 : index
    %338 = memref.load %arg1[%c71] : memref<144xf32, #tpu.memory_space<smem>>
    %339 = vector.broadcast %338 : f32 to vector<1x256xf32>
    %340 = arith.mulf %339, %325 : vector<1x256xf32>
    %341 = arith.addf %324, %340 : vector<1x256xf32>
    %342 = vector.extract_strided_slice %307 {offsets = [2, 0], sizes = [1, 256], strides = [1, 1]} : vector<4x256xf32> to vector<1x256xf32>
    %c72 = arith.constant 72 : index
    %343 = memref.load %arg1[%c72] : memref<144xf32, #tpu.memory_space<smem>>
    %344 = vector.broadcast %343 : f32 to vector<1x256xf32>
    %345 = arith.mulf %344, %342 : vector<1x256xf32>
    %346 = arith.addf %329, %345 : vector<1x256xf32>
    %c73 = arith.constant 73 : index
    %347 = memref.load %arg1[%c73] : memref<144xf32, #tpu.memory_space<smem>>
    %348 = vector.broadcast %347 : f32 to vector<1x256xf32>
    %349 = arith.mulf %348, %342 : vector<1x256xf32>
    %350 = arith.addf %333, %349 : vector<1x256xf32>
    %c74 = arith.constant 74 : index
    %351 = memref.load %arg1[%c74] : memref<144xf32, #tpu.memory_space<smem>>
    %352 = vector.broadcast %351 : f32 to vector<1x256xf32>
    %353 = arith.mulf %352, %342 : vector<1x256xf32>
    %354 = arith.addf %337, %353 : vector<1x256xf32>
    %c75 = arith.constant 75 : index
    %355 = memref.load %arg1[%c75] : memref<144xf32, #tpu.memory_space<smem>>
    %356 = vector.broadcast %355 : f32 to vector<1x256xf32>
    %357 = arith.mulf %356, %342 : vector<1x256xf32>
    %358 = arith.addf %341, %357 : vector<1x256xf32>
    %359 = vector.extract_strided_slice %307 {offsets = [3, 0], sizes = [1, 256], strides = [1, 1]} : vector<4x256xf32> to vector<1x256xf32>
    %c76 = arith.constant 76 : index
    %360 = memref.load %arg1[%c76] : memref<144xf32, #tpu.memory_space<smem>>
    %361 = vector.broadcast %360 : f32 to vector<1x256xf32>
    %362 = arith.mulf %361, %359 : vector<1x256xf32>
    %363 = arith.addf %346, %362 : vector<1x256xf32>
    %c77 = arith.constant 77 : index
    %364 = memref.load %arg1[%c77] : memref<144xf32, #tpu.memory_space<smem>>
    %365 = vector.broadcast %364 : f32 to vector<1x256xf32>
    %366 = arith.mulf %365, %359 : vector<1x256xf32>
    %367 = arith.addf %350, %366 : vector<1x256xf32>
    %c78 = arith.constant 78 : index
    %368 = memref.load %arg1[%c78] : memref<144xf32, #tpu.memory_space<smem>>
    %369 = vector.broadcast %368 : f32 to vector<1x256xf32>
    %370 = arith.mulf %369, %359 : vector<1x256xf32>
    %371 = arith.addf %354, %370 : vector<1x256xf32>
    %c79 = arith.constant 79 : index
    %372 = memref.load %arg1[%c79] : memref<144xf32, #tpu.memory_space<smem>>
    %373 = vector.broadcast %372 : f32 to vector<1x256xf32>
    %374 = arith.mulf %373, %359 : vector<1x256xf32>
    %375 = arith.addf %358, %374 : vector<1x256xf32>
    %c0_26 = arith.constant 0 : index
    %c129 = arith.constant 129 : index
    %376 = vector.load %arg8[%c0_26, %c129] : memref<4x512xf32, #tpu.memory_space<vmem>>, vector<4x256xf32>
    %377 = vector.broadcast %8 : vector<1x256xf32> to vector<4x256xf32>
    %378 = arith.mulf %376, %377 : vector<4x256xf32>
    %379 = vector.extract_strided_slice %378 {offsets = [0, 0], sizes = [1, 256], strides = [1, 1]} : vector<4x256xf32> to vector<1x256xf32>
    %c80 = arith.constant 80 : index
    %380 = memref.load %arg1[%c80] : memref<144xf32, #tpu.memory_space<smem>>
    %381 = vector.broadcast %380 : f32 to vector<1x256xf32>
    %382 = arith.mulf %381, %379 : vector<1x256xf32>
    %383 = arith.addf %363, %382 : vector<1x256xf32>
    %c81 = arith.constant 81 : index
    %384 = memref.load %arg1[%c81] : memref<144xf32, #tpu.memory_space<smem>>
    %385 = vector.broadcast %384 : f32 to vector<1x256xf32>
    %386 = arith.mulf %385, %379 : vector<1x256xf32>
    %387 = arith.addf %367, %386 : vector<1x256xf32>
    %c82 = arith.constant 82 : index
    %388 = memref.load %arg1[%c82] : memref<144xf32, #tpu.memory_space<smem>>
    %389 = vector.broadcast %388 : f32 to vector<1x256xf32>
    %390 = arith.mulf %389, %379 : vector<1x256xf32>
    %391 = arith.addf %371, %390 : vector<1x256xf32>
    %c83 = arith.constant 83 : index
    %392 = memref.load %arg1[%c83] : memref<144xf32, #tpu.memory_space<smem>>
    %393 = vector.broadcast %392 : f32 to vector<1x256xf32>
    %394 = arith.mulf %393, %379 : vector<1x256xf32>
    %395 = arith.addf %375, %394 : vector<1x256xf32>
    %396 = vector.extract_strided_slice %378 {offsets = [1, 0], sizes = [1, 256], strides = [1, 1]} : vector<4x256xf32> to vector<1x256xf32>
    %c84 = arith.constant 84 : index
    %397 = memref.load %arg1[%c84] : memref<144xf32, #tpu.memory_space<smem>>
    %398 = vector.broadcast %397 : f32 to vector<1x256xf32>
    %399 = arith.mulf %398, %396 : vector<1x256xf32>
    %400 = arith.addf %383, %399 : vector<1x256xf32>
    %c85 = arith.constant 85 : index
    %401 = memref.load %arg1[%c85] : memref<144xf32, #tpu.memory_space<smem>>
    %402 = vector.broadcast %401 : f32 to vector<1x256xf32>
    %403 = arith.mulf %402, %396 : vector<1x256xf32>
    %404 = arith.addf %387, %403 : vector<1x256xf32>
    %c86 = arith.constant 86 : index
    %405 = memref.load %arg1[%c86] : memref<144xf32, #tpu.memory_space<smem>>
    %406 = vector.broadcast %405 : f32 to vector<1x256xf32>
    %407 = arith.mulf %406, %396 : vector<1x256xf32>
    %408 = arith.addf %391, %407 : vector<1x256xf32>
    %c87 = arith.constant 87 : index
    %409 = memref.load %arg1[%c87] : memref<144xf32, #tpu.memory_space<smem>>
    %410 = vector.broadcast %409 : f32 to vector<1x256xf32>
    %411 = arith.mulf %410, %396 : vector<1x256xf32>
    %412 = arith.addf %395, %411 : vector<1x256xf32>
    %413 = vector.extract_strided_slice %378 {offsets = [2, 0], sizes = [1, 256], strides = [1, 1]} : vector<4x256xf32> to vector<1x256xf32>
    %c88 = arith.constant 88 : index
    %414 = memref.load %arg1[%c88] : memref<144xf32, #tpu.memory_space<smem>>
    %415 = vector.broadcast %414 : f32 to vector<1x256xf32>
    %416 = arith.mulf %415, %413 : vector<1x256xf32>
    %417 = arith.addf %400, %416 : vector<1x256xf32>
    %c89 = arith.constant 89 : index
    %418 = memref.load %arg1[%c89] : memref<144xf32, #tpu.memory_space<smem>>
    %419 = vector.broadcast %418 : f32 to vector<1x256xf32>
    %420 = arith.mulf %419, %413 : vector<1x256xf32>
    %421 = arith.addf %404, %420 : vector<1x256xf32>
    %c90 = arith.constant 90 : index
    %422 = memref.load %arg1[%c90] : memref<144xf32, #tpu.memory_space<smem>>
    %423 = vector.broadcast %422 : f32 to vector<1x256xf32>
    %424 = arith.mulf %423, %413 : vector<1x256xf32>
    %425 = arith.addf %408, %424 : vector<1x256xf32>
    %c91 = arith.constant 91 : index
    %426 = memref.load %arg1[%c91] : memref<144xf32, #tpu.memory_space<smem>>
    %427 = vector.broadcast %426 : f32 to vector<1x256xf32>
    %428 = arith.mulf %427, %413 : vector<1x256xf32>
    %429 = arith.addf %412, %428 : vector<1x256xf32>
    %430 = vector.extract_strided_slice %378 {offsets = [3, 0], sizes = [1, 256], strides = [1, 1]} : vector<4x256xf32> to vector<1x256xf32>
    %c92 = arith.constant 92 : index
    %431 = memref.load %arg1[%c92] : memref<144xf32, #tpu.memory_space<smem>>
    %432 = vector.broadcast %431 : f32 to vector<1x256xf32>
    %433 = arith.mulf %432, %430 : vector<1x256xf32>
    %434 = arith.addf %417, %433 : vector<1x256xf32>
    %c93 = arith.constant 93 : index
    %435 = memref.load %arg1[%c93] : memref<144xf32, #tpu.memory_space<smem>>
    %436 = vector.broadcast %435 : f32 to vector<1x256xf32>
    %437 = arith.mulf %436, %430 : vector<1x256xf32>
    %438 = arith.addf %421, %437 : vector<1x256xf32>
    %c94 = arith.constant 94 : index
    %439 = memref.load %arg1[%c94] : memref<144xf32, #tpu.memory_space<smem>>
    %440 = vector.broadcast %439 : f32 to vector<1x256xf32>
    %441 = arith.mulf %440, %430 : vector<1x256xf32>
    %442 = arith.addf %425, %441 : vector<1x256xf32>
    %c95 = arith.constant 95 : index
    %443 = memref.load %arg1[%c95] : memref<144xf32, #tpu.memory_space<smem>>
    %444 = vector.broadcast %443 : f32 to vector<1x256xf32>
    %445 = arith.mulf %444, %430 : vector<1x256xf32>
    %446 = arith.addf %429, %445 : vector<1x256xf32>
    %c0_27 = arith.constant 0 : index
    %c143 = arith.constant 143 : index
    %447 = vector.load %arg8[%c0_27, %c143] : memref<4x512xf32, #tpu.memory_space<vmem>>, vector<4x256xf32>
    %448 = vector.broadcast %7 : vector<1x256xf32> to vector<4x256xf32>
    %449 = arith.mulf %447, %448 : vector<4x256xf32>
    %450 = vector.extract_strided_slice %449 {offsets = [0, 0], sizes = [1, 256], strides = [1, 1]} : vector<4x256xf32> to vector<1x256xf32>
    %c96 = arith.constant 96 : index
    %451 = memref.load %arg1[%c96] : memref<144xf32, #tpu.memory_space<smem>>
    %452 = vector.broadcast %451 : f32 to vector<1x256xf32>
    %453 = arith.mulf %452, %450 : vector<1x256xf32>
    %454 = arith.addf %434, %453 : vector<1x256xf32>
    %c97 = arith.constant 97 : index
    %455 = memref.load %arg1[%c97] : memref<144xf32, #tpu.memory_space<smem>>
    %456 = vector.broadcast %455 : f32 to vector<1x256xf32>
    %457 = arith.mulf %456, %450 : vector<1x256xf32>
    %458 = arith.addf %438, %457 : vector<1x256xf32>
    %c98 = arith.constant 98 : index
    %459 = memref.load %arg1[%c98] : memref<144xf32, #tpu.memory_space<smem>>
    %460 = vector.broadcast %459 : f32 to vector<1x256xf32>
    %461 = arith.mulf %460, %450 : vector<1x256xf32>
    %462 = arith.addf %442, %461 : vector<1x256xf32>
    %c99 = arith.constant 99 : index
    %463 = memref.load %arg1[%c99] : memref<144xf32, #tpu.memory_space<smem>>
    %464 = vector.broadcast %463 : f32 to vector<1x256xf32>
    %465 = arith.mulf %464, %450 : vector<1x256xf32>
    %466 = arith.addf %446, %465 : vector<1x256xf32>
    %467 = vector.extract_strided_slice %449 {offsets = [1, 0], sizes = [1, 256], strides = [1, 1]} : vector<4x256xf32> to vector<1x256xf32>
    %c100 = arith.constant 100 : index
    %468 = memref.load %arg1[%c100] : memref<144xf32, #tpu.memory_space<smem>>
    %469 = vector.broadcast %468 : f32 to vector<1x256xf32>
    %470 = arith.mulf %469, %467 : vector<1x256xf32>
    %471 = arith.addf %454, %470 : vector<1x256xf32>
    %c101 = arith.constant 101 : index
    %472 = memref.load %arg1[%c101] : memref<144xf32, #tpu.memory_space<smem>>
    %473 = vector.broadcast %472 : f32 to vector<1x256xf32>
    %474 = arith.mulf %473, %467 : vector<1x256xf32>
    %475 = arith.addf %458, %474 : vector<1x256xf32>
    %c102 = arith.constant 102 : index
    %476 = memref.load %arg1[%c102] : memref<144xf32, #tpu.memory_space<smem>>
    %477 = vector.broadcast %476 : f32 to vector<1x256xf32>
    %478 = arith.mulf %477, %467 : vector<1x256xf32>
    %479 = arith.addf %462, %478 : vector<1x256xf32>
    %c103 = arith.constant 103 : index
    %480 = memref.load %arg1[%c103] : memref<144xf32, #tpu.memory_space<smem>>
    %481 = vector.broadcast %480 : f32 to vector<1x256xf32>
    %482 = arith.mulf %481, %467 : vector<1x256xf32>
    %483 = arith.addf %466, %482 : vector<1x256xf32>
    %484 = vector.extract_strided_slice %449 {offsets = [2, 0], sizes = [1, 256], strides = [1, 1]} : vector<4x256xf32> to vector<1x256xf32>
    %c104 = arith.constant 104 : index
    %485 = memref.load %arg1[%c104] : memref<144xf32, #tpu.memory_space<smem>>
    %486 = vector.broadcast %485 : f32 to vector<1x256xf32>
    %487 = arith.mulf %486, %484 : vector<1x256xf32>
    %488 = arith.addf %471, %487 : vector<1x256xf32>
    %c105 = arith.constant 105 : index
    %489 = memref.load %arg1[%c105] : memref<144xf32, #tpu.memory_space<smem>>
    %490 = vector.broadcast %489 : f32 to vector<1x256xf32>
    %491 = arith.mulf %490, %484 : vector<1x256xf32>
    %492 = arith.addf %475, %491 : vector<1x256xf32>
    %c106 = arith.constant 106 : index
    %493 = memref.load %arg1[%c106] : memref<144xf32, #tpu.memory_space<smem>>
    %494 = vector.broadcast %493 : f32 to vector<1x256xf32>
    %495 = arith.mulf %494, %484 : vector<1x256xf32>
    %496 = arith.addf %479, %495 : vector<1x256xf32>
    %c107 = arith.constant 107 : index
    %497 = memref.load %arg1[%c107] : memref<144xf32, #tpu.memory_space<smem>>
    %498 = vector.broadcast %497 : f32 to vector<1x256xf32>
    %499 = arith.mulf %498, %484 : vector<1x256xf32>
    %500 = arith.addf %483, %499 : vector<1x256xf32>
    %501 = vector.extract_strided_slice %449 {offsets = [3, 0], sizes = [1, 256], strides = [1, 1]} : vector<4x256xf32> to vector<1x256xf32>
    %c108 = arith.constant 108 : index
    %502 = memref.load %arg1[%c108] : memref<144xf32, #tpu.memory_space<smem>>
    %503 = vector.broadcast %502 : f32 to vector<1x256xf32>
    %504 = arith.mulf %503, %501 : vector<1x256xf32>
    %505 = arith.addf %488, %504 : vector<1x256xf32>
    %c109 = arith.constant 109 : index
    %506 = memref.load %arg1[%c109] : memref<144xf32, #tpu.memory_space<smem>>
    %507 = vector.broadcast %506 : f32 to vector<1x256xf32>
    %508 = arith.mulf %507, %501 : vector<1x256xf32>
    %509 = arith.addf %492, %508 : vector<1x256xf32>
    %c110 = arith.constant 110 : index
    %510 = memref.load %arg1[%c110] : memref<144xf32, #tpu.memory_space<smem>>
    %511 = vector.broadcast %510 : f32 to vector<1x256xf32>
    %512 = arith.mulf %511, %501 : vector<1x256xf32>
    %513 = arith.addf %496, %512 : vector<1x256xf32>
    %c111_28 = arith.constant 111 : index
    %514 = memref.load %arg1[%c111_28] : memref<144xf32, #tpu.memory_space<smem>>
    %515 = vector.broadcast %514 : f32 to vector<1x256xf32>
    %516 = arith.mulf %515, %501 : vector<1x256xf32>
    %517 = arith.addf %500, %516 : vector<1x256xf32>
    %c0_29 = arith.constant 0 : index
    %c144 = arith.constant 144 : index
    %518 = vector.load %arg8[%c0_29, %c144] : memref<4x512xf32, #tpu.memory_space<vmem>>, vector<4x256xf32>
    %519 = vector.extract_strided_slice %518 {offsets = [0, 0], sizes = [1, 256], strides = [1, 1]} : vector<4x256xf32> to vector<1x256xf32>
    %c112_30 = arith.constant 112 : index
    %520 = memref.load %arg1[%c112_30] : memref<144xf32, #tpu.memory_space<smem>>
    %521 = vector.broadcast %520 : f32 to vector<1x256xf32>
    %522 = arith.mulf %521, %519 : vector<1x256xf32>
    %523 = arith.addf %505, %522 : vector<1x256xf32>
    %c113_31 = arith.constant 113 : index
    %524 = memref.load %arg1[%c113_31] : memref<144xf32, #tpu.memory_space<smem>>
    %525 = vector.broadcast %524 : f32 to vector<1x256xf32>
    %526 = arith.mulf %525, %519 : vector<1x256xf32>
    %527 = arith.addf %509, %526 : vector<1x256xf32>
    %c114 = arith.constant 114 : index
    %528 = memref.load %arg1[%c114] : memref<144xf32, #tpu.memory_space<smem>>
    %529 = vector.broadcast %528 : f32 to vector<1x256xf32>
    %530 = arith.mulf %529, %519 : vector<1x256xf32>
    %531 = arith.addf %513, %530 : vector<1x256xf32>
    %c115 = arith.constant 115 : index
    %532 = memref.load %arg1[%c115] : memref<144xf32, #tpu.memory_space<smem>>
    %533 = vector.broadcast %532 : f32 to vector<1x256xf32>
    %534 = arith.mulf %533, %519 : vector<1x256xf32>
    %535 = arith.addf %517, %534 : vector<1x256xf32>
    %536 = vector.extract_strided_slice %518 {offsets = [1, 0], sizes = [1, 256], strides = [1, 1]} : vector<4x256xf32> to vector<1x256xf32>
    %c116 = arith.constant 116 : index
    %537 = memref.load %arg1[%c116] : memref<144xf32, #tpu.memory_space<smem>>
    %538 = vector.broadcast %537 : f32 to vector<1x256xf32>
    %539 = arith.mulf %538, %536 : vector<1x256xf32>
    %540 = arith.addf %523, %539 : vector<1x256xf32>
    %c117 = arith.constant 117 : index
    %541 = memref.load %arg1[%c117] : memref<144xf32, #tpu.memory_space<smem>>
    %542 = vector.broadcast %541 : f32 to vector<1x256xf32>
    %543 = arith.mulf %542, %536 : vector<1x256xf32>
    %544 = arith.addf %527, %543 : vector<1x256xf32>
    %c118 = arith.constant 118 : index
    %545 = memref.load %arg1[%c118] : memref<144xf32, #tpu.memory_space<smem>>
    %546 = vector.broadcast %545 : f32 to vector<1x256xf32>
    %547 = arith.mulf %546, %536 : vector<1x256xf32>
    %548 = arith.addf %531, %547 : vector<1x256xf32>
    %c119 = arith.constant 119 : index
    %549 = memref.load %arg1[%c119] : memref<144xf32, #tpu.memory_space<smem>>
    %550 = vector.broadcast %549 : f32 to vector<1x256xf32>
    %551 = arith.mulf %550, %536 : vector<1x256xf32>
    %552 = arith.addf %535, %551 : vector<1x256xf32>
    %553 = vector.extract_strided_slice %518 {offsets = [2, 0], sizes = [1, 256], strides = [1, 1]} : vector<4x256xf32> to vector<1x256xf32>
    %c120 = arith.constant 120 : index
    %554 = memref.load %arg1[%c120] : memref<144xf32, #tpu.memory_space<smem>>
    %555 = vector.broadcast %554 : f32 to vector<1x256xf32>
    %556 = arith.mulf %555, %553 : vector<1x256xf32>
    %557 = arith.addf %540, %556 : vector<1x256xf32>
    %c121 = arith.constant 121 : index
    %558 = memref.load %arg1[%c121] : memref<144xf32, #tpu.memory_space<smem>>
    %559 = vector.broadcast %558 : f32 to vector<1x256xf32>
    %560 = arith.mulf %559, %553 : vector<1x256xf32>
    %561 = arith.addf %544, %560 : vector<1x256xf32>
    %c122 = arith.constant 122 : index
    %562 = memref.load %arg1[%c122] : memref<144xf32, #tpu.memory_space<smem>>
    %563 = vector.broadcast %562 : f32 to vector<1x256xf32>
    %564 = arith.mulf %563, %553 : vector<1x256xf32>
    %565 = arith.addf %548, %564 : vector<1x256xf32>
    %c123 = arith.constant 123 : index
    %566 = memref.load %arg1[%c123] : memref<144xf32, #tpu.memory_space<smem>>
    %567 = vector.broadcast %566 : f32 to vector<1x256xf32>
    %568 = arith.mulf %567, %553 : vector<1x256xf32>
    %569 = arith.addf %552, %568 : vector<1x256xf32>
    %570 = vector.extract_strided_slice %518 {offsets = [3, 0], sizes = [1, 256], strides = [1, 1]} : vector<4x256xf32> to vector<1x256xf32>
    %c124 = arith.constant 124 : index
    %571 = memref.load %arg1[%c124] : memref<144xf32, #tpu.memory_space<smem>>
    %572 = vector.broadcast %571 : f32 to vector<1x256xf32>
    %573 = arith.mulf %572, %570 : vector<1x256xf32>
    %574 = arith.addf %557, %573 : vector<1x256xf32>
    %c125 = arith.constant 125 : index
    %575 = memref.load %arg1[%c125] : memref<144xf32, #tpu.memory_space<smem>>
    %576 = vector.broadcast %575 : f32 to vector<1x256xf32>
    %577 = arith.mulf %576, %570 : vector<1x256xf32>
    %578 = arith.addf %561, %577 : vector<1x256xf32>
    %c126 = arith.constant 126 : index
    %579 = memref.load %arg1[%c126] : memref<144xf32, #tpu.memory_space<smem>>
    %580 = vector.broadcast %579 : f32 to vector<1x256xf32>
    %581 = arith.mulf %580, %570 : vector<1x256xf32>
    %582 = arith.addf %565, %581 : vector<1x256xf32>
    %c127_32 = arith.constant 127 : index
    %583 = memref.load %arg1[%c127_32] : memref<144xf32, #tpu.memory_space<smem>>
    %584 = vector.broadcast %583 : f32 to vector<1x256xf32>
    %585 = arith.mulf %584, %570 : vector<1x256xf32>
    %586 = arith.addf %569, %585 : vector<1x256xf32>
    %c0_33 = arith.constant 0 : index
    %c145 = arith.constant 145 : index
    %587 = vector.load %arg8[%c0_33, %c145] : memref<4x512xf32, #tpu.memory_space<vmem>>, vector<4x256xf32>
    %588 = vector.broadcast %8 : vector<1x256xf32> to vector<4x256xf32>
    %589 = arith.mulf %587, %588 : vector<4x256xf32>
    %590 = vector.extract_strided_slice %589 {offsets = [0, 0], sizes = [1, 256], strides = [1, 1]} : vector<4x256xf32> to vector<1x256xf32>
    %c128_34 = arith.constant 128 : index
    %591 = memref.load %arg1[%c128_34] : memref<144xf32, #tpu.memory_space<smem>>
    %592 = vector.broadcast %591 : f32 to vector<1x256xf32>
    %593 = arith.mulf %592, %590 : vector<1x256xf32>
    %594 = arith.addf %574, %593 : vector<1x256xf32>
    %c129_35 = arith.constant 129 : index
    %595 = memref.load %arg1[%c129_35] : memref<144xf32, #tpu.memory_space<smem>>
    %596 = vector.broadcast %595 : f32 to vector<1x256xf32>
    %597 = arith.mulf %596, %590 : vector<1x256xf32>
    %598 = arith.addf %578, %597 : vector<1x256xf32>
    %c130 = arith.constant 130 : index
    %599 = memref.load %arg1[%c130] : memref<144xf32, #tpu.memory_space<smem>>
    %600 = vector.broadcast %599 : f32 to vector<1x256xf32>
    %601 = arith.mulf %600, %590 : vector<1x256xf32>
    %602 = arith.addf %582, %601 : vector<1x256xf32>
    %c131 = arith.constant 131 : index
    %603 = memref.load %arg1[%c131] : memref<144xf32, #tpu.memory_space<smem>>
    %604 = vector.broadcast %603 : f32 to vector<1x256xf32>
    %605 = arith.mulf %604, %590 : vector<1x256xf32>
    %606 = arith.addf %586, %605 : vector<1x256xf32>
    %607 = vector.extract_strided_slice %589 {offsets = [1, 0], sizes = [1, 256], strides = [1, 1]} : vector<4x256xf32> to vector<1x256xf32>
    %c132 = arith.constant 132 : index
    %608 = memref.load %arg1[%c132] : memref<144xf32, #tpu.memory_space<smem>>
    %609 = vector.broadcast %608 : f32 to vector<1x256xf32>
    %610 = arith.mulf %609, %607 : vector<1x256xf32>
    %611 = arith.addf %594, %610 : vector<1x256xf32>
    %c133 = arith.constant 133 : index
    %612 = memref.load %arg1[%c133] : memref<144xf32, #tpu.memory_space<smem>>
    %613 = vector.broadcast %612 : f32 to vector<1x256xf32>
    %614 = arith.mulf %613, %607 : vector<1x256xf32>
    %615 = arith.addf %598, %614 : vector<1x256xf32>
    %c134 = arith.constant 134 : index
    %616 = memref.load %arg1[%c134] : memref<144xf32, #tpu.memory_space<smem>>
    %617 = vector.broadcast %616 : f32 to vector<1x256xf32>
    %618 = arith.mulf %617, %607 : vector<1x256xf32>
    %619 = arith.addf %602, %618 : vector<1x256xf32>
    %c135 = arith.constant 135 : index
    %620 = memref.load %arg1[%c135] : memref<144xf32, #tpu.memory_space<smem>>
    %621 = vector.broadcast %620 : f32 to vector<1x256xf32>
    %622 = arith.mulf %621, %607 : vector<1x256xf32>
    %623 = arith.addf %606, %622 : vector<1x256xf32>
    %624 = vector.extract_strided_slice %589 {offsets = [2, 0], sizes = [1, 256], strides = [1, 1]} : vector<4x256xf32> to vector<1x256xf32>
    %c136 = arith.constant 136 : index
    %625 = memref.load %arg1[%c136] : memref<144xf32, #tpu.memory_space<smem>>
    %626 = vector.broadcast %625 : f32 to vector<1x256xf32>
    %627 = arith.mulf %626, %624 : vector<1x256xf32>
    %628 = arith.addf %611, %627 : vector<1x256xf32>
    %c137 = arith.constant 137 : index
    %629 = memref.load %arg1[%c137] : memref<144xf32, #tpu.memory_space<smem>>
    %630 = vector.broadcast %629 : f32 to vector<1x256xf32>
    %631 = arith.mulf %630, %624 : vector<1x256xf32>
    %632 = arith.addf %615, %631 : vector<1x256xf32>
    %c138 = arith.constant 138 : index
    %633 = memref.load %arg1[%c138] : memref<144xf32, #tpu.memory_space<smem>>
    %634 = vector.broadcast %633 : f32 to vector<1x256xf32>
    %635 = arith.mulf %634, %624 : vector<1x256xf32>
    %636 = arith.addf %619, %635 : vector<1x256xf32>
    %c139 = arith.constant 139 : index
    %637 = memref.load %arg1[%c139] : memref<144xf32, #tpu.memory_space<smem>>
    %638 = vector.broadcast %637 : f32 to vector<1x256xf32>
    %639 = arith.mulf %638, %624 : vector<1x256xf32>
    %640 = arith.addf %623, %639 : vector<1x256xf32>
    %641 = vector.extract_strided_slice %589 {offsets = [3, 0], sizes = [1, 256], strides = [1, 1]} : vector<4x256xf32> to vector<1x256xf32>
    %c140 = arith.constant 140 : index
    %642 = memref.load %arg1[%c140] : memref<144xf32, #tpu.memory_space<smem>>
    %643 = vector.broadcast %642 : f32 to vector<1x256xf32>
    %644 = arith.mulf %643, %641 : vector<1x256xf32>
    %645 = arith.addf %628, %644 : vector<1x256xf32>
    %c141 = arith.constant 141 : index
    %646 = memref.load %arg1[%c141] : memref<144xf32, #tpu.memory_space<smem>>
    %647 = vector.broadcast %646 : f32 to vector<1x256xf32>
    %648 = arith.mulf %647, %641 : vector<1x256xf32>
    %649 = arith.addf %632, %648 : vector<1x256xf32>
    %c142 = arith.constant 142 : index
    %650 = memref.load %arg1[%c142] : memref<144xf32, #tpu.memory_space<smem>>
    %651 = vector.broadcast %650 : f32 to vector<1x256xf32>
    %652 = arith.mulf %651, %641 : vector<1x256xf32>
    %653 = arith.addf %636, %652 : vector<1x256xf32>
    %c143_36 = arith.constant 143 : index
    %654 = memref.load %arg1[%c143_36] : memref<144xf32, #tpu.memory_space<smem>>
    %655 = vector.broadcast %654 : f32 to vector<1x256xf32>
    %656 = arith.mulf %655, %641 : vector<1x256xf32>
    %657 = arith.addf %640, %656 : vector<1x256xf32>
    %cst_37 = arith.constant 0.000000e+00 : f32
    %658 = vector.broadcast %cst_37 : f32 to vector<1x256xf32>
    %659 = arith.maximumf %645, %658 : vector<1x256xf32>
    %c0_38 = arith.constant 0 : index
    %c128_39 = arith.constant 128 : index
    %660 = vector.load %arg8[%c0_38, %c128_39] : memref<4x512xf32, #tpu.memory_space<vmem>>, vector<1x256xf32>
    tpu.vector_store %arg8[%c0_38, %c128_39], %659 {strides = array<i32>} : memref<4x512xf32, #tpu.memory_space<vmem>>, vector<1x256xf32>,
    %cst_40 = arith.constant 0.000000e+00 : f32
    %661 = vector.broadcast %cst_40 : f32 to vector<1x256xf32>
    %662 = arith.maximumf %649, %661 : vector<1x256xf32>
    %c1_41 = arith.constant 1 : index
    %c128_42 = arith.constant 128 : index
    %663 = vector.load %arg8[%c1_41, %c128_42] : memref<4x512xf32, #tpu.memory_space<vmem>>, vector<1x256xf32>
    tpu.vector_store %arg8[%c1_41, %c128_42], %662 {strides = array<i32>} : memref<4x512xf32, #tpu.memory_space<vmem>>, vector<1x256xf32>,
    %cst_43 = arith.constant 0.000000e+00 : f32
    %664 = vector.broadcast %cst_43 : f32 to vector<1x256xf32>
    %665 = arith.maximumf %653, %664 : vector<1x256xf32>
    %c2_44 = arith.constant 2 : index
    %c128_45 = arith.constant 128 : index
    %666 = vector.load %arg8[%c2_44, %c128_45] : memref<4x512xf32, #tpu.memory_space<vmem>>, vector<1x256xf32>
    tpu.vector_store %arg8[%c2_44, %c128_45], %665 {strides = array<i32>} : memref<4x512xf32, #tpu.memory_space<vmem>>, vector<1x256xf32>,
    %cst_46 = arith.constant 0.000000e+00 : f32
    %667 = vector.broadcast %cst_46 : f32 to vector<1x256xf32>
    %668 = arith.maximumf %657, %667 : vector<1x256xf32>
    %c3_47 = arith.constant 3 : index
    %c128_48 = arith.constant 128 : index
    %669 = vector.load %arg8[%c3_47, %c128_48] : memref<4x512xf32, #tpu.memory_space<vmem>>, vector<1x256xf32>
    tpu.vector_store %arg8[%c3_47, %c128_48], %668 {strides = array<i32>} : memref<4x512xf32, #tpu.memory_space<vmem>>, vector<1x256xf32>,
    %cst_49 = arith.constant 0.000000e+00 : f32
    %670 = vector.broadcast %cst_49 : f32 to vector<1x256xf32>
    %c0_50 = arith.constant 0 : index
    %671 = memref.load %arg4[%c0_50] : memref<4xf32, #tpu.memory_space<smem>>
    %672 = vector.broadcast %671 : f32 to vector<1x256xf32>
    %673 = arith.addf %670, %672 : vector<1x256xf32>
    %cst_51 = arith.constant 0.000000e+00 : f32
    %674 = vector.broadcast %cst_51 : f32 to vector<1x256xf32>
    %c1_52 = arith.constant 1 : index
    %675 = memref.load %arg4[%c1_52] : memref<4xf32, #tpu.memory_space<smem>>
    %676 = vector.broadcast %675 : f32 to vector<1x256xf32>
    %677 = arith.addf %674, %676 : vector<1x256xf32>
    %cst_53 = arith.constant 0.000000e+00 : f32
    %678 = vector.broadcast %cst_53 : f32 to vector<1x256xf32>
    %c2_54 = arith.constant 2 : index
    %679 = memref.load %arg4[%c2_54] : memref<4xf32, #tpu.memory_space<smem>>
    %680 = vector.broadcast %679 : f32 to vector<1x256xf32>
    %681 = arith.addf %678, %680 : vector<1x256xf32>
    %cst_55 = arith.constant 0.000000e+00 : f32
    %682 = vector.broadcast %cst_55 : f32 to vector<1x256xf32>
    %c3_56 = arith.constant 3 : index
    %683 = memref.load %arg4[%c3_56] : memref<4xf32, #tpu.memory_space<smem>>
    %684 = vector.broadcast %683 : f32 to vector<1x256xf32>
    %685 = arith.addf %682, %684 : vector<1x256xf32>
    %c0_57 = arith.constant 0 : index
    %c111_58 = arith.constant 111 : index
    %686 = vector.load %arg8[%c0_57, %c111_58] : memref<4x512xf32, #tpu.memory_space<vmem>>, vector<4x256xf32>
    %687 = vector.broadcast %7 : vector<1x256xf32> to vector<4x256xf32>
    %688 = arith.mulf %686, %687 : vector<4x256xf32>
    %689 = vector.extract_strided_slice %688 {offsets = [0, 0], sizes = [1, 256], strides = [1, 1]} : vector<4x256xf32> to vector<1x256xf32>
    %c0_59 = arith.constant 0 : index
    %690 = memref.load %arg3[%c0_59] : memref<144xf32, #tpu.memory_space<smem>>
    %691 = vector.broadcast %690 : f32 to vector<1x256xf32>
    %692 = arith.mulf %691, %689 : vector<1x256xf32>
    %693 = arith.addf %673, %692 : vector<1x256xf32>
    %c1_60 = arith.constant 1 : index
    %694 = memref.load %arg3[%c1_60] : memref<144xf32, #tpu.memory_space<smem>>
    %695 = vector.broadcast %694 : f32 to vector<1x256xf32>
    %696 = arith.mulf %695, %689 : vector<1x256xf32>
    %697 = arith.addf %677, %696 : vector<1x256xf32>
    %c2_61 = arith.constant 2 : index
    %698 = memref.load %arg3[%c2_61] : memref<144xf32, #tpu.memory_space<smem>>
    %699 = vector.broadcast %698 : f32 to vector<1x256xf32>
    %700 = arith.mulf %699, %689 : vector<1x256xf32>
    %701 = arith.addf %681, %700 : vector<1x256xf32>
    %c3_62 = arith.constant 3 : index
    %702 = memref.load %arg3[%c3_62] : memref<144xf32, #tpu.memory_space<smem>>
    %703 = vector.broadcast %702 : f32 to vector<1x256xf32>
    %704 = arith.mulf %703, %689 : vector<1x256xf32>
    %705 = arith.addf %685, %704 : vector<1x256xf32>
    %706 = vector.extract_strided_slice %688 {offsets = [1, 0], sizes = [1, 256], strides = [1, 1]} : vector<4x256xf32> to vector<1x256xf32>
    %c4_63 = arith.constant 4 : index
    %707 = memref.load %arg3[%c4_63] : memref<144xf32, #tpu.memory_space<smem>>
    %708 = vector.broadcast %707 : f32 to vector<1x256xf32>
    %709 = arith.mulf %708, %706 : vector<1x256xf32>
    %710 = arith.addf %693, %709 : vector<1x256xf32>
    %c5_64 = arith.constant 5 : index
    %711 = memref.load %arg3[%c5_64] : memref<144xf32, #tpu.memory_space<smem>>
    %712 = vector.broadcast %711 : f32 to vector<1x256xf32>
    %713 = arith.mulf %712, %706 : vector<1x256xf32>
    %714 = arith.addf %697, %713 : vector<1x256xf32>
    %c6_65 = arith.constant 6 : index
    %715 = memref.load %arg3[%c6_65] : memref<144xf32, #tpu.memory_space<smem>>
    %716 = vector.broadcast %715 : f32 to vector<1x256xf32>
    %717 = arith.mulf %716, %706 : vector<1x256xf32>
    %718 = arith.addf %701, %717 : vector<1x256xf32>
    %c7_66 = arith.constant 7 : index
    %719 = memref.load %arg3[%c7_66] : memref<144xf32, #tpu.memory_space<smem>>
    %720 = vector.broadcast %719 : f32 to vector<1x256xf32>
    %721 = arith.mulf %720, %706 : vector<1x256xf32>
    %722 = arith.addf %705, %721 : vector<1x256xf32>
    %723 = vector.extract_strided_slice %688 {offsets = [2, 0], sizes = [1, 256], strides = [1, 1]} : vector<4x256xf32> to vector<1x256xf32>
    %c8_67 = arith.constant 8 : index
    %724 = memref.load %arg3[%c8_67] : memref<144xf32, #tpu.memory_space<smem>>
    %725 = vector.broadcast %724 : f32 to vector<1x256xf32>
    %726 = arith.mulf %725, %723 : vector<1x256xf32>
    %727 = arith.addf %710, %726 : vector<1x256xf32>
    %c9_68 = arith.constant 9 : index
    %728 = memref.load %arg3[%c9_68] : memref<144xf32, #tpu.memory_space<smem>>
    %729 = vector.broadcast %728 : f32 to vector<1x256xf32>
    %730 = arith.mulf %729, %723 : vector<1x256xf32>
    %731 = arith.addf %714, %730 : vector<1x256xf32>
    %c10_69 = arith.constant 10 : index
    %732 = memref.load %arg3[%c10_69] : memref<144xf32, #tpu.memory_space<smem>>
    %733 = vector.broadcast %732 : f32 to vector<1x256xf32>
    %734 = arith.mulf %733, %723 : vector<1x256xf32>
    %735 = arith.addf %718, %734 : vector<1x256xf32>
    %c11_70 = arith.constant 11 : index
    %736 = memref.load %arg3[%c11_70] : memref<144xf32, #tpu.memory_space<smem>>
    %737 = vector.broadcast %736 : f32 to vector<1x256xf32>
    %738 = arith.mulf %737, %723 : vector<1x256xf32>
    %739 = arith.addf %722, %738 : vector<1x256xf32>
    %740 = vector.extract_strided_slice %688 {offsets = [3, 0], sizes = [1, 256], strides = [1, 1]} : vector<4x256xf32> to vector<1x256xf32>
    %c12_71 = arith.constant 12 : index
    %741 = memref.load %arg3[%c12_71] : memref<144xf32, #tpu.memory_space<smem>>
    %742 = vector.broadcast %741 : f32 to vector<1x256xf32>
    %743 = arith.mulf %742, %740 : vector<1x256xf32>
    %744 = arith.addf %727, %743 : vector<1x256xf32>
    %c13_72 = arith.constant 13 : index
    %745 = memref.load %arg3[%c13_72] : memref<144xf32, #tpu.memory_space<smem>>
    %746 = vector.broadcast %745 : f32 to vector<1x256xf32>
    %747 = arith.mulf %746, %740 : vector<1x256xf32>
    %748 = arith.addf %731, %747 : vector<1x256xf32>
    %c14_73 = arith.constant 14 : index
    %749 = memref.load %arg3[%c14_73] : memref<144xf32, #tpu.memory_space<smem>>
    %750 = vector.broadcast %749 : f32 to vector<1x256xf32>
    %751 = arith.mulf %750, %740 : vector<1x256xf32>
    %752 = arith.addf %735, %751 : vector<1x256xf32>
    %c15_74 = arith.constant 15 : index
    %753 = memref.load %arg3[%c15_74] : memref<144xf32, #tpu.memory_space<smem>>
    %754 = vector.broadcast %753 : f32 to vector<1x256xf32>
    %755 = arith.mulf %754, %740 : vector<1x256xf32>
    %756 = arith.addf %739, %755 : vector<1x256xf32>
    %c0_75 = arith.constant 0 : index
    %c112_76 = arith.constant 112 : index
    %757 = vector.load %arg8[%c0_75, %c112_76] : memref<4x512xf32, #tpu.memory_space<vmem>>, vector<4x256xf32>
    %758 = vector.extract_strided_slice %757 {offsets = [0, 0], sizes = [1, 256], strides = [1, 1]} : vector<4x256xf32> to vector<1x256xf32>
    %c16_77 = arith.constant 16 : index
    %759 = memref.load %arg3[%c16_77] : memref<144xf32, #tpu.memory_space<smem>>
    %760 = vector.broadcast %759 : f32 to vector<1x256xf32>
    %761 = arith.mulf %760, %758 : vector<1x256xf32>
    %762 = arith.addf %744, %761 : vector<1x256xf32>
    %c17_78 = arith.constant 17 : index
    %763 = memref.load %arg3[%c17_78] : memref<144xf32, #tpu.memory_space<smem>>
    %764 = vector.broadcast %763 : f32 to vector<1x256xf32>
    %765 = arith.mulf %764, %758 : vector<1x256xf32>
    %766 = arith.addf %748, %765 : vector<1x256xf32>
    %c18_79 = arith.constant 18 : index
    %767 = memref.load %arg3[%c18_79] : memref<144xf32, #tpu.memory_space<smem>>
    %768 = vector.broadcast %767 : f32 to vector<1x256xf32>
    %769 = arith.mulf %768, %758 : vector<1x256xf32>
    %770 = arith.addf %752, %769 : vector<1x256xf32>
    %c19_80 = arith.constant 19 : index
    %771 = memref.load %arg3[%c19_80] : memref<144xf32, #tpu.memory_space<smem>>
    %772 = vector.broadcast %771 : f32 to vector<1x256xf32>
    %773 = arith.mulf %772, %758 : vector<1x256xf32>
    %774 = arith.addf %756, %773 : vector<1x256xf32>
    %775 = vector.extract_strided_slice %757 {offsets = [1, 0], sizes = [1, 256], strides = [1, 1]} : vector<4x256xf32> to vector<1x256xf32>
    %c20_81 = arith.constant 20 : index
    %776 = memref.load %arg3[%c20_81] : memref<144xf32, #tpu.memory_space<smem>>
    %777 = vector.broadcast %776 : f32 to vector<1x256xf32>
    %778 = arith.mulf %777, %775 : vector<1x256xf32>
    %779 = arith.addf %762, %778 : vector<1x256xf32>
    %c21_82 = arith.constant 21 : index
    %780 = memref.load %arg3[%c21_82] : memref<144xf32, #tpu.memory_space<smem>>
    %781 = vector.broadcast %780 : f32 to vector<1x256xf32>
    %782 = arith.mulf %781, %775 : vector<1x256xf32>
    %783 = arith.addf %766, %782 : vector<1x256xf32>
    %c22_83 = arith.constant 22 : index
    %784 = memref.load %arg3[%c22_83] : memref<144xf32, #tpu.memory_space<smem>>
    %785 = vector.broadcast %784 : f32 to vector<1x256xf32>
    %786 = arith.mulf %785, %775 : vector<1x256xf32>
    %787 = arith.addf %770, %786 : vector<1x256xf32>
    %c23_84 = arith.constant 23 : index
    %788 = memref.load %arg3[%c23_84] : memref<144xf32, #tpu.memory_space<smem>>
    %789 = vector.broadcast %788 : f32 to vector<1x256xf32>
    %790 = arith.mulf %789, %775 : vector<1x256xf32>
    %791 = arith.addf %774, %790 : vector<1x256xf32>
    %792 = vector.extract_strided_slice %757 {offsets = [2, 0], sizes = [1, 256], strides = [1, 1]} : vector<4x256xf32> to vector<1x256xf32>
    %c24_85 = arith.constant 24 : index
    %793 = memref.load %arg3[%c24_85] : memref<144xf32, #tpu.memory_space<smem>>
    %794 = vector.broadcast %793 : f32 to vector<1x256xf32>
    %795 = arith.mulf %794, %792 : vector<1x256xf32>
    %796 = arith.addf %779, %795 : vector<1x256xf32>
    %c25_86 = arith.constant 25 : index
    %797 = memref.load %arg3[%c25_86] : memref<144xf32, #tpu.memory_space<smem>>
    %798 = vector.broadcast %797 : f32 to vector<1x256xf32>
    %799 = arith.mulf %798, %792 : vector<1x256xf32>
    %800 = arith.addf %783, %799 : vector<1x256xf32>
    %c26_87 = arith.constant 26 : index
    %801 = memref.load %arg3[%c26_87] : memref<144xf32, #tpu.memory_space<smem>>
    %802 = vector.broadcast %801 : f32 to vector<1x256xf32>
    %803 = arith.mulf %802, %792 : vector<1x256xf32>
    %804 = arith.addf %787, %803 : vector<1x256xf32>
    %c27_88 = arith.constant 27 : index
    %805 = memref.load %arg3[%c27_88] : memref<144xf32, #tpu.memory_space<smem>>
    %806 = vector.broadcast %805 : f32 to vector<1x256xf32>
    %807 = arith.mulf %806, %792 : vector<1x256xf32>
    %808 = arith.addf %791, %807 : vector<1x256xf32>
    %809 = vector.extract_strided_slice %757 {offsets = [3, 0], sizes = [1, 256], strides = [1, 1]} : vector<4x256xf32> to vector<1x256xf32>
    %c28_89 = arith.constant 28 : index
    %810 = memref.load %arg3[%c28_89] : memref<144xf32, #tpu.memory_space<smem>>
    %811 = vector.broadcast %810 : f32 to vector<1x256xf32>
    %812 = arith.mulf %811, %809 : vector<1x256xf32>
    %813 = arith.addf %796, %812 : vector<1x256xf32>
    %c29_90 = arith.constant 29 : index
    %814 = memref.load %arg3[%c29_90] : memref<144xf32, #tpu.memory_space<smem>>
    %815 = vector.broadcast %814 : f32 to vector<1x256xf32>
    %816 = arith.mulf %815, %809 : vector<1x256xf32>
    %817 = arith.addf %800, %816 : vector<1x256xf32>
    %c30_91 = arith.constant 30 : index
    %818 = memref.load %arg3[%c30_91] : memref<144xf32, #tpu.memory_space<smem>>
    %819 = vector.broadcast %818 : f32 to vector<1x256xf32>
    %820 = arith.mulf %819, %809 : vector<1x256xf32>
    %821 = arith.addf %804, %820 : vector<1x256xf32>
    %c31_92 = arith.constant 31 : index
    %822 = memref.load %arg3[%c31_92] : memref<144xf32, #tpu.memory_space<smem>>
    %823 = vector.broadcast %822 : f32 to vector<1x256xf32>
    %824 = arith.mulf %823, %809 : vector<1x256xf32>
    %825 = arith.addf %808, %824 : vector<1x256xf32>
    %c0_93 = arith.constant 0 : index
    %c113_94 = arith.constant 113 : index
    %826 = vector.load %arg8[%c0_93, %c113_94] : memref<4x512xf32, #tpu.memory_space<vmem>>, vector<4x256xf32>
    %827 = vector.broadcast %8 : vector<1x256xf32> to vector<4x256xf32>
    %828 = arith.mulf %826, %827 : vector<4x256xf32>
    %829 = vector.extract_strided_slice %828 {offsets = [0, 0], sizes = [1, 256], strides = [1, 1]} : vector<4x256xf32> to vector<1x256xf32>
    %c32_95 = arith.constant 32 : index
    %830 = memref.load %arg3[%c32_95] : memref<144xf32, #tpu.memory_space<smem>>
    %831 = vector.broadcast %830 : f32 to vector<1x256xf32>
    %832 = arith.mulf %831, %829 : vector<1x256xf32>
    %833 = arith.addf %813, %832 : vector<1x256xf32>
    %c33_96 = arith.constant 33 : index
    %834 = memref.load %arg3[%c33_96] : memref<144xf32, #tpu.memory_space<smem>>
    %835 = vector.broadcast %834 : f32 to vector<1x256xf32>
    %836 = arith.mulf %835, %829 : vector<1x256xf32>
    %837 = arith.addf %817, %836 : vector<1x256xf32>
    %c34_97 = arith.constant 34 : index
    %838 = memref.load %arg3[%c34_97] : memref<144xf32, #tpu.memory_space<smem>>
    %839 = vector.broadcast %838 : f32 to vector<1x256xf32>
    %840 = arith.mulf %839, %829 : vector<1x256xf32>
    %841 = arith.addf %821, %840 : vector<1x256xf32>
    %c35_98 = arith.constant 35 : index
    %842 = memref.load %arg3[%c35_98] : memref<144xf32, #tpu.memory_space<smem>>
    %843 = vector.broadcast %842 : f32 to vector<1x256xf32>
    %844 = arith.mulf %843, %829 : vector<1x256xf32>
    %845 = arith.addf %825, %844 : vector<1x256xf32>
    %846 = vector.extract_strided_slice %828 {offsets = [1, 0], sizes = [1, 256], strides = [1, 1]} : vector<4x256xf32> to vector<1x256xf32>
    %c36_99 = arith.constant 36 : index
    %847 = memref.load %arg3[%c36_99] : memref<144xf32, #tpu.memory_space<smem>>
    %848 = vector.broadcast %847 : f32 to vector<1x256xf32>
    %849 = arith.mulf %848, %846 : vector<1x256xf32>
    %850 = arith.addf %833, %849 : vector<1x256xf32>
    %c37_100 = arith.constant 37 : index
    %851 = memref.load %arg3[%c37_100] : memref<144xf32, #tpu.memory_space<smem>>
    %852 = vector.broadcast %851 : f32 to vector<1x256xf32>
    %853 = arith.mulf %852, %846 : vector<1x256xf32>
    %854 = arith.addf %837, %853 : vector<1x256xf32>
    %c38_101 = arith.constant 38 : index
    %855 = memref.load %arg3[%c38_101] : memref<144xf32, #tpu.memory_space<smem>>
    %856 = vector.broadcast %855 : f32 to vector<1x256xf32>
    %857 = arith.mulf %856, %846 : vector<1x256xf32>
    %858 = arith.addf %841, %857 : vector<1x256xf32>
    %c39_102 = arith.constant 39 : index
    %859 = memref.load %arg3[%c39_102] : memref<144xf32, #tpu.memory_space<smem>>
    %860 = vector.broadcast %859 : f32 to vector<1x256xf32>
    %861 = arith.mulf %860, %846 : vector<1x256xf32>
    %862 = arith.addf %845, %861 : vector<1x256xf32>
    %863 = vector.extract_strided_slice %828 {offsets = [2, 0], sizes = [1, 256], strides = [1, 1]} : vector<4x256xf32> to vector<1x256xf32>
    %c40_103 = arith.constant 40 : index
    %864 = memref.load %arg3[%c40_103] : memref<144xf32, #tpu.memory_space<smem>>
    %865 = vector.broadcast %864 : f32 to vector<1x256xf32>
    %866 = arith.mulf %865, %863 : vector<1x256xf32>
    %867 = arith.addf %850, %866 : vector<1x256xf32>
    %c41_104 = arith.constant 41 : index
    %868 = memref.load %arg3[%c41_104] : memref<144xf32, #tpu.memory_space<smem>>
    %869 = vector.broadcast %868 : f32 to vector<1x256xf32>
    %870 = arith.mulf %869, %863 : vector<1x256xf32>
    %871 = arith.addf %854, %870 : vector<1x256xf32>
    %c42_105 = arith.constant 42 : index
    %872 = memref.load %arg3[%c42_105] : memref<144xf32, #tpu.memory_space<smem>>
    %873 = vector.broadcast %872 : f32 to vector<1x256xf32>
    %874 = arith.mulf %873, %863 : vector<1x256xf32>
    %875 = arith.addf %858, %874 : vector<1x256xf32>
    %c43_106 = arith.constant 43 : index
    %876 = memref.load %arg3[%c43_106] : memref<144xf32, #tpu.memory_space<smem>>
    %877 = vector.broadcast %876 : f32 to vector<1x256xf32>
    %878 = arith.mulf %877, %863 : vector<1x256xf32>
    %879 = arith.addf %862, %878 : vector<1x256xf32>
    %880 = vector.extract_strided_slice %828 {offsets = [3, 0], sizes = [1, 256], strides = [1, 1]} : vector<4x256xf32> to vector<1x256xf32>
    %c44_107 = arith.constant 44 : index
    %881 = memref.load %arg3[%c44_107] : memref<144xf32, #tpu.memory_space<smem>>
    %882 = vector.broadcast %881 : f32 to vector<1x256xf32>
    %883 = arith.mulf %882, %880 : vector<1x256xf32>
    %884 = arith.addf %867, %883 : vector<1x256xf32>
    %c45_108 = arith.constant 45 : index
    %885 = memref.load %arg3[%c45_108] : memref<144xf32, #tpu.memory_space<smem>>
    %886 = vector.broadcast %885 : f32 to vector<1x256xf32>
    %887 = arith.mulf %886, %880 : vector<1x256xf32>
    %888 = arith.addf %871, %887 : vector<1x256xf32>
    %c46_109 = arith.constant 46 : index
    %889 = memref.load %arg3[%c46_109] : memref<144xf32, #tpu.memory_space<smem>>
    %890 = vector.broadcast %889 : f32 to vector<1x256xf32>
    %891 = arith.mulf %890, %880 : vector<1x256xf32>
    %892 = arith.addf %875, %891 : vector<1x256xf32>
    %c47_110 = arith.constant 47 : index
    %893 = memref.load %arg3[%c47_110] : memref<144xf32, #tpu.memory_space<smem>>
    %894 = vector.broadcast %893 : f32 to vector<1x256xf32>
    %895 = arith.mulf %894, %880 : vector<1x256xf32>
    %896 = arith.addf %879, %895 : vector<1x256xf32>
    %c0_111 = arith.constant 0 : index
    %c127_112 = arith.constant 127 : index
    %897 = vector.load %arg8[%c0_111, %c127_112] : memref<4x512xf32, #tpu.memory_space<vmem>>, vector<4x256xf32>
    %898 = vector.broadcast %7 : vector<1x256xf32> to vector<4x256xf32>
    %899 = arith.mulf %897, %898 : vector<4x256xf32>
    %900 = vector.extract_strided_slice %899 {offsets = [0, 0], sizes = [1, 256], strides = [1, 1]} : vector<4x256xf32> to vector<1x256xf32>
    %c48_113 = arith.constant 48 : index
    %901 = memref.load %arg3[%c48_113] : memref<144xf32, #tpu.memory_space<smem>>
    %902 = vector.broadcast %901 : f32 to vector<1x256xf32>
    %903 = arith.mulf %902, %900 : vector<1x256xf32>
    %904 = arith.addf %884, %903 : vector<1x256xf32>
    %c49_114 = arith.constant 49 : index
    %905 = memref.load %arg3[%c49_114] : memref<144xf32, #tpu.memory_space<smem>>
    %906 = vector.broadcast %905 : f32 to vector<1x256xf32>
    %907 = arith.mulf %906, %900 : vector<1x256xf32>
    %908 = arith.addf %888, %907 : vector<1x256xf32>
    %c50_115 = arith.constant 50 : index
    %909 = memref.load %arg3[%c50_115] : memref<144xf32, #tpu.memory_space<smem>>
    %910 = vector.broadcast %909 : f32 to vector<1x256xf32>
    %911 = arith.mulf %910, %900 : vector<1x256xf32>
    %912 = arith.addf %892, %911 : vector<1x256xf32>
    %c51_116 = arith.constant 51 : index
    %913 = memref.load %arg3[%c51_116] : memref<144xf32, #tpu.memory_space<smem>>
    %914 = vector.broadcast %913 : f32 to vector<1x256xf32>
    %915 = arith.mulf %914, %900 : vector<1x256xf32>
    %916 = arith.addf %896, %915 : vector<1x256xf32>
    %917 = vector.extract_strided_slice %899 {offsets = [1, 0], sizes = [1, 256], strides = [1, 1]} : vector<4x256xf32> to vector<1x256xf32>
    %c52_117 = arith.constant 52 : index
    %918 = memref.load %arg3[%c52_117] : memref<144xf32, #tpu.memory_space<smem>>
    %919 = vector.broadcast %918 : f32 to vector<1x256xf32>
    %920 = arith.mulf %919, %917 : vector<1x256xf32>
    %921 = arith.addf %904, %920 : vector<1x256xf32>
    %c53_118 = arith.constant 53 : index
    %922 = memref.load %arg3[%c53_118] : memref<144xf32, #tpu.memory_space<smem>>
    %923 = vector.broadcast %922 : f32 to vector<1x256xf32>
    %924 = arith.mulf %923, %917 : vector<1x256xf32>
    %925 = arith.addf %908, %924 : vector<1x256xf32>
    %c54_119 = arith.constant 54 : index
    %926 = memref.load %arg3[%c54_119] : memref<144xf32, #tpu.memory_space<smem>>
    %927 = vector.broadcast %926 : f32 to vector<1x256xf32>
    %928 = arith.mulf %927, %917 : vector<1x256xf32>
    %929 = arith.addf %912, %928 : vector<1x256xf32>
    %c55_120 = arith.constant 55 : index
    %930 = memref.load %arg3[%c55_120] : memref<144xf32, #tpu.memory_space<smem>>
    %931 = vector.broadcast %930 : f32 to vector<1x256xf32>
    %932 = arith.mulf %931, %917 : vector<1x256xf32>
    %933 = arith.addf %916, %932 : vector<1x256xf32>
    %934 = vector.extract_strided_slice %899 {offsets = [2, 0], sizes = [1, 256], strides = [1, 1]} : vector<4x256xf32> to vector<1x256xf32>
    %c56_121 = arith.constant 56 : index
    %935 = memref.load %arg3[%c56_121] : memref<144xf32, #tpu.memory_space<smem>>
    %936 = vector.broadcast %935 : f32 to vector<1x256xf32>
    %937 = arith.mulf %936, %934 : vector<1x256xf32>
    %938 = arith.addf %921, %937 : vector<1x256xf32>
    %c57_122 = arith.constant 57 : index
    %939 = memref.load %arg3[%c57_122] : memref<144xf32, #tpu.memory_space<smem>>
    %940 = vector.broadcast %939 : f32 to vector<1x256xf32>
    %941 = arith.mulf %940, %934 : vector<1x256xf32>
    %942 = arith.addf %925, %941 : vector<1x256xf32>
    %c58_123 = arith.constant 58 : index
    %943 = memref.load %arg3[%c58_123] : memref<144xf32, #tpu.memory_space<smem>>
    %944 = vector.broadcast %943 : f32 to vector<1x256xf32>
    %945 = arith.mulf %944, %934 : vector<1x256xf32>
    %946 = arith.addf %929, %945 : vector<1x256xf32>
    %c59_124 = arith.constant 59 : index
    %947 = memref.load %arg3[%c59_124] : memref<144xf32, #tpu.memory_space<smem>>
    %948 = vector.broadcast %947 : f32 to vector<1x256xf32>
    %949 = arith.mulf %948, %934 : vector<1x256xf32>
    %950 = arith.addf %933, %949 : vector<1x256xf32>
    %951 = vector.extract_strided_slice %899 {offsets = [3, 0], sizes = [1, 256], strides = [1, 1]} : vector<4x256xf32> to vector<1x256xf32>
    %c60_125 = arith.constant 60 : index
    %952 = memref.load %arg3[%c60_125] : memref<144xf32, #tpu.memory_space<smem>>
    %953 = vector.broadcast %952 : f32 to vector<1x256xf32>
    %954 = arith.mulf %953, %951 : vector<1x256xf32>
    %955 = arith.addf %938, %954 : vector<1x256xf32>
    %c61_126 = arith.constant 61 : index
    %956 = memref.load %arg3[%c61_126] : memref<144xf32, #tpu.memory_space<smem>>
    %957 = vector.broadcast %956 : f32 to vector<1x256xf32>
    %958 = arith.mulf %957, %951 : vector<1x256xf32>
    %959 = arith.addf %942, %958 : vector<1x256xf32>
    %c62_127 = arith.constant 62 : index
    %960 = memref.load %arg3[%c62_127] : memref<144xf32, #tpu.memory_space<smem>>
    %961 = vector.broadcast %960 : f32 to vector<1x256xf32>
    %962 = arith.mulf %961, %951 : vector<1x256xf32>
    %963 = arith.addf %946, %962 : vector<1x256xf32>
    %c63_128 = arith.constant 63 : index
    %964 = memref.load %arg3[%c63_128] : memref<144xf32, #tpu.memory_space<smem>>
    %965 = vector.broadcast %964 : f32 to vector<1x256xf32>
    %966 = arith.mulf %965, %951 : vector<1x256xf32>
    %967 = arith.addf %950, %966 : vector<1x256xf32>
    %c0_129 = arith.constant 0 : index
    %c128_130 = arith.constant 128 : index
    %968 = vector.load %arg8[%c0_129, %c128_130] : memref<4x512xf32, #tpu.memory_space<vmem>>, vector<4x256xf32>
    %969 = vector.extract_strided_slice %968 {offsets = [0, 0], sizes = [1, 256], strides = [1, 1]} : vector<4x256xf32> to vector<1x256xf32>
    %c64_131 = arith.constant 64 : index
    %970 = memref.load %arg3[%c64_131] : memref<144xf32, #tpu.memory_space<smem>>
    %971 = vector.broadcast %970 : f32 to vector<1x256xf32>
    %972 = arith.mulf %971, %969 : vector<1x256xf32>
    %973 = arith.addf %955, %972 : vector<1x256xf32>
    %c65_132 = arith.constant 65 : index
    %974 = memref.load %arg3[%c65_132] : memref<144xf32, #tpu.memory_space<smem>>
    %975 = vector.broadcast %974 : f32 to vector<1x256xf32>
    %976 = arith.mulf %975, %969 : vector<1x256xf32>
    %977 = arith.addf %959, %976 : vector<1x256xf32>
    %c66_133 = arith.constant 66 : index
    %978 = memref.load %arg3[%c66_133] : memref<144xf32, #tpu.memory_space<smem>>
    %979 = vector.broadcast %978 : f32 to vector<1x256xf32>
    %980 = arith.mulf %979, %969 : vector<1x256xf32>
    %981 = arith.addf %963, %980 : vector<1x256xf32>
    %c67_134 = arith.constant 67 : index
    %982 = memref.load %arg3[%c67_134] : memref<144xf32, #tpu.memory_space<smem>>
    %983 = vector.broadcast %982 : f32 to vector<1x256xf32>
    %984 = arith.mulf %983, %969 : vector<1x256xf32>
    %985 = arith.addf %967, %984 : vector<1x256xf32>
    %986 = vector.extract_strided_slice %968 {offsets = [1, 0], sizes = [1, 256], strides = [1, 1]} : vector<4x256xf32> to vector<1x256xf32>
    %c68_135 = arith.constant 68 : index
    %987 = memref.load %arg3[%c68_135] : memref<144xf32, #tpu.memory_space<smem>>
    %988 = vector.broadcast %987 : f32 to vector<1x256xf32>
    %989 = arith.mulf %988, %986 : vector<1x256xf32>
    %990 = arith.addf %973, %989 : vector<1x256xf32>
    %c69_136 = arith.constant 69 : index
    %991 = memref.load %arg3[%c69_136] : memref<144xf32, #tpu.memory_space<smem>>
    %992 = vector.broadcast %991 : f32 to vector<1x256xf32>
    %993 = arith.mulf %992, %986 : vector<1x256xf32>
    %994 = arith.addf %977, %993 : vector<1x256xf32>
    %c70_137 = arith.constant 70 : index
    %995 = memref.load %arg3[%c70_137] : memref<144xf32, #tpu.memory_space<smem>>
    %996 = vector.broadcast %995 : f32 to vector<1x256xf32>
    %997 = arith.mulf %996, %986 : vector<1x256xf32>
    %998 = arith.addf %981, %997 : vector<1x256xf32>
    %c71_138 = arith.constant 71 : index
    %999 = memref.load %arg3[%c71_138] : memref<144xf32, #tpu.memory_space<smem>>
    %1000 = vector.broadcast %999 : f32 to vector<1x256xf32>
    %1001 = arith.mulf %1000, %986 : vector<1x256xf32>
    %1002 = arith.addf %985, %1001 : vector<1x256xf32>
    %1003 = vector.extract_strided_slice %968 {offsets = [2, 0], sizes = [1, 256], strides = [1, 1]} : vector<4x256xf32> to vector<1x256xf32>
    %c72_139 = arith.constant 72 : index
    %1004 = memref.load %arg3[%c72_139] : memref<144xf32, #tpu.memory_space<smem>>
    %1005 = vector.broadcast %1004 : f32 to vector<1x256xf32>
    %1006 = arith.mulf %1005, %1003 : vector<1x256xf32>
    %1007 = arith.addf %990, %1006 : vector<1x256xf32>
    %c73_140 = arith.constant 73 : index
    %1008 = memref.load %arg3[%c73_140] : memref<144xf32, #tpu.memory_space<smem>>
    %1009 = vector.broadcast %1008 : f32 to vector<1x256xf32>
    %1010 = arith.mulf %1009, %1003 : vector<1x256xf32>
    %1011 = arith.addf %994, %1010 : vector<1x256xf32>
    %c74_141 = arith.constant 74 : index
    %1012 = memref.load %arg3[%c74_141] : memref<144xf32, #tpu.memory_space<smem>>
    %1013 = vector.broadcast %1012 : f32 to vector<1x256xf32>
    %1014 = arith.mulf %1013, %1003 : vector<1x256xf32>
    %1015 = arith.addf %998, %1014 : vector<1x256xf32>
    %c75_142 = arith.constant 75 : index
    %1016 = memref.load %arg3[%c75_142] : memref<144xf32, #tpu.memory_space<smem>>
    %1017 = vector.broadcast %1016 : f32 to vector<1x256xf32>
    %1018 = arith.mulf %1017, %1003 : vector<1x256xf32>
    %1019 = arith.addf %1002, %1018 : vector<1x256xf32>
    %1020 = vector.extract_strided_slice %968 {offsets = [3, 0], sizes = [1, 256], strides = [1, 1]} : vector<4x256xf32> to vector<1x256xf32>
    %c76_143 = arith.constant 76 : index
    %1021 = memref.load %arg3[%c76_143] : memref<144xf32, #tpu.memory_space<smem>>
    %1022 = vector.broadcast %1021 : f32 to vector<1x256xf32>
    %1023 = arith.mulf %1022, %1020 : vector<1x256xf32>
    %1024 = arith.addf %1007, %1023 : vector<1x256xf32>
    %c77_144 = arith.constant 77 : index
    %1025 = memref.load %arg3[%c77_144] : memref<144xf32, #tpu.memory_space<smem>>
    %1026 = vector.broadcast %1025 : f32 to vector<1x256xf32>
    %1027 = arith.mulf %1026, %1020 : vector<1x256xf32>
    %1028 = arith.addf %1011, %1027 : vector<1x256xf32>
    %c78_145 = arith.constant 78 : index
    %1029 = memref.load %arg3[%c78_145] : memref<144xf32, #tpu.memory_space<smem>>
    %1030 = vector.broadcast %1029 : f32 to vector<1x256xf32>
    %1031 = arith.mulf %1030, %1020 : vector<1x256xf32>
    %1032 = arith.addf %1015, %1031 : vector<1x256xf32>
    %c79_146 = arith.constant 79 : index
    %1033 = memref.load %arg3[%c79_146] : memref<144xf32, #tpu.memory_space<smem>>
    %1034 = vector.broadcast %1033 : f32 to vector<1x256xf32>
    %1035 = arith.mulf %1034, %1020 : vector<1x256xf32>
    %1036 = arith.addf %1019, %1035 : vector<1x256xf32>
    %c0_147 = arith.constant 0 : index
    %c129_148 = arith.constant 129 : index
    %1037 = vector.load %arg8[%c0_147, %c129_148] : memref<4x512xf32, #tpu.memory_space<vmem>>, vector<4x256xf32>
    %1038 = vector.broadcast %8 : vector<1x256xf32> to vector<4x256xf32>
    %1039 = arith.mulf %1037, %1038 : vector<4x256xf32>
    %1040 = vector.extract_strided_slice %1039 {offsets = [0, 0], sizes = [1, 256], strides = [1, 1]} : vector<4x256xf32> to vector<1x256xf32>
    %c80_149 = arith.constant 80 : index
    %1041 = memref.load %arg3[%c80_149] : memref<144xf32, #tpu.memory_space<smem>>
    %1042 = vector.broadcast %1041 : f32 to vector<1x256xf32>
    %1043 = arith.mulf %1042, %1040 : vector<1x256xf32>
    %1044 = arith.addf %1024, %1043 : vector<1x256xf32>
    %c81_150 = arith.constant 81 : index
    %1045 = memref.load %arg3[%c81_150] : memref<144xf32, #tpu.memory_space<smem>>
    %1046 = vector.broadcast %1045 : f32 to vector<1x256xf32>
    %1047 = arith.mulf %1046, %1040 : vector<1x256xf32>
    %1048 = arith.addf %1028, %1047 : vector<1x256xf32>
    %c82_151 = arith.constant 82 : index
    %1049 = memref.load %arg3[%c82_151] : memref<144xf32, #tpu.memory_space<smem>>
    %1050 = vector.broadcast %1049 : f32 to vector<1x256xf32>
    %1051 = arith.mulf %1050, %1040 : vector<1x256xf32>
    %1052 = arith.addf %1032, %1051 : vector<1x256xf32>
    %c83_152 = arith.constant 83 : index
    %1053 = memref.load %arg3[%c83_152] : memref<144xf32, #tpu.memory_space<smem>>
    %1054 = vector.broadcast %1053 : f32 to vector<1x256xf32>
    %1055 = arith.mulf %1054, %1040 : vector<1x256xf32>
    %1056 = arith.addf %1036, %1055 : vector<1x256xf32>
    %1057 = vector.extract_strided_slice %1039 {offsets = [1, 0], sizes = [1, 256], strides = [1, 1]} : vector<4x256xf32> to vector<1x256xf32>
    %c84_153 = arith.constant 84 : index
    %1058 = memref.load %arg3[%c84_153] : memref<144xf32, #tpu.memory_space<smem>>
    %1059 = vector.broadcast %1058 : f32 to vector<1x256xf32>
    %1060 = arith.mulf %1059, %1057 : vector<1x256xf32>
    %1061 = arith.addf %1044, %1060 : vector<1x256xf32>
    %c85_154 = arith.constant 85 : index
    %1062 = memref.load %arg3[%c85_154] : memref<144xf32, #tpu.memory_space<smem>>
    %1063 = vector.broadcast %1062 : f32 to vector<1x256xf32>
    %1064 = arith.mulf %1063, %1057 : vector<1x256xf32>
    %1065 = arith.addf %1048, %1064 : vector<1x256xf32>
    %c86_155 = arith.constant 86 : index
    %1066 = memref.load %arg3[%c86_155] : memref<144xf32, #tpu.memory_space<smem>>
    %1067 = vector.broadcast %1066 : f32 to vector<1x256xf32>
    %1068 = arith.mulf %1067, %1057 : vector<1x256xf32>
    %1069 = arith.addf %1052, %1068 : vector<1x256xf32>
    %c87_156 = arith.constant 87 : index
    %1070 = memref.load %arg3[%c87_156] : memref<144xf32, #tpu.memory_space<smem>>
    %1071 = vector.broadcast %1070 : f32 to vector<1x256xf32>
    %1072 = arith.mulf %1071, %1057 : vector<1x256xf32>
    %1073 = arith.addf %1056, %1072 : vector<1x256xf32>
    %1074 = vector.extract_strided_slice %1039 {offsets = [2, 0], sizes = [1, 256], strides = [1, 1]} : vector<4x256xf32> to vector<1x256xf32>
    %c88_157 = arith.constant 88 : index
    %1075 = memref.load %arg3[%c88_157] : memref<144xf32, #tpu.memory_space<smem>>
    %1076 = vector.broadcast %1075 : f32 to vector<1x256xf32>
    %1077 = arith.mulf %1076, %1074 : vector<1x256xf32>
    %1078 = arith.addf %1061, %1077 : vector<1x256xf32>
    %c89_158 = arith.constant 89 : index
    %1079 = memref.load %arg3[%c89_158] : memref<144xf32, #tpu.memory_space<smem>>
    %1080 = vector.broadcast %1079 : f32 to vector<1x256xf32>
    %1081 = arith.mulf %1080, %1074 : vector<1x256xf32>
    %1082 = arith.addf %1065, %1081 : vector<1x256xf32>
    %c90_159 = arith.constant 90 : index
    %1083 = memref.load %arg3[%c90_159] : memref<144xf32, #tpu.memory_space<smem>>
    %1084 = vector.broadcast %1083 : f32 to vector<1x256xf32>
    %1085 = arith.mulf %1084, %1074 : vector<1x256xf32>
    %1086 = arith.addf %1069, %1085 : vector<1x256xf32>
    %c91_160 = arith.constant 91 : index
    %1087 = memref.load %arg3[%c91_160] : memref<144xf32, #tpu.memory_space<smem>>
    %1088 = vector.broadcast %1087 : f32 to vector<1x256xf32>
    %1089 = arith.mulf %1088, %1074 : vector<1x256xf32>
    %1090 = arith.addf %1073, %1089 : vector<1x256xf32>
    %1091 = vector.extract_strided_slice %1039 {offsets = [3, 0], sizes = [1, 256], strides = [1, 1]} : vector<4x256xf32> to vector<1x256xf32>
    %c92_161 = arith.constant 92 : index
    %1092 = memref.load %arg3[%c92_161] : memref<144xf32, #tpu.memory_space<smem>>
    %1093 = vector.broadcast %1092 : f32 to vector<1x256xf32>
    %1094 = arith.mulf %1093, %1091 : vector<1x256xf32>
    %1095 = arith.addf %1078, %1094 : vector<1x256xf32>
    %c93_162 = arith.constant 93 : index
    %1096 = memref.load %arg3[%c93_162] : memref<144xf32, #tpu.memory_space<smem>>
    %1097 = vector.broadcast %1096 : f32 to vector<1x256xf32>
    %1098 = arith.mulf %1097, %1091 : vector<1x256xf32>
    %1099 = arith.addf %1082, %1098 : vector<1x256xf32>
    %c94_163 = arith.constant 94 : index
    %1100 = memref.load %arg3[%c94_163] : memref<144xf32, #tpu.memory_space<smem>>
    %1101 = vector.broadcast %1100 : f32 to vector<1x256xf32>
    %1102 = arith.mulf %1101, %1091 : vector<1x256xf32>
    %1103 = arith.addf %1086, %1102 : vector<1x256xf32>
    %c95_164 = arith.constant 95 : index
    %1104 = memref.load %arg3[%c95_164] : memref<144xf32, #tpu.memory_space<smem>>
    %1105 = vector.broadcast %1104 : f32 to vector<1x256xf32>
    %1106 = arith.mulf %1105, %1091 : vector<1x256xf32>
    %1107 = arith.addf %1090, %1106 : vector<1x256xf32>
    %c0_165 = arith.constant 0 : index
    %c143_166 = arith.constant 143 : index
    %1108 = vector.load %arg8[%c0_165, %c143_166] : memref<4x512xf32, #tpu.memory_space<vmem>>, vector<4x256xf32>
    %1109 = vector.broadcast %7 : vector<1x256xf32> to vector<4x256xf32>
    %1110 = arith.mulf %1108, %1109 : vector<4x256xf32>
    %1111 = vector.extract_strided_slice %1110 {offsets = [0, 0], sizes = [1, 256], strides = [1, 1]} : vector<4x256xf32> to vector<1x256xf32>
    %c96_167 = arith.constant 96 : index
    %1112 = memref.load %arg3[%c96_167] : memref<144xf32, #tpu.memory_space<smem>>
    %1113 = vector.broadcast %1112 : f32 to vector<1x256xf32>
    %1114 = arith.mulf %1113, %1111 : vector<1x256xf32>
    %1115 = arith.addf %1095, %1114 : vector<1x256xf32>
    %c97_168 = arith.constant 97 : index
    %1116 = memref.load %arg3[%c97_168] : memref<144xf32, #tpu.memory_space<smem>>
    %1117 = vector.broadcast %1116 : f32 to vector<1x256xf32>
    %1118 = arith.mulf %1117, %1111 : vector<1x256xf32>
    %1119 = arith.addf %1099, %1118 : vector<1x256xf32>
    %c98_169 = arith.constant 98 : index
    %1120 = memref.load %arg3[%c98_169] : memref<144xf32, #tpu.memory_space<smem>>
    %1121 = vector.broadcast %1120 : f32 to vector<1x256xf32>
    %1122 = arith.mulf %1121, %1111 : vector<1x256xf32>
    %1123 = arith.addf %1103, %1122 : vector<1x256xf32>
    %c99_170 = arith.constant 99 : index
    %1124 = memref.load %arg3[%c99_170] : memref<144xf32, #tpu.memory_space<smem>>
    %1125 = vector.broadcast %1124 : f32 to vector<1x256xf32>
    %1126 = arith.mulf %1125, %1111 : vector<1x256xf32>
    %1127 = arith.addf %1107, %1126 : vector<1x256xf32>
    %1128 = vector.extract_strided_slice %1110 {offsets = [1, 0], sizes = [1, 256], strides = [1, 1]} : vector<4x256xf32> to vector<1x256xf32>
    %c100_171 = arith.constant 100 : index
    %1129 = memref.load %arg3[%c100_171] : memref<144xf32, #tpu.memory_space<smem>>
    %1130 = vector.broadcast %1129 : f32 to vector<1x256xf32>
    %1131 = arith.mulf %1130, %1128 : vector<1x256xf32>
    %1132 = arith.addf %1115, %1131 : vector<1x256xf32>
    %c101_172 = arith.constant 101 : index
    %1133 = memref.load %arg3[%c101_172] : memref<144xf32, #tpu.memory_space<smem>>
    %1134 = vector.broadcast %1133 : f32 to vector<1x256xf32>
    %1135 = arith.mulf %1134, %1128 : vector<1x256xf32>
    %1136 = arith.addf %1119, %1135 : vector<1x256xf32>
    %c102_173 = arith.constant 102 : index
    %1137 = memref.load %arg3[%c102_173] : memref<144xf32, #tpu.memory_space<smem>>
    %1138 = vector.broadcast %1137 : f32 to vector<1x256xf32>
    %1139 = arith.mulf %1138, %1128 : vector<1x256xf32>
    %1140 = arith.addf %1123, %1139 : vector<1x256xf32>
    %c103_174 = arith.constant 103 : index
    %1141 = memref.load %arg3[%c103_174] : memref<144xf32, #tpu.memory_space<smem>>
    %1142 = vector.broadcast %1141 : f32 to vector<1x256xf32>
    %1143 = arith.mulf %1142, %1128 : vector<1x256xf32>
    %1144 = arith.addf %1127, %1143 : vector<1x256xf32>
    %1145 = vector.extract_strided_slice %1110 {offsets = [2, 0], sizes = [1, 256], strides = [1, 1]} : vector<4x256xf32> to vector<1x256xf32>
    %c104_175 = arith.constant 104 : index
    %1146 = memref.load %arg3[%c104_175] : memref<144xf32, #tpu.memory_space<smem>>
    %1147 = vector.broadcast %1146 : f32 to vector<1x256xf32>
    %1148 = arith.mulf %1147, %1145 : vector<1x256xf32>
    %1149 = arith.addf %1132, %1148 : vector<1x256xf32>
    %c105_176 = arith.constant 105 : index
    %1150 = memref.load %arg3[%c105_176] : memref<144xf32, #tpu.memory_space<smem>>
    %1151 = vector.broadcast %1150 : f32 to vector<1x256xf32>
    %1152 = arith.mulf %1151, %1145 : vector<1x256xf32>
    %1153 = arith.addf %1136, %1152 : vector<1x256xf32>
    %c106_177 = arith.constant 106 : index
    %1154 = memref.load %arg3[%c106_177] : memref<144xf32, #tpu.memory_space<smem>>
    %1155 = vector.broadcast %1154 : f32 to vector<1x256xf32>
    %1156 = arith.mulf %1155, %1145 : vector<1x256xf32>
    %1157 = arith.addf %1140, %1156 : vector<1x256xf32>
    %c107_178 = arith.constant 107 : index
    %1158 = memref.load %arg3[%c107_178] : memref<144xf32, #tpu.memory_space<smem>>
    %1159 = vector.broadcast %1158 : f32 to vector<1x256xf32>
    %1160 = arith.mulf %1159, %1145 : vector<1x256xf32>
    %1161 = arith.addf %1144, %1160 : vector<1x256xf32>
    %1162 = vector.extract_strided_slice %1110 {offsets = [3, 0], sizes = [1, 256], strides = [1, 1]} : vector<4x256xf32> to vector<1x256xf32>
    %c108_179 = arith.constant 108 : index
    %1163 = memref.load %arg3[%c108_179] : memref<144xf32, #tpu.memory_space<smem>>
    %1164 = vector.broadcast %1163 : f32 to vector<1x256xf32>
    %1165 = arith.mulf %1164, %1162 : vector<1x256xf32>
    %1166 = arith.addf %1149, %1165 : vector<1x256xf32>
    %c109_180 = arith.constant 109 : index
    %1167 = memref.load %arg3[%c109_180] : memref<144xf32, #tpu.memory_space<smem>>
    %1168 = vector.broadcast %1167 : f32 to vector<1x256xf32>
    %1169 = arith.mulf %1168, %1162 : vector<1x256xf32>
    %1170 = arith.addf %1153, %1169 : vector<1x256xf32>
    %c110_181 = arith.constant 110 : index
    %1171 = memref.load %arg3[%c110_181] : memref<144xf32, #tpu.memory_space<smem>>
    %1172 = vector.broadcast %1171 : f32 to vector<1x256xf32>
    %1173 = arith.mulf %1172, %1162 : vector<1x256xf32>
    %1174 = arith.addf %1157, %1173 : vector<1x256xf32>
    %c111_182 = arith.constant 111 : index
    %1175 = memref.load %arg3[%c111_182] : memref<144xf32, #tpu.memory_space<smem>>
    %1176 = vector.broadcast %1175 : f32 to vector<1x256xf32>
    %1177 = arith.mulf %1176, %1162 : vector<1x256xf32>
    %1178 = arith.addf %1161, %1177 : vector<1x256xf32>
    %c0_183 = arith.constant 0 : index
    %c144_184 = arith.constant 144 : index
    %1179 = vector.load %arg8[%c0_183, %c144_184] : memref<4x512xf32, #tpu.memory_space<vmem>>, vector<4x256xf32>
    %1180 = vector.extract_strided_slice %1179 {offsets = [0, 0], sizes = [1, 256], strides = [1, 1]} : vector<4x256xf32> to vector<1x256xf32>
    %c112_185 = arith.constant 112 : index
    %1181 = memref.load %arg3[%c112_185] : memref<144xf32, #tpu.memory_space<smem>>
    %1182 = vector.broadcast %1181 : f32 to vector<1x256xf32>
    %1183 = arith.mulf %1182, %1180 : vector<1x256xf32>
    %1184 = arith.addf %1166, %1183 : vector<1x256xf32>
    %c113_186 = arith.constant 113 : index
    %1185 = memref.load %arg3[%c113_186] : memref<144xf32, #tpu.memory_space<smem>>
    %1186 = vector.broadcast %1185 : f32 to vector<1x256xf32>
    %1187 = arith.mulf %1186, %1180 : vector<1x256xf32>
    %1188 = arith.addf %1170, %1187 : vector<1x256xf32>
    %c114_187 = arith.constant 114 : index
    %1189 = memref.load %arg3[%c114_187] : memref<144xf32, #tpu.memory_space<smem>>
    %1190 = vector.broadcast %1189 : f32 to vector<1x256xf32>
    %1191 = arith.mulf %1190, %1180 : vector<1x256xf32>
    %1192 = arith.addf %1174, %1191 : vector<1x256xf32>
    %c115_188 = arith.constant 115 : index
    %1193 = memref.load %arg3[%c115_188] : memref<144xf32, #tpu.memory_space<smem>>
    %1194 = vector.broadcast %1193 : f32 to vector<1x256xf32>
    %1195 = arith.mulf %1194, %1180 : vector<1x256xf32>
    %1196 = arith.addf %1178, %1195 : vector<1x256xf32>
    %1197 = vector.extract_strided_slice %1179 {offsets = [1, 0], sizes = [1, 256], strides = [1, 1]} : vector<4x256xf32> to vector<1x256xf32>
    %c116_189 = arith.constant 116 : index
    %1198 = memref.load %arg3[%c116_189] : memref<144xf32, #tpu.memory_space<smem>>
    %1199 = vector.broadcast %1198 : f32 to vector<1x256xf32>
    %1200 = arith.mulf %1199, %1197 : vector<1x256xf32>
    %1201 = arith.addf %1184, %1200 : vector<1x256xf32>
    %c117_190 = arith.constant 117 : index
    %1202 = memref.load %arg3[%c117_190] : memref<144xf32, #tpu.memory_space<smem>>
    %1203 = vector.broadcast %1202 : f32 to vector<1x256xf32>
    %1204 = arith.mulf %1203, %1197 : vector<1x256xf32>
    %1205 = arith.addf %1188, %1204 : vector<1x256xf32>
    %c118_191 = arith.constant 118 : index
    %1206 = memref.load %arg3[%c118_191] : memref<144xf32, #tpu.memory_space<smem>>
    %1207 = vector.broadcast %1206 : f32 to vector<1x256xf32>
    %1208 = arith.mulf %1207, %1197 : vector<1x256xf32>
    %1209 = arith.addf %1192, %1208 : vector<1x256xf32>
    %c119_192 = arith.constant 119 : index
    %1210 = memref.load %arg3[%c119_192] : memref<144xf32, #tpu.memory_space<smem>>
    %1211 = vector.broadcast %1210 : f32 to vector<1x256xf32>
    %1212 = arith.mulf %1211, %1197 : vector<1x256xf32>
    %1213 = arith.addf %1196, %1212 : vector<1x256xf32>
    %1214 = vector.extract_strided_slice %1179 {offsets = [2, 0], sizes = [1, 256], strides = [1, 1]} : vector<4x256xf32> to vector<1x256xf32>
    %c120_193 = arith.constant 120 : index
    %1215 = memref.load %arg3[%c120_193] : memref<144xf32, #tpu.memory_space<smem>>
    %1216 = vector.broadcast %1215 : f32 to vector<1x256xf32>
    %1217 = arith.mulf %1216, %1214 : vector<1x256xf32>
    %1218 = arith.addf %1201, %1217 : vector<1x256xf32>
    %c121_194 = arith.constant 121 : index
    %1219 = memref.load %arg3[%c121_194] : memref<144xf32, #tpu.memory_space<smem>>
    %1220 = vector.broadcast %1219 : f32 to vector<1x256xf32>
    %1221 = arith.mulf %1220, %1214 : vector<1x256xf32>
    %1222 = arith.addf %1205, %1221 : vector<1x256xf32>
    %c122_195 = arith.constant 122 : index
    %1223 = memref.load %arg3[%c122_195] : memref<144xf32, #tpu.memory_space<smem>>
    %1224 = vector.broadcast %1223 : f32 to vector<1x256xf32>
    %1225 = arith.mulf %1224, %1214 : vector<1x256xf32>
    %1226 = arith.addf %1209, %1225 : vector<1x256xf32>
    %c123_196 = arith.constant 123 : index
    %1227 = memref.load %arg3[%c123_196] : memref<144xf32, #tpu.memory_space<smem>>
    %1228 = vector.broadcast %1227 : f32 to vector<1x256xf32>
    %1229 = arith.mulf %1228, %1214 : vector<1x256xf32>
    %1230 = arith.addf %1213, %1229 : vector<1x256xf32>
    %1231 = vector.extract_strided_slice %1179 {offsets = [3, 0], sizes = [1, 256], strides = [1, 1]} : vector<4x256xf32> to vector<1x256xf32>
    %c124_197 = arith.constant 124 : index
    %1232 = memref.load %arg3[%c124_197] : memref<144xf32, #tpu.memory_space<smem>>
    %1233 = vector.broadcast %1232 : f32 to vector<1x256xf32>
    %1234 = arith.mulf %1233, %1231 : vector<1x256xf32>
    %1235 = arith.addf %1218, %1234 : vector<1x256xf32>
    %c125_198 = arith.constant 125 : index
    %1236 = memref.load %arg3[%c125_198] : memref<144xf32, #tpu.memory_space<smem>>
    %1237 = vector.broadcast %1236 : f32 to vector<1x256xf32>
    %1238 = arith.mulf %1237, %1231 : vector<1x256xf32>
    %1239 = arith.addf %1222, %1238 : vector<1x256xf32>
    %c126_199 = arith.constant 126 : index
    %1240 = memref.load %arg3[%c126_199] : memref<144xf32, #tpu.memory_space<smem>>
    %1241 = vector.broadcast %1240 : f32 to vector<1x256xf32>
    %1242 = arith.mulf %1241, %1231 : vector<1x256xf32>
    %1243 = arith.addf %1226, %1242 : vector<1x256xf32>
    %c127_200 = arith.constant 127 : index
    %1244 = memref.load %arg3[%c127_200] : memref<144xf32, #tpu.memory_space<smem>>
    %1245 = vector.broadcast %1244 : f32 to vector<1x256xf32>
    %1246 = arith.mulf %1245, %1231 : vector<1x256xf32>
    %1247 = arith.addf %1230, %1246 : vector<1x256xf32>
    %c0_201 = arith.constant 0 : index
    %c145_202 = arith.constant 145 : index
    %1248 = vector.load %arg8[%c0_201, %c145_202] : memref<4x512xf32, #tpu.memory_space<vmem>>, vector<4x256xf32>
    %1249 = vector.broadcast %8 : vector<1x256xf32> to vector<4x256xf32>
    %1250 = arith.mulf %1248, %1249 : vector<4x256xf32>
    %1251 = vector.extract_strided_slice %1250 {offsets = [0, 0], sizes = [1, 256], strides = [1, 1]} : vector<4x256xf32> to vector<1x256xf32>
    %c128_203 = arith.constant 128 : index
    %1252 = memref.load %arg3[%c128_203] : memref<144xf32, #tpu.memory_space<smem>>
    %1253 = vector.broadcast %1252 : f32 to vector<1x256xf32>
    %1254 = arith.mulf %1253, %1251 : vector<1x256xf32>
    %1255 = arith.addf %1235, %1254 : vector<1x256xf32>
    %c129_204 = arith.constant 129 : index
    %1256 = memref.load %arg3[%c129_204] : memref<144xf32, #tpu.memory_space<smem>>
    %1257 = vector.broadcast %1256 : f32 to vector<1x256xf32>
    %1258 = arith.mulf %1257, %1251 : vector<1x256xf32>
    %1259 = arith.addf %1239, %1258 : vector<1x256xf32>
    %c130_205 = arith.constant 130 : index
    %1260 = memref.load %arg3[%c130_205] : memref<144xf32, #tpu.memory_space<smem>>
    %1261 = vector.broadcast %1260 : f32 to vector<1x256xf32>
    %1262 = arith.mulf %1261, %1251 : vector<1x256xf32>
    %1263 = arith.addf %1243, %1262 : vector<1x256xf32>
    %c131_206 = arith.constant 131 : index
    %1264 = memref.load %arg3[%c131_206] : memref<144xf32, #tpu.memory_space<smem>>
    %1265 = vector.broadcast %1264 : f32 to vector<1x256xf32>
    %1266 = arith.mulf %1265, %1251 : vector<1x256xf32>
    %1267 = arith.addf %1247, %1266 : vector<1x256xf32>
    %1268 = vector.extract_strided_slice %1250 {offsets = [1, 0], sizes = [1, 256], strides = [1, 1]} : vector<4x256xf32> to vector<1x256xf32>
    %c132_207 = arith.constant 132 : index
    %1269 = memref.load %arg3[%c132_207] : memref<144xf32, #tpu.memory_space<smem>>
    %1270 = vector.broadcast %1269 : f32 to vector<1x256xf32>
    %1271 = arith.mulf %1270, %1268 : vector<1x256xf32>
    %1272 = arith.addf %1255, %1271 : vector<1x256xf32>
    %c133_208 = arith.constant 133 : index
    %1273 = memref.load %arg3[%c133_208] : memref<144xf32, #tpu.memory_space<smem>>
    %1274 = vector.broadcast %1273 : f32 to vector<1x256xf32>
    %1275 = arith.mulf %1274, %1268 : vector<1x256xf32>
    %1276 = arith.addf %1259, %1275 : vector<1x256xf32>
    %c134_209 = arith.constant 134 : index
    %1277 = memref.load %arg3[%c134_209] : memref<144xf32, #tpu.memory_space<smem>>
    %1278 = vector.broadcast %1277 : f32 to vector<1x256xf32>
    %1279 = arith.mulf %1278, %1268 : vector<1x256xf32>
    %1280 = arith.addf %1263, %1279 : vector<1x256xf32>
    %c135_210 = arith.constant 135 : index
    %1281 = memref.load %arg3[%c135_210] : memref<144xf32, #tpu.memory_space<smem>>
    %1282 = vector.broadcast %1281 : f32 to vector<1x256xf32>
    %1283 = arith.mulf %1282, %1268 : vector<1x256xf32>
    %1284 = arith.addf %1267, %1283 : vector<1x256xf32>
    %1285 = vector.extract_strided_slice %1250 {offsets = [2, 0], sizes = [1, 256], strides = [1, 1]} : vector<4x256xf32> to vector<1x256xf32>
    %c136_211 = arith.constant 136 : index
    %1286 = memref.load %arg3[%c136_211] : memref<144xf32, #tpu.memory_space<smem>>
    %1287 = vector.broadcast %1286 : f32 to vector<1x256xf32>
    %1288 = arith.mulf %1287, %1285 : vector<1x256xf32>
    %1289 = arith.addf %1272, %1288 : vector<1x256xf32>
    %c137_212 = arith.constant 137 : index
    %1290 = memref.load %arg3[%c137_212] : memref<144xf32, #tpu.memory_space<smem>>
    %1291 = vector.broadcast %1290 : f32 to vector<1x256xf32>
    %1292 = arith.mulf %1291, %1285 : vector<1x256xf32>
    %1293 = arith.addf %1276, %1292 : vector<1x256xf32>
    %c138_213 = arith.constant 138 : index
    %1294 = memref.load %arg3[%c138_213] : memref<144xf32, #tpu.memory_space<smem>>
    %1295 = vector.broadcast %1294 : f32 to vector<1x256xf32>
    %1296 = arith.mulf %1295, %1285 : vector<1x256xf32>
    %1297 = arith.addf %1280, %1296 : vector<1x256xf32>
    %c139_214 = arith.constant 139 : index
    %1298 = memref.load %arg3[%c139_214] : memref<144xf32, #tpu.memory_space<smem>>
    %1299 = vector.broadcast %1298 : f32 to vector<1x256xf32>
    %1300 = arith.mulf %1299, %1285 : vector<1x256xf32>
    %1301 = arith.addf %1284, %1300 : vector<1x256xf32>
    %1302 = vector.extract_strided_slice %1250 {offsets = [3, 0], sizes = [1, 256], strides = [1, 1]} : vector<4x256xf32> to vector<1x256xf32>
    %c140_215 = arith.constant 140 : index
    %1303 = memref.load %arg3[%c140_215] : memref<144xf32, #tpu.memory_space<smem>>
    %1304 = vector.broadcast %1303 : f32 to vector<1x256xf32>
    %1305 = arith.mulf %1304, %1302 : vector<1x256xf32>
    %1306 = arith.addf %1289, %1305 : vector<1x256xf32>
    %c141_216 = arith.constant 141 : index
    %1307 = memref.load %arg3[%c141_216] : memref<144xf32, #tpu.memory_space<smem>>
    %1308 = vector.broadcast %1307 : f32 to vector<1x256xf32>
    %1309 = arith.mulf %1308, %1302 : vector<1x256xf32>
    %1310 = arith.addf %1293, %1309 : vector<1x256xf32>
    %c142_217 = arith.constant 142 : index
    %1311 = memref.load %arg3[%c142_217] : memref<144xf32, #tpu.memory_space<smem>>
    %1312 = vector.broadcast %1311 : f32 to vector<1x256xf32>
    %1313 = arith.mulf %1312, %1302 : vector<1x256xf32>
    %1314 = arith.addf %1297, %1313 : vector<1x256xf32>
    %c143_218 = arith.constant 143 : index
    %1315 = memref.load %arg3[%c143_218] : memref<144xf32, #tpu.memory_space<smem>>
    %1316 = vector.broadcast %1315 : f32 to vector<1x256xf32>
    %1317 = arith.mulf %1316, %1302 : vector<1x256xf32>
    %1318 = arith.addf %1301, %1317 : vector<1x256xf32>
    %c0_219 = arith.constant 0 : index
    %c0_220 = arith.constant 0 : index
    %c0_221 = arith.constant 0 : index
    %1319 = vector.load %arg6[%c0_219, %c0_220, %c0_221] : memref<1x4x256xf32, #tpu.memory_space<vmem>>, vector<1x1x256xf32>
    %1320 = vector.shape_cast %1319 : vector<1x1x256xf32> to vector<1x256xf32>
    %1321 = arith.addf %1306, %1320 : vector<1x256xf32>
    %cst_222 = arith.constant 0.000000e+00 : f32
    %1322 = vector.broadcast %cst_222 : f32 to vector<1x256xf32>
    %1323 = arith.maximumf %1321, %1322 : vector<1x256xf32>
    %c0_223 = arith.constant 0 : index
    %c0_224 = arith.constant 0 : index
    %c0_225 = arith.constant 0 : index
    %1324 = vector.load %arg7[%c0_223, %c0_224, %c0_225] : memref<1x4x256xf32, #tpu.memory_space<vmem>>, vector<1x1x256xf32>
    %1325 = vector.shape_cast %1324 : vector<1x1x256xf32> to vector<1x256xf32>
    %1326 = vector.shape_cast %1323 : vector<1x256xf32> to vector<1x1x256xf32>
    tpu.vector_store %arg7[%c0_223, %c0_224, %c0_225], %1326 {strides = array<i32>} : memref<1x4x256xf32, #tpu.memory_space<vmem>>, vector<1x1x256xf32>,
    %c0_226 = arith.constant 0 : index
    %c1_227 = arith.constant 1 : index
    %c0_228 = arith.constant 0 : index
    %1327 = vector.load %arg6[%c0_226, %c1_227, %c0_228] : memref<1x4x256xf32, #tpu.memory_space<vmem>>, vector<1x1x256xf32>
    %1328 = vector.shape_cast %1327 : vector<1x1x256xf32> to vector<1x256xf32>
    %1329 = arith.addf %1310, %1328 : vector<1x256xf32>
    %cst_229 = arith.constant 0.000000e+00 : f32
    %1330 = vector.broadcast %cst_229 : f32 to vector<1x256xf32>
    %1331 = arith.maximumf %1329, %1330 : vector<1x256xf32>
    %c0_230 = arith.constant 0 : index
    %c1_231 = arith.constant 1 : index
    %c0_232 = arith.constant 0 : index
    %1332 = vector.load %arg7[%c0_230, %c1_231, %c0_232] : memref<1x4x256xf32, #tpu.memory_space<vmem>>, vector<1x1x256xf32>
    %1333 = vector.shape_cast %1332 : vector<1x1x256xf32> to vector<1x256xf32>
    %1334 = vector.shape_cast %1331 : vector<1x256xf32> to vector<1x1x256xf32>
    tpu.vector_store %arg7[%c0_230, %c1_231, %c0_232], %1334 {strides = array<i32>} : memref<1x4x256xf32, #tpu.memory_space<vmem>>, vector<1x1x256xf32>,
    %c0_233 = arith.constant 0 : index
    %c2_234 = arith.constant 2 : index
    %c0_235 = arith.constant 0 : index
    %1335 = vector.load %arg6[%c0_233, %c2_234, %c0_235] : memref<1x4x256xf32, #tpu.memory_space<vmem>>, vector<1x1x256xf32>
    %1336 = vector.shape_cast %1335 : vector<1x1x256xf32> to vector<1x256xf32>
    %1337 = arith.addf %1314, %1336 : vector<1x256xf32>
    %cst_236 = arith.constant 0.000000e+00 : f32
    %1338 = vector.broadcast %cst_236 : f32 to vector<1x256xf32>
    %1339 = arith.maximumf %1337, %1338 : vector<1x256xf32>
    %c0_237 = arith.constant 0 : index
    %c2_238 = arith.constant 2 : index
    %c0_239 = arith.constant 0 : index
    %1340 = vector.load %arg7[%c0_237, %c2_238, %c0_239] : memref<1x4x256xf32, #tpu.memory_space<vmem>>, vector<1x1x256xf32>
    %1341 = vector.shape_cast %1340 : vector<1x1x256xf32> to vector<1x256xf32>
    %1342 = vector.shape_cast %1339 : vector<1x256xf32> to vector<1x1x256xf32>
    tpu.vector_store %arg7[%c0_237, %c2_238, %c0_239], %1342 {strides = array<i32>} : memref<1x4x256xf32, #tpu.memory_space<vmem>>, vector<1x1x256xf32>,
    %c0_240 = arith.constant 0 : index
    %c3_241 = arith.constant 3 : index
    %c0_242 = arith.constant 0 : index
    %1343 = vector.load %arg6[%c0_240, %c3_241, %c0_242] : memref<1x4x256xf32, #tpu.memory_space<vmem>>, vector<1x1x256xf32>
    %1344 = vector.shape_cast %1343 : vector<1x1x256xf32> to vector<1x256xf32>
    %1345 = arith.addf %1318, %1344 : vector<1x256xf32>
    %cst_243 = arith.constant 0.000000e+00 : f32
    %1346 = vector.broadcast %cst_243 : f32 to vector<1x256xf32>
    %1347 = arith.maximumf %1345, %1346 : vector<1x256xf32>
    %c0_244 = arith.constant 0 : index
    %c3_245 = arith.constant 3 : index
    %c0_246 = arith.constant 0 : index
    %1348 = vector.load %arg7[%c0_244, %c3_245, %c0_246] : memref<1x4x256xf32, #tpu.memory_space<vmem>>, vector<1x1x256xf32>
    %1349 = vector.shape_cast %1348 : vector<1x1x256xf32> to vector<1x256xf32>
    %1350 = vector.shape_cast %1347 : vector<1x256xf32> to vector<1x1x256xf32>
    tpu.vector_store %arg7[%c0_244, %c3_245, %c0_246], %1350 {strides = array<i32>} : memref<1x4x256xf32, #tpu.memory_space<vmem>>, vector<1x1x256xf32>,
    return
  }
  func.func @transform_0(%arg0: i32) -> i32 {
    %c0_i32 = arith.constant 0 : i32
    %c0_i32_0 = arith.constant 0 : i32
    return %c0_i32 : i32
  }
  func.func @transform_1(%arg0: i32) -> i32 {
    %c0_i32 = arith.constant 0 : i32
    %c0_i32_0 = arith.constant 0 : i32
    return %c0_i32 : i32
  }
  func.func @transform_2(%arg0: i32) -> i32 {
    %c0_i32 = arith.constant 0 : i32
    %c0_i32_0 = arith.constant 0 : i32
    return %c0_i32 : i32
  }
  func.func @transform_3(%arg0: i32) -> i32 {
    %c0_i32 = arith.constant 0 : i32
    %c0_i32_0 = arith.constant 0 : i32
    return %c0_i32 : i32
  }
  func.func @transform_4(%arg0: i32) -> (i32, i32) {
    %c0_i32 = arith.constant 0 : i32
    %c0_i32_0 = arith.constant 0 : i32
    %c0_i32_1 = arith.constant 0 : i32
    return %c0_i32, %c0_i32_0 : i32, i32
  }
  func.func @transform_5(%arg0: i32) -> (i32, i32, i32) {
    %c0_i32 = arith.constant 0 : i32
    %c0_i32_0 = arith.constant 0 : i32
    %c0_i32_1 = arith.constant 0 : i32
    return %arg0, %c0_i32, %c0_i32_0 : i32, i32, i32
  }
  func.func @transform_6(%arg0: i32) -> (i32, i32, i32) {
    %c0_i32 = arith.constant 0 : i32
    %c0_i32_0 = arith.constant 0 : i32
    %c0_i32_1 = arith.constant 0 : i32
    return %arg0, %c0_i32, %c0_i32_0 : i32, i32, i32
  }
}

</mosaic_0001>

<bundles_post_ra>
// kernel: resnet_block.1
= control target key start
LH: loop header
LB: loop body
LE: loop exit
PB: predicated region body
PF: predicated region fallthrough
CT: control target
= control target key end

     0   :  { %s11762_s0 = inlined_call_operand.vmem [shape: f32[144], index: 0, kind: input, shape index: {}]   ;;  %s11763_s1 = inlined_call_operand.vmem [shape: f32[4], index: 1, kind: input, shape index: {}]   ;;  %s11764_s2 = inlined_call_operand.vmem [shape: f32[144], index: 2, kind: input, shape index: {}]   ;;  %s11765_s3 = inlined_call_operand.vmem [shape: f32[4], index: 3, kind: input, shape index: {}]   ;;  %s11766_s4 = inlined_call_operand.vmem [shape: f32[3,256], index: 4, kind: input, shape index: {}]   ;;  %s11767_s5 = inlined_call_operand.vmem [shape: f32[2,4,256], index: 5, kind: input, shape index: {}]   ;;  %s11768_s6 = inlined_call_operand.vmem [shape: f32[2,4,256], index: 6, kind: output, shape index: {}]  }
   0x1   :  { %12129 = sst [smem:[#allocation234_spill]] %s11762_s0 }
   0x2   :  { %12130 = sst [smem:[#allocation235_spill]] %s11763_s1 }
   0x3   :  { %12131 = sst [smem:[#allocation236_spill]] %s11764_s2 }
   0x4   :  { %12132 = sst [smem:[#allocation237_spill]] %s11765_s3 }
   0x5   :  { %12133 = sst [smem:[#allocation238_spill]] %s11766_s4 }
   0x6   :  { %12134 = sst [smem:[#allocation239_spill]] %s11767_s5 }
   0x7   :  { %12135 = sst [smem:[#allocation240_spill]] %s11768_s6 }
   0x8   :  { %11 = vsyncpa [#allocation4], 0 }
   0x9   :  { %12 = vsyncpa [#allocation6], 0 }
   0xa   :  { %13 = vsyncpa [#allocation9], 0  ;;  %s7209_s21 = smov 0  }
   0xb LB: > { %12136 = sst [smem:[#allocation13_spill]] %s7153_s21  ;;  %s12137_s1 = sld [smem:[#allocation235_spill]]  ;;  %s7153_s21 = sphi %s7209_s21, %s19_s21  }
   0xc   : > { %s7218_s25 = sadd.s32 4294967295, %s7153_s21   ;;  %p6282_p0 = scmp.ge.s32.totalorder %s7153_s21, 1 }
   0xd   : > { %p181_p1 = scmp.lt.s32.totalorder %s7153_s21, 3  ;;  %p7037_p2 = scmp.eq.s32.totalorder %s7218_s25, 0 }
   0xe   : > { %s12139_s0 = sld [smem:[#allocation234_spill]]  ;;  %s12140_s2 = sld [smem:[#allocation236_spill]] }
   0xf   : > { %p7223_p3 = pnand %p6282_p0, %p181_p1  ;;  %s12142_s3 = sld [smem:[#allocation237_spill]] }
  0x11   : > { %s205_s24 = sshll.u32 %s12137_s1, 4  ;;  %p7024_p4 = pneg %p7223_p3  ;;  %s206_s24 = int_to_ptr.vmem [resolvable:$true] %s205_s24 }
  0x12   : > { %s7075_s13 = scalar_lea.vmem %s206_s24, 16  ;;  %p7083_p10 = scmp.lt.s32.totalorder %s206_s24, %s206_s24 }
  0x13   : > { %p7241_p5 = pnand %p7037_p2, %p7024_p4  ;;  %p7076_p6 = scmp.ne.s32.totalorder %s206_s24, %s7075_s13 }
  0x14   : > { %s194_s29 = sshll.u32 %s12139_s0, 4  ;;  %s216_s8 = sshll.u32 %s12140_s2, 4  ;;  %s7230_s29 = int_to_ptr.vmem [resolvable:$true] %s194_s29  ;;  %s7237_s8 = int_to_ptr.vmem [resolvable:$true] %s216_s8 }
  0x15   : > { %s227_s12 = sshll.u32 %s12142_s3, 4  ;;  %p7077_p7 = pneg %p7241_p5  ;;  %s7248_s12 = int_to_ptr.vmem [resolvable:$true] %s227_s12 }
  0x16   : > { %p7084_p11 = scmp.lt.s32.totalorder %s7075_s13, %s7075_s13 }
  0x17   : > { %p7078_p8 = pnand %p7077_p7, %p7076_p6 }
  0x18   : > { %p7085_p12 = por %p7084_p11, %p7083_p10 }
  0x19   : > { %p7079_p9 = pneg %p7078_p8 }
  0x1b   : > { %p7086_p13 = pnand %p7085_p12, %p7079_p9 }
  0x1d   : > { %7089 = shalt.err (!%p7086_p13)
}
  0x1e   : > { %s7155_s14 = smov [#allocation5]   ;;  %s7090_s15 = scalar_lea.vmem %s7230_s29, 32 }
  0x1f   : > { %7030 = dma.vmem_to_smem (!%p7241_p5), %s206_s24, 16, %s7155_s14, [#allocation6]  }
  0x20   : > { %p7091_p0 = scmp.ne.s32.totalorder %s7230_s29, %s7090_s15  ;;  %p7098_p6 = scmp.lt.s32.totalorder %s7230_s29, %s7230_s29 }
  0x21   : > { %p7099_p8 = scmp.lt.s32.totalorder %s7090_s15, %s7090_s15 }
  0x22   : > { %p7093_p1 = pnand %p7091_p0, %p7077_p7 }
  0x23   : > { %p7100_p10 = por %p7099_p8, %p7098_p6 }
  0x24   : > { %p7094_p4 = pneg %p7093_p1 }
  0x26   : > { %p7101_p9 = pnand %p7100_p10, %p7094_p4 }
  0x28   : > { %7104 = shalt.err (!%p7101_p9)
}
  0x29   : > { %s7156_s16 = smov [#allocation3]   ;;  %s7105_s17 = scalar_lea.vmem %s7237_s8, 32 }
  0x2a   : > { %7027 = dma.vmem_to_smem (!%p7241_p5), %s7230_s29, 32, %s7156_s16, [#allocation4]  }
  0x2b   : > { %p7106_p11 = scmp.ne.s32.totalorder %s7237_s8, %s7105_s17  ;;  %p7113_p0 = scmp.lt.s32.totalorder %s7237_s8, %s7237_s8 }
  0x2c   : > { %p7114_p1 = scmp.lt.s32.totalorder %s7105_s17, %s7105_s17 }
  0x2d   : > { %p7108_p12 = pnand %p7106_p11, %p7077_p7 }
  0x2e   : > { %p7115_p4 = por %p7114_p1, %p7113_p0 }
  0x2f   : > { %p7109_p13 = pneg %p7108_p12 }
  0x31   : > { %p7116_p6 = pnand %p7115_p4, %p7109_p13 }
  0x33   : > { %7119 = shalt.err (!%p7116_p6)
}
  0x34   : > { %s7157_s18 = smov [#allocation7]   ;;  %s7120_s19 = scalar_lea.vmem %s7248_s12, 16 }
  0x35   : > { %7033 = dma.vmem_to_smem (!%p7241_p5), %s7237_s8, 32, %s7157_s18, [#allocation6]  }
  0x36   : > { %p7121_p8 = scmp.ne.s32.totalorder %s7248_s12, %s7120_s19  ;;  %p7128_p11 = scmp.lt.s32.totalorder %s7248_s12, %s7248_s12 }
  0x37   : > { %p7129_p12 = scmp.lt.s32.totalorder %s7120_s19, %s7120_s19 }
  0x38   : > { %p7123_p10 = pnand %p7121_p8, %p7077_p7 }
  0x39   : > { %p7130_p13 = por %p7129_p12, %p7128_p11 }
  0x3a   : > { %p7124_p9 = pneg %p7123_p10 }
  0x3c   : > { %p7131_p0 = pnand %p7130_p13, %p7124_p9 }
  0x3e   : > { %7134 = shalt.err (!%p7131_p0)
}
  0x3f   : > { %s7158_s20 = smov [#allocation8]   ;;  %251 = sbr.rel (%p7223_p3) target bundleno = 2073 (0x819), region = 44 }
  0x40   : > { %7036 = dma.vmem_to_smem (!%p7241_p5), %s7248_s12, 16, %s7158_s20, [#allocation9]  }
  0x46   : > { %7140 = dma.done.wait (%p7037_p2), [#allocation4], 32  }
  0x47   : > { %7142 = vsyncadd (%p7037_p2), [#allocation4], 4294967264 }
  0x48   : > { %7144 = dma.done.wait (%p7037_p2), [#allocation6], 48  }
  0x49   : > { %7146 = vsyncadd (%p7037_p2), [#allocation6], 4294967248 }
  0x4a   : > { %7148 = dma.done.wait (%p7037_p2), [#allocation9], 16  }
  0x4b   : > { %7150 = vsyncadd (%p7037_p2), [#allocation9], 4294967280 }
  0x4c   : > { %269 = sfence }
  0x4d   : > { %v11769_v0 = vlaneseq  ;;  %p294_p3 = scmp.lt.s32.totalorder %s7218_s25, 1  ;;  %s12143_s4 = sld [smem:[#allocation238_spill]]  ;;  %v7159_v3 = vmov 0.0   ;;  %vm889_vm0 = vcmask 924672   ;;  %vm552_vm1 = vcmask 1039360  }
  0x4e   : > { %304 = vst [vmem:[#allocation2] sm:$0xf] %v7159_v3  ;;  %305 = vst [vmem:[#allocation2 + $0xc] sm:$0xf] %v7159_v3  ;;  %s6340_s28 = sld [smem:[#allocation3 + $0x10]]  ;;  %s12146_s5 = sld [smem:[#allocation239_spill]] }
  0x4f   : > { %v7306_v2 = vshrl.u32 %v11769_v0, 7  ;;  %s13104_s25 = smov (!%p294_p3, %s7218_s25), 1  ;;  %s6341_s8 = sld [smem:[#allocation3 + $0x11]]  ;;  %vm1801_vm2 = vcmask 7168   ;;  %vm2133_vm3 = vcmask 121856   ;;  %vm338_vm4 = vcmask 908288  }
  0x50   : > { %12145 = sst [smem:[#allocation15_spill]] %s13104_s25  ;;  %s11878_s27 = sshll.u32 %s13104_s25, 3  ;;  %vm550_vm5 = vcmask 1043456   ;;  %vm2786_vm6 = vcmask 138240   ;;  %vm908_vm7 = vcmask 1031168   ;;  %vm1255_vm8 = vcmask 916480  }
  0x51   : > { %12144 = vst [vmem:[#allocation14_spill] sm:$0xff] %v7306_v2  ;;  %v328_v5 = vsub.s32 0, %v7306_v2  ;;  %v332_v6 = vsub.s32 1, %v7306_v2  ;;  %s11888_s9 = smov 111   ;;  %s6342_s10 = sld [smem:[#allocation3 + $0x12]]  ;;  %vm1818_vm9 = vcmask 900096  }
  0x52   : > { %s6343_s11 = sld [smem:[#allocation3 + $0x13]]  ;;  %s6344_s12 = sld [smem:[#allocation3 + $0x14]]  ;;  %vm2150_vm10 = vcmask 785408   ;;  %vm2473_vm11 = vcmask 777216   ;;  %vm2803_vm12 = vcmask 769024  }
  0x53   : > { %v308_v1 = vld [vmem:[%s12143_s4] ss:$4 sm:$0x3]  ;;  %v6297_v4 = vld [vmem:[%s12143_s4 + $0x2] ss:$4 sm:$0x3] }
  0x54   : > { %v329_v7 = vrot.slane %v308_v1, %v328_v5  ;;  %v333_v8 = vrot.slane %v308_v1, %v332_v6  ;;  %s7322_s7 = scalar_lea.vmem %s12146_s5, %s11878_s27  ;;  %v880_v9 = vrot.slane %v6297_v4, %v328_v5  ;;  %v884_v10 = vrot.slane %v6297_v4, %v332_v6  ;;  %s7161_s13 = smov 127  }
  0x55   : > { %12147 = sst [smem:[#allocation16_spill]] %s7322_s7  ;;  %v306_v11 = vld [vmem:[%s7322_s7] sm:$0xff]  ;;  %v539_v14 = vstv %s6340_s28  ;;  %v559_v17 = vstv %s6341_s8  ;;  %s6347_s14 = sld [smem:[#allocation3 + $0x15]] }
  0x56   : > { %v7325_v12 = vcombine.low %v329_v7, %v333_v8  ;;  %307 = vst [vmem:[#allocation2 + $0x4] sm:$0xff] %v306_v11  ;;  %v7327_v13 = vcombine.low %v880_v9, %v884_v10  ;;  %s6350_s15 = sld [smem:[#allocation3 + $0x16]]  ;;  %s6353_s16 = sld [smem:[#allocation3 + $0x17]] }
  0x57   : > { %v577_v22 = vstv %s6342_s10  ;;  %s6356_s17 = sld [smem:[#allocation3 + $0x18]]  ;;  %s6359_s18 = sld [smem:[#allocation3 + $0x19]] }
  0x58   : > { %335 = vrot.lane.b32.xlu0 %v7325_v12, %s11888_s9  ;;  %v595_v25 = vstv %s6343_s11  ;;  %v613_v26 = vstv %s6344_s12  ;;  %s6362_s19 = sld [smem:[#allocation3 + $0x1a]]  ;;  %s6365_s20 = sld [smem:[#allocation3 + $0x1b]] }
  0x59   : > { %s6368_s22 = sld [smem:[#allocation3 + $0x1c]]  ;;  %s6371_s23 = sld [smem:[#allocation3 + $0x1d]] }
  0x5a   : > { %s6374_s24 = sld [smem:[#allocation3 + $0x1e]]  ;;  %s6377_s26 = sld [smem:[#allocation3 + $0x1f]] }
  0x5b   : > { %v635_v31 = vstv %s6347_s14  ;;  %s7162_s28 = smov 113   ;;  %s6380_s29 = sld [smem:[#allocation3 + $0x20]] }
  0x5c   : > { %v657_v36 = vstv %s6350_s15  ;;  %v679_v41 = vstv %s6353_s16  ;;  %s6381_s30 = sld [smem:[#allocation3 + $0x21]]  ;;  %s6382_s8 = sld [smem:[#allocation3 + $0x22]] }
  0x5d   : > { %v7331_v15 = vld [vmem:[#allocation2 + $0x8] sm:$0xf]  ;;  %v7333_v16 = vld [vmem:[#allocation2] sm:$0xff]  ;;  %v701_v46 = vstv %s6356_s17  ;;  %v723_v51 = vstv %s6359_s18  ;;  %s6383_s10 = sld [smem:[#allocation3 + $0x23]]  ;;  %s11892_s11 = smov 126  }
  0x5e   : > { %v541_v18 = vmul.f32 %v539_v14, %v7331_v15  ;;  %v540_v19 = vmul.f32 %v539_v14, %v7333_v16  ;;  %v560_v20 = vmul.f32 %v559_v17, %v7333_v16  ;;  %v561_v21 = vmul.f32 %v559_v17, %v7331_v15  ;;  %s6384_s12 = sld [smem:[#allocation3 + $0x24]]  ;;  %s7489_s14 = sld [smem:[#allocation3 + $0x30]] }
  0x5f   : > { %v578_v23 = vmul.f32 %v577_v22, %v7333_v16  ;;  %v579_v24 = vmul.f32 %v577_v22, %v7331_v15  ;;  %v596_v27 = vmul.f32 %v595_v25, %v7333_v16  ;;  %v597_v28 = vmul.f32 %v595_v25, %v7331_v15  ;;  %s6387_s15 = sld [smem:[#allocation3 + $0x25]]  ;;  %s6390_s16 = sld [smem:[#allocation3 + $0x26]] }
  0x60   : > { %546 = vrot.lane.b32.xlu1 %v541_v18, %s7161_s13  ;;  %544 = vrot.lane.b32.xlu0 %v540_v19, %s7161_s13  ;;  %v614_v29 = vmul.f32 %v613_v26, %v7333_v16  ;;  %v615_v30 = vmul.f32 %v613_v26, %v7331_v15  ;;  %v636_v34 = vmul.f32 %v635_v31, %v7333_v16  ;;  %v745_v56 = vstv %s6362_s19  ;;  %s6393_s17 = sld [smem:[#allocation3 + $0x27]]  ;;  %s11890_s18 = smov 112  }
  0x61   : > { %v637_v35 = vmul.f32 %v635_v31, %v7331_v15  ;;  %v658_v39 = vmul.f32 %v657_v36, %v7333_v16  ;;  %v659_v40 = vmul.f32 %v657_v36, %v7331_v15  ;;  %v680_v44 = vmul.f32 %v679_v41, %v7333_v16  ;;  %s6396_s19 = sld [smem:[#allocation3 + $0x28]]  ;;  %s8208_s27 = sld [smem:[#allocation3 + $0x6]] }
  0x62   : > { %v6345_v32 = vrot.slane %v614_v29, 9  ;;  %v6346_v33 = vrot.slane %v615_v30, 9  ;;  %v6348_v37 = vrot.slane %v636_v34, 9  ;;  %v681_v45 = vmul.f32 %v679_v41, %v7331_v15  ;;  %s9776_s0 = sld [smem:[#allocation7 + $0x6a]]  ;;  %s9789_s1 = sld [smem:[#allocation7 + $0x6b]] }
  0x63   : > { %v6349_v38 = vrot.slane %v637_v35, 9  ;;  %v6351_v42 = vrot.slane %v658_v39, 9  ;;  %v6352_v43 = vrot.slane %v659_v40, 9  ;;  %v6354_v47 = vrot.slane %v680_v44, 9  ;;  %s9791_s2 = sld [smem:[#allocation7 + $0x6c]]  ;;  %s9797_s3 = sld [smem:[#allocation7 + $0x6d]] }
  0x64   : > { %564 = vrot.lane.b32.xlu1 %v560_v20, %s7161_s13  ;;  %566 = vrot.lane.b32.xlu0 %v561_v21, %s7161_s13  ;;  %v6355_v48 = vrot.slane %v681_v45, 9  ;;  %v702_v49 = vmul.f32 %v701_v46, %v7333_v16  ;;  %v703_v50 = vmul.f32 %v701_v46, %v7331_v15  ;;  %v724_v54 = vmul.f32 %v723_v51, %v7333_v16  ;;  %s9799_s4 = sld [smem:[#allocation7 + $0x6f]]  ;;  %s9806_s5 = sld [smem:[#allocation7 + $0x6e]] }
  0x65   : > { %v725_v55 = vmul.f32 %v723_v51, %v7331_v15  ;;  %v746_v59 = vmul.f32 %v745_v56, %v7333_v16  ;;  %v747_v60 = vmul.f32 %v745_v56, %v7331_v15  ;;  %v767_v61 = vstv %s6365_s20  ;;  %s6399_s20 = sld [smem:[#allocation3 + $0x29]]  ;;  %s9828_s6 = sld [smem:[#allocation7 + $0x80]] }
  0x66   : > { %v6357_v52 = vrot.slane %v702_v49, 10  ;;  %v6358_v53 = vrot.slane %v703_v50, 10  ;;  %v6360_v57 = vrot.slane %v724_v54, 10  ;;  %v768_v1 = vmul.f32 %v767_v61, %v7333_v16  ;;  %s9826_s21 = sld [smem:[#allocation7 + $0x81]]  ;;  %s9837_s25 = sld [smem:[#allocation7 + $0x83]] }
  0x67   : > { %v6361_v58 = vrot.slane %v725_v55, 10  ;;  %v6363_v62 = vrot.slane %v746_v59, 10  ;;  %v6364_v63 = vrot.slane %v747_v60, 10  ;;  %v769_v3 = vmul.f32 %v767_v61, %v7331_v15  ;;  %s9852_s7 = sld [smem:[#allocation7 + $0x84]] }
  0x68   : > { %582 = vrot.lane.b32.xlu1 %v578_v23, %s7161_s13  ;;  %584 = vrot.lane.b32.xlu0 %v579_v24, %s7161_s13  ;;  %v789_v4 = vstv %s6368_s22  ;;  %v6366_v5 = vrot.slane %v768_v1, 10  ;;  %v811_v9 = vstv %s6371_s23  ;;  %s6402_s22 = sld [smem:[#allocation3 + $0x2a]]  ;;  %s6405_s23 = sld [smem:[#allocation3 + $0x2b]] }
  0x69   : > { %v6367_v6 = vrot.slane %v769_v3, 10  ;;  %v790_v7 = vmul.f32 %v789_v4, %v7333_v16  ;;  %v791_v8 = vmul.f32 %v789_v4, %v7331_v15  ;;  %v812_v14 = vmul.f32 %v811_v9, %v7333_v16  ;;  %12587 = sst [smem:[#allocation209_spill]] %s9776_s0 }
  0x6a   : > { %v813_v17 = vmul.f32 %v811_v9, %v7331_v15  ;;  %v833_v18 = vstv %s6374_s24  ;;  %v855_v23 = vstv %s6377_s26  ;;  %v896_v1 = vstv %s6380_s29  ;;  %s6408_s24 = sld [smem:[#allocation3 + $0x2c]]  ;;  %s6411_s26 = sld [smem:[#allocation3 + $0x2d]] }
  0x6b   : > { %v6369_v10 = vrot.slane %v790_v7, 11  ;;  %v6370_v11 = vrot.slane %v791_v8, 11  ;;  %v6372_v19 = vrot.slane %v812_v14, 11  ;;  %v834_v21 = vmul.f32 %v833_v18, %v7333_v16  ;;  %s6417_s29 = sld [smem:[#allocation3 + $0x2f]]  ;;  %12590 = sst [smem:[#allocation210_spill]] %s9789_s1 }
  0x6c   : > { %600 = vrot.lane.b32.xlu1 %v596_v27, %s7161_s13  ;;  %602 = vrot.lane.b32.xlu0 %v597_v28, %s7161_s13  ;;  %v6373_v20 = vrot.slane %v813_v17, 11  ;;  %v835_v22 = vmul.f32 %v833_v18, %v7331_v15  ;;  %v856_v26 = vmul.f32 %v855_v23, %v7333_v16  ;;  %v857_v27 = vmul.f32 %v855_v23, %v7331_v15  ;;  %12591 = sst [smem:[#allocation211_spill]] %s9791_s2 }
  0x6d   : > { %v6375_v24 = vrot.slane %v834_v21, 11  ;;  %v915_v9 = vstv %s6381_s30  ;;  %v933_v17 = vstv %s6382_s8  ;;  %v951_v21 = vstv %s6383_s10  ;;  %s6421_s30 = sld [smem:[#allocation3 + $0x31]]  ;;  %s6422_s8 = sld [smem:[#allocation3 + $0x32]] }
  0x6e   : > { %v6376_v25 = vrot.slane %v835_v22, 11  ;;  %v6378_v28 = vrot.slane %v856_v26, 11  ;;  %v6379_v29 = vrot.slane %v857_v27, 11  ;;  %v969_v22 = vstv %s6384_s12  ;;  %s6423_s10 = sld [smem:[#allocation3 + $0x33]]  ;;  %s6424_s12 = sld [smem:[#allocation3 + $0x34]] }
  0x6f   : > { %v1243_v26 = vstv %s7489_s14  ;;  %s6430_s14 = sld [smem:[#allocation3 + $0x36]]  ;;  %12593 = sst [smem:[#allocation212_spill]] %s9797_s3 }
  0x70   : > { %622 = vrot.lane.b32.xlu1 %v6345_v32, %s7161_s13  ;;  %624 = vrot.lane.b32.xlu0 %v6346_v33, %s7161_s13  ;;  %12594 = sst [smem:[#allocation213_spill]] %s9799_s4 }
  0x71   : > { %12596 = sst [smem:[#allocation214_spill]] %s9806_s5 }
  0x72   : > { %12599 = sst [smem:[#allocation215_spill]] %s9826_s21 }
  0x73   : > { %12600 = sst [smem:[#allocation216_spill]] %s9828_s6 }
  0x74   : > { %644 = vrot.lane.b32.xlu1 %v6348_v37, %s7161_s13  ;;  %646 = vrot.lane.b32.xlu0 %v6349_v38, %s7161_s13  ;;  %12603 = sst [smem:[#allocation217_spill]] %s9837_s25 }
  0x75   : > { %12607 = sst [smem:[#allocation220_spill]] %s9852_s7 }
  0x78   : > { %666 = vrot.lane.b32.xlu1 %v6351_v42, %s7161_s13  ;;  %668 = vrot.lane.b32.xlu0 %v6352_v43, %s7161_s13 }
  0x7c   : > { %688 = vrot.lane.b32.xlu1 %v6354_v47, %s7161_s13  ;;  %690 = vrot.lane.b32.xlu0 %v6355_v48, %s7161_s13 }
  0x80   : > { %710 = vrot.lane.b32.xlu1 %v6357_v52, %s7161_s13  ;;  %712 = vrot.lane.b32.xlu0 %v6358_v53, %s7161_s13 }
  0x84   : > { %732 = vrot.lane.b32.xlu1 %v6360_v57, %s7161_s13  ;;  %734 = vrot.lane.b32.xlu0 %v6361_v58, %s7161_s13 }
  0x88   : > { %754 = vrot.lane.b32.xlu1 %v6363_v62, %s7161_s13  ;;  %756 = vrot.lane.b32.xlu0 %v6364_v63, %s7161_s13 }
  0x8c   : > { %776 = vrot.lane.b32.xlu1 %v6366_v5, %s7161_s13  ;;  %778 = vrot.lane.b32.xlu0 %v6367_v6, %s7161_s13 }
  0x90   : > { %798 = vrot.lane.b32.xlu1 %v6369_v10, %s7161_s13  ;;  %800 = vrot.lane.b32.xlu0 %v6370_v11, %s7161_s13 }
  0x94   : > { %820 = vrot.lane.b32.xlu1 %v6372_v19, %s7161_s13  ;;  %822 = vrot.lane.b32.xlu0 %v6373_v20, %s7161_s13 }
  0x98   : > { %842 = vrot.lane.b32.xlu1 %v6375_v24, %s7161_s13  ;;  %844 = vrot.lane.b32.xlu0 %v6376_v25, %s7161_s13 }
  0x9c   : > { %864 = vrot.lane.b32.xlu1 %v6378_v28, %s7161_s13  ;;  %866 = vrot.lane.b32.xlu0 %v6379_v29, %s7161_s13  ;;  %v991_v28 = vstv %s6387_s15  ;;  %s6427_s15 = sld [smem:[#allocation3 + $0x35]] }
  0xa0   : > { %886 = vrot.lane.b32.xlu1 %v7327_v13, %s7162_s28  ;;  %1234 = vrot.lane.b32.xlu0 %v7325_v12, %s7161_s13  ;;  %s6414_s28 = sld [smem:[#allocation3 + $0x2e]] }
  0xca   : > { %v7402_v30 = vpop.permute.xlu0 %335 }
  0xd2   : > { %v7404_v31 = vpop.permute.xlu1 %546  ;;  %v7406_v32 = vpop.permute.xlu0 %544 }
  0xd6   : > { %v7408_v33 = vpop.permute.xlu1 %564  ;;  %v7410_v34 = vpop.permute.xlu0 %566 }
  0xda   : > { %v7412_v35 = vpop.permute.xlu1 %582  ;;  %v7414_v36 = vpop.permute.xlu0 %584 }
  0xde   : > { %v7416_v37 = vpop.permute.xlu1 %600  ;;  %v7418_v38 = vpop.permute.xlu0 %602 }
  0xe2   : > { %v7420_v39 = vpop.permute.xlu1 %622  ;;  %v7422_v40 = vpop.permute.xlu0 %624 }
  0xe6   : > { %v7424_v41 = vpop.permute.xlu1 %644  ;;  %v7426_v42 = vpop.permute.xlu0 %646 }
  0xea   : > { %v7428_v43 = vpop.permute.xlu1 %666  ;;  %v7430_v44 = vpop.permute.xlu0 %668 }
  0xee   : > { %v7432_v45 = vpop.permute.xlu1 %688  ;;  %v7434_v46 = vpop.permute.xlu0 %690 }
  0xf2   : > { %v7436_v47 = vpop.permute.xlu1 %710  ;;  %v7438_v48 = vpop.permute.xlu0 %712 }
  0xf6   : > { %v7440_v49 = vpop.permute.xlu1 %732  ;;  %v7442_v50 = vpop.permute.xlu0 %734 }
  0xfa   : > { %v7444_v51 = vpop.permute.xlu1 %754  ;;  %v7446_v52 = vpop.permute.xlu0 %756 }
  0xfb   : > { %12148 = vst [vmem:[#allocation17_spill] sm:$0xff] %v7444_v51  ;;  %12149 = vst [vmem:[#allocation18_spill] sm:$0xff] %v7446_v52 }
  0xfe   : > { %v7448_v53 = vpop.permute.xlu1 %776  ;;  %v7450_v54 = vpop.permute.xlu0 %778 }
  0xff   : > { %12150 = vst [vmem:[#allocation19_spill] sm:$0xff] %v7448_v53  ;;  %12151 = vst [vmem:[#allocation20_spill] sm:$0xff] %v7450_v54 }
 0x102   : > { %v7452_v55 = vpop.permute.xlu1 %798  ;;  %v7454_v56 = vpop.permute.xlu0 %800 }
 0x103   : > { %12152 = vst [vmem:[#allocation21_spill] sm:$0xff] %v7452_v55  ;;  %12153 = vst [vmem:[#allocation22_spill] sm:$0xff] %v7454_v56 }
 0x106   : > { %v7456_v57 = vpop.permute.xlu1 %820  ;;  %v7458_v58 = vpop.permute.xlu0 %822 }
 0x107   : > { %12154 = vst [vmem:[#allocation23_spill] sm:$0xff] %v7456_v57  ;;  %12155 = vst [vmem:[#allocation24_spill] sm:$0xff] %v7458_v58 }
 0x10a   : > { %v7460_v59 = vpop.permute.xlu1 %842  ;;  %v7464_v61 = vpop.permute.xlu0 %844 }
 0x10b   : > { %12156 = vst [vmem:[#allocation25_spill] sm:$0xff] %v7460_v59  ;;  %12158 = vst [vmem:[#allocation27_spill] sm:$0xff] %v7464_v61 }
 0x10e   : > { %v7462_v60 = vpop.permute.xlu1 %864  ;;  %v7468_v3 = vpop.permute.xlu0 %866 }
 0x10f   : > { %12157 = vst [vmem:[#allocation26_spill] sm:$0xff] %v7462_v60  ;;  %12160 = vst [vmem:[#allocation29_spill] sm:$0xff] %v7468_v3  ;;  %v549_v3 = vrot.slane %v7404_v31, 4 }
 0x112   : > { %v887_v62 = vpop.permute.xlu1 %886  ;;  %v1235_v10 = vpop.permute.xlu0 %1234 }
 0x113   : > { %v7466_v63 = vrot.slane %v887_v62, 4  ;;  %v7487_v14 = vrot.slane %v1235_v10, 4 }
 0x115   : > { %12159 = vst [vmem:[#allocation28_spill] sm:$0xff] %v7466_v63  ;;  %v7471_v4 = vsel %vm889_vm0, %v7466_v63, %v887_v62  ;;  %v7475_v5 = vmul.f32 %v7466_v63, %v7331_v15  ;;  %12162 = vst [vmem:[#allocation31_spill] sm:$0xff] %v7487_v14  ;;  %v7496_v19 = vsel %vm552_vm1, %v7487_v14, %v1235_v10 }
 0x116   : > { %12161 = vst [vmem:[#allocation30_spill] sm:$0xff] %v7471_v4  ;;  %v7479_v6 = vmul.f32 %v7471_v4, %v7333_v16  ;;  %12163 = vst [vmem:[#allocation32_spill] sm:$0xff] %v7496_v19  ;;  %v7503_v23 = vmul.f32 %v7496_v19, %v7333_v16 }
 0x117   : > { %v898_v7 = vmul.f32 %v896_v1, %v7475_v5  ;;  %v917_v15 = vmul.f32 %v915_v9, %v7475_v5  ;;  %v935_v18 = vmul.f32 %v933_v17, %v7475_v5  ;;  %v953_v24 = vmul.f32 %v951_v21, %v7475_v5 }
 0x118   : > { %v897_v8 = vmul.f32 %v896_v1, %v7479_v6  ;;  %v916_v11 = vmul.f32 %v915_v9, %v7479_v6  ;;  %v934_v20 = vmul.f32 %v933_v17, %v7479_v6  ;;  %v952_v25 = vmul.f32 %v951_v21, %v7479_v6 }
 0x119   : > { %903 = vrot.lane.b32.xlu1 %v898_v7, %s11892_s11  ;;  %v970_v27 = vmul.f32 %v969_v22, %v7479_v6  ;;  %v1244_v29 = vmul.f32 %v1243_v26, %v7503_v23  ;;  %v971_v62 = vmul.f32 %v969_v22, %v7475_v5  ;;  %v992_v1 = vmul.f32 %v991_v28, %v7479_v6 }
 0x11a   : > { %901 = vrot.lane.b32.xlu0 %v897_v8, %s11892_s11  ;;  %v1013_v7 = vstv %s6390_s16  ;;  %v993_v9 = vmul.f32 %v991_v28, %v7475_v5  ;;  %v1057_v22 = vstv %s6396_s19  ;;  %s6433_s16 = sld [smem:[#allocation3 + $0x37]]  ;;  %s6439_s19 = sld [smem:[#allocation3 + $0x39]] }
 0x11b   : > { %v6385_v16 = vrot.slane %v970_v27, 9  ;;  %v6386_v8 = vrot.slane %v971_v62, 9  ;;  %v6388_v10 = vrot.slane %v992_v1, 9  ;;  %v1058_v28 = vmul.f32 %v1057_v22, %v7479_v6 }
 0x11c   : > { %v6389_v17 = vrot.slane %v993_v9, 9 }
 0x11d   : > { %922 = vrot.lane.b32.xlu1 %v917_v15, %s11892_s11  ;;  %v1014_v15 = vmul.f32 %v1013_v7, %v7479_v6  ;;  %v6397_v1 = vrot.slane %v1058_v28, 10 }
 0x11e   : > { %920 = vrot.lane.b32.xlu0 %v916_v11, %s11892_s11  ;;  %v1035_v11 = vstv %s6393_s17  ;;  %s6436_s17 = sld [smem:[#allocation3 + $0x38]] }
 0x11f   : > { %v1036_v21 = vmul.f32 %v1035_v11, %v7479_v6 }
 0x121   : > { %940 = vrot.lane.b32.xlu1 %v935_v18, %s11892_s11  ;;  %v1015_v18 = vmul.f32 %v1013_v7, %v7475_v5  ;;  %v6394_v27 = vrot.slane %v1036_v21, 9 }
 0x122   : > { %938 = vrot.lane.b32.xlu0 %v934_v20, %s11892_s11  ;;  %v6391_v20 = vrot.slane %v1014_v15, 9 }
 0x125   : > { %958 = vrot.lane.b32.xlu1 %v953_v24, %s11892_s11  ;;  %v6392_v24 = vrot.slane %v1015_v18, 9 }
 0x126   : > { %956 = vrot.lane.b32.xlu0 %v952_v25, %s11892_s11  ;;  %v1037_v25 = vmul.f32 %v1035_v11, %v7475_v5 }
 0x128   : > { %v6395_v62 = vrot.slane %v1037_v25, 9 }
 0x129   : > { %1248 = vrot.lane.b32.xlu1 %v1244_v29, %s11890_s18  ;;  %v1079_v29 = vstv %s6399_s20  ;;  %s6442_s20 = sld [smem:[#allocation3 + $0x3a]] }
 0x12a   : > { %978 = vrot.lane.b32.xlu0 %v6385_v16, %s11892_s11  ;;  %v1059_v16 = vmul.f32 %v1057_v22, %v7475_v5  ;;  %v1080_v7 = vmul.f32 %v1079_v29, %v7479_v6 }
 0x12c   : > { %v6398_v9 = vrot.slane %v1059_v16, 10  ;;  %v6400_v15 = vrot.slane %v1080_v7, 10 }
 0x12d   : > { %980 = vrot.lane.b32.xlu1 %v6386_v8, %s11892_s11  ;;  %v1101_v8 = vstv %s6402_s22  ;;  %s6445_s22 = sld [smem:[#allocation3 + $0x3b]] }
 0x12e   : > { %1000 = vrot.lane.b32.xlu0 %v6388_v10, %s11892_s11  ;;  %v1081_v10 = vmul.f32 %v1079_v29, %v7475_v5  ;;  %v1102_v11 = vmul.f32 %v1101_v8, %v7479_v6 }
 0x130   : > { %v6401_v18 = vrot.slane %v1081_v10, 10  ;;  %v6403_v21 = vrot.slane %v1102_v11, 10 }
 0x131   : > { %1002 = vrot.lane.b32.xlu1 %v6389_v17, %s11892_s11  ;;  %v1123_v17 = vstv %s6405_s23  ;;  %s6448_s23 = sld [smem:[#allocation3 + $0x3c]] }
 0x132   : > { %1022 = vrot.lane.b32.xlu0 %v6391_v20, %s11892_s11  ;;  %v1103_v20 = vmul.f32 %v1101_v8, %v7475_v5  ;;  %v1124_v22 = vmul.f32 %v1123_v17, %v7479_v6 }
 0x134   : > { %v6404_v25 = vrot.slane %v1103_v20, 10  ;;  %v6406_v28 = vrot.slane %v1124_v22, 10 }
 0x135   : > { %1024 = vrot.lane.b32.xlu1 %v6392_v24, %s11892_s11  ;;  %v1145_v24 = vstv %s6408_s24  ;;  %s6451_s24 = sld [smem:[#allocation3 + $0x3d]] }
 0x136   : > { %1044 = vrot.lane.b32.xlu0 %v6394_v27, %s11892_s11  ;;  %v1125_v27 = vmul.f32 %v1123_v17, %v7475_v5  ;;  %v1146_v29 = vmul.f32 %v1145_v24, %v7479_v6 }
 0x138   : > { %v6407_v16 = vrot.slane %v1125_v27, 10  ;;  %v6409_v7 = vrot.slane %v1146_v29, 11 }
 0x139   : > { %1046 = vrot.lane.b32.xlu1 %v6395_v62, %s11892_s11  ;;  %v1167_v62 = vstv %s6411_s26  ;;  %s6454_s26 = sld [smem:[#allocation3 + $0x3e]] }
 0x13a   : > { %1066 = vrot.lane.b32.xlu0 %v6397_v1, %s11892_s11  ;;  %v1147_v1 = vmul.f32 %v1145_v24, %v7475_v5  ;;  %v1168_v8 = vmul.f32 %v1167_v62, %v7479_v6 }
 0x13c   : > { %v6410_v10 = vrot.slane %v1147_v1, 11  ;;  %v6412_v11 = vrot.slane %v1168_v8, 11  ;;  %v1262_v1 = vstv %s6421_s30  ;;  %v1280_v8 = vstv %s6422_s8  ;;  %s6461_s30 = sld [smem:[#allocation3 + $0x41]]  ;;  %s7627_s8 = sld [smem:[#allocation3 + $0x42]] }
 0x13d   : > { %1068 = vrot.lane.b32.xlu1 %v6398_v9, %s11892_s11  ;;  %v1189_v9 = vstv %s6414_s28  ;;  %s6457_s28 = sld [smem:[#allocation3 + $0x3f]] }
 0x13e   : > { %1088 = vrot.lane.b32.xlu0 %v6400_v15, %s11892_s11  ;;  %v1169_v15 = vmul.f32 %v1167_v62, %v7475_v5  ;;  %v1190_v17 = vmul.f32 %v1189_v9, %v7479_v6 }
 0x140   : > { %v6413_v20 = vrot.slane %v1169_v15, 11  ;;  %v6415_v22 = vrot.slane %v1190_v17, 11  ;;  %v1316_v15 = vstv %s6424_s12  ;;  %s6463_s12 = sld [smem:[#allocation3 + $0x43]] }
 0x141   : > { %1090 = vrot.lane.b32.xlu1 %v6401_v18, %s11892_s11  ;;  %v1211_v18 = vstv %s6417_s29  ;;  %v1317_v17 = vmul.f32 %v1316_v15, %v7503_v23  ;;  %s7619_s29 = sld [smem:[#allocation3 + $0x40]] }
 0x142   : > { %1110 = vrot.lane.b32.xlu0 %v6403_v21, %s11892_s11  ;;  %v1191_v21 = vmul.f32 %v1189_v9, %v7475_v5  ;;  %v1212_v24 = vmul.f32 %v1211_v18, %v7479_v6  ;;  %v1281_v9 = vmul.f32 %v1280_v8, %v7503_v23 }
 0x144   : > { %v6416_v27 = vrot.slane %v1191_v21, 11  ;;  %v6418_v62 = vrot.slane %v1212_v24, 11  ;;  %v1338_v21 = vstv %s6427_s15  ;;  %s6466_s15 = sld [smem:[#allocation3 + $0x45]] }
 0x145   : > { %1112 = vrot.lane.b32.xlu1 %v6404_v25, %s11892_s11  ;;  %v1233_v25 = vld [vmem:[#allocation2 + $0x8] sm:$0xf]  ;;  %v1339_v24 = vmul.f32 %v1338_v21, %v7503_v23 }
 0x146   : > { %1132 = vrot.lane.b32.xlu0 %v6406_v28, %s11892_s11  ;;  %v1213_v28 = vmul.f32 %v1211_v18, %v7475_v5  ;;  %v7560_v29 = vmul.f32 %v7487_v14, %v1233_v25  ;;  %v1263_v5 = vmul.f32 %v1262_v1, %v7503_v23 }
 0x148   : > { %v1245_v6 = vmul.f32 %v1243_v26, %v7560_v29  ;;  %v1282_v26 = vmul.f32 %v1280_v8, %v7560_v29 }
 0x149   : > { %1134 = vrot.lane.b32.xlu1 %v6407_v16, %s11892_s11  ;;  %v6419_v16 = vrot.slane %v1213_v28, 11  ;;  %v1360_v28 = vstv %s6430_s14  ;;  %s6468_s14 = sld [smem:[#allocation3 + $0x46]] }
 0x14a   : > { %1154 = vrot.lane.b32.xlu0 %v6409_v7, %s11892_s11  ;;  %v1264_v7 = vmul.f32 %v1262_v1, %v7560_v29  ;;  %v1362_v1 = vmul.f32 %v1360_v28, %v7560_v29 }
 0x14d   : > { %1156 = vrot.lane.b32.xlu1 %v6410_v10, %s11892_s11  ;;  %v1298_v10 = vstv %s6423_s10  ;;  %s7629_s10 = sld [smem:[#allocation3 + $0x44]] }
 0x14e   : > { %1176 = vrot.lane.b32.xlu0 %v6412_v11, %s11892_s11  ;;  %v1299_v11 = vmul.f32 %v1298_v10, %v7503_v23  ;;  %v1300_v18 = vmul.f32 %v1298_v10, %v7560_v29  ;;  %v1404_v10 = vstv %s6436_s17  ;;  %s6472_s17 = sld [smem:[#allocation3 + $0x48]] }
 0x151   : > { %1178 = vrot.lane.b32.xlu1 %v6413_v20, %s11892_s11  ;;  %v1318_v20 = vmul.f32 %v1316_v15, %v7560_v29 }
 0x152   : > { %1198 = vrot.lane.b32.xlu0 %v6415_v22, %s11892_s11  ;;  %v6425_v22 = vrot.slane %v1317_v17, 9 }
 0x153   : > { %v6426_v25 = vrot.slane %v1318_v20, 9  ;;  %v1426_v20 = vstv %s6439_s19  ;;  %s6474_s19 = sld [smem:[#allocation3 + $0x49]] }
 0x155   : > { %1200 = vrot.lane.b32.xlu1 %v6416_v27, %s11892_s11  ;;  %v1340_v27 = vmul.f32 %v1338_v21, %v7560_v29 }
 0x156   : > { %1220 = vrot.lane.b32.xlu0 %v6418_v62, %s11892_s11  ;;  %v6428_v62 = vrot.slane %v1339_v24, 9 }
 0x159   : > { %1222 = vrot.lane.b32.xlu1 %v6419_v16, %s11892_s11  ;;  %v1361_v16 = vmul.f32 %v1360_v28, %v7503_v23  ;;  %s8234_s11 = sld [smem:[#allocation3 + $0xb]] }
 0x15a   : > { %1250 = vrot.lane.b32.xlu0 %v1245_v6, %s11890_s18  ;;  %v6429_v6 = vrot.slane %v1340_v27, 9  ;;  %v1448_v27 = vstv %s6442_s20  ;;  %s6476_s20 = sld [smem:[#allocation3 + $0x4a]] }
 0x15d   : > { %1267 = vrot.lane.b32.xlu1 %v1263_v5, %s11890_s18  ;;  %v1382_v5 = vstv %s6433_s16  ;;  %s6470_s16 = sld [smem:[#allocation3 + $0x47]] }
 0x15e   : > { %1269 = vrot.lane.b32.xlu0 %v1264_v7, %s11890_s18  ;;  %v6431_v7 = vrot.slane %v1361_v16, 9  ;;  %v1383_v8 = vmul.f32 %v1382_v5, %v7503_v23 }
 0x160   : > { %v6434_v15 = vrot.slane %v1383_v8, 9 }
 0x161   : > { %1285 = vrot.lane.b32.xlu1 %v1281_v9, %s11890_s18  ;;  %v6432_v9 = vrot.slane %v1362_v1, 9  ;;  %v1470_v1 = vstv %s6445_s22  ;;  %s6478_s22 = sld [smem:[#allocation3 + $0x4b]] }
 0x162   : > { %1287 = vrot.lane.b32.xlu0 %v1282_v26, %s11890_s18  ;;  %v1384_v26 = vmul.f32 %v1382_v5, %v7560_v29 }
 0x164   : > { %v6435_v17 = vrot.slane %v1384_v26, 9  ;;  %v1492_v26 = vstv %s6448_s23  ;;  %s6480_s23 = sld [smem:[#allocation3 + $0x4c]] }
 0x165   : > { %1303 = vrot.lane.b32.xlu1 %v1299_v11, %s11890_s18  ;;  %v1405_v11 = vmul.f32 %v1404_v10, %v7503_v23 }
 0x166   : > { %1305 = vrot.lane.b32.xlu0 %v1300_v18, %s11890_s18  ;;  %v1406_v18 = vmul.f32 %v1404_v10, %v7560_v29 }
 0x167   : > { %v6437_v21 = vrot.slane %v1405_v11, 10 }
 0x168   : > { %v6438_v24 = vrot.slane %v1406_v18, 10  ;;  %v1514_v18 = vstv %s6451_s24  ;;  %s6482_s24 = sld [smem:[#allocation3 + $0x4d]] }
 0x169   : > { %1325 = vrot.lane.b32.xlu1 %v6425_v22, %s11890_s18  ;;  %v1427_v22 = vmul.f32 %v1426_v20, %v7503_v23 }
 0x16a   : > { %1327 = vrot.lane.b32.xlu0 %v6426_v25, %s11890_s18  ;;  %v1428_v25 = vmul.f32 %v1426_v20, %v7560_v29 }
 0x16b   : > { %v6440_v28 = vrot.slane %v1427_v22, 10 }
 0x16c   : > { %v6441_v16 = vrot.slane %v1428_v25, 10  ;;  %v1536_v25 = vstv %s6454_s26  ;;  %s6484_s26 = sld [smem:[#allocation3 + $0x4e]] }
 0x16d   : > { %1347 = vrot.lane.b32.xlu1 %v6428_v62, %s11890_s18  ;;  %v1449_v62 = vmul.f32 %v1448_v27, %v7503_v23 }
 0x16e   : > { %1349 = vrot.lane.b32.xlu0 %v6429_v6, %s11890_s18  ;;  %v1450_v6 = vmul.f32 %v1448_v27, %v7560_v29 }
 0x16f   : > { %v6443_v5 = vrot.slane %v1449_v62, 10  ;;  %v1537_v62 = vmul.f32 %v1536_v25, %v7503_v23 }
 0x170   : > { %v6444_v8 = vrot.slane %v1450_v6, 10  ;;  %v1538_v6 = vmul.f32 %v1536_v25, %v7560_v29  ;;  %v1617_v25 = vstv %s6463_s12  ;;  %s6491_s12 = sld [smem:[#allocation3 + $0x53]] }
 0x171   : > { %1369 = vrot.lane.b32.xlu1 %v6431_v7, %s11890_s18  ;;  %v1471_v7 = vmul.f32 %v1470_v1, %v7503_v23 }
 0x172   : > { %1371 = vrot.lane.b32.xlu0 %v6432_v9, %s11890_s18  ;;  %v1472_v9 = vmul.f32 %v1470_v1, %v7560_v29  ;;  %v1558_v1 = vstv %s6457_s28  ;;  %s6486_s28 = sld [smem:[#allocation3 + $0x4f]] }
 0x173   : > { %v6446_v10 = vrot.slane %v1471_v7, 10  ;;  %v6455_v7 = vrot.slane %v1537_v62, 11 }
 0x174   : > { %v6447_v11 = vrot.slane %v1472_v9, 10  ;;  %v6456_v9 = vrot.slane %v1538_v6, 11 }
 0x175   : > { %1391 = vrot.lane.b32.xlu1 %v6434_v15, %s11890_s18  ;;  %v1493_v15 = vmul.f32 %v1492_v26, %v7503_v23 }
 0x176   : > { %1393 = vrot.lane.b32.xlu0 %v6435_v17, %s11890_s18  ;;  %v1494_v17 = vmul.f32 %v1492_v26, %v7560_v29  ;;  %v1560_v26 = vmul.f32 %v1558_v1, %v7560_v29 }
 0x177   : > { %v6449_v20 = vrot.slane %v1493_v15, 11  ;;  %v1581_v15 = vstv %s7619_s29  ;;  %s7165_s29 = smov 1  }
 0x178   : > { %v6450_v22 = vrot.slane %v1494_v17, 11 }
 0x179   : > { %1413 = vrot.lane.b32.xlu1 %v6437_v21, %s11890_s18  ;;  %v1515_v21 = vmul.f32 %v1514_v18, %v7503_v23 }
 0x17a   : > { %1415 = vrot.lane.b32.xlu0 %v6438_v24, %s11890_s18  ;;  %v1516_v24 = vmul.f32 %v1514_v18, %v7560_v29  ;;  %v1593_v18 = vstv %s6461_s30  ;;  %s6488_s30 = sld [smem:[#allocation3 + $0x50]] }
 0x17d   : > { %1435 = vrot.lane.b32.xlu1 %v6440_v28, %s11890_s18  ;;  %v6452_v28 = vrot.slane %v1515_v21, 11  ;;  %v1605_v21 = vstv %s7627_s8  ;;  %s6489_s8 = sld [smem:[#allocation3 + $0x51]] }
 0x17e   : > { %1437 = vrot.lane.b32.xlu0 %v6441_v16, %s11890_s18  ;;  %v6453_v16 = vrot.slane %v1516_v24, 11 }
 0x181   : > { %1457 = vrot.lane.b32.xlu1 %v6443_v5, %s11890_s18 }
 0x182   : > { %1459 = vrot.lane.b32.xlu0 %v6444_v8, %s11890_s18  ;;  %v1559_v8 = vmul.f32 %v1558_v1, %v7503_v23  ;;  %v6459_v23 = vrot.slane %v1560_v26, 11 }
 0x184   : > { %v6458_v17 = vrot.slane %v1559_v8, 11 }
 0x185   : > { %1479 = vrot.lane.b32.xlu1 %v6446_v10, %s11890_s18  ;;  %v7637_v10 = vld [vmem:[#allocation2 + $0x4] sm:$0xff] }
 0x186   : > { %1481 = vrot.lane.b32.xlu0 %v6447_v11, %s11890_s18  ;;  %v1594_v29 = vmul.f32 %v1593_v18, %v7637_v10  ;;  %v1606_v62 = vmul.f32 %v1605_v21, %v7637_v10  ;;  %v1618_v6 = vmul.f32 %v1617_v25, %v7637_v10 }
 0x189   : > { %1501 = vrot.lane.b32.xlu1 %v6449_v20, %s11890_s18  ;;  %v1582_v20 = vmul.f32 %v1581_v15, %v7637_v10 }
 0x18a   : > { %1503 = vrot.lane.b32.xlu0 %v6450_v22, %s11890_s18  ;;  %v1629_v22 = vstv %s7629_s10  ;;  %s6490_s10 = sld [smem:[#allocation3 + $0x52]] }
 0x18b   : > { %v7621_v27 = vpop.permute.xlu1 %903 }
 0x18c   : > { %12164 = vst [vmem:[#allocation33_spill] sm:$0xff] %v7621_v27 }
 0x18d   : > { %1523 = vrot.lane.b32.xlu1 %v6452_v28, %s11890_s18  ;;  %v1643_v28 = vstv %s6466_s15  ;;  %s6492_s15 = sld [smem:[#allocation3 + $0x54]] }
 0x18e   : > { %1525 = vrot.lane.b32.xlu0 %v6453_v16, %s11890_s18  ;;  %v1630_v16 = vmul.f32 %v1629_v22, %v7637_v10  ;;  %v1644_v1 = vmul.f32 %v1643_v28, %v7637_v10 }
 0x18f   : > { %v7631_v5 = vpop.permute.xlu1 %922 }
 0x190   : > { %12165 = vst [vmem:[#allocation34_spill] sm:$0xff] %v7631_v5  ;;  %v6465_v26 = vrot.slane %v1630_v16, 9 }
 0x191   : > { %1545 = vrot.lane.b32.xlu1 %v6455_v7, %s11890_s18  ;;  %v1657_v7 = vstv %s6468_s14  ;;  %s11886_s14 = smov 110  }
 0x192   : > { %1547 = vrot.lane.b32.xlu0 %v6456_v9, %s11890_s18  ;;  %v1671_v9 = vstv %s6470_s16  ;;  %v1658_v15 = vmul.f32 %v1657_v7, %v7637_v10  ;;  %s6495_s16 = sld [smem:[#allocation3 + $0x55]] }
 0x193   : > { %v7640_v11 = vpop.permute.xlu1 %940  ;;  %v1672_v18 = vmul.f32 %v1671_v9, %v7637_v10 }
 0x194   : > { %12166 = vst [vmem:[#allocation35_spill] sm:$0xff] %v7640_v11  ;;  %v6469_v21 = vrot.slane %v1658_v15, 9  ;;  %v1741_v15 = vstv %s6480_s23  ;;  %s6510_s23 = sld [smem:[#allocation3 + $0x5a]] }
 0x195   : > { %1567 = vrot.lane.b32.xlu1 %v6458_v17, %s11890_s18  ;;  %v6467_v17 = vrot.slane %v1644_v1, 9  ;;  %v6471_v25 = vrot.slane %v1672_v18, 9  ;;  %v1755_v18 = vstv %s6482_s24  ;;  %s6513_s24 = sld [smem:[#allocation3 + $0x5b]] }
 0x196   : > { %1569 = vrot.lane.b32.xlu0 %v6459_v23, %s11890_s18  ;;  %v1685_v23 = vstv %s6472_s17  ;;  %s6498_s17 = sld [smem:[#allocation3 + $0x56]]  ;;  %s8232_s18 = sld [smem:[#allocation3 + $0x7]] }
 0x197   : > { %v7648_v24 = vpop.permute.xlu1 %958  ;;  %v1686_v22 = vmul.f32 %v1685_v23, %v7637_v10 }
 0x198   : > { %12167 = vst [vmem:[#allocation36_spill] sm:$0xff] %v7648_v24 }
 0x199   : > { %1584 = vrot.lane.b32.xlu1 %v1582_v20, %s11888_s9  ;;  %v6473_v1 = vrot.slane %v1686_v22, 10  ;;  %v1756_v22 = vmul.f32 %v1755_v18, %v7637_v10 }
 0x19a   : > { %1596 = vrot.lane.b32.xlu0 %v1594_v29, %s11888_s9  ;;  %v1699_v29 = vstv %s6474_s19  ;;  %s6501_s19 = sld [smem:[#allocation3 + $0x57]] }
 0x19b   : > { %v7656_v8 = vpop.permute.xlu1 %1248  ;;  %v1700_v28 = vmul.f32 %v1699_v29, %v7637_v10  ;;  %v1742_v29 = vmul.f32 %v1741_v15, %v7637_v10 }
 0x19c   : > { %12168 = vst [vmem:[#allocation37_spill] sm:$0xff] %v7656_v8  ;;  %v411_v61 = vstv %s8232_s18  ;;  %s8420_s18 = sld [smem:[#allocation3 + $0x83]] }
 0x19d   : > { %1608 = vrot.lane.b32.xlu1 %v1606_v62, %s11888_s9  ;;  %v1713_v62 = vstv %s6476_s20  ;;  %v6475_v9 = vrot.slane %v1700_v28, 10  ;;  %v6481_v28 = vrot.slane %v1742_v29, 11  ;;  %s6504_s20 = sld [smem:[#allocation3 + $0x58]] }
 0x19e   : > { %1620 = vrot.lane.b32.xlu0 %v1618_v6, %s11888_s9  ;;  %v1727_v6 = vstv %s6478_s22  ;;  %v1714_v7 = vmul.f32 %v1713_v62, %v7637_v10  ;;  %v1769_v62 = vstv %s6484_s26  ;;  %s6507_s22 = sld [smem:[#allocation3 + $0x59]]  ;;  %s6516_s26 = sld [smem:[#allocation3 + $0x5c]] }
 0x19f   : > { %v7662_v20 = vpop.permute.xlu1 %980 }
 0x1a0   : > { %12169 = vst [vmem:[#allocation38_spill] sm:$0xff] %v7662_v20  ;;  %v6477_v23 = vrot.slane %v1714_v7, 10 }
 0x1a1   : > { %1634 = vrot.lane.b32.xlu1 %v6465_v26, %s11888_s9  ;;  %v1728_v26 = vmul.f32 %v1727_v6, %v7637_v10  ;;  %v1770_v6 = vmul.f32 %v1769_v62, %v7637_v10 }
 0x1a2   : > { %1648 = vrot.lane.b32.xlu0 %v6467_v17, %s11888_s9 }
 0x1a3   : > { %v7668_v16 = vpop.permute.xlu1 %1002 }
 0x1a4   : > { %12170 = vst [vmem:[#allocation39_spill] sm:$0xff] %v7668_v16 }
 0x1a5   : > { %1662 = vrot.lane.b32.xlu1 %v6469_v21, %s11888_s9  ;;  %v6479_v21 = vrot.slane %v1728_v26, 10 }
 0x1a6   : > { %1676 = vrot.lane.b32.xlu0 %v6471_v25, %s11888_s9  ;;  %v1783_v25 = vstv %s6486_s28  ;;  %s6519_s28 = sld [smem:[#allocation3 + $0x5d]] }
 0x1a7   : > { %v7674_v17 = vpop.permute.xlu1 %1024  ;;  %v1784_v7 = vmul.f32 %v1783_v25, %v7637_v10 }
 0x1a8   : > { %12171 = vst [vmem:[#allocation40_spill] sm:$0xff] %v7674_v17  ;;  %v1919_v17 = vstv %s6498_s17  ;;  %s6532_s17 = sld [smem:[#allocation3 + $0x64]] }
 0x1a9   : > { %1690 = vrot.lane.b32.xlu1 %v6473_v1, %s11888_s9  ;;  %v6483_v1 = vrot.slane %v1756_v22, 11  ;;  %v6487_v26 = vrot.slane %v1784_v7, 11 }
 0x1aa   : > { %1704 = vrot.lane.b32.xlu0 %v6475_v9, %s11888_s9  ;;  %v6485_v9 = vrot.slane %v1770_v6, 11 }
 0x1ab   : > { %v7680_v0 = vpop.permute.xlu1 %1046 }
 0x1ac   : > { %12172 = vst [vmem:[#allocation41_spill] sm:$0xff] %v7680_v0 }
 0x1ad   : > { %1718 = vrot.lane.b32.xlu1 %v6477_v23, %s11888_s9  ;;  %v7694_v23 = vpop.permute.xlu0 %901 }
 0x1ae   : > { %1732 = vrot.lane.b32.xlu0 %v6479_v21, %s11888_s9  ;;  %12175 = vst [vmem:[#allocation44_spill] sm:$0xff] %v7694_v23 }
 0x1af   : > { %v7686_v15 = vpop.permute.xlu1 %1068 }
 0x1b0   : > { %12173 = vst [vmem:[#allocation42_spill] sm:$0xff] %v7686_v15 }
 0x1b1   : > { %1746 = vrot.lane.b32.xlu1 %v6481_v28, %s11888_s9  ;;  %v7701_v22 = vpop.permute.xlu0 %920 }
 0x1b2   : > { %1760 = vrot.lane.b32.xlu0 %v6483_v1, %s11888_s9  ;;  %12178 = vst [vmem:[#allocation47_spill] sm:$0xff] %v7701_v22 }
 0x1b3   : > { %v7690_v18 = vpop.permute.xlu1 %1090 }
 0x1b4   : > { %12174 = vst [vmem:[#allocation43_spill] sm:$0xff] %v7690_v18 }
 0x1b5   : > { %1774 = vrot.lane.b32.xlu1 %v6485_v9, %s11888_s9  ;;  %v7705_v25 = vpop.permute.xlu0 %938 }
 0x1b6   : > { %1788 = vrot.lane.b32.xlu0 %v6487_v26, %s11888_s9  ;;  %12180 = vst [vmem:[#allocation49_spill] sm:$0xff] %v7705_v25  ;;  %s8230_s9 = sld [smem:[#allocation3 + $0x3]] }
 0x1b7   : > { %v7696_v29 = vpop.permute.xlu1 %1112 }
 0x1b8   : > { %12176 = vst [vmem:[#allocation45_spill] sm:$0xff] %v7696_v29 }
 0x1b9   : > { %1798 = vrot.lane.b32.xlu1 %v7327_v13, %s7165_s29  ;;  %v7711_v1 = vpop.permute.xlu0 %956  ;;  %s6522_s29 = sld [smem:[#allocation3 + $0x5e]] }
 0x1ba   : > { %12183 = vst [vmem:[#allocation52_spill] sm:$0xff] %v7711_v1 }
 0x1bb   : > { %v7699_v21 = vpop.permute.xlu1 %1134 }
 0x1bc   : > { %12177 = vst [vmem:[#allocation46_spill] sm:$0xff] %v7699_v21  ;;  %v363_v60 = vstv %s8230_s9  ;;  %s8371_s9 = sld [smem:[#allocation3 + $0x81]] }
 0x1bd   : > { %v7715_v9 = vpop.permute.xlu0 %978 }
 0x1be   : > { %12185 = vst [vmem:[#allocation54_spill] sm:$0xff] %v7715_v9 }
 0x1bf   : > { %v7703_v62 = vpop.permute.xlu1 %1156 }
 0x1c0   : > { %12179 = vst [vmem:[#allocation48_spill] sm:$0xff] %v7703_v62 }
 0x1c1   : > { %v7721_v14 = vpop.permute.xlu0 %1000 }
 0x1c2   : > { %12188 = vst [vmem:[#allocation57_spill] sm:$0xff] %v7721_v14 }
 0x1c3   : > { %v7707_v28 = vpop.permute.xlu1 %1178 }
 0x1c4   : > { %12181 = vst [vmem:[#allocation50_spill] sm:$0xff] %v7707_v28 }
 0x1c5   : > { %v7725_v63 = vpop.permute.xlu0 %1022 }
 0x1c6   : > { %12190 = vst [vmem:[#allocation59_spill] sm:$0xff] %v7725_v63  ;;  %v1898_v63 = vstv %s6495_s16  ;;  %s6531_s16 = sld [smem:[#allocation3 + $0x63]] }
 0x1c7   : > { %v7709_v6 = vpop.permute.xlu1 %1200 }
 0x1c8   : > { %12182 = vst [vmem:[#allocation51_spill] sm:$0xff] %v7709_v6 }
 0x1c9   : > { %v7731_v6 = vpop.permute.xlu0 %1044 }
 0x1ca   : > { %12193 = vst [vmem:[#allocation62_spill] sm:$0xff] %v7731_v6 }
 0x1cb   : > { %v7713_v7 = vpop.permute.xlu1 %1222 }
 0x1cc   : > { %12184 = vst [vmem:[#allocation53_spill] sm:$0xff] %v7713_v7 }
 0x1cd   : > { %v7735_v7 = vpop.permute.xlu0 %1066 }
 0x1ce   : > { %12195 = vst [vmem:[#allocation64_spill] sm:$0xff] %v7735_v7 }
 0x1cf   : > { %v7717_v26 = vpop.permute.xlu1 %1267 }
 0x1d0   : > { %12186 = vst [vmem:[#allocation55_spill] sm:$0xff] %v7717_v26 }
 0x1d3   : > { %v7719_v19 = vpop.permute.xlu1 %1285 }
 0x1d4   : > { %12187 = vst [vmem:[#allocation56_spill] sm:$0xff] %v7719_v19  ;;  %v7741_v19 = vpop.permute.xlu0 %1088 }
 0x1d5   : > { %12198 = vst [vmem:[#allocation67_spill] sm:$0xff] %v7741_v19 }
 0x1d7   : > { %v7723_v4 = vpop.permute.xlu1 %1303 }
 0x1d8   : > { %12189 = vst [vmem:[#allocation58_spill] sm:$0xff] %v7723_v4  ;;  %v7745_v4 = vpop.permute.xlu0 %1110 }
 0x1d9   : > { %12200 = vst [vmem:[#allocation69_spill] sm:$0xff] %v7745_v4 }
 0x1db   : > { %v7727_v62 = vpop.permute.xlu1 %1325 }
 0x1dc   : > { %12191 = vst [vmem:[#allocation60_spill] sm:$0xff] %v7727_v62 }
 0x1df   : > { %v7729_v28 = vpop.permute.xlu1 %1347 }
 0x1e0   : > { %12192 = vst [vmem:[#allocation61_spill] sm:$0xff] %v7729_v28  ;;  %v7751_v28 = vpop.permute.xlu0 %1132 }
 0x1e1   : > { %12203 = vst [vmem:[#allocation72_spill] sm:$0xff] %v7751_v28 }
 0x1e3   : > { %v7733_v21 = vpop.permute.xlu1 %1369 }
 0x1e4   : > { %12194 = vst [vmem:[#allocation63_spill] sm:$0xff] %v7733_v21  ;;  %v7755_v21 = vpop.permute.xlu0 %1154 }
 0x1e5   : > { %12205 = vst [vmem:[#allocation74_spill] sm:$0xff] %v7755_v21 }
 0x1e7   : > { %v7737_v29 = vpop.permute.xlu1 %1391 }
 0x1e8   : > { %12196 = vst [vmem:[#allocation65_spill] sm:$0xff] %v7737_v29 }
 0x1eb   : > { %v7739_v26 = vpop.permute.xlu1 %1413 }
 0x1ec   : > { %12197 = vst [vmem:[#allocation66_spill] sm:$0xff] %v7739_v26  ;;  %v7761_v26 = vpop.permute.xlu0 %1176 }
 0x1ed   : > { %12208 = vst [vmem:[#allocation77_spill] sm:$0xff] %v7761_v26 }
 0x1ef   : > { %v7743_v18 = vpop.permute.xlu1 %1435 }
 0x1f0   : > { %12199 = vst [vmem:[#allocation68_spill] sm:$0xff] %v7743_v18  ;;  %v7765_v18 = vpop.permute.xlu0 %1198 }
 0x1f1   : > { %12210 = vst [vmem:[#allocation79_spill] sm:$0xff] %v7765_v18 }
 0x1f3   : > { %v7747_v15 = vpop.permute.xlu1 %1457 }
 0x1f4   : > { %12201 = vst [vmem:[#allocation70_spill] sm:$0xff] %v7747_v15 }
 0x1f7   : > { %v7749_v62 = vpop.permute.xlu1 %1479 }
 0x1f8   : > { %12202 = vst [vmem:[#allocation71_spill] sm:$0xff] %v7749_v62  ;;  %v7771_v62 = vpop.permute.xlu0 %1220 }
 0x1f9   : > { %12213 = vst [vmem:[#allocation82_spill] sm:$0xff] %v7771_v62  ;;  %v1826_v62 = vstv %s6489_s8  ;;  %s7167_s8 = smov 15  }
 0x1fb   : > { %v7753_v6 = vpop.permute.xlu1 %1501 }
 0x1fc   : > { %12204 = vst [vmem:[#allocation73_spill] sm:$0xff] %v7753_v6  ;;  %v7775_v6 = vpop.permute.xlu0 %1250 }
 0x1fd   : > { %12215 = vst [vmem:[#allocation84_spill] sm:$0xff] %v7775_v6 }
 0x1ff   : > { %v7757_v7 = vpop.permute.xlu1 %1523 }
 0x200   : > { %12206 = vst [vmem:[#allocation75_spill] sm:$0xff] %v7757_v7 }
 0x203   : > { %v7759_v29 = vpop.permute.xlu1 %1545 }
 0x204   : > { %12207 = vst [vmem:[#allocation76_spill] sm:$0xff] %v7759_v29  ;;  %v7781_v29 = vpop.permute.xlu0 %1269 }
 0x205   : > { %12218 = vst [vmem:[#allocation87_spill] sm:$0xff] %v7781_v29 }
 0x207   : > { %v7763_v19 = vpop.permute.xlu1 %1567 }
 0x208   : > { %12209 = vst [vmem:[#allocation78_spill] sm:$0xff] %v7763_v19  ;;  %v7785_v19 = vpop.permute.xlu0 %1287 }
 0x209   : > { %12220 = vst [vmem:[#allocation89_spill] sm:$0xff] %v7785_v19 }
 0x20b   : > { %v7767_v4 = vpop.permute.xlu1 %1584 }
 0x20c   : > { %12211 = vst [vmem:[#allocation80_spill] sm:$0xff] %v7767_v4  ;;  %v7791_v4 = vpop.permute.xlu0 %1305 }
 0x20d   : > { %12223 = vst [vmem:[#allocation92_spill] sm:$0xff] %v7791_v4 }
 0x20f   : > { %v7769_v15 = vpop.permute.xlu1 %1608 }
 0x210   : > { %12212 = vst [vmem:[#allocation81_spill] sm:$0xff] %v7769_v15 }
 0x213   : > { %v7773_v28 = vpop.permute.xlu1 %1634 }
 0x214   : > { %12214 = vst [vmem:[#allocation83_spill] sm:$0xff] %v7773_v28  ;;  %v1797_v28 = vld [vmem:[#allocation2 + $0xc] sm:$0xf] }
 0x217   : > { %v7777_v21 = vpop.permute.xlu1 %1662 }
 0x218   : > { %12216 = vst [vmem:[#allocation85_spill] sm:$0xff] %v7777_v21 }
 0x21b   : > { %v7779_v7 = vpop.permute.xlu1 %1690 }
 0x21c   : > { %12217 = vst [vmem:[#allocation86_spill] sm:$0xff] %v7779_v7  ;;  %v1808_v7 = vstv %s6488_s30  ;;  %s6525_s30 = sld [smem:[#allocation3 + $0x5f]] }
 0x21f   : > { %v7783_v26 = vpop.permute.xlu1 %1718 }
 0x220   : > { %12219 = vst [vmem:[#allocation88_spill] sm:$0xff] %v7783_v26 }
 0x223   : > { %v7787_v18 = vpop.permute.xlu1 %1746 }
 0x224   : > { %12221 = vst [vmem:[#allocation90_spill] sm:$0xff] %v7787_v18  ;;  %v7801_v18 = vpop.permute.xlu0 %1327 }
 0x225   : > { %12226 = vst [vmem:[#allocation95_spill] sm:$0xff] %v7801_v18  ;;  %v1860_v18 = vstv %s6491_s12  ;;  %s6529_s12 = sld [smem:[#allocation3 + $0x61]] }
 0x227   : > { %v7789_v15 = vpop.permute.xlu1 %1774 }
 0x228   : > { %12222 = vst [vmem:[#allocation91_spill] sm:$0xff] %v7789_v15 }
 0x22b   : > { %v1799_v6 = vpop.permute.xlu1 %1798 }
 0x22c   : > { %v7793_v21 = vrot.slane %v1799_v6, 4 }
 0x22e   : > { %12224 = vst [vmem:[#allocation93_spill] sm:$0xff] %v7793_v21  ;;  %v7796_v29 = vsel %vm1801_vm2, %v7793_v21, %v1799_v6  ;;  %v7799_v26 = vmul.f32 %v7793_v21, %v1797_v28  ;;  %v7812_v6 = vpop.permute.xlu0 %1349 }
 0x22f   : > { %12225 = vst [vmem:[#allocation94_spill] sm:$0xff] %v7796_v29  ;;  %v7805_v15 = vmul.f32 %v7796_v29, %v7637_v10  ;;  %12227 = vst [vmem:[#allocation96_spill] sm:$0xff] %v7812_v6  ;;  %v1843_v10 = vstv %s6490_s10  ;;  %s6528_s10 = sld [smem:[#allocation3 + $0x60]] }
 0x230   : > { %v1810_v4 = vmul.f32 %v1808_v7, %v7799_v26  ;;  %v1828_v28 = vmul.f32 %v1826_v62, %v7799_v26 }
 0x231   : > { %v1809_v19 = vmul.f32 %v1808_v7, %v7805_v15  ;;  %v1827_v21 = vmul.f32 %v1826_v62, %v7805_v15  ;;  %v1845_v7 = vmul.f32 %v1843_v10, %v7799_v26  ;;  %v1844_v29 = vmul.f32 %v1843_v10, %v7805_v15 }
 0x232   : > { %1815 = vrot.lane.b32.xlu1 %v1810_v4, %s11886_s14  ;;  %v1877_v4 = vstv %s6492_s15  ;;  %v1862_v62 = vmul.f32 %v1860_v18, %v7799_v26  ;;  %v1899_v0 = vmul.f32 %v1898_v63, %v7805_v15  ;;  %s6530_s15 = sld [smem:[#allocation3 + $0x62]] }
 0x233   : > { %1813 = vrot.lane.b32.xlu0 %v1809_v19, %s11886_s14  ;;  %v7820_v19 = vpop.permute.xlu0 %1371  ;;  %v1879_v6 = vmul.f32 %v1877_v4, %v7799_v26 }
 0x234   : > { %12228 = vst [vmem:[#allocation97_spill] sm:$0xff] %v7820_v19 }
 0x235   : > { %v6494_v10 = vrot.slane %v1879_v6, 9  ;;  %v1940_v6 = vstv %s6501_s19  ;;  %s11884_s19 = smov 96  }
 0x236   : > { %1833 = vrot.lane.b32.xlu1 %v1828_v28, %s11886_s14  ;;  %v1861_v28 = vmul.f32 %v1860_v18, %v7805_v15 }
 0x237   : > { %1831 = vrot.lane.b32.xlu0 %v1827_v21, %s11886_s14  ;;  %v1878_v21 = vmul.f32 %v1877_v4, %v7805_v15  ;;  %v7830_v19 = vpop.permute.xlu0 %1393  ;;  %v1921_v4 = vmul.f32 %v1919_v17, %v7799_v26 }
 0x238   : > { %12229 = vst [vmem:[#allocation98_spill] sm:$0xff] %v7830_v19 }
 0x23a   : > { %1850 = vrot.lane.b32.xlu1 %v1845_v7, %s11886_s14  ;;  %v1900_v7 = vmul.f32 %v1898_v63, %v7799_v26  ;;  %v6500_v63 = vrot.slane %v1921_v4, 9  ;;  %v1982_v4 = vstv %s6507_s22  ;;  %s6538_s22 = sld [smem:[#allocation3 + $0x66]] }
 0x23b   : > { %1848 = vrot.lane.b32.xlu0 %v1844_v29, %s11886_s14  ;;  %v6493_v29 = vrot.slane %v1878_v21, 9  ;;  %v7838_v19 = vpop.permute.xlu0 %1415  ;;  %v1942_v21 = vmul.f32 %v1940_v6, %v7799_v26 }
 0x23c   : > { %v6497_v18 = vrot.slane %v1900_v7, 9  ;;  %12230 = vst [vmem:[#allocation99_spill] sm:$0xff] %v7838_v19  ;;  %v1961_v7 = vstv %s6504_s20  ;;  %s6535_s20 = sld [smem:[#allocation3 + $0x65]] }
 0x23e   : > { %1867 = vrot.lane.b32.xlu1 %v1862_v62, %s11886_s14  ;;  %v6496_v62 = vrot.slane %v1899_v0, 9  ;;  %v6503_v0 = vrot.slane %v1942_v21, 9  ;;  %v2003_v21 = vstv %s6510_s23  ;;  %s6541_s23 = sld [smem:[#allocation3 + $0x67]] }
 0x23f   : > { %1865 = vrot.lane.b32.xlu0 %v1861_v28, %s11886_s14  ;;  %v1920_v28 = vmul.f32 %v1919_v17, %v7805_v15  ;;  %v1963_v17 = vmul.f32 %v1961_v7, %v7799_v26 }
 0x242   : > { %1888 = vrot.lane.b32.xlu1 %v6494_v10, %s11886_s14  ;;  %v6499_v10 = vrot.slane %v1920_v28, 9  ;;  %v6506_v28 = vrot.slane %v1963_v17, 10  ;;  %v2024_v17 = vstv %s6513_s24  ;;  %s6544_s24 = sld [smem:[#allocation3 + $0x68]] }
 0x243   : > { %1886 = vrot.lane.b32.xlu0 %v6493_v29, %s11886_s14  ;;  %v1941_v29 = vmul.f32 %v1940_v6, %v7805_v15  ;;  %v1984_v6 = vmul.f32 %v1982_v4, %v7799_v26 }
 0x245   : > { %v6502_v19 = vrot.slane %v1941_v29, 9  ;;  %v6509_v29 = vrot.slane %v1984_v6, 10  ;;  %v2045_v6 = vstv %s6516_s26  ;;  %s6547_s26 = sld [smem:[#allocation3 + $0x69]] }
 0x246   : > { %1909 = vrot.lane.b32.xlu1 %v6497_v18, %s11886_s14  ;;  %v7846_v18 = vpop.permute.xlu0 %1437 }
 0x247   : > { %1907 = vrot.lane.b32.xlu0 %v6496_v62, %s11886_s14  ;;  %12231 = vst [vmem:[#allocation100_spill] sm:$0xff] %v7846_v18  ;;  %v1962_v62 = vmul.f32 %v1961_v7, %v7805_v15  ;;  %v2005_v7 = vmul.f32 %v2003_v21, %v7799_v26 }
 0x24a   : > { %1930 = vrot.lane.b32.xlu1 %v6500_v63, %s11886_s14  ;;  %v6505_v63 = vrot.slane %v1962_v62, 10  ;;  %v7854_v18 = vpop.permute.xlu0 %1459  ;;  %v6512_v62 = vrot.slane %v2005_v7, 10  ;;  %v2066_v7 = vstv %s6519_s28  ;;  %s6550_s28 = sld [smem:[#allocation3 + $0x6a]] }
 0x24b   : > { %1928 = vrot.lane.b32.xlu0 %v6499_v10, %s11886_s14  ;;  %v1983_v10 = vmul.f32 %v1982_v4, %v7805_v15  ;;  %12232 = vst [vmem:[#allocation101_spill] sm:$0xff] %v7854_v18  ;;  %v2026_v4 = vmul.f32 %v2024_v17, %v7799_v26 }
 0x24e   : > { %1951 = vrot.lane.b32.xlu1 %v6503_v0, %s11886_s14  ;;  %v6508_v0 = vrot.slane %v1983_v10, 10  ;;  %v6515_v10 = vrot.slane %v2026_v4, 10  ;;  %v2087_v4 = vstv %s6522_s29  ;;  %s6553_s29 = sld [smem:[#allocation3 + $0x6b]] }
 0x24f   : > { %1949 = vrot.lane.b32.xlu0 %v6502_v19, %s11886_s14  ;;  %v2004_v19 = vmul.f32 %v2003_v21, %v7805_v15  ;;  %v2047_v21 = vmul.f32 %v2045_v6, %v7799_v26 }
 0x251   : > { %v6511_v18 = vrot.slane %v2004_v19, 10  ;;  %v6518_v19 = vrot.slane %v2047_v21, 11 }
 0x252   : > { %1972 = vrot.lane.b32.xlu1 %v6506_v28, %s11886_s14  ;;  %v7862_v28 = vpop.permute.xlu0 %1481 }
 0x253   : > { %1970 = vrot.lane.b32.xlu0 %v6505_v63, %s11886_s14  ;;  %12233 = vst [vmem:[#allocation102_spill] sm:$0xff] %v7862_v28  ;;  %v2025_v63 = vmul.f32 %v2024_v17, %v7805_v15  ;;  %v2068_v17 = vmul.f32 %v2066_v7, %v7799_v26 }
 0x256   : > { %1993 = vrot.lane.b32.xlu1 %v6509_v29, %s11886_s14  ;;  %v6514_v29 = vrot.slane %v2025_v63, 10  ;;  %v7870_v28 = vpop.permute.xlu0 %1503  ;;  %v6521_v63 = vrot.slane %v2068_v17, 11 }
 0x257   : > { %1991 = vrot.lane.b32.xlu0 %v6508_v0, %s11886_s14  ;;  %v2046_v0 = vmul.f32 %v2045_v6, %v7805_v15  ;;  %12234 = vst [vmem:[#allocation103_spill] sm:$0xff] %v7870_v28  ;;  %v2089_v6 = vmul.f32 %v2087_v4, %v7799_v26  ;;  %v2088_v28 = vmul.f32 %v2087_v4, %v7805_v15 }
 0x259   : > { %v6524_v21 = vrot.slane %v2089_v6, 11 }
 0x25a   : > { %2014 = vrot.lane.b32.xlu1 %v6512_v62, %s11886_s14  ;;  %v6517_v62 = vrot.slane %v2046_v0, 11  ;;  %v7878_v8 = vpop.permute.xlu0 %1525 }
 0x25b   : > { %2012 = vrot.lane.b32.xlu0 %v6511_v18, %s11886_s14  ;;  %v2067_v18 = vmul.f32 %v2066_v7, %v7805_v15  ;;  %12235 = vst [vmem:[#allocation104_spill] sm:$0xff] %v7878_v8  ;;  %v6523_v7 = vrot.slane %v2088_v28, 11  ;;  %v2272_v8 = vstv %s6541_s23  ;;  %s11881_s23 = smov 95  }
 0x25e   : > { %2035 = vrot.lane.b32.xlu1 %v6515_v10, %s11886_s14  ;;  %v6520_v10 = vrot.slane %v2067_v18, 11  ;;  %v7886_v17 = vpop.permute.xlu0 %1547 }
 0x25f   : > { %2033 = vrot.lane.b32.xlu0 %v6514_v29, %s11886_s14  ;;  %v2108_v29 = vstv %s6525_s30  ;;  %12236 = vst [vmem:[#allocation105_spill] sm:$0xff] %v7886_v17  ;;  %s6556_s30 = sld [smem:[#allocation3 + $0x6c]] }
 0x260   : > { %v2110_v0 = vmul.f32 %v2108_v29, %v7799_v26 }
 0x262   : > { %2056 = vrot.lane.b32.xlu1 %v6518_v19, %s11886_s14  ;;  %v2109_v19 = vmul.f32 %v2108_v29, %v7805_v15  ;;  %v7891_v4 = vpop.permute.xlu0 %1569 }
 0x263   : > { %2054 = vrot.lane.b32.xlu0 %v6517_v62, %s11886_s14  ;;  %v6527_v62 = vrot.slane %v2110_v0, 11  ;;  %12237 = vst [vmem:[#allocation106_spill] sm:$0xff] %v7891_v4  ;;  %v2251_v4 = vstv %s6538_s22  ;;  %s6572_s22 = sld [smem:[#allocation3 + $0x74]] }
 0x264   : > { %v6526_v18 = vrot.slane %v2109_v19, 11 }
 0x266   : > { %2077 = vrot.lane.b32.xlu1 %v6521_v63, %s11886_s14  ;;  %v7894_v26 = vpop.permute.xlu0 %1596 }
 0x267   : > { %2075 = vrot.lane.b32.xlu0 %v6520_v10, %s11886_s14  ;;  %12238 = vst [vmem:[#allocation107_spill] sm:$0xff] %v7894_v26 }
 0x26a   : > { %2098 = vrot.lane.b32.xlu1 %v6524_v21, %s11886_s14  ;;  %v7896_v15 = vpop.permute.xlu0 %1620 }
 0x26b   : > { %2096 = vrot.lane.b32.xlu0 %v6523_v7, %s11886_s14  ;;  %12239 = vst [vmem:[#allocation108_spill] sm:$0xff] %v7896_v15  ;;  %v2209_v15 = vstv %s6532_s17  ;;  %s6570_s17 = sld [smem:[#allocation3 + $0x72]] }
 0x26e   : > { %2119 = vrot.lane.b32.xlu1 %v6527_v62, %s11886_s14  ;;  %v7898_v28 = vpop.permute.xlu0 %1648 }
 0x26f   : > { %2117 = vrot.lane.b32.xlu0 %v6526_v18, %s11886_s14  ;;  %12240 = vst [vmem:[#allocation109_spill] sm:$0xff] %v7898_v28  ;;  %v2192_v28 = vstv %s6531_s16  ;;  %s6569_s16 = sld [smem:[#allocation3 + $0x71]]  ;;  %s8224_s14 = sld [smem:[#allocation5 + $0x3]] }
 0x272   : > { %v7900_v63 = vpop.permute.xlu0 %1676 }
 0x273   : > { %2130 = vrot.lane.b32.xlu0 %v7325_v12, %s7167_s8  ;;  %12241 = vst [vmem:[#allocation110_spill] sm:$0xff] %v7900_v63  ;;  %s6559_s8 = sld [smem:[#allocation3 + $0x6d]] }
 0x276   : > { %v7902_v6 = vpop.permute.xlu0 %1704 }
 0x277   : > { %12242 = vst [vmem:[#allocation111_spill] sm:$0xff] %v7902_v6 }
 0x27a   : > { %v7904_v10 = vpop.permute.xlu0 %1732 }
 0x27b   : > { %12243 = vst [vmem:[#allocation112_spill] sm:$0xff] %v7904_v10 }
 0x27e   : > { %v7906_v29 = vpop.permute.xlu0 %1760 }
 0x27f   : > { %12244 = vst [vmem:[#allocation113_spill] sm:$0xff] %v7906_v29 }
 0x282   : > { %v7908_v21 = vpop.permute.xlu0 %1788 }
 0x283   : > { %12245 = vst [vmem:[#allocation114_spill] sm:$0xff] %v7908_v21 }
 0x2a5   : > { %v7910_v0 = vpop.permute.xlu0 %1813 }
 0x2a6   : > { %12246 = vst [vmem:[#allocation115_spill] sm:$0xff] %v7910_v0 }
 0x2a9   : > { %v7912_v7 = vpop.permute.xlu0 %1831 }
 0x2aa   : > { %12247 = vst [vmem:[#allocation116_spill] sm:$0xff] %v7912_v7 }
 0x2ad   : > { %v7914_v12 = vpop.permute.xlu0 %1848 }
 0x2ae   : > { %12248 = vst [vmem:[#allocation117_spill] sm:$0xff] %v7914_v12 }
 0x2b1   : > { %v7916_v19 = vpop.permute.xlu0 %1865 }
 0x2b2   : > { %12249 = vst [vmem:[#allocation118_spill] sm:$0xff] %v7916_v19 }
 0x2b5   : > { %v7918_v62 = vpop.permute.xlu0 %1886 }
 0x2b6   : > { %12250 = vst [vmem:[#allocation119_spill] sm:$0xff] %v7918_v62  ;;  %v2158_v62 = vstv %s6529_s12  ;;  %s6565_s12 = sld [smem:[#allocation3 + $0x6f]] }
 0x2b9   : > { %v7920_v18 = vpop.permute.xlu0 %1907 }
 0x2ba   : > { %12251 = vst [vmem:[#allocation120_spill] sm:$0xff] %v7920_v18 }
 0x2bd   : > { %v7922_v63 = vpop.permute.xlu0 %1928 }
 0x2be   : > { %12252 = vst [vmem:[#allocation121_spill] sm:$0xff] %v7922_v63  ;;  %v2129_v63 = vld [vmem:[#allocation2 + $0xc] sm:$0xf] }
 0x2c1   : > { %v7924_v6 = vpop.permute.xlu0 %1949 }
 0x2c2   : > { %12253 = vst [vmem:[#allocation122_spill] sm:$0xff] %v7924_v6 }
 0x2c5   : > { %v7926_v10 = vpop.permute.xlu0 %1970 }
 0x2c6   : > { %12254 = vst [vmem:[#allocation123_spill] sm:$0xff] %v7926_v10  ;;  %v7942_v10 = vld [vmem:[#allocation2 + $0x4] sm:$0xff] }
 0x2c9   : > { %v7928_v29 = vpop.permute.xlu0 %1991 }
 0x2ca   : > { %12255 = vst [vmem:[#allocation124_spill] sm:$0xff] %v7928_v29 }
 0x2cd   : > { %v7930_v21 = vpop.permute.xlu0 %2012 }
 0x2ce   : > { %12256 = vst [vmem:[#allocation125_spill] sm:$0xff] %v7930_v21  ;;  %v2140_v21 = vstv %s6528_s10  ;;  %s6562_s10 = sld [smem:[#allocation3 + $0x6e]] }
 0x2d1   : > { %v7932_v0 = vpop.permute.xlu0 %2033 }
 0x2d2   : > { %12257 = vst [vmem:[#allocation126_spill] sm:$0xff] %v7932_v0 }
 0x2d5   : > { %v7934_v7 = vpop.permute.xlu0 %2054 }
 0x2d6   : > { %12258 = vst [vmem:[#allocation127_spill] sm:$0xff] %v7934_v7 }
 0x2d9   : > { %v7936_v12 = vpop.permute.xlu0 %2075 }
 0x2da   : > { %12259 = vst [vmem:[#allocation128_spill] sm:$0xff] %v7936_v12 }
 0x2dd   : > { %v7938_v19 = vpop.permute.xlu0 %2096 }
 0x2de   : > { %12260 = vst [vmem:[#allocation129_spill] sm:$0xff] %v7938_v19 }
 0x2e1   : > { %v7940_v18 = vpop.permute.xlu0 %2117 }
 0x2e2   : > { %12261 = vst [vmem:[#allocation130_spill] sm:$0xff] %v7940_v18 }
 0x2e5   : > { %v2131_v6 = vpop.permute.xlu0 %2130 }
 0x2e6   : > { %v7944_v29 = vrot.slane %v2131_v6, 4 }
 0x2e8   : > { %12262 = vst [vmem:[#allocation131_spill] sm:$0xff] %v7944_v29  ;;  %v7947_v0 = vsel %vm2133_vm3, %v7944_v29, %v2131_v6  ;;  %v7950_v12 = vmul.f32 %v7944_v29, %v2129_v63  ;;  %v2175_v29 = vstv %s6530_s15  ;;  %s6568_s15 = sld [smem:[#allocation3 + $0x70]] }
 0x2e9   : > { %12263 = vst [vmem:[#allocation132_spill] sm:$0xff] %v7947_v0  ;;  %v7954_v19 = vmul.f32 %v7947_v0, %v7942_v10 }
 0x2ea   : > { %v2142_v18 = vmul.f32 %v2140_v21, %v7950_v12  ;;  %v2160_v6 = vmul.f32 %v2158_v62, %v7950_v12 }
 0x2eb   : > { %v2141_v7 = vmul.f32 %v2140_v21, %v7954_v19  ;;  %v2159_v63 = vmul.f32 %v2158_v62, %v7954_v19  ;;  %v2177_v21 = vmul.f32 %v2175_v29, %v7950_v12  ;;  %v2176_v0 = vmul.f32 %v2175_v29, %v7954_v19 }
 0x2ec   : > { %2147 = vrot.lane.b32.xlu0 %v2142_v18, %s11884_s19  ;;  %v2211_v62 = vmul.f32 %v2209_v15, %v7950_v12  ;;  %v2193_v18 = vmul.f32 %v2192_v28, %v7954_v19 }
 0x2ed   : > { %2145 = vrot.lane.b32.xlu1 %v2141_v7, %s11884_s19  ;;  %v2194_v7 = vmul.f32 %v2192_v28, %v7950_v12 }
 0x2ee   : > { %v6534_v29 = vrot.slane %v2211_v62, 9  ;;  %v7981_v62 = vpop.permute.xlu1 %1815 }
 0x2ef   : > { %12264 = vst [vmem:[#allocation133_spill] sm:$0xff] %v7981_v62 }
 0x2f0   : > { %2165 = vrot.lane.b32.xlu0 %v2160_v6, %s11884_s19  ;;  %v2210_v6 = vmul.f32 %v2209_v15, %v7954_v19  ;;  %v2253_v15 = vmul.f32 %v2251_v4, %v7950_v12 }
 0x2f1   : > { %2163 = vrot.lane.b32.xlu1 %v2159_v63, %s11884_s19  ;;  %v2230_v63 = vstv %s6535_s20  ;;  %s6571_s20 = sld [smem:[#allocation3 + $0x73]] }
 0x2f2   : > { %v2232_v26 = vmul.f32 %v2230_v63, %v7950_v12 }
 0x2f4   : > { %2182 = vrot.lane.b32.xlu0 %v2177_v21, %s11884_s19  ;;  %v6533_v21 = vrot.slane %v2210_v6, 9  ;;  %v6537_v28 = vrot.slane %v2232_v26, 9  ;;  %v2274_v6 = vmul.f32 %v2272_v8, %v7950_v12  ;;  %v2293_v26 = vstv %s6544_s24  ;;  %s6575_s24 = sld [smem:[#allocation3 + $0x75]] }
 0x2f5   : > { %2180 = vrot.lane.b32.xlu1 %v2176_v0, %s11884_s19  ;;  %v2231_v0 = vmul.f32 %v2230_v63, %v7954_v19 }
 0x2f7   : > { %v6536_v17 = vrot.slane %v2231_v0, 9  ;;  %v7989_v0 = vpop.permute.xlu1 %1833 }
 0x2f8   : > { %2199 = vrot.lane.b32.xlu0 %v2194_v7, %s11884_s19  ;;  %v2252_v7 = vmul.f32 %v2251_v4, %v7954_v19  ;;  %v6543_v4 = vrot.slane %v2274_v6, 9  ;;  %12265 = vst [vmem:[#allocation134_spill] sm:$0xff] %v7989_v0  ;;  %v2335_v6 = vstv %s6550_s28  ;;  %s6581_s28 = sld [smem:[#allocation3 + $0x77]] }
 0x2f9   : > { %2197 = vrot.lane.b32.xlu1 %v2193_v18, %s11884_s19  ;;  %v6540_v18 = vrot.slane %v2253_v15, 9  ;;  %v2314_v15 = vstv %s6547_s26  ;;  %s6578_s26 = sld [smem:[#allocation3 + $0x76]] }
 0x2fa   : > { %v6539_v63 = vrot.slane %v2252_v7, 9  ;;  %v2316_v7 = vmul.f32 %v2314_v15, %v7950_v12 }
 0x2fb   : > { %v7997_v0 = vpop.permute.xlu1 %1850 }
 0x2fc   : > { %2220 = vrot.lane.b32.xlu0 %v6534_v29, %s11884_s19  ;;  %v2273_v29 = vmul.f32 %v2272_v8, %v7954_v19  ;;  %12266 = vst [vmem:[#allocation135_spill] sm:$0xff] %v7997_v0 }
 0x2fd   : > { %2218 = vrot.lane.b32.xlu1 %v6533_v21, %s11884_s19  ;;  %v2295_v21 = vmul.f32 %v2293_v26, %v7950_v12 }
 0x2ff   : > { %v6546_v8 = vrot.slane %v2295_v21, 10  ;;  %v2356_v21 = vstv %s6553_s29  ;;  %s6584_s29 = sld [smem:[#allocation3 + $0x78]] }
 0x300   : > { %2241 = vrot.lane.b32.xlu0 %v6537_v28, %s11884_s19  ;;  %v6542_v28 = vrot.slane %v2273_v29, 9  ;;  %v6549_v29 = vrot.slane %v2316_v7, 10  ;;  %v2377_v7 = vstv %s6556_s30  ;;  %s6587_s30 = sld [smem:[#allocation3 + $0x79]] }
 0x301   : > { %2239 = vrot.lane.b32.xlu1 %v6536_v17, %s11884_s19  ;;  %v2294_v17 = vmul.f32 %v2293_v26, %v7954_v19  ;;  %v2337_v26 = vmul.f32 %v2335_v6, %v7950_v12 }
 0x304   : > { %2262 = vrot.lane.b32.xlu0 %v6540_v18, %s11884_s19  ;;  %v6545_v18 = vrot.slane %v2294_v17, 10  ;;  %v6552_v17 = vrot.slane %v2337_v26, 10  ;;  %v2398_v26 = vstv %s6559_s8  ;;  %s6590_s8 = sld [smem:[#allocation3 + $0x7a]] }
 0x305   : > { %2260 = vrot.lane.b32.xlu1 %v6539_v63, %s11884_s19  ;;  %v2315_v63 = vmul.f32 %v2314_v15, %v7954_v19  ;;  %v2358_v15 = vmul.f32 %v2356_v21, %v7950_v12 }
 0x308   : > { %2283 = vrot.lane.b32.xlu0 %v6543_v4, %s11884_s19  ;;  %v6548_v4 = vrot.slane %v2315_v63, 10  ;;  %v6555_v63 = vrot.slane %v2358_v15, 10  ;;  %v2419_v15 = vstv %s6562_s10  ;;  %s6593_s10 = sld [smem:[#allocation3 + $0x7b]] }
 0x309   : > { %2281 = vrot.lane.b32.xlu1 %v6542_v28, %s11884_s19  ;;  %v2336_v28 = vmul.f32 %v2335_v6, %v7954_v19  ;;  %v2379_v6 = vmul.f32 %v2377_v7, %v7950_v12 }
 0x30b   : > { %v6551_v0 = vrot.slane %v2336_v28, 10  ;;  %v6558_v28 = vrot.slane %v2379_v6, 11  ;;  %v2440_v6 = vstv %s6565_s12  ;;  %s6596_s12 = sld [smem:[#allocation3 + $0x7c]] }
 0x30c   : > { %2304 = vrot.lane.b32.xlu0 %v6546_v8, %s11884_s19  ;;  %v8005_v8 = vpop.permute.xlu1 %1867 }
 0x30d   : > { %2302 = vrot.lane.b32.xlu1 %v6545_v18, %s11884_s19  ;;  %12267 = vst [vmem:[#allocation136_spill] sm:$0xff] %v8005_v8  ;;  %v2357_v18 = vmul.f32 %v2356_v21, %v7954_v19  ;;  %v2400_v21 = vmul.f32 %v2398_v26, %v7950_v12 }
 0x310   : > { %2325 = vrot.lane.b32.xlu0 %v6549_v29, %s11884_s19  ;;  %v6554_v29 = vrot.slane %v2357_v18, 10  ;;  %v8013_v8 = vpop.permute.xlu1 %1888  ;;  %v6561_v18 = vrot.slane %v2400_v21, 11  ;;  %v2441_v21 = vmul.f32 %v2440_v6, %v7954_v19 }
 0x311   : > { %2323 = vrot.lane.b32.xlu1 %v6548_v4, %s11884_s19  ;;  %v2378_v4 = vmul.f32 %v2377_v7, %v7954_v19  ;;  %12268 = vst [vmem:[#allocation137_spill] sm:$0xff] %v8013_v8  ;;  %v2421_v7 = vmul.f32 %v2419_v15, %v7950_v12 }
 0x314   : > { %2346 = vrot.lane.b32.xlu0 %v6552_v17, %s11884_s19  ;;  %v6557_v17 = vrot.slane %v2378_v4, 11  ;;  %v6564_v4 = vrot.slane %v2421_v7, 11 }
 0x315   : > { %2344 = vrot.lane.b32.xlu1 %v6551_v0, %s11884_s19  ;;  %v2399_v0 = vmul.f32 %v2398_v26, %v7954_v19  ;;  %v2442_v26 = vmul.f32 %v2440_v6, %v7950_v12 }
 0x317   : > { %v6560_v8 = vrot.slane %v2399_v0, 11  ;;  %v6567_v0 = vrot.slane %v2442_v26, 11 }
 0x318   : > { %2367 = vrot.lane.b32.xlu0 %v6555_v63, %s11884_s19  ;;  %v8021_v63 = vpop.permute.xlu1 %1909 }
 0x319   : > { %2365 = vrot.lane.b32.xlu1 %v6554_v29, %s11884_s19  ;;  %12269 = vst [vmem:[#allocation138_spill] sm:$0xff] %v8021_v63  ;;  %v2420_v29 = vmul.f32 %v2419_v15, %v7954_v19  ;;  %v2463_v15 = vstv %s6568_s15  ;;  %s6599_s15 = sld [smem:[#allocation3 + $0x7d]] }
 0x31a   : > { %v2464_v19 = vmul.f32 %v2463_v15, %v7942_v10 }
 0x31c   : > { %2388 = vrot.lane.b32.xlu0 %v6558_v28, %s11884_s19  ;;  %v6563_v28 = vrot.slane %v2420_v29, 11  ;;  %v8031_v63 = vpop.permute.xlu1 %1930 }
 0x31d   : > { %2386 = vrot.lane.b32.xlu1 %v6557_v17, %s11884_s19  ;;  %v8029_v17 = vld [vmem:[#allocation2 + $0xc] sm:$0xf]  ;;  %12270 = vst [vmem:[#allocation139_spill] sm:$0xff] %v8031_v63  ;;  %v2574_v63 = vstv %s6578_s26  ;;  %s8179_s26 = sld [smem:[#allocation5]] }
 0x31e   : > { %v2465_v12 = vmul.f32 %v2463_v15, %v8029_v17  ;;  %v2532_v15 = vstv %s6572_s22  ;;  %s8170_s22 = sld [smem:[#allocation3]] }
 0x320   : > { %2409 = vrot.lane.b32.xlu0 %v6561_v18, %s11884_s19  ;;  %v6566_v18 = vrot.slane %v2441_v21, 11  ;;  %v8038_v7 = vpop.permute.xlu1 %1951 }
 0x321   : > { %2407 = vrot.lane.b32.xlu1 %v6560_v8, %s11884_s19  ;;  %v2481_v8 = vstv %s6569_s16  ;;  %12271 = vst [vmem:[#allocation140_spill] sm:$0xff] %v8038_v7  ;;  %s6602_s16 = sld [smem:[#allocation3 + $0x7e]] }
 0x322   : > { %v2483_v29 = vmul.f32 %v2481_v8, %v8029_v17  ;;  %v2482_v6 = vmul.f32 %v2481_v8, %v7942_v10  ;;  %v2533_v8 = vmul.f32 %v2532_v15, %v7942_v10 }
 0x324   : > { %2430 = vrot.lane.b32.xlu0 %v6564_v4, %s11884_s19  ;;  %v2498_v4 = vstv %s6570_s17  ;;  %s6605_s17 = sld [smem:[#allocation3 + $0x7f]] }
 0x325   : > { %2428 = vrot.lane.b32.xlu1 %v6563_v28, %s11884_s19  ;;  %v2500_v26 = vmul.f32 %v2498_v4, %v8029_v17  ;;  %v8046_v28 = vpop.permute.xlu1 %1972  ;;  %v2499_v21 = vmul.f32 %v2498_v4, %v7942_v10 }
 0x326   : > { %12272 = vst [vmem:[#allocation141_spill] sm:$0xff] %v8046_v28 }
 0x328   : > { %2451 = vrot.lane.b32.xlu0 %v6567_v0, %s11884_s19  ;;  %v2515_v0 = vstv %s6571_s20  ;;  %s11959_s20 = smov 17  }
 0x329   : > { %2449 = vrot.lane.b32.xlu1 %v6566_v18, %s11884_s19  ;;  %v2517_v18 = vmul.f32 %v2515_v0, %v8029_v17  ;;  %s8222_s19 = sld [smem:[#allocation3 + $0xe]] }
 0x32c   : > { %2470 = vrot.lane.b32.xlu0 %v2465_v12, %s11881_s23  ;;  %v2534_v12 = vmul.f32 %v2532_v15, %v8029_v17 }
 0x32d   : > { %2468 = vrot.lane.b32.xlu1 %v2464_v19, %s11881_s23  ;;  %v2516_v19 = vmul.f32 %v2515_v0, %v7942_v10  ;;  %v2576_v0 = vmul.f32 %v2574_v63, %v8029_v17 }
 0x32e   : > { %v6574_v4 = vrot.slane %v2534_v12, 9  ;;  %v2575_v12 = vmul.f32 %v2574_v63, %v7942_v10 }
 0x330   : > { %2488 = vrot.lane.b32.xlu0 %v2483_v29, %s11881_s23  ;;  %v2553_v29 = vstv %s6575_s24  ;;  %s8172_s24 = sld [smem:[#allocation3 + $0x4]] }
 0x331   : > { %2486 = vrot.lane.b32.xlu1 %v2482_v6, %s11881_s23  ;;  %v8056_v6 = vpop.permute.xlu1 %1993  ;;  %v2555_v28 = vmul.f32 %v2553_v29, %v8029_v17  ;;  %v2554_v7 = vmul.f32 %v2553_v29, %v7942_v10  ;;  %v6579_v29 = vrot.slane %v2575_v12, 9 }
 0x332   : > { %12273 = vst [vmem:[#allocation142_spill] sm:$0xff] %v8056_v6  ;;  %v2595_v6 = vstv %s6581_s28  ;;  %s8181_s28 = sld [smem:[#allocation3 + $0x8]] }
 0x334   : > { %2505 = vrot.lane.b32.xlu0 %v2500_v26, %s11881_s23  ;;  %v6573_v26 = vrot.slane %v2533_v8, 9  ;;  %v2597_v8 = vmul.f32 %v2595_v6, %v8029_v17 }
 0x335   : > { %2503 = vrot.lane.b32.xlu1 %v2499_v21, %s11881_s23  ;;  %v6577_v21 = vrot.slane %v2555_v28, 9  ;;  %v8064_v15 = vpop.permute.xlu1 %2014  ;;  %v2596_v28 = vmul.f32 %v2595_v6, %v7942_v10 }
 0x336   : > { %12274 = vst [vmem:[#allocation143_spill] sm:$0xff] %v8064_v15 }
 0x338   : > { %2522 = vrot.lane.b32.xlu0 %v2517_v18, %s11881_s23  ;;  %v6576_v18 = vrot.slane %v2554_v7, 9  ;;  %v6583_v7 = vrot.slane %v2597_v8, 9 }
 0x339   : > { %2520 = vrot.lane.b32.xlu1 %v2516_v19, %s11881_s23  ;;  %v6580_v19 = vrot.slane %v2576_v0, 9  ;;  %v8072_v15 = vpop.permute.xlu1 %2035  ;;  %v2637_v0 = vstv %s6587_s30  ;;  %s8187_s30 = sld [smem:[#allocation5 + $0x1]] }
 0x33a   : > { %12275 = vst [vmem:[#allocation144_spill] sm:$0xff] %v8072_v15  ;;  %v2639_v6 = vmul.f32 %v2637_v0, %v8029_v17  ;;  %v2638_v8 = vmul.f32 %v2637_v0, %v7942_v10  ;;  %v2658_v15 = vstv %s6590_s8  ;;  %s8189_s8 = sld [smem:[#allocation3 + $0x1]] }
 0x33c   : > { %2543 = vrot.lane.b32.xlu0 %v6574_v4, %s11881_s23  ;;  %v2616_v4 = vstv %s6584_s29  ;;  %s8183_s29 = sld [smem:[#allocation3 + $0xc]] }
 0x33d   : > { %2541 = vrot.lane.b32.xlu1 %v6573_v26, %s11881_s23  ;;  %v2618_v63 = vmul.f32 %v2616_v4, %v8029_v17  ;;  %v6582_v26 = vrot.slane %v2596_v28, 9  ;;  %v8080_v12 = vpop.permute.xlu1 %2056  ;;  %v2660_v28 = vmul.f32 %v2658_v15, %v8029_v17 }
 0x33e   : > { %12276 = vst [vmem:[#allocation145_spill] sm:$0xff] %v8080_v12 }
 0x340   : > { %2564 = vrot.lane.b32.xlu0 %v6577_v21, %s11881_s23  ;;  %v2617_v21 = vmul.f32 %v2616_v4, %v7942_v10  ;;  %v6588_v4 = vrot.slane %v2638_v8, 10 }
 0x341   : > { %2562 = vrot.lane.b32.xlu1 %v6576_v18, %s11881_s23  ;;  %v6586_v18 = vrot.slane %v2618_v63, 10  ;;  %v2679_v63 = vstv %s6593_s10  ;;  %v8088_v12 = vpop.permute.xlu1 %2077  ;;  %s8191_s10 = sld [smem:[#allocation3 + $0x5]] }
 0x342   : > { %12277 = vst [vmem:[#allocation146_spill] sm:$0xff] %v8088_v12  ;;  %v2721_v12 = vstv %s6599_s15  ;;  %s8202_s15 = sld [smem:[#allocation3 + $0xd]] }
 0x344   : > { %2585 = vrot.lane.b32.xlu0 %v6580_v19, %s11881_s23  ;;  %v6585_v19 = vrot.slane %v2617_v21, 10  ;;  %v2681_v21 = vmul.f32 %v2679_v63, %v8029_v17 }
 0x345   : > { %2583 = vrot.lane.b32.xlu1 %v6579_v29, %s11881_s23  ;;  %v6589_v29 = vrot.slane %v2639_v6, 10  ;;  %v2700_v6 = vstv %s6596_s12  ;;  %v8096_v8 = vpop.permute.xlu1 %2098  ;;  %s8193_s12 = sld [smem:[#allocation3 + $0x9]] }
 0x346   : > { %12278 = vst [vmem:[#allocation147_spill] sm:$0xff] %v8096_v8 }
 0x348   : > { %2606 = vrot.lane.b32.xlu0 %v6583_v7, %s11881_s23  ;;  %v2659_v7 = vmul.f32 %v2658_v15, %v7942_v10  ;;  %v2702_v15 = vmul.f32 %v2700_v6, %v8029_v17  ;;  %v495_v14 = vstv %s8202_s15  ;;  %s8629_s15 = sld [smem:[#allocation3 + $0x8e]] }
 0x349   : > { %2604 = vrot.lane.b32.xlu1 %v6582_v26, %s11881_s23  ;;  %v6592_v26 = vrot.slane %v2660_v28, 10  ;;  %v2701_v28 = vmul.f32 %v2700_v6, %v7942_v10  ;;  %v8104_v62 = vpop.permute.xlu1 %2119 }
 0x34a   : > { %v6591_v0 = vrot.slane %v2659_v7, 10  ;;  %v2723_v7 = vmul.f32 %v2721_v12, %v8029_v17  ;;  %12279 = vst [vmem:[#allocation148_spill] sm:$0xff] %v8104_v62 }
 0x34c   : > { %2627 = vrot.lane.b32.xlu0 %v6586_v18, %s11881_s23  ;;  %v2680_v18 = vmul.f32 %v2679_v63, %v7942_v10  ;;  %v6597_v63 = vrot.slane %v2701_v28, 11 }
 0x34d   : > { %2625 = vrot.lane.b32.xlu1 %v6585_v19, %s11881_s23  ;;  %v6595_v19 = vrot.slane %v2681_v21, 10  ;;  %v2742_v21 = vstv %s6602_s16  ;;  %s8204_s16 = sld [smem:[#allocation5 + $0x2]] }
 0x350   : > { %2648 = vrot.lane.b32.xlu0 %v6589_v29, %s11881_s23  ;;  %v6594_v29 = vrot.slane %v2680_v18, 10  ;;  %v2744_v18 = vmul.f32 %v2742_v21, %v8029_v17 }
 0x351   : > { %2646 = vrot.lane.b32.xlu1 %v6588_v4, %s11881_s23  ;;  %v6598_v4 = vrot.slane %v2702_v15, 11  ;;  %v2763_v15 = vstv %s6605_s17  ;;  %s8206_s17 = sld [smem:[#allocation3 + $0x2]] }
 0x353   : > { %v318_v16 = vstv %s8204_s16  ;;  %s8649_s16 = sld [smem:[#allocation3 + $0x8f]] }
 0x354   : > { %2669 = vrot.lane.b32.xlu0 %v6592_v26, %s11881_s23  ;;  %v2722_v26 = vmul.f32 %v2721_v12, %v7942_v10  ;;  %v2765_v12 = vmul.f32 %v2763_v15, %v8029_v17 }
 0x355   : > { %2667 = vrot.lane.b32.xlu1 %v6591_v0, %s11881_s23  ;;  %v6601_v0 = vrot.slane %v2723_v7, 11 }
 0x356   : > { %v6600_v6 = vrot.slane %v2722_v26, 11 }
 0x357   : > { %v357_v9 = vstv %s8206_s17  ;;  %s6690_s17 = sld [smem:[#allocation7 + $0x10]] }
 0x358   : > { %2690 = vrot.lane.b32.xlu0 %v6595_v19, %s11881_s23  ;;  %v2743_v19 = vmul.f32 %v2742_v21, %v7942_v10 }
 0x359   : > { %2688 = vrot.lane.b32.xlu1 %v6594_v29, %s11881_s23  ;;  %v6604_v29 = vrot.slane %v2744_v18, 11 }
 0x35a   : > { %v6603_v28 = vrot.slane %v2743_v19, 11 }
 0x35c   : > { %2711 = vrot.lane.b32.xlu0 %v6598_v4, %s11881_s23  ;;  %v2764_v4 = vmul.f32 %v2763_v15, %v7942_v10 }
 0x35d   : > { %2709 = vrot.lane.b32.xlu1 %v6597_v63, %s11881_s23  ;;  %v6607_v63 = vrot.slane %v2765_v12, 11 }
 0x35e   : > { %v6606_v26 = vrot.slane %v2764_v4, 11 }
 0x35f   : > { %v8110_v8 = vpop.permute.xlu1 %2145 }
 0x360   : > { %12280 = vst [vmem:[#allocation149_spill] sm:$0xff] %v8110_v8  ;;  %2732 = vrot.lane.b32.xlu0 %v6601_v0, %s11881_s23  ;;  %v439_v8 = vstv %s8193_s12  ;;  %s8608_s12 = sld [smem:[#allocation3 + $0x8d]] }
 0x361   : > { %2730 = vrot.lane.b32.xlu1 %v6600_v6, %s11881_s23 }
 0x363   : > { %v8116_v7 = vpop.permute.xlu1 %2163 }
 0x364   : > { %12281 = vst [vmem:[#allocation150_spill] sm:$0xff] %v8116_v7  ;;  %2753 = vrot.lane.b32.xlu0 %v6604_v29, %s11881_s23  ;;  %v383_v7 = vstv %s8191_s10  ;;  %s8588_s10 = sld [smem:[#allocation3 + $0x8c]] }
 0x365   : > { %2751 = vrot.lane.b32.xlu1 %v6603_v28, %s11881_s23 }
 0x367   : > { %v8120_v21 = vpop.permute.xlu1 %2180 }
 0x368   : > { %12282 = vst [vmem:[#allocation151_spill] sm:$0xff] %v8120_v21  ;;  %2774 = vrot.lane.b32.xlu0 %v6607_v63, %s11881_s23  ;;  %v315_v21 = vstv %s8187_s30  ;;  %s8548_s30 = sld [smem:[#allocation3 + $0x8a]] }
 0x369   : > { %2772 = vrot.lane.b32.xlu1 %v6606_v26, %s11881_s23  ;;  %s8215_s23 = sld [smem:[#allocation3 + $0xa]] }
 0x36b   : > { %v8124_v0 = vpop.permute.xlu1 %2197 }
 0x36c   : > { %12283 = vst [vmem:[#allocation152_spill] sm:$0xff] %v8124_v0  ;;  %v481_v0 = vstv %s8183_s29  ;;  %s8530_s29 = sld [smem:[#allocation3 + $0x89]] }
 0x36d   : > { %2783 = vrot.lane.b32.xlu1 %v7327_v13, %s11959_s20 }
 0x36f   : > { %v8128_v18 = vpop.permute.xlu1 %2218  ;;  %v453_v24 = vstv %s8215_s23  ;;  %s8445_s23 = sld [smem:[#allocation3 + $0x85]] }
 0x370   : > { %12284 = vst [vmem:[#allocation153_spill] sm:$0xff] %v8128_v18 }
 0x373   : > { %v8130_v6 = vpop.permute.xlu1 %2239 }
 0x374   : > { %12285 = vst [vmem:[#allocation154_spill] sm:$0xff] %v8130_v6  ;;  %v8152_v6 = vpop.permute.xlu0 %2147 }
 0x375   : > { %12296 = vst [vmem:[#allocation165_spill] sm:$0xff] %v8152_v6 }
 0x377   : > { %v8132_v19 = vpop.permute.xlu1 %2260 }
 0x378   : > { %12286 = vst [vmem:[#allocation155_spill] sm:$0xff] %v8132_v19 }
 0x37b   : > { %v8134_v15 = vpop.permute.xlu1 %2281 }
 0x37c   : > { %12287 = vst [vmem:[#allocation156_spill] sm:$0xff] %v8134_v15  ;;  %v8156_v15 = vpop.permute.xlu0 %2165 }
 0x37d   : > { %12298 = vst [vmem:[#allocation167_spill] sm:$0xff] %v8156_v15 }
 0x37f   : > { %v8136_v29 = vpop.permute.xlu1 %2302 }
 0x380   : > { %12288 = vst [vmem:[#allocation157_spill] sm:$0xff] %v8136_v29 }
 0x383   : > { %v8138_v12 = vpop.permute.xlu1 %2323 }
 0x384   : > { %12289 = vst [vmem:[#allocation158_spill] sm:$0xff] %v8138_v12 }
 0x387   : > { %v8140_v28 = vpop.permute.xlu1 %2344 }
 0x388   : > { %12290 = vst [vmem:[#allocation159_spill] sm:$0xff] %v8140_v28  ;;  %v8162_v28 = vpop.permute.xlu0 %2182 }
 0x389   : > { %12301 = vst [vmem:[#allocation170_spill] sm:$0xff] %v8162_v28  ;;  %v369_v28 = vstv %s8172_s24  ;;  %s8468_s24 = sld [smem:[#allocation3 + $0x86]] }
 0x38b   : > { %v8142_v4 = vpop.permute.xlu1 %2365 }
 0x38c   : > { %12291 = vst [vmem:[#allocation160_spill] sm:$0xff] %v8142_v4 }
 0x38f   : > { %v8144_v63 = vpop.permute.xlu1 %2386 }
 0x390   : > { %12292 = vst [vmem:[#allocation161_spill] sm:$0xff] %v8144_v63  ;;  %v8166_v63 = vpop.permute.xlu0 %2199 }
 0x391   : > { %12303 = vst [vmem:[#allocation172_spill] sm:$0xff] %v8166_v63  ;;  %v345_v63 = vstv %s8170_s22  ;;  %s8250_s22 = sld [smem:[#allocation3 + $0xf]] }
 0x393   : > { %v8146_v26 = vpop.permute.xlu1 %2407 }
 0x394   : > { %12293 = vst [vmem:[#allocation162_spill] sm:$0xff] %v8146_v26 }
 0x397   : > { %v8148_v13 = vpop.permute.xlu1 %2428 }
 0x398   : > { %12294 = vst [vmem:[#allocation163_spill] sm:$0xff] %v8148_v13 }
 0x39b   : > { %v8150_v18 = vpop.permute.xlu1 %2449 }
 0x39c   : > { %12295 = vst [vmem:[#allocation164_spill] sm:$0xff] %v8150_v18 }
 0x39f   : > { %v8154_v19 = vpop.permute.xlu1 %2468 }
 0x3a0   : > { %12297 = vst [vmem:[#allocation166_spill] sm:$0xff] %v8154_v19  ;;  %v8177_v19 = vrot.slane %v7402_v30, 4 }
 0x3a2   : > { %12306 = vst [vmem:[#allocation175_spill] sm:$0xff] %v8177_v19 }
 0x3a3   : > { %v8158_v29 = vpop.permute.xlu1 %2486 }
 0x3a4   : > { %12299 = vst [vmem:[#allocation168_spill] sm:$0xff] %v8158_v29  ;;  %v7171_v29 = vmov 1966171168  }
 0x3a5   : > { %v8210_v13 = vunpack.c.l.s4 %v7171_v29 }
 0x3a7   : > { %v8160_v12 = vpop.permute.xlu1 %2503 }
 0x3a8   : > { %12300 = vst [vmem:[#allocation169_spill] sm:$0xff] %v8160_v12  ;;  %v8200_v12 = vsel %vm338_vm4, %v8177_v19, %v7402_v30  ;;  %v7072_v30 = vld [vmem:[#allocation2] sm:$0xff] }
 0x3a9   : > { %12309 = vst [vmem:[#allocation178_spill] sm:$0xff] %v8200_v12 }
 0x3ab   : > { %v8164_v4 = vpop.permute.xlu1 %2520 }
 0x3ac   : > { %12302 = vst [vmem:[#allocation171_spill] sm:$0xff] %v8164_v4  ;;  %v8185_v4 = vpop.permute.xlu0 %2220 }
 0x3ad   : > { %12307 = vst [vmem:[#allocation176_spill] sm:$0xff] %v8185_v4 }
 0x3af   : > { %v8168_v26 = vpop.permute.xlu1 %2541 }
 0x3b0   : > { %12304 = vst [vmem:[#allocation173_spill] sm:$0xff] %v8168_v26  ;;  %v324_v26 = vld [vmem:[#allocation2 + $0x8] sm:$0xf]  ;;  %v8226_v29 = vpop.permute.xlu0 %2241 }
 0x3b1   : > { %v8213_v4 = vmul.f32 %v8177_v19, %v324_v26  ;;  %12310 = vst [vmem:[#allocation179_spill] sm:$0xff] %v8226_v29 }
 0x3b3   : > { %v8174_v18 = vpop.permute.xlu1 %2562  ;;  %v347_v19 = vmul.f32 %v345_v63, %v8213_v4  ;;  %v371_v29 = vmul.f32 %v369_v28, %v8213_v4 }
 0x3b4   : > { %12305 = vst [vmem:[#allocation174_spill] sm:$0xff] %v8174_v18  ;;  %v8256_v20 = vpop.permute.xlu0 %2262 }
 0x3b5   : > { %12313 = vst [vmem:[#allocation182_spill] sm:$0xff] %v8256_v20 }
 0x3b7   : > { %v8195_v18 = vpop.permute.xlu1 %2583 }
 0x3b8   : > { %12308 = vst [vmem:[#allocation177_spill] sm:$0xff] %v8195_v18  ;;  %v8218_v18 = vmul.f32 %v7072_v30, %v8200_v12  ;;  %v312_v12 = vstv %s8179_s26  ;;  %v351_v30 = vstv %s8189_s8  ;;  %v8280_v58 = vpop.permute.xlu0 %2283  ;;  %s8491_s26 = sld [smem:[#allocation3 + $0x87]]  ;;  %s8570_s8 = sld [smem:[#allocation3 + $0x8b]] }
 0x3b9   : > { %v353_v20 = vmul.f32 %v351_v30, %v8213_v4  ;;  %12315 = vst [vmem:[#allocation184_spill] sm:$0xff] %v8280_v58 }
 0x3ba   : > { %v346_v15 = vmul.f32 %v345_v63, %v8218_v18  ;;  %v370_v6 = vmul.f32 %v369_v28, %v8218_v18  ;;  %v397_v63 = vstv %s8208_s27  ;;  %v349_v28 = vadd.f32 %v347_v19, %v312_v12  ;;  %s8350_s27 = sld [smem:[#allocation3 + $0x80]] }
 0x3bb   : > { %v8228_v26 = vpop.permute.xlu1 %2604  ;;  %v352_v27 = vmul.f32 %v351_v30, %v8218_v18  ;;  %v384_v19 = vmul.f32 %v383_v7, %v8218_v18  ;;  %v548_v30 = vrot.slane %v7406_v32, 4  ;;  %v355_v59 = vadd.f32 %v353_v20, %v315_v21 }
 0x3bc   : > { %12311 = vst [vmem:[#allocation180_spill] sm:$0xff] %v8228_v26  ;;  %v425_v26 = vstv %s8181_s28  ;;  %v348_v25 = vadd.f32 %v346_v15, %v312_v12  ;;  %v6305_v11 = vrot.slane %v370_v6, 9  ;;  %v8273_v12 = vmul.f32 %v481_v0, %v8213_v4  ;;  %s8508_s28 = sld [smem:[#allocation3 + $0x88]] }
 0x3bd   : > { %v427_v1 = vmul.f32 %v425_v26, %v8213_v4  ;;  %v426_v22 = vmul.f32 %v425_v26, %v8218_v18  ;;  %v8276_v26 = vmul.f32 %v481_v0, %v8218_v18  ;;  %v6308_v56 = vrot.slane %v384_v19, 9 }
 0x3be   : > { %v380_v5 = vadd.f32 %v6305_v11, %v348_v25  ;;  %v440_v55 = vmul.f32 %v439_v8, %v8218_v18  ;;  %v6330_v11 = vrot.slane %v8273_v12, 11  ;;  %v441_v25 = vmul.f32 %v439_v8, %v8213_v4 }
 0x3bf   : > { %v8244_v62 = vpop.permute.xlu1 %2625  ;;  %v6318_v6 = vrot.slane %v427_v1, 10  ;;  %v398_v1 = vmul.f32 %v397_v63, %v8218_v18  ;;  %v399_v53 = vmul.f32 %v397_v63, %v8213_v4  ;;  %v568_v20 = vrot.slane %v7408_v33, 4 }
 0x3c0   : > { %12312 = vst [vmem:[#allocation181_spill] sm:$0xff] %v8244_v62  ;;  %v6306_v62 = vrot.slane %v371_v29, 9  ;;  %v385_v29 = vmul.f32 %v383_v7, %v8213_v4  ;;  %v354_v7 = vadd.f32 %v352_v27, %v315_v21  ;;  %v551_v27 = vsel %vm550_vm5, %v548_v30, %v549_v3 }
 0x3c1   : > { %v6311_v19 = vrot.slane %v398_v1, 9  ;;  %v6320_v12 = vrot.slane %v440_v55, 10  ;;  %v6321_v3 = vrot.slane %v441_v25, 10  ;;  %v569_v8 = vrot.slane %v7410_v34, 4 }
 0x3c2   : > { %v381_v15 = vadd.f32 %v6306_v62, %v349_v28  ;;  %v358_v62 = vmul.f32 %v357_v9, %v8218_v18  ;;  %v6309_v0 = vrot.slane %v385_v29, 9  ;;  %v454_v29 = vmul.f32 %v453_v24, %v8218_v18 }
 0x3c3   : > { %v8262_v23 = vpop.permute.xlu1 %2646  ;;  %v586_v63 = vrot.slane %v7412_v35, 4  ;;  %v6312_v30 = vrot.slane %v399_v53, 9  ;;  %v12319_v1 = vstv %s8222_s19  ;;  %v412_v53 = vmul.f32 %v411_v61, %v8218_v18 }
 0x3c4   : > { %12314 = vst [vmem:[#allocation183_spill] sm:$0xff] %v8262_v23  ;;  %v6317_v23 = vrot.slane %v426_v22, 10  ;;  %v437_v54 = vadd.f32 %v6318_v6, %v381_v15  ;;  %v6329_v22 = vrot.slane %v8276_v26, 11  ;;  %v360_v21 = vadd.f32 %v358_v62, %v318_v16 }
 0x3c5   : > { %v394_v15 = vadd.f32 %v6308_v56, %v354_v7  ;;  %v395_v6 = vadd.f32 %v6309_v0, %v355_v59  ;;  %v455_v62 = vmul.f32 %v453_v24, %v8213_v4  ;;  %v510_v56 = vmul.f32 %v12319_v1, %v8218_v18 }
 0x3c6   : > { %v436_v58 = vadd.f32 %v6317_v23, %v380_v5  ;;  %v496_v5 = vmul.f32 %v495_v14, %v8218_v18  ;;  %v8299_v23 = vpop.permute.xlu0 %2304  ;;  %v408_v59 = vadd.f32 %v6311_v19, %v360_v21  ;;  %v6323_v7 = vrot.slane %v454_v29, 10 }
 0x3c7   : > { %v8282_v57 = vpop.permute.xlu1 %2667  ;;  %12318 = vst [vmem:[#allocation187_spill] sm:$0xff] %v8299_v23  ;;  %v587_v0 = vrot.slane %v7414_v36, 4  ;;  %v450_v25 = vadd.f32 %v6320_v12, %v394_v15  ;;  %v451_v24 = vadd.f32 %v6321_v3, %v395_v6  ;;  %v570_v21 = vsel %vm550_vm5, %v568_v20, %v569_v8 }
 0x3c8   : > { %12316 = vst [vmem:[#allocation185_spill] sm:$0xff] %v8282_v57  ;;  %v359_v57 = vmul.f32 %v357_v9, %v8213_v4  ;;  %v497_v9 = vmul.f32 %v495_v14, %v8213_v4  ;;  %v364_v14 = vmul.f32 %v363_v60, %v8218_v18  ;;  %v6324_v29 = vrot.slane %v455_v62, 10 }
 0x3c9   : > { %v6335_v12 = vrot.slane %v510_v56, 11  ;;  %v464_v52 = vadd.f32 %v6323_v7, %v408_v59  ;;  %v588_v51 = vsel %vm550_vm5, %v586_v63, %v587_v0  ;;  %v6314_v8 = vrot.slane %v412_v53, 9 }
 0x3ca   : > { %v361_v26 = vadd.f32 %v359_v57, %v318_v16  ;;  %v413_v57 = vmul.f32 %v411_v61, %v8213_v4  ;;  %v6332_v16 = vrot.slane %v496_v5, 11  ;;  %v6333_v1 = vrot.slane %v497_v9, 11  ;;  %v8319_v23 = vpop.permute.xlu0 %2325 }
 0x3cb   : > { %v8294_v28 = vpop.permute.xlu1 %2688  ;;  %v12323_v61 = vstv %s8224_s14  ;;  %v12324_v5 = vstv %s8234_s11  ;;  %v493_v56 = vadd.f32 %v6330_v11, %v437_v54  ;;  %v553_v59 = vsel %vm552_vm1, %v7406_v32, %v551_v27  ;;  %s8390_s11 = sld [smem:[#allocation3 + $0x82]]  ;;  %s8422_s14 = sld [smem:[#allocation3 + $0x84]] }
 0x3cc   : > { %12317 = vst [vmem:[#allocation186_spill] sm:$0xff] %v8294_v28  ;;  %v365_v28 = vmul.f32 %v363_v60, %v8213_v4  ;;  %v409_v19 = vadd.f32 %v6312_v30, %v361_v26  ;;  %v366_v6 = vadd.f32 %v364_v14, %v12323_v61  ;;  %v468_v3 = vmul.f32 %v12324_v5, %v8218_v18 }
 0x3cd   : > { %v12325_v9 = vmov %v12323_v61  ;;  %v6315_v26 = vrot.slane %v413_v57, 9  ;;  %v12326_v30 = vmov %v12324_v5  ;;  %v506_v63 = vadd.f32 %v6332_v16, %v450_v25 }
 0x3ce   : > { %v367_v20 = vadd.f32 %v365_v28, %v12325_v9  ;;  %v469_v62 = vmul.f32 %v12326_v30, %v8213_v4  ;;  %v507_v7 = vadd.f32 %v6333_v1, %v451_v24  ;;  %v571_v0 = vsel %vm552_vm1, %v7408_v33, %v570_v21  ;;  %v8348_v24 = vpop.permute.xlu0 %2346 }
 0x3cf   : > { %v8308_v55 = vpop.permute.xlu1 %2709  ;;  %v465_v14 = vadd.f32 %v6324_v29, %v409_v19  ;;  %v520_v53 = vadd.f32 %v6335_v12, %v464_v52  ;;  %v589_v57 = vsel %vm552_vm1, %v7412_v35, %v588_v51  ;;  %v6326_v5 = vrot.slane %v468_v3, 10 }
 0x3d0   : > { %12320 = vst [vmem:[#allocation188_spill] sm:$0xff] %v8308_v55  ;;  %v12321_v55 = vstv %s8222_s19  ;;  %v12328_v54 = vstv %s8250_s22  ;;  %v422_v11 = vadd.f32 %v6314_v8, %v366_v6  ;;  %v6327_v32 = vrot.slane %v469_v62, 10  ;;  %s11963_s19 = smov 94   ;;  %s6691_s22 = sld [smem:[#allocation7 + $0x11]] }
 0x3d1   : > { %v511_v15 = vmul.f32 %v12321_v55, %v8213_v4  ;;  %v492_v55 = vadd.f32 %v6329_v22, %v436_v58  ;;  %v524_v58 = vmul.f32 %v12328_v54, %v8218_v18  ;;  %v423_v22 = vadd.f32 %v6315_v26, %v367_v20 }
 0x3d2   : > { %v12329_v27 = vmov %v12328_v54  ;;  %v604_v33 = vrot.slane %v7416_v37, 4  ;;  %v605_v52 = vrot.slane %v7418_v38, 4  ;;  %v626_v35 = vrot.slane %v7420_v39, 4 }
 0x3d3   : > { %v8321_v60 = vpop.permute.xlu1 %2730  ;;  %v6336_v61 = vrot.slane %v511_v15, 11  ;;  %v525_v25 = vmul.f32 %v12329_v27, %v8213_v4  ;;  %v627_v51 = vrot.slane %v7422_v40, 4  ;;  %v12330_v18 = vunpack.c.0.s8 %v8210_v13 }
 0x3d4   : > { %12322 = vst [vmem:[#allocation189_spill] sm:$0xff] %v8321_v60  ;;  %v557_v1 = vadd.f32 %v7404_v31, %v493_v56  ;;  %v8362_v4 = vadd.f32 %v553_v59, %v492_v55  ;;  %v8366_v19 = vadd.f32 %v571_v0, %v506_v63  ;;  %v575_v29 = vadd.f32 %v7410_v34, %v507_v7  ;;  %v8380_v56 = vpop.permute.xlu0 %2367 }
 0x3d5   : > { %v8359_v16 = vsub.s32 %v12330_v18, %v7306_v2  ;;  %v521_v15 = vadd.f32 %v6336_v61, %v465_v14  ;;  %v8369_v12 = vadd.f32 %v589_v57, %v520_v53  ;;  %v478_v6 = vadd.f32 %v6326_v5, %v422_v11 }
 0x3d6   : > { %v479_v3 = vadd.f32 %v6327_v32, %v423_v22  ;;  %v6338_v9 = vrot.slane %v524_v58, 11  ;;  %v6339_v20 = vrot.slane %v525_v25, 11  ;;  %v606_v13 = vsel %vm550_vm5, %v604_v33, %v605_v52 }
 0x3d7   : > { %v8338_v28 = vpop.permute.xlu1 %2751  ;;  %12331 = vst [vmem:[#allocation191_spill] sm:$0xff] %v8359_v16  ;;  %v628_v31 = vsel %vm550_vm5, %v626_v35, %v627_v51  ;;  %v648_v8 = vrot.slane %v7424_v41, 4  ;;  %v649_v26 = vrot.slane %v7426_v42, 4  ;;  %v670_v34 = vrot.slane %v7428_v43, 4 }
 0x3d8   : > { %12327 = vst [vmem:[#allocation190_spill] sm:$0xff] %v8338_v28  ;;  %v671_v30 = vrot.slane %v7430_v44, 4  ;;  %v692_v62 = vrot.slane %v7432_v45, 4  ;;  %v693_v59 = vrot.slane %v7434_v46, 4  ;;  %v714_v63 = vrot.slane %v7436_v47, 4  ;;  %v8416_v52 = vpop.permute.xlu0 %2388 }
 0x3d9   : > { %v715_v7 = vrot.slane %v7438_v48, 4  ;;  %v593_v14 = vadd.f32 %v7414_v36, %v521_v15  ;;  %v534_v61 = vadd.f32 %v6338_v9, %v478_v6  ;;  %v633_v53 = vadd.f32 %v7422_v40, %v557_v1  ;;  %v12335_v6 = vld [vmem:[#allocation17_spill] sm:$0xff]  ;;  %v12336_v9 = vld [vmem:[#allocation18_spill] sm:$0xff] }
 0x3da   : > { %v2793_v57 = vstv %s8350_s27  ;;  %v535_v5 = vadd.f32 %v6339_v20, %v479_v3  ;;  %v607_v54 = vsel %vm552_vm1, %v7416_v37, %v606_v13  ;;  %v629_v36 = vsel %vm552_vm1, %v7420_v39, %v628_v31  ;;  %v12338_v13 = vld [vmem:[#allocation20_spill] sm:$0xff]  ;;  %s6692_s27 = sld [smem:[#allocation7 + $0x12]] }
 0x3db   : > { %v8364_v21 = vpop.permute.xlu1 %2772  ;;  %v650_v40 = vsel %vm550_vm5, %v648_v8, %v649_v26  ;;  %v655_v22 = vadd.f32 %v7426_v42, %v575_v29  ;;  %v672_v37 = vsel %vm550_vm5, %v670_v34, %v671_v30  ;;  %v694_v27 = vsel %vm550_vm5, %v692_v62, %v693_v59 }
 0x3dc   : > { %12332 = vst [vmem:[#allocation192_spill] sm:$0xff] %v8364_v21  ;;  %v716_v25 = vsel %vm550_vm5, %v714_v63, %v715_v7  ;;  %v736_v33 = vrot.slane %v7440_v49, 4  ;;  %v737_v39 = vrot.slane %v7442_v50, 4  ;;  %v2811_v35 = vstv %s8371_s9  ;;  %s6693_s9 = sld [smem:[#allocation7 + $0x13]] }
 0x3dd   : > { %v611_v51 = vadd.f32 %v7418_v38, %v535_v5  ;;  %v651_v18 = vsel %vm552_vm1, %v7424_v41, %v650_v40  ;;  %v677_v1 = vadd.f32 %v7430_v44, %v593_v14  ;;  %v673_v29 = vsel %vm552_vm1, %v7428_v43, %v672_v37  ;;  %v12337_v38 = vld [vmem:[#allocation19_spill] sm:$0xff]  ;;  %v8456_v14 = vpop.permute.xlu0 %2409  ;;  %v12342_v37 = vld [vmem:[#allocation24_spill] sm:$0xff] }
 0x3de   : > { %v695_v15 = vsel %vm552_vm1, %v7432_v45, %v694_v27  ;;  %v758_v3 = vrot.slane %v12335_v6, 4  ;;  %v759_v20 = vrot.slane %v12336_v9, 4  ;;  %v780_v41 = vrot.slane %v12337_v38, 4  ;;  %v12341_v40 = vld [vmem:[#allocation23_spill] sm:$0xff] }
 0x3df   : > { %v2784_v55 = vpop.permute.xlu1 %2783  ;;  %v781_v31 = vrot.slane %v12338_v13, 4  ;;  %v717_v44 = vsel %vm552_vm1, %v7436_v47, %v716_v25  ;;  %v738_v43 = vsel %vm550_vm5, %v736_v33, %v737_v39  ;;  %v632_v26 = vadd.f32 %v629_v36, %v8362_v4  ;;  %v12343_v25 = vld [vmem:[#allocation25_spill] sm:$0xff]  ;;  %v12344_v33 = vld [vmem:[#allocation27_spill] sm:$0xff] }
 0x3e0   : > { %v8385_v0 = vrot.slane %v2784_v55, 4  ;;  %v2828_v34 = vstv %s8390_s11  ;;  %v699_v30 = vadd.f32 %v7434_v46, %v611_v51  ;;  %v721_v62 = vadd.f32 %v7438_v48, %v633_v53  ;;  %v12339_v48 = vld [vmem:[#allocation21_spill] sm:$0xff]  ;;  %v12340_v53 = vld [vmem:[#allocation22_spill] sm:$0xff]  ;;  %s6694_s11 = sld [smem:[#allocation7 + $0x14]] }
 0x3e1   : > { %v676_v47 = vadd.f32 %v673_v29, %v8369_v12  ;;  %v743_v59 = vadd.f32 %v7442_v50, %v655_v22  ;;  %v760_v4 = vsel %vm550_vm5, %v758_v3, %v759_v20  ;;  %v8454_v63 = vadd.f32 %v717_v44, %v632_v26  ;;  %v8486_v3 = vpop.permute.xlu0 %2430 }
 0x3e2   : > { %12333 = vst [vmem:[#allocation193_spill] sm:$0xff] %v8385_v0  ;;  %v8396_v58 = vsel %vm2786_vm6, %v8385_v0, %v2784_v55  ;;  %v8400_v11 = vmul.f32 %v8385_v0, %v8029_v17  ;;  %v654_v55 = vadd.f32 %v651_v18, %v8366_v19  ;;  %v782_v46 = vsel %vm550_vm5, %v780_v41, %v781_v31 }
 0x3e3   : > { %12334 = vst [vmem:[#allocation194_spill] sm:$0xff] %v8396_v58  ;;  %v8408_v32 = vmul.f32 %v8396_v58, %v7942_v10  ;;  %v610_v10 = vadd.f32 %v607_v54, %v534_v61  ;;  %v802_v19 = vrot.slane %v12339_v48, 4  ;;  %v739_v12 = vsel %vm552_vm1, %v7440_v49, %v738_v43 }
 0x3e4   : > { %v2795_v17 = vmul.f32 %v2793_v57, %v8400_v11  ;;  %v2813_v8 = vmul.f32 %v2811_v35, %v8400_v11  ;;  %v2830_v61 = vmul.f32 %v2828_v34, %v8400_v11  ;;  %v803_v50 = vrot.slane %v12340_v53, 4 }
 0x3e5   : > { %v2794_v42 = vmul.f32 %v2793_v57, %v8408_v32  ;;  %v2812_v45 = vmul.f32 %v2811_v35, %v8408_v32  ;;  %v698_v7 = vadd.f32 %v695_v15, %v610_v10  ;;  %v2829_v57 = vmul.f32 %v2828_v34, %v8408_v32  ;;  %v12346_v10 = vld [vmem:[#allocation29_spill] sm:$0xff] }
 0x3e6   : > { %2800 = vrot.lane.b32.xlu1 %v2795_v17, %s11963_s19  ;;  %v2845_v5 = vstv %s8420_s18  ;;  %v2862_v54 = vstv %s8422_s14  ;;  %v765_v36 = vadd.f32 %v12336_v9, %v677_v1  ;;  %v824_v22 = vrot.slane %v12341_v40, 4  ;;  %s6697_s18 = sld [smem:[#allocation7 + $0x15]]  ;;  %s6700_s14 = sld [smem:[#allocation7 + $0x16]] }
 0x3e7   : > { %2798 = vrot.lane.b32.xlu0 %v2794_v42, %s11963_s19  ;;  %v825_v27 = vrot.slane %v12342_v37, 4  ;;  %v761_v49 = vsel %vm552_vm1, %v12335_v6, %v760_v4  ;;  %v846_v17 = vrot.slane %v12343_v25, 4  ;;  %v847_v39 = vrot.slane %v12344_v33, 4  ;;  %v12345_v42 = vld [vmem:[#allocation26_spill] sm:$0xff] }
 0x3e8   : > { %v868_v35 = vrot.slane %v12345_v42, 4  ;;  %v869_v51 = vrot.slane %v12346_v10, 4  ;;  %v742_v18 = vadd.f32 %v739_v12, %v654_v55  ;;  %v783_v1 = vsel %vm552_vm1, %v12337_v38, %v782_v46  ;;  %v12348_v55 = vld [vmem:[#allocation44_spill] sm:$0xff] }
 0x3e9   : > { %v2847_v29 = vmul.f32 %v2845_v5, %v8400_v11  ;;  %v2864_v15 = vmul.f32 %v2862_v54, %v8400_v11  ;;  %v804_v6 = vsel %vm550_vm5, %v802_v19, %v803_v50  ;;  %v2846_v9 = vmul.f32 %v2845_v5, %v8408_v32  ;;  %v12350_v5 = vld [vmem:[#allocation47_spill] sm:$0xff] }
 0x3ea   : > { %2818 = vrot.lane.b32.xlu1 %v2813_v8, %s11963_s19  ;;  %v2863_v20 = vmul.f32 %v2862_v54, %v8408_v32  ;;  %v2883_v41 = vstv %s8445_s23  ;;  %v787_v31 = vadd.f32 %v12338_v13, %v699_v30  ;;  %v809_v44 = vadd.f32 %v12340_v53, %v721_v62  ;;  %s6703_s23 = sld [smem:[#allocation7 + $0x17]] }
 0x3eb   : > { %2816 = vrot.lane.b32.xlu0 %v2812_v45, %s11963_s19  ;;  %v826_v38 = vsel %vm550_vm5, %v824_v22, %v825_v27  ;;  %v764_v8 = vadd.f32 %v761_v49, %v676_v47  ;;  %v848_v43 = vsel %vm550_vm5, %v846_v17, %v847_v39  ;;  %v870_v26 = vsel %vm550_vm5, %v868_v35, %v869_v51  ;;  %v12347_v45 = vld [vmem:[#allocation33_spill] sm:$0xff]  ;;  %v12351_v22 = vld [vmem:[#allocation35_spill] sm:$0xff]  ;;  %v8521_v27 = vpop.permute.xlu0 %2451  ;;  %v12354_v35 = vld [vmem:[#allocation52_spill] sm:$0xff] }
 0x3ec   : > { %v906_v34 = vrot.slane %v12347_v45, 4  ;;  %v905_v4 = vrot.slane %v12348_v55, 4  ;;  %v805_v13 = vsel %vm552_vm1, %v12339_v48, %v804_v6  ;;  %v786_v30 = vadd.f32 %v783_v1, %v698_v7  ;;  %v12349_v48 = vld [vmem:[#allocation34_spill] sm:$0xff] }
 0x3ed   : > { %v6614_v62 = vrot.slane %v2864_v15, 9  ;;  %v2885_v46 = vmul.f32 %v2883_v41, %v8400_v11  ;;  %v831_v47 = vadd.f32 %v12342_v37, %v743_v59  ;;  %v6613_v19 = vrot.slane %v2863_v20, 9 }
 0x3ee   : > { %2835 = vrot.lane.b32.xlu1 %v2830_v61, %s11963_s19  ;;  %v2884_v12 = vmul.f32 %v2883_v41, %v8408_v32  ;;  %v2904_v61 = vstv %s8468_s24  ;;  %v827_v53 = vsel %vm552_vm1, %v12341_v40, %v826_v38  ;;  %v849_v50 = vsel %vm552_vm1, %v12343_v25, %v848_v43  ;;  %v12352_v40 = vld [vmem:[#allocation49_spill] sm:$0xff]  ;;  %v12353_v25 = vld [vmem:[#allocation36_spill] sm:$0xff]  ;;  %s6706_s24 = sld [smem:[#allocation7 + $0x18]] }
 0x3ef   : > { %2833 = vrot.lane.b32.xlu0 %v2829_v57, %s11963_s19  ;;  %v871_v7 = vsel %vm552_vm1, %v12345_v42, %v870_v26  ;;  %v907_v59 = vsel %vm550_vm5, %v905_v4, %v906_v34  ;;  %v925_v57 = vrot.slane %v12349_v48, 4  ;;  %v924_v54 = vrot.slane %v12350_v5, 4  ;;  %v8539_v4 = vpop.permute.xlu0 %2470 }
 0x3f0   : > { %v943_v37 = vrot.slane %v12351_v22, 4  ;;  %v942_v49 = vrot.slane %v12352_v40, 4  ;;  %v961_v17 = vrot.slane %v12353_v25, 4  ;;  %v6617_v39 = vrot.slane %v2885_v46, 9 }
 0x3f1   : > { %v2906_v42 = vmul.f32 %v2904_v61, %v8400_v11  ;;  %v960_v51 = vrot.slane %v12354_v35, 4  ;;  %v6616_v1 = vrot.slane %v2884_v12, 9  ;;  %v2925_v15 = vstv %s8491_s26  ;;  %s6709_s26 = sld [smem:[#allocation7 + $0x19]] }
 0x3f2   : > { %2852 = vrot.lane.b32.xlu1 %v2847_v29, %s11963_s19  ;;  %v2905_v29 = vmul.f32 %v2904_v61, %v8408_v32  ;;  %v853_v6 = vadd.f32 %v12344_v33, %v765_v36  ;;  %v808_v20 = vadd.f32 %v805_v13, %v8454_v63  ;;  %v830_v41 = vadd.f32 %v827_v53, %v742_v18  ;;  %v12355_v33 = vld [vmem:[#allocation38_spill] sm:$0xff] }
 0x3f3   : > { %2850 = vrot.lane.b32.xlu0 %v2846_v9, %s11963_s19  ;;  %v875_v9 = vadd.f32 %v12346_v10, %v787_v31  ;;  %v909_v38 = vsel %vm908_vm7, %v12348_v55, %v907_v59  ;;  %v926_v43 = vsel %vm550_vm5, %v924_v54, %v925_v57  ;;  %v852_v26 = vadd.f32 %v849_v50, %v764_v8  ;;  %v12358_v57 = vld [vmem:[#allocation57_spill] sm:$0xff] }
 0x3f4   : > { %v874_v34 = vadd.f32 %v871_v7, %v786_v30  ;;  %v944_v36 = vsel %vm550_vm5, %v942_v49, %v943_v37  ;;  %v983_v10 = vrot.slane %v12355_v33, 4  ;;  %v6620_v63 = vrot.slane %v2906_v42, 9  ;;  %v12357_v7 = vld [vmem:[#allocation39_spill] sm:$0xff]  ;;  %v12359_v42 = vld [vmem:[#allocation37_spill] sm:$0xff] }
 0x3f5   : > { %v2927_v18 = vmul.f32 %v2925_v15, %v8400_v11  ;;  %v962_v31 = vsel %vm550_vm5, %v960_v51, %v961_v17  ;;  %v6619_v13 = vrot.slane %v2905_v29, 9  ;;  %v2926_v55 = vmul.f32 %v2925_v15, %v8408_v32  ;;  %v12360_v15 = vld [vmem:[#allocation40_spill] sm:$0xff] }
 0x3f6   : > { %2873 = vrot.lane.b32.xlu1 %v6614_v62, %s11963_s19  ;;  %v2946_v62 = vstv %s8508_s28  ;;  %v913_v8 = vadd.f32 %v12347_v45, %v809_v44  ;;  %v912_v30 = vadd.f32 %v909_v38, %v808_v20  ;;  %v931_v46 = vadd.f32 %v12349_v48, %v831_v47  ;;  %s6712_s28 = sld [smem:[#allocation7 + $0x1a]] }
 0x3f7   : > { %2871 = vrot.lane.b32.xlu0 %v6613_v19, %s11963_s19  ;;  %v12356_v19 = vld [vmem:[#allocation54_spill] sm:$0xff]  ;;  %v927_v61 = vsel %vm908_vm7, %v12350_v5, %v926_v43  ;;  %v949_v53 = vadd.f32 %v12351_v22, %v853_v6  ;;  %v945_v50 = vsel %vm908_vm7, %v12352_v40, %v944_v36  ;;  %v1005_v59 = vrot.slane %v12357_v7, 4  ;;  %v8566_v5 = vpop.permute.xlu0 %2488  ;;  %v12362_v43 = vld [vmem:[#allocation59_spill] sm:$0xff] }
 0x3f8   : > { %v982_v12 = vrot.slane %v12356_v19, 4  ;;  %v963_v44 = vsel %vm908_vm7, %v12354_v35, %v962_v31  ;;  %v6623_v47 = vrot.slane %v2927_v18, 9  ;;  %v2948_v48 = vmul.f32 %v2946_v62, %v8400_v11  ;;  %v12363_v31 = vld [vmem:[#allocation62_spill] sm:$0xff] }
 0x3f9   : > { %v1004_v54 = vrot.slane %v12358_v57, 4  ;;  %v6622_v22 = vrot.slane %v2926_v55, 9  ;;  %v2947_v37 = vmul.f32 %v2946_v62, %v8408_v32  ;;  %v2967_v40 = vstv %s8530_s29  ;;  %v12364_v62 = vld [vmem:[#allocation64_spill] sm:$0xff]  ;;  %s6715_s29 = sld [smem:[#allocation7 + $0x1b]] }
 0x3fa   : > { %2894 = vrot.lane.b32.xlu1 %v6617_v39, %s11963_s19  ;;  %v984_v45 = vsel %vm550_vm5, %v982_v12, %v983_v10  ;;  %v930_v49 = vadd.f32 %v927_v61, %v830_v41  ;;  %v948_v17 = vadd.f32 %v945_v50, %v852_v26  ;;  %v967_v39 = vadd.f32 %v12353_v25, %v875_v9  ;;  %v12361_v41 = vld [vmem:[#allocation41_spill] sm:$0xff]  ;;  %v12366_v61 = vld [vmem:[#allocation43_spill] sm:$0xff] }
 0x3fb   : > { %2892 = vrot.lane.b32.xlu0 %v6616_v1, %s11963_s19  ;;  %v966_v51 = vadd.f32 %v963_v44, %v874_v34  ;;  %v985_v1 = vsel %vm908_vm7, %v12356_v19, %v984_v45  ;;  %v1006_v29 = vsel %vm550_vm5, %v1004_v54, %v1005_v59  ;;  %v1027_v6 = vrot.slane %v12360_v15, 4  ;;  %v12365_v19 = vld [vmem:[#allocation42_spill] sm:$0xff]  ;;  %v8599_v59 = vpop.permute.xlu0 %2505 }
 0x3fc   : > { %v8581_v20 = vadd.f32 %v12355_v33, %v913_v8  ;;  %v1049_v38 = vrot.slane %v12361_v41, 4  ;;  %v6626_v25 = vrot.slane %v2948_v48, 10  ;;  %v2969_v9 = vmul.f32 %v2967_v40, %v8400_v11 }
 0x3fd   : > { %v1026_v26 = vrot.slane %v12362_v43, 4  ;;  %v6625_v34 = vrot.slane %v2947_v37, 10  ;;  %v2968_v36 = vmul.f32 %v2967_v40, %v8408_v32  ;;  %v2988_v10 = vstv %s8548_s30  ;;  %s6718_s30 = sld [smem:[#allocation7 + $0x1c]] }
 0x3fe   : > { %2915 = vrot.lane.b32.xlu1 %v6620_v63, %s11963_s19  ;;  %v988_v63 = vadd.f32 %v985_v1, %v912_v30  ;;  %v1007_v18 = vsel %vm908_vm7, %v12358_v57, %v1006_v29  ;;  %v1011_v33 = vadd.f32 %v12357_v7, %v931_v46  ;;  %v1070_v8 = vrot.slane %v12364_v62, 4  ;;  %v12367_v46 = vld [vmem:[#allocation45_spill] sm:$0xff] }
 0x3ff   : > { %2913 = vrot.lane.b32.xlu0 %v6619_v13, %s11963_s19  ;;  %v1048_v13 = vrot.slane %v12363_v31, 4  ;;  %v1028_v55 = vsel %vm550_vm5, %v1026_v26, %v1027_v6  ;;  %v1071_v12 = vrot.slane %v12365_v19, 4  ;;  %v1093_v50 = vrot.slane %v12366_v61, 4  ;;  %v12369_v29 = vld [vmem:[#allocation69_spill] sm:$0xff]  ;;  %v12370_v26 = vld [vmem:[#allocation46_spill] sm:$0xff] }
 0x400   : > { %v1115_v7 = vrot.slane %v12367_v46, 4  ;;  %v6629_v44 = vrot.slane %v2969_v9, 10  ;;  %v2990_v45 = vmul.f32 %v2988_v10, %v8400_v11  ;;  %v6628_v57 = vrot.slane %v2968_v36, 10 }
 0x401   : > { %v1050_v30 = vsel %vm550_vm5, %v1048_v13, %v1049_v38  ;;  %v2989_v54 = vmul.f32 %v2988_v10, %v8408_v32  ;;  %v1010_v37 = vadd.f32 %v1007_v18, %v930_v49  ;;  %v1029_v40 = vsel %vm908_vm7, %v12362_v43, %v1028_v55  ;;  %v12371_v43 = vld [vmem:[#allocation48_spill] sm:$0xff]  ;;  %v8625_v13 = vpop.permute.xlu0 %2522 }
 0x402   : > { %2936 = vrot.lane.b32.xlu1 %v6623_v47, %s11963_s19  ;;  %v12368_v47 = vld [vmem:[#allocation67_spill] sm:$0xff]  ;;  %v1033_v1 = vadd.f32 %v12360_v15, %v949_v53  ;;  %v1114_v6 = vrot.slane %v12369_v29, 4  ;;  %v1051_v38 = vsel %vm908_vm7, %v12363_v31, %v1050_v30  ;;  %v1159_v53 = vrot.slane %v12371_v43, 4  ;;  %v12372_v10 = vld [vmem:[#allocation72_spill] sm:$0xff] }
 0x403   : > { %2934 = vrot.lane.b32.xlu0 %v6622_v22, %s11963_s19  ;;  %v1092_v48 = vrot.slane %v12368_v47, 4  ;;  %v3009_v22 = vstv %s8570_s8  ;;  %v6632_v15 = vrot.slane %v2990_v45, 10  ;;  %v1136_v18 = vrot.slane %v12372_v10, 4  ;;  %s6721_s8 = sld [smem:[#allocation7 + $0x1d]] }
 0x404   : > { %v1116_v49 = vsel %vm550_vm5, %v1114_v6, %v1115_v7  ;;  %v3011_v36 = vmul.f32 %v3009_v22, %v8400_v11  ;;  %v6631_v31 = vrot.slane %v2989_v54, 10  ;;  %v3010_v55 = vmul.f32 %v3009_v22, %v8408_v32  ;;  %v12373_v7 = vld [vmem:[#allocation74_spill] sm:$0xff] }
 0x405   : > { %v1094_v9 = vsel %vm550_vm5, %v1092_v48, %v1093_v50  ;;  %v1054_v50 = vadd.f32 %v1051_v38, %v966_v51  ;;  %v1055_v30 = vadd.f32 %v12361_v41, %v967_v39  ;;  %v12374_v39 = vld [vmem:[#allocation50_spill] sm:$0xff]  ;;  %v3051_v6 = vstv %s8608_s12  ;;  %s6727_s12 = sld [smem:[#allocation7 + $0x1f]] }
 0x406   : > { %2957 = vrot.lane.b32.xlu1 %v6626_v25, %s11963_s19  ;;  %v1072_v25 = vsel %vm550_vm5, %v1070_v8, %v1071_v12  ;;  %v3030_v8 = vstv %s8588_s10  ;;  %v1032_v12 = vadd.f32 %v1029_v40, %v948_v17  ;;  %v1095_v48 = vsel %vm908_vm7, %v12368_v47, %v1094_v9  ;;  %v12375_v9 = vld [vmem:[#allocation77_spill] sm:$0xff]  ;;  %s6724_s10 = sld [smem:[#allocation7 + $0x1e]] }
 0x407   : > { %2955 = vrot.lane.b32.xlu0 %v6625_v34, %s11963_s19  ;;  %v1137_v34 = vrot.slane %v12370_v26, 4  ;;  %v1073_v45 = vsel %vm908_vm7, %v12364_v62, %v1072_v25  ;;  %v1181_v51 = vrot.slane %v12374_v39, 4  ;;  %v6635_v41 = vrot.slane %v3011_v36, 10 }
 0x408   : > { %v3032_v22 = vmul.f32 %v3030_v8, %v8400_v11  ;;  %v1077_v62 = vadd.f32 %v12365_v19, %v8581_v20  ;;  %v6634_v40 = vrot.slane %v3010_v55, 10  ;;  %v3031_v47 = vmul.f32 %v3030_v8, %v8408_v32 }
 0x409   : > { %v1138_v54 = vsel %vm550_vm5, %v1136_v18, %v1137_v34  ;;  %v1098_v38 = vadd.f32 %v1095_v48, %v1010_v37  ;;  %v1099_v25 = vadd.f32 %v12366_v61, %v1011_v33  ;;  %v1180_v34 = vrot.slane %v12375_v9, 4  ;;  %v12376_v33 = vld [vmem:[#allocation51_spill] sm:$0xff]  ;;  %v12377_v18 = vld [vmem:[#allocation53_spill] sm:$0xff] }
 0x40a   : > { %2978 = vrot.lane.b32.xlu1 %v6629_v44, %s11963_s19  ;;  %v1158_v44 = vrot.slane %v12373_v7, 4  ;;  %v1139_v20 = vsel %vm908_vm7, %v12372_v10, %v1138_v54  ;;  %v1203_v61 = vrot.slane %v12376_v33, 4  ;;  %v6638_v37 = vrot.slane %v3032_v22, 11  ;;  %v12379_v54 = vld [vmem:[#allocation82_spill] sm:$0xff] }
 0x40b   : > { %2976 = vrot.lane.b32.xlu0 %v6628_v57, %s11963_s19  ;;  %v1117_v57 = vsel %vm908_vm7, %v12369_v29, %v1116_v49  ;;  %v1076_v29 = vadd.f32 %v1073_v45, %v988_v63  ;;  %v1182_v63 = vsel %vm550_vm5, %v1180_v34, %v1181_v51  ;;  %v3053_v36 = vmul.f32 %v3051_v6, %v8400_v11 }
 0x40c   : > { %v1160_v17 = vsel %vm550_vm5, %v1158_v44, %v1159_v53  ;;  %v1120_v49 = vadd.f32 %v1117_v57, %v1032_v12  ;;  %v1121_v53 = vadd.f32 %v12367_v46, %v1033_v1  ;;  %v6637_v46 = vrot.slane %v3031_v47, 11 }
 0x40d   : > { %v1161_v19 = vsel %vm908_vm7, %v12373_v7, %v1160_v17  ;;  %v3052_v1 = vmul.f32 %v3051_v6, %v8408_v32  ;;  %v3072_v10 = vstv %s8629_s15  ;;  %v1142_v55 = vadd.f32 %v1139_v20, %v1054_v50  ;;  %v12378_v7 = vld [vmem:[#allocation79_spill] sm:$0xff]  ;;  %v12384_v20 = vld [vmem:[#allocation89_spill] sm:$0xff]  ;;  %s6730_s15 = sld [smem:[#allocation7 + $0x20]] }
 0x40e   : > { %2999 = vrot.lane.b32.xlu1 %v6632_v15, %s11963_s19  ;;  %v8659_v15 = vpop.permute.xlu0 %2543  ;;  %v1143_v8 = vadd.f32 %v12370_v26, %v1055_v30  ;;  %v1165_v12 = vadd.f32 %v12371_v43, %v1077_v62  ;;  %v1202_v44 = vrot.slane %v12378_v7, 4  ;;  %v8672_v45 = vadd.f32 %v1161_v19, %v1076_v29  ;;  %v12380_v43 = vld [vmem:[#allocation84_spill] sm:$0xff]  ;;  %v12382_v29 = vld [vmem:[#allocation87_spill] sm:$0xff] }
 0x40f   : > { %2997 = vrot.lane.b32.xlu0 %v6631_v31, %s11963_s19  ;;  %v1225_v31 = vrot.slane %v12377_v18, 4  ;;  %v1183_v48 = vsel %vm908_vm7, %v12375_v9, %v1182_v63  ;;  %v1187_v57 = vadd.f32 %v12374_v39, %v1099_v25  ;;  %v1224_v17 = vrot.slane %v12379_v54, 4  ;;  %v12381_v39 = vld [vmem:[#allocation55_spill] sm:$0xff]  ;;  %v12383_v9 = vld [vmem:[#allocation56_spill] sm:$0xff]  ;;  %v12385_v63 = vld [vmem:[#allocation58_spill] sm:$0xff] }
 0x410   : > { %v1204_v26 = vsel %vm550_vm5, %v1202_v44, %v1203_v61  ;;  %v1253_v50 = vrot.slane %v12380_v43, 4  ;;  %v6641_v30 = vrot.slane %v3053_v36, 11  ;;  %v3074_v51 = vmul.f32 %v3072_v10, %v8400_v11 }
 0x411   : > { %v6640_v62 = vrot.slane %v3052_v1, 11  ;;  %v3093_v47 = vstv %s8649_s16  ;;  %v1271_v6 = vrot.slane %v12381_v39, 4  ;;  %v1272_v25 = vrot.slane %v12382_v29, 4  ;;  %v12388_v1 = vld [vmem:[#allocation95_spill] sm:$0xff]  ;;  %s6731_s16 = sld [smem:[#allocation7 + $0x21]] }
 0x412   : > { %3020 = vrot.lane.b32.xlu1 %v6635_v41, %s11963_s19  ;;  %v1226_v41 = vsel %vm550_vm5, %v1224_v17, %v1225_v31  ;;  %v8683_v22 = vpop.permute.xlu0 %2564  ;;  %v1289_v34 = vrot.slane %v12383_v9, 4  ;;  %v1290_v19 = vrot.slane %v12384_v20, 4  ;;  %v1307_v61 = vrot.slane %v12385_v63, 4  ;;  %v12387_v31 = vld [vmem:[#allocation60_spill] sm:$0xff] }
 0x413   : > { %3018 = vrot.lane.b32.xlu0 %v6634_v40, %s11963_s19  ;;  %v3073_v40 = vmul.f32 %v3072_v10, %v8408_v32  ;;  %v1330_v44 = vrot.slane %v12388_v1, 4  ;;  %v1186_v10 = vadd.f32 %v1183_v48, %v1098_v38  ;;  %v1205_v17 = vsel %vm908_vm7, %v12378_v7, %v1204_v26  ;;  %v12390_v48 = vld [vmem:[#allocation61_spill] sm:$0xff]  ;;  %v12391_v7 = vld [vmem:[#allocation96_spill] sm:$0xff] }
 0x414   : > { %v6644_v35 = vrot.slane %v3074_v51, 11  ;;  %v3095_v2 = vmul.f32 %v3093_v47, %v8400_v11  ;;  %v1209_v58 = vadd.f32 %v12376_v33, %v1121_v53  ;;  %v3094_v16 = vmul.f32 %v3093_v47, %v8408_v32 }
 0x415   : > { %v6643_v0 = vrot.slane %v3073_v40, 11  ;;  %v12389_v21 = vrot.slane %v12359_v42, 4  ;;  %v1273_v38 = vsel %vm550_vm5, %v1271_v6, %v1272_v25  ;;  %v1352_v26 = vrot.slane %v12391_v7, 4  ;;  %v12397_v25 = vld [vmem:[#allocation99_spill] sm:$0xff] }
 0x416   : > { %3041 = vrot.lane.b32.xlu1 %v6638_v37, %s11963_s19  ;;  %v12386_v37 = vld [vmem:[#allocation92_spill] sm:$0xff]  ;;  %v1208_v11 = vadd.f32 %v1205_v17, %v1120_v49  ;;  %v1291_v53 = vsel %vm550_vm5, %v1289_v34, %v1290_v19  ;;  %v8714_v32 = vpop.permute.xlu0 %2585  ;;  %v1260_v51 = vadd.f32 %v12380_v43, %v1165_v12  ;;  %v1274_v49 = vsel %vm1255_vm8, %v12381_v39, %v1273_v38  ;;  %v12394_v12 = vld [vmem:[#allocation65_spill] sm:$0xff]  ;;  %v12396_v39 = vld [vmem:[#allocation66_spill] sm:$0xff] }
 0x417   : > { %3039 = vrot.lane.b32.xlu0 %v6637_v46, %s11963_s19  ;;  %v1308_v36 = vrot.slane %v12386_v37, 4  ;;  %v1329_v46 = vrot.slane %v12387_v31, 4  ;;  %v1254_v28 = vsel %vm550_vm5, %v12389_v21, %v1253_v50  ;;  %v1231_v50 = vadd.f32 %v12377_v18, %v1143_v8  ;;  %v12398_v34 = vld [vmem:[#allocation68_spill] sm:$0xff] }
 0x418   : > { %v1278_v40 = vadd.f32 %v12382_v29, %v1187_v57  ;;  %v6646_v47 = vrot.slane %v3094_v16, 11  ;;  %v1292_v6 = vsel %vm1255_vm8, %v12383_v9, %v1291_v53  ;;  %v1395_v57 = vrot.slane %v12394_v12, 4  ;;  %v12395_v16 = vld [vmem:[#allocation98_spill] sm:$0xff] }
 0x419   : > { %v1309_v33 = vsel %vm550_vm5, %v1307_v61, %v1308_v36  ;;  %v1396_v43 = vrot.slane %v12395_v16, 4  ;;  %v1417_v29 = vrot.slane %v12396_v39, 4  ;;  %v1418_v9 = vrot.slane %v12397_v25, 4 }
 0x41a   : > { %3062 = vrot.lane.b32.xlu1 %v6641_v30, %s11963_s19  ;;  %v1227_v30 = vsel %vm908_vm7, %v12379_v54, %v1226_v41  ;;  %v1331_v54 = vsel %vm550_vm5, %v1329_v46, %v1330_v44  ;;  %v6647_v41 = vrot.slane %v3095_v2, 11  ;;  %v1439_v19 = vrot.slane %v12398_v34, 4  ;;  %v8743_v17 = vpop.permute.xlu0 %2606 }
 0x41b   : > { %3060 = vrot.lane.b32.xlu0 %v6640_v62, %s11963_s19  ;;  %v1351_v62 = vrot.slane %v12390_v48, 4  ;;  %v1230_v21 = vadd.f32 %v1227_v30, %v1142_v55  ;;  %v1332_v18 = vsel %vm1255_vm8, %v12387_v31, %v1331_v54  ;;  %v12393_v55 = vld [vmem:[#allocation97_spill] sm:$0xff]  ;;  %v1277_v31 = vadd.f32 %v1274_v49, %v1186_v10 }
 0x41c   : > { %v1374_v8 = vrot.slane %v12393_v55, 4  ;;  %v1295_v46 = vadd.f32 %v1292_v6, %v1208_v11  ;;  %v1296_v44 = vadd.f32 %v12384_v20, %v1209_v58  ;;  %v1314_v38 = vadd.f32 %v12386_v37, %v1231_v50  ;;  %v12400_v20 = vld [vmem:[#allocation70_spill] sm:$0xff]  ;;  %v12402_v50 = vld [vmem:[#allocation71_spill] sm:$0xff] }
 0x41d   : > { %v1353_v2 = vsel %vm550_vm5, %v1351_v62, %v1352_v26  ;;  %v1336_v62 = vadd.f32 %v12388_v1, %v1260_v51  ;;  %v1358_v26 = vadd.f32 %v12391_v7, %v1278_v40  ;;  %v1419_v11 = vsel %vm550_vm5, %v1417_v29, %v1418_v9  ;;  %v12403_v51 = vld [vmem:[#allocation102_spill] sm:$0xff]  ;;  %v12408_v9 = vld [vmem:[#allocation76_spill] sm:$0xff] }
 0x41e   : > { %3083 = vrot.lane.b32.xlu1 %v6644_v35, %s11963_s19  ;;  %v1256_v35 = vsel %vm1255_vm8, %v12359_v42, %v1254_v28  ;;  %v12392_v28 = vld [vmem:[#allocation63_spill] sm:$0xff]  ;;  %v1354_v53 = vsel %vm1255_vm8, %v12390_v48, %v1353_v2  ;;  %v1461_v54 = vrot.slane %v12400_v20, 4  ;;  %v1483_v1 = vrot.slane %v12402_v50, 4  ;;  %v8770_v29 = vpop.permute.xlu0 %2627 }
 0x41f   : > { %3081 = vrot.lane.b32.xlu0 %v6643_v0, %s11963_s19  ;;  %v1310_v0 = vsel %vm1255_vm8, %v12385_v63, %v1309_v33  ;;  %v1373_v42 = vrot.slane %v12392_v28, 4  ;;  %v12399_v63 = vld [vmem:[#allocation100_spill] sm:$0xff]  ;;  %v1259_v36 = vadd.f32 %v1256_v35, %v8672_v45  ;;  %v1397_v45 = vsel %vm550_vm5, %v1395_v57, %v1396_v43  ;;  %v12405_v48 = vld [vmem:[#allocation103_spill] sm:$0xff] }
 0x420   : > { %v1440_v61 = vrot.slane %v12399_v63, 4  ;;  %v1313_v30 = vadd.f32 %v1310_v0, %v1230_v21  ;;  %v12401_v21 = vld [vmem:[#allocation101_spill] sm:$0xff]  ;;  %v1484_v7 = vrot.slane %v12403_v51, 4  ;;  %v1506_v49 = vrot.slane %v12405_v48, 4  ;;  %v12407_v0 = vld [vmem:[#allocation104_spill] sm:$0xff] }
 0x421   : > { %v1375_v33 = vsel %vm550_vm5, %v1373_v42, %v1374_v8  ;;  %v1335_v10 = vadd.f32 %v1332_v18, %v1259_v36  ;;  %v1462_v37 = vrot.slane %v12401_v21, 4  ;;  %v1380_v40 = vadd.f32 %v12393_v55, %v1296_v44  ;;  %v12410_v44 = vld [vmem:[#allocation78_spill] sm:$0xff] }
 0x422   : > { %3104 = vrot.lane.b32.xlu1 %v6647_v41, %s11963_s19  ;;  %v1441_v58 = vsel %vm550_vm5, %v1439_v19, %v1440_v61  ;;  %v12404_v41 = vld [vmem:[#allocation73_spill] sm:$0xff]  ;;  %v1528_v18 = vrot.slane %v12407_v0, 4  ;;  %v1357_v2 = vadd.f32 %v1354_v53, %v1277_v31  ;;  %v1376_v42 = vsel %vm1255_vm8, %v12392_v28, %v1375_v33 }
 0x423   : > { %3102 = vrot.lane.b32.xlu0 %v6646_v47, %s11963_s19  ;;  %v1505_v35 = vrot.slane %v12404_v41, 4  ;;  %v12406_v47 = vld [vmem:[#allocation75_spill] sm:$0xff]  ;;  %v1398_v8 = vsel %vm1255_vm8, %v12394_v12, %v1397_v45  ;;  %v1402_v57 = vadd.f32 %v12395_v16, %v1314_v38  ;;  %v1420_v43 = vsel %vm1255_vm8, %v12396_v39, %v1419_v11  ;;  %v12409_v61 = vld [vmem:[#allocation105_spill] sm:$0xff]  ;;  %v12411_v38 = vld [vmem:[#allocation106_spill] sm:$0xff]  ;;  %s9774_s19 = sld [smem:[#allocation7 + $0x69]] }
 0x424   : > { %v1527_v6 = vrot.slane %v12406_v47, 4  ;;  %v1463_v55 = vsel %vm550_vm5, %v1461_v54, %v1462_v37  ;;  %v1549_v19 = vrot.slane %v12408_v9, 4  ;;  %v1550_v36 = vrot.slane %v12409_v61, 4 }
 0x425   : > { %v1442_v31 = vsel %vm1255_vm8, %v12398_v34, %v1441_v58  ;;  %v1485_v28 = vsel %vm550_vm5, %v1483_v1, %v1484_v7  ;;  %v1507_v12 = vsel %vm550_vm5, %v1505_v35, %v1506_v49  ;;  %v1571_v16 = vrot.slane %v12410_v44, 4  ;;  %v12414_v49 = vld [vmem:[#allocation81_spill] sm:$0xff] }
 0x426   : > { %v1572_v53 = vrot.slane %v12411_v38, 4  ;;  %v1424_v39 = vadd.f32 %v12397_v25, %v1336_v62  ;;  %v1529_v33 = vsel %vm550_vm5, %v1527_v6, %v1528_v18  ;;  %v1379_v45 = vadd.f32 %v1376_v42, %v1295_v46 }
 0x427   : > { %v1401_v11 = vadd.f32 %v1398_v8, %v1313_v30  ;;  %v1446_v54 = vadd.f32 %v12399_v63, %v1358_v26  ;;  %v1468_v37 = vadd.f32 %v12401_v21, %v1380_v40  ;;  %v1423_v60 = vadd.f32 %v1420_v43, %v1335_v10  ;;  %v12412_v30 = vld [vmem:[#allocation80_spill] sm:$0xff]  ;;  %v12413_v26 = vld [vmem:[#allocation107_spill] sm:$0xff]  ;;  %v8797_v21 = vpop.permute.xlu0 %2648 }
 0x428   : > { %v1464_v34 = vsel %vm1255_vm8, %v12400_v20, %v1463_v55  ;;  %v1551_v58 = vsel %vm550_vm5, %v1549_v19, %v1550_v36  ;;  %v1508_v1 = vsel %vm1255_vm8, %v12404_v41, %v1507_v12  ;;  %v1445_v7 = vadd.f32 %v1442_v31, %v1357_v2  ;;  %v12415_v2 = vld [vmem:[#allocation108_spill] sm:$0xff]  ;;  %v12417_v19 = vld [vmem:[#allocation109_spill] sm:$0xff] }
 0x429   : > { %v1486_v25 = vsel %vm1255_vm8, %v12402_v50, %v1485_v28  ;;  %v1573_v46 = vsel %vm550_vm5, %v1571_v16, %v1572_v53  ;;  %v1586_v62 = vrot.slane %v12412_v30, 4  ;;  %v1530_v63 = vsel %vm1255_vm8, %v12406_v47, %v1529_v33  ;;  %v12419_v53 = vld [vmem:[#allocation110_spill] sm:$0xff]  ;;  %12586 = sst [smem:[#allocation208_spill]] %s9774_s19 }
 0x42a   : > { %v1598_v10 = vrot.slane %v12413_v26, 4  ;;  %v1490_v20 = vadd.f32 %v12403_v51, %v1402_v57  ;;  %v1512_v35 = vadd.f32 %v12405_v48, %v1424_v39  ;;  %v1467_v41 = vadd.f32 %v1464_v34, %v1379_v45 }
 0x42b   : > { %v1610_v40 = vrot.slane %v12414_v49, 4  ;;  %v1534_v50 = vadd.f32 %v12407_v0, %v1446_v54  ;;  %v1552_v6 = vsel %vm1255_vm8, %v12408_v9, %v1551_v58  ;;  %v1489_v18 = vadd.f32 %v1486_v25, %v1401_v11  ;;  %v12416_v0 = vld [vmem:[#allocation83_spill] sm:$0xff]  ;;  %v8822_v33 = vpop.permute.xlu0 %2669 }
 0x42c   : > { %v1622_v42 = vrot.slane %v12415_v2, 4  ;;  %v1556_v47 = vadd.f32 %v12409_v61, %v1468_v37  ;;  %v1511_v8 = vadd.f32 %v1508_v1, %v1423_v60  ;;  %v1533_v43 = vadd.f32 %v1530_v63, %v1445_v7  ;;  %v12418_v61 = vld [vmem:[#allocation85_spill] sm:$0xff]  ;;  %v12420_v1 = vld [vmem:[#allocation86_spill] sm:$0xff] }
 0x42d   : > { %v1574_v51 = vsel %vm1255_vm8, %v12410_v44, %v1573_v46  ;;  %v1587_v48 = vsel %vm338_vm4, %v1586_v62, %v12412_v30  ;;  %v1599_v57 = vsel %vm338_vm4, %v1598_v10, %v12413_v26  ;;  %v1636_v55 = vrot.slane %v12416_v0, 4 }
 0x42e   : > { %v1650_v9 = vrot.slane %v12417_v19, 4  ;;  %v1578_v36 = vadd.f32 %v12411_v38, %v1490_v20  ;;  %v1555_v31 = vadd.f32 %v1552_v6, %v1467_v41  ;;  %v1611_v60 = vsel %vm338_vm4, %v1610_v40, %v12414_v49  ;;  %v12422_v20 = vld [vmem:[#allocation88_spill] sm:$0xff] }
 0x42f   : > { %v1664_v28 = vrot.slane %v12418_v61, 4  ;;  %v1591_v12 = vadd.f32 %v1586_v62, %v1512_v35  ;;  %v1577_v44 = vadd.f32 %v1574_v51, %v1489_v18  ;;  %v1623_v16 = vsel %vm338_vm4, %v1622_v42, %v12415_v2  ;;  %v12421_v62 = vld [vmem:[#allocation111_spill] sm:$0xff]  ;;  %v12423_v41 = vld [vmem:[#allocation112_spill] sm:$0xff]  ;;  %v12424_v18 = vld [vmem:[#allocation90_spill] sm:$0xff]  ;;  %v8839_v51 = vpop.permute.xlu0 %2690 }
 0x430   : > { %v1678_v39 = vrot.slane %v12419_v53, 4  ;;  %v1590_v45 = vadd.f32 %v1587_v48, %v1511_v8  ;;  %v1602_v11 = vadd.f32 %v1599_v57, %v1533_v43  ;;  %v1603_v54 = vadd.f32 %v1598_v10, %v1534_v50 }
 0x431   : > { %v1615_v37 = vadd.f32 %v1610_v40, %v1556_v47  ;;  %v1614_v38 = vadd.f32 %v1611_v60, %v1555_v31  ;;  %v1637_v34 = vsel %vm338_vm4, %v1636_v55, %v12416_v0  ;;  %v1651_v58 = vsel %vm338_vm4, %v1650_v9, %v12417_v19  ;;  %v12426_v31 = vld [vmem:[#allocation91_spill] sm:$0xff] }
 0x432   : > { %v1692_v7 = vrot.slane %v12420_v1, 4  ;;  %v1626_v25 = vadd.f32 %v1623_v16, %v1577_v44  ;;  %v1627_v46 = vadd.f32 %v1622_v42, %v1578_v36  ;;  %v1665_v30 = vsel %vm338_vm4, %v1664_v28, %v12418_v61  ;;  %v12427_v61 = vld [vmem:[#allocation114_spill] sm:$0xff] }
 0x433   : > { %v1706_v63 = vrot.slane %v12421_v62, 4  ;;  %v1641_v26 = vadd.f32 %v1636_v55, %v1591_v12  ;;  %v1679_v10 = vsel %vm338_vm4, %v1678_v39, %v12419_v53  ;;  %v1720_v35 = vrot.slane %v12422_v20, 4  ;;  %v12425_v55 = vld [vmem:[#allocation113_spill] sm:$0xff]  ;;  %v12428_v53 = vld [vmem:[#allocation115_spill] sm:$0xff] }
 0x434   : > { %v1734_v49 = vrot.slane %v12423_v41, 4  ;;  %v1640_v40 = vadd.f32 %v1637_v34, %v1590_v45  ;;  %v1654_v50 = vadd.f32 %v1651_v58, %v1602_v11  ;;  %v1655_v6 = vadd.f32 %v1650_v9, %v1603_v54  ;;  %v12429_v54 = vld [vmem:[#allocation116_spill] sm:$0xff] }
 0x435   : > { %v1748_v2 = vrot.slane %v12424_v18, 4  ;;  %v1668_v47 = vadd.f32 %v1665_v30, %v1614_v38  ;;  %v1669_v42 = vadd.f32 %v1664_v28, %v1615_v37  ;;  %v1683_v8 = vadd.f32 %v1678_v39, %v1627_v46 }
 0x436   : > { %v1693_v43 = vsel %vm338_vm4, %v1692_v7, %v12420_v1  ;;  %v1682_v48 = vadd.f32 %v1679_v10, %v1626_v25  ;;  %v1697_v57 = vadd.f32 %v1692_v7, %v1641_v26  ;;  %v1707_v0 = vsel %vm338_vm4, %v1706_v63, %v12421_v62  ;;  %v8860_v62 = vpop.permute.xlu0 %2711  ;;  %v12430_v26 = vld [vmem:[#allocation133_spill] sm:$0xff] }
 0x437   : > { %v1762_v19 = vrot.slane %v12425_v55, 4  ;;  %v1721_v9 = vsel %vm338_vm4, %v1720_v35, %v12422_v20  ;;  %v1735_v36 = vsel %vm338_vm4, %v1734_v49, %v12423_v41  ;;  %v1776_v60 = vrot.slane %v12426_v31, 4  ;;  %v12431_v20 = vld [vmem:[#allocation117_spill] sm:$0xff]  ;;  %v12432_v41 = vld [vmem:[#allocation118_spill] sm:$0xff] }
 0x438   : > { %v1790_v28 = vrot.slane %v12427_v61, 4  ;;  %v1696_v12 = vadd.f32 %v1693_v43, %v1640_v40  ;;  %v1711_v44 = vadd.f32 %v1706_v63, %v1655_v6  ;;  %v1749_v16 = vsel %vm338_vm4, %v1748_v2, %v12424_v18  ;;  %v12433_v18 = vld [vmem:[#allocation119_spill] sm:$0xff]  ;;  %v12434_v43 = vld [vmem:[#allocation120_spill] sm:$0xff] }
 0x439   : > { %v1817_v39 = vrot.slane %v12428_v53, 4  ;;  %v1710_v45 = vadd.f32 %v1707_v0, %v1654_v50  ;;  %v1725_v11 = vadd.f32 %v1720_v35, %v1669_v42  ;;  %v1835_v37 = vrot.slane %v12429_v54, 4 }
 0x43a   : > { %v1724_v38 = vadd.f32 %v1721_v9, %v1668_v47  ;;  %v1738_v34 = vadd.f32 %v1735_v36, %v1682_v48  ;;  %v1739_v58 = vadd.f32 %v1734_v49, %v1683_v8  ;;  %v1763_v1 = vsel %vm338_vm4, %v1762_v19, %v12425_v55  ;;  %v12435_v9 = vld [vmem:[#allocation134_spill] sm:$0xff] }
 0x43b   : > { %v1752_v7 = vadd.f32 %v1749_v16, %v1696_v12  ;;  %v1753_v25 = vadd.f32 %v1748_v2, %v1697_v57  ;;  %v1777_v46 = vsel %vm338_vm4, %v1776_v60, %v12426_v31  ;;  %v1791_v30 = vsel %vm338_vm4, %v1790_v28, %v12427_v61  ;;  %v12436_v61 = vld [vmem:[#allocation135_spill] sm:$0xff] }
 0x43c   : > { %v1819_v63 = vsel %vm1818_vm9, %v1817_v39, %v12428_v53  ;;  %v1820_v10 = vsel %vm1818_vm9, %v1817_v39, %v12430_v26  ;;  %v1852_v35 = vrot.slane %v12431_v20, 4  ;;  %v1869_v49 = vrot.slane %v12432_v41, 4  ;;  %v12438_v53 = vld [vmem:[#allocation137_spill] sm:$0xff]  ;;  %v12443_v26 = vld [vmem:[#allocation124_spill] sm:$0xff] }
 0x43d   : > { %v1766_v40 = vadd.f32 %v1763_v1, %v1710_v45  ;;  %v1767_v50 = vadd.f32 %v1762_v19, %v1711_v44  ;;  %v1836_v6 = vsel %vm1818_vm9, %v1835_v37, %v12429_v54  ;;  %v1890_v2 = vrot.slane %v12433_v18, 4  ;;  %v12439_v45 = vld [vmem:[#allocation121_spill] sm:$0xff]  ;;  %v8887_v54 = vpop.permute.xlu0 %2732 }
 0x43e   : > { %v1780_v47 = vadd.f32 %v1777_v46, %v1724_v38  ;;  %v1781_v42 = vadd.f32 %v1776_v60, %v1725_v11  ;;  %v1795_v8 = vadd.f32 %v1790_v28, %v1739_v58  ;;  %v1911_v48 = vrot.slane %v12434_v43, 4  ;;  %v12437_v60 = vld [vmem:[#allocation136_spill] sm:$0xff]  ;;  %v12440_v38 = vld [vmem:[#allocation138_spill] sm:$0xff] }
 0x43f   : > { %v1794_v57 = vadd.f32 %v1791_v30, %v1738_v34  ;;  %v1823_v0 = vadd.f32 %v1819_v63, %v1752_v7  ;;  %v1824_v55 = vadd.f32 %v1820_v10, %v1753_v25  ;;  %v1837_v36 = vsel %vm1818_vm9, %v1835_v37, %v12435_v9  ;;  %v12441_v58 = vld [vmem:[#allocation122_spill] sm:$0xff]  ;;  %v12442_v7 = vld [vmem:[#allocation123_spill] sm:$0xff] }
 0x440   : > { %v1840_v31 = vadd.f32 %v1836_v6, %v1766_v40  ;;  %v1853_v19 = vsel %vm1818_vm9, %v1852_v35, %v12431_v20  ;;  %v1854_v12 = vsel %vm1818_vm9, %v1852_v35, %v12436_v61  ;;  %v1870_v44 = vsel %vm1818_vm9, %v1869_v49, %v12432_v41 }
 0x441   : > { %v1871_v28 = vsel %vm1818_vm9, %v1869_v49, %v12437_v60  ;;  %v1891_v16 = vsel %vm1818_vm9, %v1890_v2, %v12433_v18  ;;  %v1892_v39 = vsel %vm1818_vm9, %v1890_v2, %v12438_v53  ;;  %v1932_v11 = vrot.slane %v12439_v45, 4  ;;  %v12444_v49 = vld [vmem:[#allocation125_spill] sm:$0xff]  ;;  %v12451_v53 = vld [vmem:[#allocation128_spill] sm:$0xff] }
 0x442   : > { %v1912_v37 = vsel %vm1818_vm9, %v1911_v48, %v12434_v43  ;;  %v1913_v34 = vsel %vm1818_vm9, %v1911_v48, %v12440_v38  ;;  %v1953_v1 = vrot.slane %v12441_v58, 4  ;;  %v1974_v25 = vrot.slane %v12442_v7, 4  ;;  %v12445_v48 = vld [vmem:[#allocation139_spill] sm:$0xff]  ;;  %v12452_v38 = vld [vmem:[#allocation129_spill] sm:$0xff] }
 0x443   : > { %v1841_v46 = vadd.f32 %v1837_v36, %v1767_v50  ;;  %v1857_v30 = vadd.f32 %v1853_v19, %v1780_v47  ;;  %v1858_v63 = vadd.f32 %v1854_v12, %v1781_v42  ;;  %v1995_v10 = vrot.slane %v12443_v26, 4  ;;  %v12446_v47 = vld [vmem:[#allocation140_spill] sm:$0xff]  ;;  %v12448_v36 = vld [vmem:[#allocation142_spill] sm:$0xff]  ;;  %v8914_v12 = vpop.permute.xlu0 %2753 }
 0x444   : > { %v1874_v20 = vadd.f32 %v1870_v44, %v1794_v57  ;;  %v1875_v35 = vadd.f32 %v1871_v28, %v1795_v8  ;;  %v1895_v41 = vadd.f32 %v1891_v16, %v1823_v0  ;;  %v2016_v40 = vrot.slane %v12444_v49, 4  ;;  %v12447_v57 = vld [vmem:[#allocation141_spill] sm:$0xff]  ;;  %v12449_v19 = vld [vmem:[#allocation126_spill] sm:$0xff]  ;;  %v12450_v28 = vld [vmem:[#allocation127_spill] sm:$0xff] }
 0x445   : > { %v1896_v6 = vadd.f32 %v1892_v39, %v1824_v55  ;;  %v1916_v18 = vadd.f32 %v1912_v37, %v1840_v31  ;;  %v1917_v2 = vadd.f32 %v1913_v34, %v1841_v46  ;;  %v1933_v43 = vsel %vm1818_vm9, %v1932_v11, %v12439_v45  ;;  %v12453_v46 = vld [vmem:[#allocation143_spill] sm:$0xff] }
 0x446   : > { %v1934_v9 = vsel %vm1818_vm9, %v1932_v11, %v12445_v48  ;;  %v1954_v50 = vsel %vm1818_vm9, %v1953_v1, %v12441_v58  ;;  %v1955_v42 = vsel %vm1818_vm9, %v1953_v1, %v12446_v47  ;;  %v1975_v8 = vsel %vm1818_vm9, %v1974_v25, %v12442_v7  ;;  %v12459_v47 = vld [vmem:[#allocation150_spill] sm:$0xff] }
 0x447   : > { %v1976_v0 = vsel %vm1818_vm9, %v1974_v25, %v12447_v57  ;;  %v1996_v55 = vsel %vm1818_vm9, %v1995_v10, %v12443_v26  ;;  %v1997_v31 = vsel %vm1818_vm9, %v1995_v10, %v12448_v36  ;;  %v2037_v61 = vrot.slane %v12449_v19, 4 }
 0x448   : > { %v1937_v44 = vadd.f32 %v1933_v43, %v1857_v30  ;;  %v2017_v60 = vsel %vm1818_vm9, %v2016_v40, %v12444_v49  ;;  %v2058_v16 = vrot.slane %v12450_v28, 4  ;;  %v2079_v39 = vrot.slane %v12451_v53, 4  ;;  %v12454_v49 = vld [vmem:[#allocation144_spill] sm:$0xff] }
 0x449   : > { %v1938_v45 = vadd.f32 %v1934_v9, %v1858_v63  ;;  %v1958_v11 = vadd.f32 %v1954_v50, %v1874_v20  ;;  %v1959_v37 = vadd.f32 %v1955_v42, %v1875_v35  ;;  %v2100_v34 = vrot.slane %v12452_v38, 4  ;;  %v12455_v20 = vld [vmem:[#allocation145_spill] sm:$0xff] }
 0x44a   : > { %v1979_v58 = vadd.f32 %v1975_v8, %v1895_v41  ;;  %v1980_v1 = vadd.f32 %v1976_v0, %v1896_v6  ;;  %v2000_v7 = vadd.f32 %v1996_v55, %v1916_v18  ;;  %v2001_v25 = vadd.f32 %v1997_v31, %v1917_v2  ;;  %v12456_v6 = vld [vmem:[#allocation130_spill] sm:$0xff]  ;;  %v12458_v9 = vld [vmem:[#allocation149_spill] sm:$0xff]  ;;  %v8940_v8 = vpop.permute.xlu0 %2774  ;;  %v12460_v55 = vld [vmem:[#allocation151_spill] sm:$0xff] }
 0x44b   : > { %v2018_v26 = vsel %vm1818_vm9, %v2016_v40, %v12453_v46  ;;  %v2021_v30 = vadd.f32 %v2017_v60, %v1937_v44  ;;  %v2038_v10 = vsel %vm1818_vm9, %v2037_v61, %v12449_v19  ;;  %v2039_v43 = vsel %vm1818_vm9, %v2037_v61, %v12454_v49  ;;  %v12457_v2 = vld [vmem:[#allocation146_spill] sm:$0xff]  ;;  %v12463_v46 = vld [vmem:[#allocation148_spill] sm:$0xff]  ;;  %v12467_v49 = vld [vmem:[#allocation153_spill] sm:$0xff] }
 0x44c   : > { %v2059_v63 = vsel %vm1818_vm9, %v2058_v16, %v12450_v28  ;;  %v2060_v35 = vsel %vm1818_vm9, %v2058_v16, %v12455_v20  ;;  %v2080_v41 = vsel %vm1818_vm9, %v2079_v39, %v12451_v53  ;;  %v2121_v18 = vrot.slane %v12456_v6, 4  ;;  %v12461_v28 = vld [vmem:[#allocation147_spill] sm:$0xff]  ;;  %v12468_v20 = vld [vmem:[#allocation170_spill] sm:$0xff] }
 0x44d   : > { %v2081_v40 = vsel %vm1818_vm9, %v2079_v39, %v12457_v2  ;;  %v2101_v48 = vsel %vm1818_vm9, %v2100_v34, %v12452_v38  ;;  %v2149_v50 = vrot.slane %v12458_v9, 4  ;;  %v2167_v42 = vrot.slane %v12459_v47, 4 }
 0x44e   : > { %v2022_v57 = vadd.f32 %v2018_v26, %v1938_v45  ;;  %v2042_v0 = vadd.f32 %v2038_v10, %v1958_v11  ;;  %v2184_v36 = vrot.slane %v12460_v55, 4  ;;  %v2043_v31 = vadd.f32 %v2039_v43, %v1959_v37  ;;  %v12464_v37 = vld [vmem:[#allocation165_spill] sm:$0xff] }
 0x44f   : > { %v2063_v19 = vadd.f32 %v2059_v63, %v1979_v58  ;;  %v2064_v61 = vadd.f32 %v2060_v35, %v1980_v1  ;;  %v2084_v44 = vadd.f32 %v2080_v41, %v2000_v7  ;;  %v2085_v60 = vadd.f32 %v2081_v40, %v2001_v25  ;;  %v12469_v41 = vld [vmem:[#allocation154_spill] sm:$0xff] }
 0x450   : > { %v2102_v16 = vsel %vm1818_vm9, %v2100_v34, %v12461_v28  ;;  %v2105_v53 = vadd.f32 %v2101_v48, %v2021_v30  ;;  %v2122_v39 = vsel %vm1818_vm9, %v2121_v18, %v12456_v6  ;;  %v2123_v45 = vsel %vm1818_vm9, %v2121_v18, %v12463_v46  ;;  %v12465_v34 = vld [vmem:[#allocation167_spill] sm:$0xff]  ;;  %v12466_v30 = vld [vmem:[#allocation152_spill] sm:$0xff] }
 0x451   : > { %v2151_v11 = vsel %vm2150_vm10, %v2149_v50, %v12458_v9  ;;  %v2152_v58 = vsel %vm2150_vm10, %v2149_v50, %v12464_v37  ;;  %v2168_v1 = vsel %vm2150_vm10, %v2167_v42, %v12459_v47  ;;  %v2169_v25 = vsel %vm2150_vm10, %v2167_v42, %v12465_v34  ;;  %v12470_v18 = vld [vmem:[#allocation155_spill] sm:$0xff]  ;;  %v12471_v50 = vld [vmem:[#allocation156_spill] sm:$0xff] }
 0x452   : > { %v2185_v26 = vsel %vm2150_vm10, %v2184_v36, %v12460_v55  ;;  %v2201_v10 = vrot.slane %v12466_v30, 4  ;;  %v2222_v43 = vrot.slane %v12467_v49, 4  ;;  %v2106_v63 = vadd.f32 %v2102_v16, %v2022_v57  ;;  %v12473_v16 = vld [vmem:[#allocation172_spill] sm:$0xff] }
 0x453   : > { %v2186_v35 = vsel %vm2150_vm10, %v2184_v36, %v12468_v20  ;;  %v2243_v6 = vrot.slane %v12469_v41, 4  ;;  %v2264_v2 = vrot.slane %v12470_v18, 4  ;;  %v2126_v40 = vadd.f32 %v2122_v39, %v2042_v0  ;;  %v12476_v39 = vld [vmem:[#allocation182_spill] sm:$0xff] }
 0x454   : > { %v2127_v48 = vadd.f32 %v2123_v45, %v2043_v31  ;;  %v2155_v9 = vadd.f32 %v2151_v11, %v2063_v19  ;;  %v2285_v47 = vrot.slane %v12471_v50, 4  ;;  %v2156_v55 = vadd.f32 %v2152_v58, %v2064_v61  ;;  %v12474_v31 = vld [vmem:[#allocation176_spill] sm:$0xff]  ;;  %v12477_v58 = vld [vmem:[#allocation157_spill] sm:$0xff] }
 0x455   : > { %v2172_v28 = vadd.f32 %v2168_v1, %v2084_v44  ;;  %v2173_v46 = vadd.f32 %v2169_v25, %v2085_v60  ;;  %v2189_v37 = vadd.f32 %v2185_v26, %v2105_v53  ;;  %v2190_v57 = vadd.f32 %v2186_v35, %v2106_v63  ;;  %v12475_v44 = vld [vmem:[#allocation179_spill] sm:$0xff]  ;;  %v12478_v25 = vld [vmem:[#allocation158_spill] sm:$0xff] }
 0x456   : > { %v2202_v36 = vsel %vm2150_vm10, %v2201_v10, %v12466_v30  ;;  %v2203_v20 = vsel %vm2150_vm10, %v2201_v10, %v12473_v16  ;;  %v2223_v0 = vsel %vm2150_vm10, %v2222_v43, %v12467_v49  ;;  %v2224_v19 = vsel %vm2150_vm10, %v2222_v43, %v12474_v31  ;;  %v12479_v63 = vld [vmem:[#allocation159_spill] sm:$0xff]  ;;  %v12481_v16 = vld [vmem:[#allocation160_spill] sm:$0xff] }
 0x457   : > { %v2244_v61 = vsel %vm2150_vm10, %v2243_v6, %v12469_v41  ;;  %v2245_v60 = vsel %vm2150_vm10, %v2243_v6, %v12475_v44  ;;  %v2265_v53 = vsel %vm2150_vm10, %v2264_v2, %v12470_v18  ;;  %v2266_v45 = vsel %vm2150_vm10, %v2264_v2, %v12476_v39  ;;  %v12480_v18 = vld [vmem:[#allocation184_spill] sm:$0xff] }
 0x458   : > { %v8947_v38 = vpop.permute.xlu1 %2800  ;;  %v2286_v11 = vsel %vm2150_vm10, %v2285_v47, %v12471_v50  ;;  %v2306_v1 = vrot.slane %v12477_v58, 4  ;;  %v2327_v26 = vrot.slane %v12478_v25, 4  ;;  %v2206_v10 = vadd.f32 %v2202_v36, %v2126_v40 }
 0x459   : > { %12462 = vst [vmem:[#allocation17_spill] sm:$0xff] %v8947_v38  ;;  %v8957_v7 = vpop.permute.xlu0 %2798  ;;  %v2207_v49 = vadd.f32 %v2203_v20, %v2127_v48  ;;  %v2227_v43 = vadd.f32 %v2223_v0, %v2155_v9  ;;  %v2348_v35 = vrot.slane %v12479_v63, 4  ;;  %v2248_v6 = vadd.f32 %v2244_v61, %v2172_v28  ;;  %v12482_v9 = vld [vmem:[#allocation161_spill] sm:$0xff]  ;;  %v12483_v20 = vld [vmem:[#allocation187_spill] sm:$0xff]  ;;  %v12484_v61 = vld [vmem:[#allocation162_spill] sm:$0xff] }
 0x45a   : > { %v2287_v2 = vsel %vm2150_vm10, %v2285_v47, %v12480_v18  ;;  %v2369_v50 = vrot.slane %v12481_v16, 4  ;;  %v2228_v31 = vadd.f32 %v2224_v19, %v2156_v55  ;;  %v2269_v44 = vadd.f32 %v2265_v53, %v2189_v37  ;;  %v12485_v53 = vld [vmem:[#allocation163_spill] sm:$0xff] }
 0x45b   : > { %v2290_v39 = vadd.f32 %v2286_v11, %v2206_v10  ;;  %v2270_v38 = vadd.f32 %v2266_v45, %v2190_v57  ;;  %v2307_v40 = vsel %vm2150_vm10, %v2306_v1, %v12477_v58  ;;  %v2328_v48 = vsel %vm2150_vm10, %v2327_v26, %v12478_v25  ;;  %v12486_v25 = vld [vmem:[#allocation164_spill] sm:$0xff]  ;;  %v12487_v10 = vld [vmem:[#allocation166_spill] sm:$0xff] }
 0x45c   : > { %v8970_v42 = vpop.permute.xlu1 %2818  ;;  %v2390_v36 = vrot.slane %v12482_v9, 4  ;;  %v2308_v28 = vsel %vm2150_vm10, %v2306_v1, %v12483_v20  ;;  %v2349_v47 = vsel %vm2150_vm10, %v2348_v35, %v12479_v63  ;;  %v2329_v55 = vsel %vm2150_vm10, %v2327_v26, %v8319_v23 }
 0x45d   : > { %12472 = vst [vmem:[#allocation18_spill] sm:$0xff] %v8970_v42  ;;  %v8972_v34 = vpop.permute.xlu0 %2816  ;;  %v2249_v42 = vadd.f32 %v2245_v60, %v2173_v46  ;;  %v2350_v46 = vsel %vm2150_vm10, %v2348_v35, %v8348_v24  ;;  %v2291_v37 = vadd.f32 %v2287_v2, %v2207_v49  ;;  %v2370_v19 = vsel %vm2150_vm10, %v2369_v50, %v12481_v16 }
 0x45e   : > { %v2411_v60 = vrot.slane %v12484_v61, 4  ;;  %v2432_v45 = vrot.slane %v12485_v53, 4  ;;  %v2371_v11 = vsel %vm2150_vm10, %v2369_v50, %v8380_v56  ;;  %v2311_v58 = vadd.f32 %v2307_v40, %v2227_v43 }
 0x45f   : > { %v2332_v1 = vadd.f32 %v2328_v48, %v2248_v6  ;;  %v2453_v23 = vrot.slane %v12486_v25, 4  ;;  %v2312_v26 = vadd.f32 %v2308_v28, %v2228_v31  ;;  %v2391_v24 = vsel %vm2150_vm10, %v2390_v36, %v12482_v9  ;;  %v12488_v31 = vld [vmem:[#allocation168_spill] sm:$0xff]  ;;  %v12489_v9 = vld [vmem:[#allocation169_spill] sm:$0xff]  ;;  %v12490_v28 = vld [vmem:[#allocation171_spill] sm:$0xff] }
 0x460   : > { %v8994_v30 = vpop.permute.xlu1 %2835  ;;  %v2472_v49 = vrot.slane %v12487_v10, 4  ;;  %v2392_v63 = vsel %vm2150_vm10, %v2390_v36, %v8416_v52  ;;  %v2333_v35 = vadd.f32 %v2329_v55, %v2249_v42  ;;  %v2353_v2 = vadd.f32 %v2349_v47, %v2269_v44 }
 0x461   : > { %v8997_v41 = vpop.permute.xlu0 %2833  ;;  %v2374_v16 = vadd.f32 %v2370_v19, %v2290_v39  ;;  %v2354_v20 = vadd.f32 %v2350_v46, %v2270_v38  ;;  %v2375_v56 = vadd.f32 %v2371_v11, %v2291_v37  ;;  %v2412_v6 = vsel %vm2150_vm10, %v2411_v60, %v12484_v61 }
 0x462   : > { %v2433_v50 = vsel %vm2150_vm10, %v2432_v45, %v12485_v53  ;;  %v2490_v40 = vrot.slane %v12488_v31, 4  ;;  %v2413_v52 = vsel %vm2150_vm10, %v2411_v60, %v8456_v14  ;;  %v2395_v42 = vadd.f32 %v2391_v24, %v2311_v58  ;;  %v12492_v58 = vld [vmem:[#allocation174_spill] sm:$0xff] }
 0x463   : > { %v2454_v44 = vsel %vm2150_vm10, %v2453_v23, %v12486_v25  ;;  %v2396_v39 = vadd.f32 %v2392_v63, %v2312_v26  ;;  %v2434_v38 = vsel %vm2150_vm10, %v2432_v45, %v8486_v3  ;;  %v2474_v48 = vsel %vm2473_vm11, %v2472_v49, %v12487_v10  ;;  %v12491_v45 = vld [vmem:[#allocation173_spill] sm:$0xff] }
 0x464   : > { %v9009_v0 = vpop.permute.xlu1 %2852  ;;  %v2507_v36 = vrot.slane %v12489_v9, 4  ;;  %v2524_v47 = vrot.slane %v12490_v28, 4  ;;  %v2455_v55 = vsel %vm2150_vm10, %v2453_v23, %v8521_v27  ;;  %v2416_v14 = vadd.f32 %v2412_v6, %v2332_v1 }
 0x465   : > { %v9017_v57 = vpop.permute.xlu0 %2850  ;;  %v2437_v37 = vadd.f32 %v2433_v50, %v2353_v2  ;;  %v2475_v19 = vsel %vm2473_vm11, %v2472_v49, %v8539_v4  ;;  %v2417_v61 = vadd.f32 %v2413_v52, %v2333_v35  ;;  %v2491_v3 = vsel %vm2473_vm11, %v2490_v40, %v12488_v31  ;;  %v12493_v49 = vld [vmem:[#allocation177_spill] sm:$0xff]  ;;  %v12494_v31 = vld [vmem:[#allocation180_spill] sm:$0xff] }
 0x466   : > { %v2492_v53 = vsel %vm2473_vm11, %v2490_v40, %v8566_v5  ;;  %v2545_v11 = vrot.slane %v12491_v45, 4  ;;  %v2566_v27 = vrot.slane %v12492_v58, 4  ;;  %v2458_v25 = vadd.f32 %v2454_v44, %v2374_v16 }
 0x467   : > { %v2478_v23 = vadd.f32 %v2474_v48, %v2395_v42  ;;  %v2438_v1 = vadd.f32 %v2434_v38, %v2354_v20  ;;  %v2459_v26 = vadd.f32 %v2455_v55, %v2375_v56  ;;  %v2508_v4 = vsel %vm2473_vm11, %v2507_v36, %v12489_v9  ;;  %v12496_v9 = vld [vmem:[#allocation183_spill] sm:$0xff] }
 0x468   : > { %v9031_v18 = vpop.permute.xlu1 %2873  ;;  %v2509_v24 = vsel %vm2473_vm11, %v2507_v36, %v8599_v59  ;;  %v2525_v10 = vsel %vm2473_vm11, %v2524_v47, %v12490_v28  ;;  %v2587_v63 = vrot.slane %v12493_v49, 4  ;;  %v2479_v35 = vadd.f32 %v2475_v19, %v2396_v39  ;;  %v12495_v39 = vld [vmem:[#allocation181_spill] sm:$0xff] }
 0x469   : > { %v9033_v43 = vpop.permute.xlu0 %2871  ;;  %v2495_v2 = vadd.f32 %v2491_v3, %v2416_v14  ;;  %v2496_v6 = vadd.f32 %v2492_v53, %v2417_v61  ;;  %v2526_v16 = vsel %vm2473_vm11, %v2524_v47, %v8625_v13  ;;  %v2546_v56 = vsel %vm2473_vm11, %v2545_v11, %v12491_v45  ;;  %v12497_v28 = vld [vmem:[#allocation185_spill] sm:$0xff]  ;;  %v12498_v45 = vld [vmem:[#allocation186_spill] sm:$0xff] }
 0x46a   : > { %v2547_v59 = vsel %vm2473_vm11, %v2545_v11, %v8659_v15  ;;  %v2567_v50 = vsel %vm2473_vm11, %v2566_v27, %v12492_v58  ;;  %v2608_v40 = vrot.slane %v12494_v31, 4  ;;  %v2512_v52 = vadd.f32 %v2508_v4, %v2437_v37 }
 0x46b   : > { %v2513_v42 = vadd.f32 %v2509_v24, %v2438_v1  ;;  %v2529_v44 = vadd.f32 %v2525_v10, %v2458_v25  ;;  %v2629_v38 = vrot.slane %v12495_v39, 4  ;;  %v2568_v13 = vsel %vm2473_vm11, %v2566_v27, %v8683_v22 }
 0x46c   : > { %v9052_v46 = vpop.permute.xlu1 %2894  ;;  %v2588_v48 = vsel %vm2473_vm11, %v2587_v63, %v12493_v49  ;;  %v2650_v36 = vrot.slane %v12496_v9, 4  ;;  %v2671_v15 = vrot.slane %v12497_v28, 4  ;;  %v2530_v55 = vadd.f32 %v2526_v16, %v2459_v26 }
 0x46d   : > { %v9056_v60 = vpop.permute.xlu0 %2892  ;;  %v2550_v14 = vadd.f32 %v2546_v56, %v2478_v23  ;;  %v2551_v19 = vadd.f32 %v2547_v59, %v2479_v35  ;;  %v2571_v37 = vadd.f32 %v2567_v50, %v2495_v2  ;;  %v2589_v3 = vsel %vm2473_vm11, %v2587_v63, %v8714_v32  ;;  %v12500_v35 = vld [vmem:[#allocation189_spill] sm:$0xff]  ;;  %v12501_v56 = vld [vmem:[#allocation190_spill] sm:$0xff] }
 0x46e   : > { %v2609_v22 = vsel %vm2473_vm11, %v2608_v40, %v12494_v31  ;;  %v2610_v53 = vsel %vm2473_vm11, %v2608_v40, %v8743_v17  ;;  %v2692_v11 = vrot.slane %v12498_v45, 4  ;;  %v2572_v58 = vadd.f32 %v2568_v13, %v2496_v6  ;;  %v12499_v17 = vld [vmem:[#allocation188_spill] sm:$0xff] }
 0x46f   : > { %v2592_v27 = vadd.f32 %v2588_v48, %v2512_v52  ;;  %v2630_v25 = vsel %vm2473_vm11, %v2629_v38, %v12495_v39  ;;  %v2631_v23 = vsel %vm2473_vm11, %v2629_v38, %v8770_v29  ;;  %v2651_v1 = vsel %vm2473_vm11, %v2650_v36, %v12496_v9  ;;  %v12502_v38 = vld [vmem:[#allocation192_spill] sm:$0xff] }
 0x470   : > { %v9071_v5 = vpop.permute.xlu1 %2915  ;;  %v2652_v32 = vsel %vm2473_vm11, %v2650_v36, %v8797_v21  ;;  %v2672_v26 = vsel %vm2473_vm11, %v2671_v15, %v12497_v28  ;;  %v2713_v4 = vrot.slane %v12499_v17, 4  ;;  %v2593_v10 = vadd.f32 %v2589_v3, %v2513_v42 }
 0x471   : > { %v9075_v20 = vpop.permute.xlu0 %2913  ;;  %v2613_v49 = vadd.f32 %v2609_v22, %v2529_v44  ;;  %v2614_v63 = vadd.f32 %v2610_v53, %v2530_v55  ;;  %v2734_v2 = vrot.slane %v12500_v35, 4  ;;  %v2634_v29 = vadd.f32 %v2630_v25, %v2550_v14 }
 0x472   : > { %v2673_v16 = vsel %vm2473_vm11, %v2671_v15, %v8822_v33  ;;  %v2693_v21 = vsel %vm2473_vm11, %v2692_v11, %v12498_v45  ;;  %v2755_v59 = vrot.slane %v12501_v56, 4  ;;  %v2635_v50 = vadd.f32 %v2631_v23, %v2551_v19 }
 0x473   : > { %v2655_v31 = vadd.f32 %v2651_v1, %v2571_v37  ;;  %v2656_v40 = vadd.f32 %v2652_v32, %v2572_v58  ;;  %v2676_v52 = vadd.f32 %v2672_v26, %v2592_v27  ;;  %v2694_v42 = vsel %vm2473_vm11, %v2692_v11, %v8839_v51  ;;  %v12503_v32 = vld [vmem:[#allocation17_spill] sm:$0xff] }
 0x474   : > { %v9091_v47 = vpop.permute.xlu1 %2936  ;;  %v2714_v44 = vsel %vm2473_vm11, %v2713_v4, %v12499_v17  ;;  %v2715_v39 = vsel %vm2473_vm11, %v2713_v4, %v8860_v62  ;;  %v2776_v33 = vrot.slane %v12502_v38, 4  ;;  %v2677_v48 = vadd.f32 %v2673_v16, %v2593_v10 }
 0x475   : > { %v9093_v61 = vpop.permute.xlu0 %2934  ;;  %v2697_v9 = vadd.f32 %v2693_v21, %v2613_v49  ;;  %v2735_v36 = vsel %vm2473_vm11, %v2734_v2, %v12500_v35  ;;  %v2802_v28 = vrot.slane %v8957_v7, 4  ;;  %v2736_v51 = vsel %vm2473_vm11, %v2734_v2, %v8887_v54  ;;  %v12504_v49 = vld [vmem:[#allocation18_spill] sm:$0xff] }
 0x476   : > { %v2756_v55 = vsel %vm2473_vm11, %v2755_v59, %v12501_v56  ;;  %v2820_v62 = vrot.slane %v8972_v34, 4  ;;  %v2698_v14 = vadd.f32 %v2694_v42, %v2614_v63  ;;  %v2718_v19 = vadd.f32 %v2714_v44, %v2634_v29 }
 0x477   : > { %v2719_v37 = vadd.f32 %v2715_v39, %v2635_v50  ;;  %v2757_v3 = vsel %vm2473_vm11, %v2755_v59, %v8914_v12  ;;  %v2739_v22 = vadd.f32 %v2735_v36, %v2655_v31  ;;  %v2777_v53 = vsel %vm2473_vm11, %v2776_v33, %v12502_v38 }
 0x478   : > { %v9113_v24 = vpop.permute.xlu1 %2957  ;;  %v2778_v45 = vsel %vm2473_vm11, %v2776_v33, %v8940_v8  ;;  %v2837_v54 = vrot.slane %v8997_v41, 4  ;;  %v2740_v58 = vadd.f32 %v2736_v51, %v2656_v40  ;;  %v2760_v27 = vadd.f32 %v2756_v55, %v2676_v52 }
 0x479   : > { %v9116_v6 = vpop.permute.xlu0 %2955  ;;  %v2804_v25 = vsel %vm2803_vm12, %v2802_v28, %v8957_v7  ;;  %v2854_v23 = vrot.slane %v9017_v57, 4  ;;  %v2761_v12 = vadd.f32 %v2757_v3, %v2677_v48  ;;  %v2805_v26 = vsel %vm2803_vm12, %v2802_v28, %v12503_v32 }
 0x47a   : > { %v2821_v17 = vsel %vm2803_vm12, %v2820_v62, %v8972_v34  ;;  %v2875_v8 = vrot.slane %v9033_v43, 4  ;;  %v2781_v4 = vadd.f32 %v2777_v53, %v2697_v9  ;;  %v2782_v10 = vadd.f32 %v2778_v45, %v2698_v14 }
 0x47b   : > { %v2822_v63 = vsel %vm2803_vm12, %v2820_v62, %v12504_v49  ;;  %v2896_v35 = vrot.slane %v9056_v60, 4  ;;  %v2808_v7 = vadd.f32 %v2804_v25, %v2718_v19  ;;  %v2838_v2 = vsel %vm2803_vm12, %v2837_v54, %v8997_v41  ;;  %v12505_v49 = vld [vmem:[#allocation191_spill] sm:$0xff] }
 0x47c   : > { %v9130_v13 = vpop.permute.xlu1 %2978  ;;  %v2839_v29 = vsel %vm2803_vm12, %v2837_v54, %v8994_v30  ;;  %v2959_v16 = vrot.slane %v9116_v6, 4  ;;  %v2809_v34 = vadd.f32 %v2805_v26, %v2719_v37  ;;  %v2825_v56 = vadd.f32 %v2821_v17, %v2739_v22 }
 0x47d   : > { %v9135_v15 = vpop.permute.xlu0 %2976  ;;  %v2855_v59 = vsel %vm2803_vm12, %v2854_v23, %v9017_v57  ;;  %v2856_v50 = vsel %vm2803_vm12, %v2854_v23, %v9009_v0  ;;  %v2826_v40 = vadd.f32 %v2822_v63, %v2740_v58  ;;  %v2876_v41 = vsel %vm2803_vm12, %v2875_v8, %v9033_v43 }
 0x47e   : > { %v2877_v30 = vsel %vm2803_vm12, %v2875_v8, %v9031_v18  ;;  %v2917_v52 = vrot.slane %v9075_v20, 4  ;;  %v2842_v42 = vadd.f32 %v2838_v2, %v2760_v27  ;;  %v2843_v44 = vadd.f32 %v2839_v29, %v2761_v12 }
 0x47f   : > { %v2897_v39 = vsel %vm2803_vm12, %v2896_v35, %v9056_v60  ;;  %v2980_v57 = vrot.slane %v9135_v15, 4  ;;  %v2859_v38 = vadd.f32 %v2855_v59, %v2781_v4  ;;  %v2860_v0 = vadd.f32 %v2856_v50, %v2782_v10 }
 0x480   : > { %v9149_v11 = vpop.permute.xlu1 %2999  ;;  %v2960_v33 = vsel %vm2803_vm12, %v2959_v16, %v9116_v6  ;;  %v2961_v43 = vsel %vm2803_vm12, %v2959_v16, %v9113_v24  ;;  %v2880_v9 = vadd.f32 %v2876_v41, %v2808_v7  ;;  %v2881_v18 = vadd.f32 %v2877_v30, %v2809_v34 }
 0x481   : > { %v2998_v1 = vpop.permute.xlu0 %2997  ;;  %v2898_v36 = vsel %vm2803_vm12, %v2896_v35, %v9052_v46  ;;  %v2938_v28 = vrot.slane %v9093_v61, 4  ;;  %v2901_v60 = vadd.f32 %v2897_v39, %v2825_v56  ;;  %v2918_v55 = vsel %vm2803_vm12, %v2917_v52, %v9075_v20 }
 0x482   : > { %v3001_v62 = vrot.slane %v2998_v1, 4  ;;  %v2964_v19 = vadd.f32 %v2960_v33, %v2880_v9  ;;  %v2965_v6 = vadd.f32 %v2961_v43, %v2881_v18  ;;  %v2981_v24 = vsel %vm2803_vm12, %v2980_v57, %v9135_v15 }
 0x483   : > { %v2982_v37 = vsel %vm2803_vm12, %v2980_v57, %v9130_v13  ;;  %v2902_v3 = vadd.f32 %v2898_v36, %v2826_v40  ;;  %v2919_v46 = vsel %vm2803_vm12, %v2917_v52, %v9071_v5  ;;  %v2922_v20 = vadd.f32 %v2918_v55, %v2842_v42 }
 0x484   : > { %v9167_v21 = vpop.permute.xlu1 %3020  ;;  %v2939_v54 = vsel %vm2803_vm12, %v2938_v28, %v9093_v61  ;;  %v2985_v15 = vadd.f32 %v2981_v24, %v2901_v60  ;;  %v3002_v13 = vsel %vm2803_vm12, %v3001_v62, %v2998_v1  ;;  %v3003_v5 = vsel %vm2803_vm12, %v3001_v62, %v9149_v11 }
 0x485   : > { %v9173_v31 = vpop.permute.xlu0 %3018  ;;  %v2986_v23 = vadd.f32 %v2982_v37, %v2902_v3  ;;  %v2923_v8 = vadd.f32 %v2919_v46, %v2843_v44  ;;  %v2940_v4 = vsel %vm2803_vm12, %v2938_v28, %v9091_v47  ;;  %v2943_v29 = vadd.f32 %v2939_v54, %v2859_v38 }
 0x486   : > { %v3022_v32 = vrot.slane %v9173_v31, 4  ;;  %v3006_v16 = vadd.f32 %v3002_v13, %v2922_v20  ;;  %v2944_v41 = vadd.f32 %v2940_v4, %v2860_v0  ;;  %v12506_v54 = vlaneseq }
 0x487   : > { %v3007_v34 = vadd.f32 %v3003_v5, %v2923_v8  ;;  %v3460_v4 = vstv %s6690_s17  ;;  %s6732_s17 = sld [smem:[#allocation7 + $0x22]] }
 0x488   : > { %v3042_v48 = vpop.permute.xlu1 %3041  ;;  %v3023_v59 = vsel %vm2803_vm12, %v3022_v32, %v9173_v31  ;;  %v3024_v30 = vsel %vm2803_vm12, %v3022_v32, %v9167_v21  ;;  %vm9235_vm13 = vcmp.lt.s32.totalorder %v12506_v54, 256 }
 0x489   : > { %v3040_v51 = vpop.permute.xlu0 %3039  ;;  %v3027_v43 = vadd.f32 %v3023_v59, %v2943_v29  ;;  %v3028_v9 = vadd.f32 %v3024_v30, %v2944_v41  ;;  %v3554_v41 = vstv %s6697_s18  ;;  %s6743_s18 = sld [smem:[#allocation7 + $0x27]] }
 0x48a   : > { %v3043_v14 = vrot.slane %v3040_v51, 4 }
 0x48c   : > { %v3044_v22 = vsel %vm2803_vm12, %v3043_v14, %v3040_v51  ;;  %v3045_v53 = vsel %vm2803_vm12, %v3043_v14, %v3042_v48  ;;  %v3063_v45 = vpop.permute.xlu1 %3062 }
 0x48d   : > { %v3048_v58 = vadd.f32 %v3044_v22, %v2964_v19  ;;  %v3049_v27 = vadd.f32 %v3045_v53, %v2965_v6  ;;  %v3061_v25 = vpop.permute.xlu0 %3060 }
 0x48e   : > { %v3064_v12 = vrot.slane %v3061_v25, 4 }
 0x48f   : > { %v3113_v26 = vmax.f32 %v3048_v58, 0.0  ;;  %v3114_v17 = vmax.f32 %v3049_v27, 0.0  ;;  %v12507_v58 = vmov 0 }
 0x490   : > { %v3065_v61 = vsel %vm2803_vm12, %v3064_v12, %v3061_v25  ;;  %v3066_v10 = vsel %vm2803_vm12, %v3064_v12, %v3063_v45  ;;  %v3084_v2 = vpop.permute.xlu1 %3083  ;;  %v12508_v58 = vsel %vm9235_vm13, 4294967295, %v12507_v58 }
 0x491   : > { %v3123_v63 = vrot.slane %v3113_v26, %v12505_v49  ;;  %v3130_v1 = vrot.slane %v3114_v17, %v12505_v49  ;;  %v3069_v35 = vadd.f32 %v3065_v61, %v2985_v15  ;;  %v3070_v7 = vadd.f32 %v3066_v10, %v2986_v23  ;;  %v3082_v11 = vpop.permute.xlu0 %3081  ;;  %12509 = vst [vmem:[#allocation19_spill] sm:$0xff] %v12508_v58 }
 0x492   : > { %v3085_v56 = vrot.slane %v3082_v11, 4 }
 0x493   : > { %v3131_v47 = vcombine.low %v3123_v63, %v3130_v1  ;;  %v3150_v50 = vmax.f32 %v3069_v35, 0.0  ;;  %v3151_v40 = vmax.f32 %v3070_v7, 0.0  ;;  %v3478_v35 = vstv %s6691_s22  ;;  %s6733_s22 = sld [smem:[#allocation7 + $0x23]] }
 0x494   : > { %v3086_v52 = vsel %vm2803_vm12, %v3085_v56, %v3082_v11  ;;  %v3087_v42 = vsel %vm2803_vm12, %v3085_v56, %v3084_v2  ;;  %v3105_v21 = vpop.permute.xlu1 %3104  ;;  %v3496_v11 = vstv %s6692_s27  ;;  %v3532_v56 = vstv %s6694_s11  ;;  %s6734_s27 = sld [smem:[#allocation7 + $0x24]]  ;;  %s6737_s11 = sld [smem:[#allocation7 + $0x25]] }
 0x495   : > { %v3160_v44 = vrot.slane %v3150_v50, %v12505_v49  ;;  %v3167_v39 = vrot.slane %v3151_v40, %v12505_v49  ;;  %v3090_v57 = vadd.f32 %v3086_v52, %v3006_v16  ;;  %v3091_v38 = vadd.f32 %v3087_v42, %v3007_v34  ;;  %v3103_v33 = vpop.permute.xlu0 %3102 }
 0x496   : > { %v3106_v31 = vrot.slane %v3103_v33, 4  ;;  %v3138_v48 = vrot.slane %v3131_v47, %v12505_v49  ;;  %v3514_v34 = vstv %s6693_s9  ;;  %s12512_s9 = smov 126  }
 0x497   : > { %v3168_v0 = vcombine.low %v3160_v44, %v3167_v39  ;;  %v3183_v18 = vmax.f32 %v3090_v57, 0.0  ;;  %v3184_v36 = vmax.f32 %v3091_v38, 0.0  ;;  %v3576_v39 = vstv %s6700_s14  ;;  %s6746_s14 = sld [smem:[#allocation7 + $0x28]] }
 0x498   : > { %v3107_v28 = vsel %vm2803_vm12, %v3106_v31, %v3103_v33  ;;  %v3108_v51 = vsel %vm2803_vm12, %v3106_v31, %v3105_v21  ;;  %3139 = vrot.lane.b32.xlu0 %v3138_v48, %s11959_s20  ;;  %v3598_v31 = vstv %s6703_s23  ;;  %s6749_s23 = sld [smem:[#allocation7 + $0x29]] }
 0x499   : > { %v3193_v60 = vrot.slane %v3183_v18, %v12505_v49  ;;  %v3200_v55 = vrot.slane %v3184_v36, %v12505_v49  ;;  %v3111_v62 = vadd.f32 %v3107_v28, %v3027_v43  ;;  %v3112_v14 = vadd.f32 %v3108_v51, %v3028_v9 }
 0x49a   : > { %v3175_v19 = vrot.slane %v3168_v0, %v12505_v49  ;;  %v3620_v36 = vstv %s6706_s24  ;;  %s6752_s24 = sld [smem:[#allocation7 + $0x2a]] }
 0x49b   : > { %v3201_v6 = vcombine.low %v3193_v60, %v3200_v55  ;;  %v3216_v24 = vmax.f32 %v3111_v62, 0.0  ;;  %v3217_v37 = vmax.f32 %v3112_v14, 0.0  ;;  %v3642_v55 = vstv %s6709_s26  ;;  %s6755_s26 = sld [smem:[#allocation7 + $0x2b]] }
 0x49c   : > { %3176 = vrot.lane.b32.xlu1 %v3175_v19, %s11959_s20 }
 0x49d   : > { %v3226_v3 = vrot.slane %v3216_v24, %v12505_v49  ;;  %v3233_v46 = vrot.slane %v3217_v37, %v12505_v49  ;;  %v3208_v22 = vrot.slane %v3201_v6, %v12505_v49  ;;  %v3664_v24 = vstv %s6712_s28  ;;  %s6758_s28 = sld [smem:[#allocation7 + $0x2c]] }
 0x49f   : > { %v3234_v53 = vcombine.low %v3226_v3, %v3233_v46  ;;  %3209 = vrot.lane.b32.xlu0 %v3208_v22, %s11959_s20 }
 0x4a1   : > { %v3241_v45 = vrot.slane %v3234_v53, %v12505_v49  ;;  %v3686_v53 = vstv %s6715_s29  ;;  %s6761_s29 = sld [smem:[#allocation7 + $0x2d]] }
 0x4a3   : > { %3242 = vrot.lane.b32.xlu1 %v3241_v45, %s11959_s20  ;;  %s9760_s20 = sld [smem:[#allocation7 + $0x68]] }
 0x4a9   : > { %12583 = sst [smem:[#allocation207_spill]] %s9760_s20 }
 0x50a   : > { %v3140_v20 = vpop.permute.xlu0 %3139 }
 0x50b   : > { %v3141_v27 = vrot.slane %v3140_v20, 1 }
 0x50d   : > { %v3142_v25 = vsel %vm2786_vm6, %v3140_v20, %v3141_v27 }
 0x50e   : > { %3149 = vst.msk [vmem:[#allocation2 + $0x4] ss:$4 sm:$0x3] %vm9235_vm13, %v3142_v25  ;;  %v3177_v15 = vpop.permute.xlu1 %3176  ;;  %v3708_v25 = vstv %s6718_s30  ;;  %s6764_s30 = sld [smem:[#allocation7 + $0x2e]] }
 0x50f   : > { %v3178_v23 = vrot.slane %v3177_v15, 1 }
 0x511   : > { %v3179_v13 = vsel %vm2786_vm6, %v3177_v15, %v3178_v23  ;;  %v3210_v12 = vpop.permute.xlu0 %3209 }
 0x512   : > { %3182 = vst.msk [vmem:[#allocation2 + $0x5] ss:$4 sm:$0x3] %vm9235_vm13, %v3179_v13  ;;  %v3211_v5 = vrot.slane %v3210_v12, 1 }
 0x514   : > { %v3212_v32 = vsel %vm2786_vm6, %v3210_v12, %v3211_v5  ;;  %v3730_v5 = vstv %s6721_s8  ;;  %s6767_s8 = sld [smem:[#allocation7 + $0x2f]] }
 0x515   : > { %3215 = vst.msk [vmem:[#allocation2 + $0x6] ss:$4 sm:$0x3] %vm9235_vm13, %v3212_v32  ;;  %v3243_v26 = vpop.permute.xlu1 %3242 }
 0x516   : > { %v3244_v17 = vrot.slane %v3243_v26, 1 }
 0x518   : > { %v3245_v8 = vsel %vm2786_vm6, %v3243_v26, %v3244_v17 }
 0x519   : > { %3248 = vst.msk [vmem:[#allocation2 + $0x7] ss:$4 sm:$0x3] %vm9235_vm13, %v3245_v8 }
 0x520   : > { %v9251_v61 = vld [vmem:[#allocation2] sm:$0xff]  ;;  %v9253_v10 = vld [vmem:[#allocation2 + $0x8] sm:$0xf] }
 0x521   : > { %v3462_v63 = vmul.f32 %v3460_v4, %v9253_v10  ;;  %v3461_v1 = vmul.f32 %v3460_v4, %v9251_v61  ;;  %v3480_v7 = vmul.f32 %v3478_v35, %v9253_v10  ;;  %v3479_v2 = vmul.f32 %v3478_v35, %v9251_v61 }
 0x522   : > { %v3498_v29 = vmul.f32 %v3496_v11, %v9253_v10  ;;  %v3497_v16 = vmul.f32 %v3496_v11, %v9251_v61  ;;  %v3516_v59 = vmul.f32 %v3514_v34, %v9253_v10  ;;  %v3534_v47 = vmul.f32 %v3532_v56, %v9253_v10 }
 0x523   : > { %3467 = vrot.lane.b32.xlu1 %v3462_v63, %s7161_s13  ;;  %3465 = vrot.lane.b32.xlu0 %v3461_v1, %s7161_s13  ;;  %v3515_v50 = vmul.f32 %v3514_v34, %v9251_v61  ;;  %v3533_v40 = vmul.f32 %v3532_v56, %v9251_v61  ;;  %v3556_v52 = vmul.f32 %v3554_v41, %v9253_v10  ;;  %v3752_v4 = vstv %s6724_s10  ;;  %s6770_s10 = sld [smem:[#allocation7 + $0x30]] }
 0x524   : > { %v6696_v30 = vrot.slane %v3534_v47, 9  ;;  %v3555_v44 = vmul.f32 %v3554_v41, %v9251_v61  ;;  %v3578_v38 = vmul.f32 %v3576_v39, %v9253_v10  ;;  %v3577_v43 = vmul.f32 %v3576_v39, %v9251_v61  ;;  %v12511_v41 = vld [vmem:[#allocation30_spill] sm:$0xff] }
 0x525   : > { %v6695_v42 = vrot.slane %v3533_v40, 9  ;;  %v6699_v57 = vrot.slane %v3556_v52, 9  ;;  %v3600_v9 = vmul.f32 %v3598_v31, %v9253_v10  ;;  %v3599_v18 = vmul.f32 %v3598_v31, %v9251_v61 }
 0x526   : > { %v6698_v33 = vrot.slane %v3555_v44, 9  ;;  %v6702_v48 = vrot.slane %v3578_v38, 9  ;;  %v6701_v0 = vrot.slane %v3577_v43, 9  ;;  %v3622_v28 = vmul.f32 %v3620_v36, %v9253_v10 }
 0x527   : > { %3485 = vrot.lane.b32.xlu1 %v3480_v7, %s7161_s13  ;;  %3483 = vrot.lane.b32.xlu0 %v3479_v2, %s7161_s13  ;;  %v6705_v21 = vrot.slane %v3600_v9, 9  ;;  %v6704_v51 = vrot.slane %v3599_v18, 9  ;;  %v3621_v60 = vmul.f32 %v3620_v36, %v9251_v61  ;;  %v3644_v14 = vmul.f32 %v3642_v55, %v9253_v10 }
 0x528   : > { %v6708_v62 = vrot.slane %v3622_v28, 10  ;;  %v3643_v6 = vmul.f32 %v3642_v55, %v9251_v61  ;;  %v3666_v3 = vmul.f32 %v3664_v24, %v9253_v10  ;;  %v3665_v22 = vmul.f32 %v3664_v24, %v9251_v61 }
 0x529   : > { %v6707_v19 = vrot.slane %v3621_v60, 10  ;;  %v6711_v37 = vrot.slane %v3644_v14, 10  ;;  %v3688_v20 = vmul.f32 %v3686_v53, %v9253_v10  ;;  %v3687_v27 = vmul.f32 %v3686_v53, %v9251_v61 }
 0x52a   : > { %v6710_v46 = vrot.slane %v3643_v6, 10  ;;  %v6714_v45 = vrot.slane %v3666_v3, 10  ;;  %v6713_v54 = vrot.slane %v3665_v22, 10  ;;  %v3710_v23 = vmul.f32 %v3708_v25, %v9253_v10 }
 0x52b   : > { %3503 = vrot.lane.b32.xlu1 %v3498_v29, %s7161_s13  ;;  %3501 = vrot.lane.b32.xlu0 %v3497_v16, %s7161_s13  ;;  %v6717_v15 = vrot.slane %v3688_v20, 10  ;;  %v6716_v13 = vrot.slane %v3687_v27, 10  ;;  %v3709_v12 = vmul.f32 %v3708_v25, %v9251_v61  ;;  %v3732_v26 = vmul.f32 %v3730_v5, %v9253_v10 }
 0x52c   : > { %v6720_v32 = vrot.slane %v3710_v23, 11  ;;  %v3731_v8 = vmul.f32 %v3730_v5, %v9251_v61  ;;  %v3754_v1 = vmul.f32 %v3752_v4, %v9253_v10  ;;  %v3753_v7 = vmul.f32 %v3752_v4, %v9251_v61 }
 0x52d   : > { %v6719_v17 = vrot.slane %v3709_v12, 11  ;;  %v6723_v63 = vrot.slane %v3732_v26, 11  ;;  %v3774_v2 = vstv %s6727_s12  ;;  %v3798_v40 = vstv %s6730_s15  ;;  %s6771_s12 = sld [smem:[#allocation7 + $0x31]]  ;;  %s6772_s15 = sld [smem:[#allocation7 + $0x32]] }
 0x52e   : > { %v6722_v35 = vrot.slane %v3731_v8, 11  ;;  %v6726_v11 = vrot.slane %v3754_v1, 11  ;;  %v3776_v29 = vmul.f32 %v3774_v2, %v9253_v10  ;;  %v6725_v16 = vrot.slane %v3753_v7, 11 }
 0x52f   : > { %3521 = vrot.lane.b32.xlu1 %v3516_v59, %s7161_s13  ;;  %3519 = vrot.lane.b32.xlu0 %v3515_v50, %s7161_s13  ;;  %v3775_v34 = vmul.f32 %v3774_v2, %v9251_v61  ;;  %v12510_v59 = vld [vmem:[#allocation28_spill] sm:$0xff]  ;;  %v3816_v44 = vstv %s6731_s16  ;;  %v3852_v43 = vstv %s6733_s22  ;;  %s6773_s16 = sld [smem:[#allocation7 + $0x33]]  ;;  %s12515_s22 = smov 112  }
 0x530   : > { %v6729_v56 = vrot.slane %v3776_v29, 11  ;;  %v9319_v47 = vmul.f32 %v9253_v10, %v12510_v59  ;;  %v3870_v31 = vstv %s6734_s27  ;;  %v3892_v36 = vstv %s6737_s11  ;;  %s6777_s27 = sld [smem:[#allocation7 + $0x35]]  ;;  %s6783_s11 = sld [smem:[#allocation7 + $0x37]] }
 0x531   : > { %v6728_v50 = vrot.slane %v3775_v34, 11  ;;  %v3936_v24 = vstv %s6743_s18  ;;  %v3958_v53 = vstv %s6746_s14  ;;  %v3980_v25 = vstv %s6749_s23  ;;  %s6789_s18 = sld [smem:[#allocation7 + $0x39]]  ;;  %s6792_s14 = sld [smem:[#allocation7 + $0x3a]] }
 0x532   : > { %v3800_v52 = vmul.f32 %v3798_v40, %v9319_v47  ;;  %v3818_v10 = vmul.f32 %v3816_v44, %v9319_v47  ;;  %v3872_v9 = vmul.f32 %v3870_v31, %v9319_v47  ;;  %v3894_v28 = vmul.f32 %v3892_v36, %v9319_v47  ;;  %s6795_s23 = sld [smem:[#allocation7 + $0x3b]] }
 0x533   : > { %3543 = vrot.lane.b32.xlu1 %v6696_v30, %s7161_s13  ;;  %3541 = vrot.lane.b32.xlu0 %v6695_v42, %s7161_s13  ;;  %v9323_v30 = vmul.f32 %v9251_v61, %v12511_v41  ;;  %v3938_v3 = vmul.f32 %v3936_v24, %v9319_v47  ;;  %v3960_v20 = vmul.f32 %v3958_v53, %v9319_v47  ;;  %v4002_v5 = vstv %s6752_s24  ;;  %s6798_s24 = sld [smem:[#allocation7 + $0x3c]] }
 0x534   : > { %v3982_v23 = vmul.f32 %v3980_v25, %v9319_v47  ;;  %v4004_v26 = vmul.f32 %v4002_v5, %v9319_v47  ;;  %v4024_v4 = vstv %s6755_s26  ;;  %v4046_v2 = vstv %s6758_s28  ;;  %s6801_s26 = sld [smem:[#allocation7 + $0x3d]]  ;;  %s6804_s28 = sld [smem:[#allocation7 + $0x3e]] }
 0x535   : > { %v3799_v42 = vmul.f32 %v3798_v40, %v9323_v30  ;;  %v3817_v39 = vmul.f32 %v3816_v44, %v9323_v30  ;;  %v3871_v18 = vmul.f32 %v3870_v31, %v9323_v30  ;;  %v3893_v60 = vmul.f32 %v3892_v36, %v9323_v30 }
 0x536   : > { %v3937_v22 = vmul.f32 %v3936_v24, %v9323_v30  ;;  %v3959_v27 = vmul.f32 %v3958_v53, %v9323_v30  ;;  %v3981_v12 = vmul.f32 %v3980_v25, %v9323_v30  ;;  %v4003_v8 = vmul.f32 %v4002_v5, %v9323_v30 }
 0x537   : > { %3565 = vrot.lane.b32.xlu1 %v6699_v57, %s7161_s13  ;;  %3563 = vrot.lane.b32.xlu0 %v6698_v33, %s7161_s13  ;;  %v3834_v57 = vstv %s6732_s17  ;;  %v4026_v1 = vmul.f32 %v4024_v4, %v9319_v47  ;;  %v4025_v7 = vmul.f32 %v4024_v4, %v9323_v30  ;;  %v4048_v29 = vmul.f32 %v4046_v2, %v9319_v47  ;;  %s6774_s17 = sld [smem:[#allocation7 + $0x34]] }
 0x538   : > { %v3836_v38 = vmul.f32 %v3834_v57, %v9319_v47  ;;  %v3835_v33 = vmul.f32 %v3834_v57, %v9323_v30  ;;  %v4047_v34 = vmul.f32 %v4046_v2, %v9323_v30 }
 0x539   : > { %v6760_v59 = vrot.slane %v4048_v29, 11 }
 0x53a   : > { %v6759_v40 = vrot.slane %v4047_v34, 11 }
 0x53b   : > { %3587 = vrot.lane.b32.xlu1 %v6702_v48, %s7161_s13  ;;  %3585 = vrot.lane.b32.xlu0 %v6701_v0, %s7161_s13  ;;  %v3854_v48 = vmul.f32 %v3852_v43, %v9319_v47  ;;  %v3853_v0 = vmul.f32 %v3852_v43, %v9323_v30 }
 0x53f   : > { %3609 = vrot.lane.b32.xlu1 %v6705_v21, %s7161_s13  ;;  %3607 = vrot.lane.b32.xlu0 %v6704_v51, %s7161_s13  ;;  %v6736_v21 = vrot.slane %v3872_v9, 9  ;;  %v6735_v51 = vrot.slane %v3871_v18, 9  ;;  %v4134_v9 = vld [vmem:[#allocation2 + $0x8] sm:$0xf] }
 0x543   : > { %3631 = vrot.lane.b32.xlu1 %v6708_v62, %s7161_s13  ;;  %3629 = vrot.lane.b32.xlu0 %v6707_v19, %s7161_s13  ;;  %v6739_v62 = vrot.slane %v3894_v28, 9  ;;  %v6738_v19 = vrot.slane %v3893_v60, 9 }
 0x547   : > { %3653 = vrot.lane.b32.xlu1 %v6711_v37, %s7161_s13  ;;  %3651 = vrot.lane.b32.xlu0 %v6710_v46, %s7161_s13 }
 0x54b   : > { %3675 = vrot.lane.b32.xlu1 %v6714_v45, %s7161_s13  ;;  %3673 = vrot.lane.b32.xlu0 %v6713_v54, %s7161_s13  ;;  %v6745_v45 = vrot.slane %v3938_v3, 9  ;;  %v6744_v54 = vrot.slane %v3937_v22, 9  ;;  %v4156_v3 = vstv %s6771_s12  ;;  %s6816_s12 = sld [smem:[#allocation7 + $0x45]] }
 0x54f   : > { %3697 = vrot.lane.b32.xlu1 %v6717_v15, %s7161_s13  ;;  %3695 = vrot.lane.b32.xlu0 %v6716_v13, %s7161_s13  ;;  %v6748_v15 = vrot.slane %v3960_v20, 10  ;;  %v6747_v13 = vrot.slane %v3959_v27, 10 }
 0x553   : > { %3719 = vrot.lane.b32.xlu1 %v6720_v32, %s7161_s13  ;;  %3717 = vrot.lane.b32.xlu0 %v6719_v17, %s7161_s13  ;;  %v6751_v32 = vrot.slane %v3982_v23, 10  ;;  %v6750_v17 = vrot.slane %v3981_v12, 10  ;;  %v4210_v23 = vstv %s6774_s17  ;;  %s9538_s17 = sld [smem:[#allocation7 + $0x47]] }
 0x557   : > { %3741 = vrot.lane.b32.xlu1 %v6723_v63, %s7161_s13  ;;  %3739 = vrot.lane.b32.xlu0 %v6722_v35, %s7161_s13  ;;  %v6754_v63 = vrot.slane %v4004_v26, 10  ;;  %v6753_v35 = vrot.slane %v4003_v8, 10  ;;  %v4232_v8 = vstv %s6777_s27  ;;  %s9541_s27 = sld [smem:[#allocation7 + $0x46]] }
 0x55b   : > { %3763 = vrot.lane.b32.xlu1 %v6726_v11, %s7161_s13  ;;  %3761 = vrot.lane.b32.xlu0 %v6725_v16, %s7161_s13  ;;  %v6757_v11 = vrot.slane %v4026_v1, 10  ;;  %v6756_v16 = vrot.slane %v4025_v7, 10 }
 0x55f   : > { %3785 = vrot.lane.b32.xlu1 %v6729_v56, %s7161_s13  ;;  %3783 = vrot.lane.b32.xlu0 %v6728_v50, %s7161_s13  ;;  %s6740_s13 = sld [smem:[#allocation7 + $0x26]]  ;;  %v4068_v56 = vstv %s6761_s29  ;;  %s6807_s29 = sld [smem:[#allocation7 + $0x3f]] }
 0x560   : > { %v4070_v50 = vmul.f32 %v4068_v56, %v9319_v47  ;;  %v4069_v41 = vmul.f32 %v4068_v56, %v9323_v30 }
 0x562   : > { %v6763_v44 = vrot.slane %v4070_v50, 11  ;;  %v6762_v57 = vrot.slane %v4069_v41, 11 }
 0x563   : > { %3805 = vrot.lane.b32.xlu1 %v3800_v52, %s12512_s9  ;;  %3803 = vrot.lane.b32.xlu0 %v3799_v42, %s12512_s9  ;;  %v4090_v52 = vstv %s6764_s30  ;;  %s6811_s30 = sld [smem:[#allocation7 + $0x41]] }
 0x565   : > { %v3914_v55 = vstv %s6740_s13  ;;  %s6786_s13 = sld [smem:[#allocation7 + $0x38]] }
 0x566   : > { %v3916_v14 = vmul.f32 %v3914_v55, %v9319_v47  ;;  %v3915_v6 = vmul.f32 %v3914_v55, %v9323_v30  ;;  %v12514_v55 = vld [vmem:[#allocation32_spill] sm:$0xff] }
 0x567   : > { %3823 = vrot.lane.b32.xlu1 %v3818_v10, %s12512_s9  ;;  %3821 = vrot.lane.b32.xlu0 %v3817_v39, %s12512_s9  ;;  %v4092_v10 = vmul.f32 %v4090_v52, %v9319_v47 }
 0x568   : > { %v6742_v37 = vrot.slane %v3916_v14, 9  ;;  %v6741_v46 = vrot.slane %v3915_v6, 9 }
 0x569   : > { %v6766_v31 = vrot.slane %v4092_v10, 11 }
 0x56b   : > { %3841 = vrot.lane.b32.xlu1 %v3836_v38, %s12512_s9  ;;  %3839 = vrot.lane.b32.xlu0 %v3835_v33, %s12512_s9  ;;  %v4091_v38 = vmul.f32 %v4090_v52, %v9323_v30  ;;  %v4112_v33 = vstv %s6767_s8  ;;  %s6810_s8 = sld [smem:[#allocation7 + $0x40]] }
 0x56c   : > { %v4113_v36 = vmul.f32 %v4112_v33, %v9323_v30 }
 0x56d   : > { %v6765_v18 = vrot.slane %v4091_v38, 11 }
 0x56e   : > { %v6768_v14 = vrot.slane %v4113_v36, 11 }
 0x56f   : > { %3859 = vrot.lane.b32.xlu1 %v3854_v48, %s12512_s9  ;;  %3857 = vrot.lane.b32.xlu0 %v3853_v0, %s12512_s9  ;;  %v4114_v48 = vmul.f32 %v4112_v33, %v9319_v47  ;;  %v9404_v47 = vmul.f32 %v9251_v61, %v12514_v55  ;;  %v4298_v33 = vstv %s6786_s13  ;;  %s9553_s13 = sld [smem:[#allocation7 + $0x48]] }
 0x571   : > { %v6769_v60 = vrot.slane %v4114_v48, 11  ;;  %v4157_v53 = vmul.f32 %v4156_v3, %v9404_v47  ;;  %v4233_v2 = vmul.f32 %v4232_v8, %v9404_v47 }
 0x573   : > { %3881 = vrot.lane.b32.xlu1 %v6736_v21, %s12512_s9  ;;  %3879 = vrot.lane.b32.xlu0 %v6735_v51, %s12512_s9  ;;  %v12513_v21 = vld [vmem:[#allocation31_spill] sm:$0xff] }
 0x574   : > { %v9398_v28 = vmul.f32 %v4134_v9, %v12513_v21  ;;  %v4299_v21 = vmul.f32 %v4298_v33, %v9404_v47 }
 0x576   : > { %v4212_v5 = vmul.f32 %v4210_v23, %v9398_v28  ;;  %v4234_v1 = vmul.f32 %v4232_v8, %v9398_v28  ;;  %v4300_v9 = vmul.f32 %v4298_v33, %v9398_v28 }
 0x577   : > { %3903 = vrot.lane.b32.xlu1 %v6739_v62, %s12512_s9  ;;  %3901 = vrot.lane.b32.xlu0 %v6738_v19, %s12512_s9  ;;  %v4138_v19 = vstv %s6770_s10  ;;  %s6813_s10 = sld [smem:[#allocation7 + $0x43]] }
 0x578   : > { %v4140_v6 = vmul.f32 %v4138_v19, %v9398_v28 }
 0x57b   : > { %3925 = vrot.lane.b32.xlu1 %v6742_v37, %s12512_s9  ;;  %3923 = vrot.lane.b32.xlu0 %v6741_v46, %s12512_s9  ;;  %v4139_v37 = vmul.f32 %v4138_v19, %v9404_v47  ;;  %v4158_v46 = vmul.f32 %v4156_v3, %v9398_v28 }
 0x57f   : > { %3947 = vrot.lane.b32.xlu1 %v6745_v45, %s12512_s9  ;;  %3945 = vrot.lane.b32.xlu0 %v6744_v54, %s12512_s9  ;;  %v4174_v45 = vstv %s6772_s15  ;;  %s6812_s15 = sld [smem:[#allocation7 + $0x42]] }
 0x580   : > { %v4176_v54 = vmul.f32 %v4174_v45, %v9398_v28  ;;  %v4175_v25 = vmul.f32 %v4174_v45, %v9404_v47 }
 0x583   : > { %3969 = vrot.lane.b32.xlu1 %v6748_v15, %s12512_s9  ;;  %3967 = vrot.lane.b32.xlu0 %v6747_v13, %s12512_s9  ;;  %v4192_v15 = vstv %s6773_s16  ;;  %s6814_s16 = sld [smem:[#allocation7 + $0x44]] }
 0x584   : > { %v4194_v12 = vmul.f32 %v4192_v15, %v9398_v28  ;;  %v4193_v26 = vmul.f32 %v4192_v15, %v9404_v47 }
 0x587   : > { %3991 = vrot.lane.b32.xlu1 %v6751_v32, %s12512_s9  ;;  %3989 = vrot.lane.b32.xlu0 %v6750_v17, %s12512_s9  ;;  %v4211_v17 = vmul.f32 %v4210_v23, %v9404_v47 }
 0x589   : > { %v6775_v7 = vrot.slane %v4211_v17, 9 }
 0x58b   : > { %4013 = vrot.lane.b32.xlu1 %v6754_v63, %s12512_s9  ;;  %4011 = vrot.lane.b32.xlu0 %v6753_v35, %s12512_s9  ;;  %v6776_v63 = vrot.slane %v4212_v5, 9 }
 0x58f   : > { %4035 = vrot.lane.b32.xlu1 %v6757_v11, %s12512_s9  ;;  %4033 = vrot.lane.b32.xlu0 %v6756_v16, %s12512_s9  ;;  %v6779_v16 = vrot.slane %v4234_v1, 9 }
 0x593   : > { %4057 = vrot.lane.b32.xlu1 %v6760_v59, %s12512_s9  ;;  %4055 = vrot.lane.b32.xlu0 %v6759_v40, %s12512_s9  ;;  %v6778_v59 = vrot.slane %v4233_v2, 9  ;;  %v4276_v40 = vstv %s6783_s11  ;;  %s12538_s11 = smov 111  }
 0x594   : > { %v4277_v38 = vmul.f32 %v4276_v40, %v9404_v47 }
 0x595   : > { %v9381_v42 = vpop.permute.xlu1 %3467  ;;  %v9384_v39 = vpop.permute.xlu0 %3465 }
 0x596   : > { %v6784_v36 = vrot.slane %v4277_v38, 9 }
 0x597   : > { %4079 = vrot.lane.b32.xlu1 %v6763_v44, %s12512_s9  ;;  %4077 = vrot.lane.b32.xlu0 %v6762_v57, %s12512_s9  ;;  %v4278_v44 = vmul.f32 %v4276_v40, %v9398_v28  ;;  %v4408_v40 = vstv %s6801_s26  ;;  %s6834_s26 = sld [smem:[#allocation7 + $0x4e]] }
 0x599   : > { %v9389_v43 = vpop.permute.xlu1 %3485  ;;  %v9392_v0 = vpop.permute.xlu0 %3483  ;;  %v6785_v48 = vrot.slane %v4278_v44, 9 }
 0x59b   : > { %4101 = vrot.lane.b32.xlu1 %v6766_v31, %s12512_s9  ;;  %4099 = vrot.lane.b32.xlu0 %v6765_v18, %s12512_s9 }
 0x59d   : > { %v9400_v51 = vpop.permute.xlu1 %3503  ;;  %v9406_v62 = vpop.permute.xlu0 %3501 }
 0x59f   : > { %4123 = vrot.lane.b32.xlu1 %v6769_v60, %s12512_s9  ;;  %4121 = vrot.lane.b32.xlu0 %v6768_v14, %s12512_s9  ;;  %s6780_s9 = sld [smem:[#allocation7 + $0x36]]  ;;  %v4320_v60 = vstv %s6789_s18  ;;  %v6788_v14 = vrot.slane %v4300_v9, 10  ;;  %v4430_v9 = vstv %s6804_s28  ;;  %s9569_s18 = sld [smem:[#allocation7 + $0x4a]] }
 0x5a0   : > { %v4322_v19 = vmul.f32 %v4320_v60, %v9398_v28  ;;  %v4321_v3 = vmul.f32 %v4320_v60, %v9404_v47  ;;  %v4432_v60 = vmul.f32 %v4430_v9, %v9398_v28  ;;  %s6838_s28 = sld [smem:[#allocation7 + $0x50]] }
 0x5a1   : > { %v9410_v30 = vpop.permute.xlu1 %3521  ;;  %v9413_v24 = vpop.permute.xlu0 %3519 }
 0x5a2   : > { %v6791_v45 = vrot.slane %v4322_v19, 10  ;;  %v6790_v15 = vrot.slane %v4321_v3, 10  ;;  %v4452_v3 = vstv %s6807_s29  ;;  %s9614_s29 = sld [smem:[#allocation7 + $0x51]] }
 0x5a3   : > { %4145 = vrot.lane.b32.xlu1 %v4140_v6, %s12515_s22  ;;  %4143 = vrot.lane.b32.xlu0 %v4139_v37, %s12515_s22  ;;  %v6787_v37 = vrot.slane %v4299_v21, 10 }
 0x5a5   : > { %v9418_v61 = vpop.permute.xlu1 %3543  ;;  %v9421_v22 = vpop.permute.xlu0 %3541  ;;  %v4254_v11 = vstv %s6780_s9  ;;  %s9550_s9 = sld [smem:[#allocation7 + $0x49]] }
 0x5a6   : > { %v4256_v34 = vmul.f32 %v4254_v11, %v9398_v28  ;;  %v4255_v50 = vmul.f32 %v4254_v11, %v9404_v47 }
 0x5a7   : > { %4163 = vrot.lane.b32.xlu1 %v4158_v46, %s12515_s22  ;;  %4161 = vrot.lane.b32.xlu0 %v4157_v53, %s12515_s22  ;;  %v4342_v46 = vstv %s6792_s14  ;;  %s6832_s14 = sld [smem:[#allocation7 + $0x4d]] }
 0x5a8   : > { %v6782_v52 = vrot.slane %v4256_v34, 9  ;;  %v6781_v57 = vrot.slane %v4255_v50, 9  ;;  %v4343_v23 = vmul.f32 %v4342_v46, %v9404_v47 }
 0x5a9   : > { %v9426_v20 = vpop.permute.xlu1 %3565  ;;  %v9429_v27 = vpop.permute.xlu0 %3563 }
 0x5ab   : > { %4181 = vrot.lane.b32.xlu1 %v4176_v54, %s12515_s22  ;;  %4179 = vrot.lane.b32.xlu0 %v4175_v25, %s12515_s22  ;;  %v4344_v54 = vmul.f32 %v4342_v46, %v9398_v28 }
 0x5ad   : > { %v9434_v13 = vpop.permute.xlu1 %3587  ;;  %v9438_v32 = vpop.permute.xlu0 %3585 }
 0x5af   : > { %4199 = vrot.lane.b32.xlu1 %v4194_v12, %s12515_s22  ;;  %4197 = vrot.lane.b32.xlu0 %v4193_v26, %s12515_s22  ;;  %v4364_v12 = vstv %s6795_s23  ;;  %v6794_v26 = vrot.slane %v4344_v54, 10  ;;  %v4454_v54 = vmul.f32 %v4452_v3, %v9398_v28  ;;  %s6830_s23 = sld [smem:[#allocation7 + $0x4c]] }
 0x5b0   : > { %v4366_v17 = vmul.f32 %v4364_v12, %v9398_v28  ;;  %v4365_v1 = vmul.f32 %v4364_v12, %v9404_v47  ;;  %v4453_v12 = vmul.f32 %v4452_v3, %v9404_v47  ;;  %v4565_v3 = vstv %s9538_s17  ;;  %s9652_s17 = sld [smem:[#allocation7 + $0x57]] }
 0x5b1   : > { %v9444_v4 = vpop.permute.xlu1 %3609  ;;  %v9447_v35 = vpop.permute.xlu0 %3607 }
 0x5b2   : > { %v6797_v11 = vrot.slane %v4366_v17, 10  ;;  %v6809_v17 = vrot.slane %v4454_v54, 11 }
 0x5b3   : > { %4221 = vrot.lane.b32.xlu1 %v6776_v63, %s12515_s22  ;;  %4219 = vrot.lane.b32.xlu0 %v6775_v7, %s12515_s22  ;;  %v6793_v63 = vrot.slane %v4343_v23, 10  ;;  %v4386_v7 = vstv %s6798_s24  ;;  %s6836_s24 = sld [smem:[#allocation7 + $0x4f]] }
 0x5b4   : > { %v4387_v50 = vmul.f32 %v4386_v7, %v9404_v47 }
 0x5b5   : > { %v9452_v29 = vpop.permute.xlu1 %3631  ;;  %v9455_v56 = vpop.permute.xlu0 %3629 }
 0x5b6   : > { %v6799_v33 = vrot.slane %v4387_v50, 11 }
 0x5b7   : > { %4243 = vrot.lane.b32.xlu1 %v6779_v16, %s12515_s22  ;;  %4241 = vrot.lane.b32.xlu0 %v6778_v59, %s12515_s22  ;;  %v4388_v16 = vmul.f32 %v4386_v7, %v9398_v28  ;;  %v6796_v59 = vrot.slane %v4365_v1, 10  ;;  %v6808_v1 = vrot.slane %v4453_v12, 11  ;;  %v4487_v7 = vstv %s6811_s30  ;;  %s9631_s30 = sld [smem:[#allocation7 + $0x52]] }
 0x5b9   : > { %v9460_v41 = vpop.permute.xlu1 %3653  ;;  %v9463_v10 = vpop.permute.xlu0 %3651  ;;  %v6800_v44 = vrot.slane %v4388_v16, 11  ;;  %v4677_v49 = vstv %s6836_s24  ;;  %s9677_s24 = sld [smem:[#allocation7 + $0x5f]] }
 0x5ba   : > { %12516 = vst [vmem:[#allocation20_spill] sm:$0xff] %v9460_v41  ;;  %12517 = vst [vmem:[#allocation21_spill] sm:$0xff] %v9463_v10 }
 0x5bb   : > { %4265 = vrot.lane.b32.xlu1 %v6782_v52, %s12515_s22  ;;  %4263 = vrot.lane.b32.xlu0 %v6781_v57, %s12515_s22  ;;  %v4410_v57 = vmul.f32 %v4408_v40, %v9398_v28  ;;  %v9536_v28 = vld [vmem:[#allocation2 + $0x4] sm:$0xff] }
 0x5bc   : > { %v4488_v16 = vmul.f32 %v4487_v7, %v9536_v28  ;;  %v4566_v12 = vmul.f32 %v4565_v3, %v9536_v28 }
 0x5bd   : > { %v9468_v31 = vpop.permute.xlu1 %3675  ;;  %v9471_v18 = vpop.permute.xlu0 %3673  ;;  %v6803_v21 = vrot.slane %v4410_v57, 11  ;;  %v4499_v57 = vstv %s6812_s15  ;;  %s9647_s15 = sld [smem:[#allocation7 + $0x55]] }
 0x5be   : > { %12518 = vst [vmem:[#allocation22_spill] sm:$0xff] %v9468_v31  ;;  %12519 = vst [vmem:[#allocation23_spill] sm:$0xff] %v9471_v18 }
 0x5bf   : > { %4287 = vrot.lane.b32.xlu1 %v6785_v48, %s12515_s22  ;;  %4285 = vrot.lane.b32.xlu0 %v6784_v36, %s12515_s22  ;;  %v4409_v48 = vmul.f32 %v4408_v40, %v9404_v47  ;;  %v4511_v40 = vstv %s6813_s10  ;;  %s9644_s10 = sld [smem:[#allocation7 + $0x54]]  ;;  %12563 = sst [smem:[#allocation198_spill]] %s9677_s24 }
 0x5c1   : > { %v9476_v55 = vpop.permute.xlu1 %3697  ;;  %v9479_v6 = vpop.permute.xlu0 %3695  ;;  %v6802_v19 = vrot.slane %v4409_v48, 11 }
 0x5c2   : > { %12520 = vst [vmem:[#allocation24_spill] sm:$0xff] %v9476_v55  ;;  %12521 = vst [vmem:[#allocation25_spill] sm:$0xff] %v9479_v6 }
 0x5c3   : > { %4309 = vrot.lane.b32.xlu1 %v6788_v14, %s12515_s22  ;;  %4307 = vrot.lane.b32.xlu0 %v6787_v37, %s12515_s22  ;;  %v4431_v37 = vmul.f32 %v4430_v9, %v9404_v47  ;;  %v4475_v47 = vstv %s6810_s8  ;;  %v4512_v9 = vmul.f32 %v4511_v40, %v9536_v28  ;;  %v6821_v40 = vrot.slane %v4566_v12, 9  ;;  %s9642_s8 = sld [smem:[#allocation7 + $0x53]] }
 0x5c4   : > { %v4476_v50 = vmul.f32 %v4475_v47, %v9536_v28  ;;  %v4593_v47 = vstv %s9550_s9  ;;  %s9659_s9 = sld [smem:[#allocation7 + $0x59]] }
 0x5c5   : > { %v9484_v53 = vpop.permute.xlu1 %3719  ;;  %v9487_v25 = vpop.permute.xlu0 %3717  ;;  %v6805_v23 = vrot.slane %v4431_v37, 11 }
 0x5c6   : > { %12522 = vst [vmem:[#allocation27_spill] sm:$0xff] %v9484_v53  ;;  %12523 = vst [vmem:[#allocation26_spill] sm:$0xff] %v9487_v25 }
 0x5c7   : > { %4331 = vrot.lane.b32.xlu1 %v6791_v45, %s12515_s22  ;;  %4329 = vrot.lane.b32.xlu0 %v6790_v15, %s12515_s22  ;;  %v6806_v45 = vrot.slane %v4432_v60, 11 }
 0x5c9   : > { %v9492_v5 = vpop.permute.xlu1 %3741  ;;  %v9495_v8 = vpop.permute.xlu0 %3739 }
 0x5ca   : > { %12524 = vst [vmem:[#allocation29_spill] sm:$0xff] %v9492_v5  ;;  %12525 = vst [vmem:[#allocation33_spill] sm:$0xff] %v9495_v8 }
 0x5cb   : > { %4353 = vrot.lane.b32.xlu1 %v6794_v26, %s12515_s22  ;;  %4351 = vrot.lane.b32.xlu0 %v6793_v63, %s12515_s22 }
 0x5cd   : > { %v9500_v2 = vpop.permute.xlu1 %3763  ;;  %v9503_v34 = vpop.permute.xlu0 %3761 }
 0x5ce   : > { %12526 = vst [vmem:[#allocation44_spill] sm:$0xff] %v9500_v2  ;;  %12527 = vst [vmem:[#allocation34_spill] sm:$0xff] %v9503_v34 }
 0x5cf   : > { %4375 = vrot.lane.b32.xlu1 %v6797_v11, %s12515_s22  ;;  %4373 = vrot.lane.b32.xlu0 %v6796_v59, %s12515_s22 }
 0x5d1   : > { %v9508_v52 = vpop.permute.xlu1 %3785  ;;  %v9511_v38 = vpop.permute.xlu0 %3783 }
 0x5d2   : > { %12528 = vst [vmem:[#allocation47_spill] sm:$0xff] %v9508_v52  ;;  %12529 = vst [vmem:[#allocation35_spill] sm:$0xff] %v9511_v38  ;;  %v12640_v38 = vstv %s9659_s9 }
 0x5d3   : > { %4397 = vrot.lane.b32.xlu1 %v6800_v44, %s12515_s22  ;;  %4395 = vrot.lane.b32.xlu0 %v6799_v33, %s12515_s22  ;;  %v4537_v44 = vstv %s6816_s12  ;;  %v4523_v33 = vstv %s6814_s16  ;;  %s12557_s12 = smov 110   ;;  %s9650_s16 = sld [smem:[#allocation7 + $0x56]] }
 0x5d4   : > { %v4524_v37 = vmul.f32 %v4523_v33, %v9536_v28 }
 0x5d5   : > { %v9516_v36 = vpop.permute.xlu1 %3805  ;;  %v9519_v14 = vpop.permute.xlu0 %3803 }
 0x5d6   : > { %12530 = vst [vmem:[#allocation49_spill] sm:$0xff] %v9516_v36  ;;  %12531 = vst [vmem:[#allocation36_spill] sm:$0xff] %v9519_v14  ;;  %v12635_v14 = vstv %s9799_s4  ;;  %s9980_s4 = sld [smem:[#allocation7 + $0xa]] }
 0x5d7   : > { %4419 = vrot.lane.b32.xlu1 %v6803_v21, %s12515_s22  ;;  %4417 = vrot.lane.b32.xlu0 %v6802_v19, %s12515_s22  ;;  %v4538_v21 = vmul.f32 %v4537_v44, %v9536_v28  ;;  %v4500_v19 = vmul.f32 %v4499_v57, %v9536_v28  ;;  %v4594_v44 = vmul.f32 %v4593_v47, %v9536_v28  ;;  %v4635_v47 = vstv %s6830_s23  ;;  %s9675_s23 = sld [smem:[#allocation7 + $0x5e]] }
 0x5d9   : > { %v9524_v46 = vpop.permute.xlu1 %3823  ;;  %v9527_v15 = vpop.permute.xlu0 %3821  ;;  %v6825_v3 = vrot.slane %v4594_v44, 10 }
 0x5da   : > { %12532 = vst [vmem:[#allocation52_spill] sm:$0xff] %v9524_v46  ;;  %12533 = vst [vmem:[#allocation38_spill] sm:$0xff] %v9527_v15 }
 0x5db   : > { %4441 = vrot.lane.b32.xlu1 %v6806_v45, %s12515_s22  ;;  %4439 = vrot.lane.b32.xlu0 %v6805_v23, %s12515_s22  ;;  %v4551_v45 = vstv %s9541_s27  ;;  %v6817_v23 = vrot.slane %v4538_v21, 9  ;;  %s9657_s27 = sld [smem:[#allocation7 + $0x58]] }
 0x5dc   : > { %v4552_v7 = vmul.f32 %v4551_v45, %v9536_v28  ;;  %v12746_v41 = vstv %s9980_s4 }
 0x5dd   : > { %v9532_v26 = vpop.permute.xlu1 %3841  ;;  %v9534_v63 = vpop.permute.xlu0 %3839  ;;  %12562 = sst [smem:[#allocation197_spill]] %s9675_s23 }
 0x5de   : > { %12534 = vst [vmem:[#allocation54_spill] sm:$0xff] %v9532_v26  ;;  %12535 = vst [vmem:[#allocation39_spill] sm:$0xff] %v9534_v63  ;;  %v6819_v33 = vrot.slane %v4552_v7, 9  ;;  %v4649_v7 = vstv %s6832_s14  ;;  %s9672_s14 = sld [smem:[#allocation7 + $0x5d]]  ;;  %v12616_v63 = vstv %s9774_s19  ;;  %v12621_v26 = vstv %s9776_s0  ;;  %s9929_s19 = sld [smem:[#allocation7 + $0x9]] }
 0x5df   : > { %4463 = vrot.lane.b32.xlu1 %v6809_v17, %s12515_s22  ;;  %4461 = vrot.lane.b32.xlu0 %v6808_v1, %s12515_s22  ;;  %s9565_s22 = sld [smem:[#allocation7 + $0x4b]]  ;;  %v6815_v1 = vrot.slane %v4524_v37, 9  ;;  %s9946_s0 = sld [smem:[#allocation7 + $0xd]] }
 0x5e1   : > { %v9544_v11 = vpop.permute.xlu1 %3859  ;;  %v9547_v59 = vpop.permute.xlu0 %3857 }
 0x5e2   : > { %12536 = vst [vmem:[#allocation57_spill] sm:$0xff] %v9544_v11  ;;  %12537 = vst [vmem:[#allocation37_spill] sm:$0xff] %v9547_v59  ;;  %v12615_v11 = vstv %s9657_s27 }
 0x5e3   : > { %4490 = vrot.lane.b32.xlu1 %v4488_v16, %s12538_s11  ;;  %4478 = vrot.lane.b32.xlu0 %v4476_v50, %s12538_s11  ;;  %v4579_v16 = vstv %s9553_s13  ;;  %s9665_s13 = sld [smem:[#allocation7 + $0x5a]] }
 0x5e4   : > { %12561 = sst [smem:[#allocation196_spill]] %s9672_s14 }
 0x5e5   : > { %v9556_v48 = vpop.permute.xlu1 %3881  ;;  %v9560_v60 = vpop.permute.xlu0 %3879  ;;  %v4621_v21 = vstv %s9565_s22  ;;  %s9667_s22 = sld [smem:[#allocation7 + $0x5b]]  ;;  %12626 = sst [smem:[#allocation225_spill]] %s9929_s19 }
 0x5e6   : > { %12539 = vst [vmem:[#allocation40_spill] sm:$0xff] %v9556_v48  ;;  %12540 = vst [vmem:[#allocation41_spill] sm:$0xff] %v9560_v60  ;;  %v4622_v45 = vmul.f32 %v4621_v21, %v9536_v28  ;;  %v4636_v21 = vmul.f32 %v4635_v47, %v9536_v28  ;;  %v9616_v47 = vld [vmem:[#allocation2 + $0x4] sm:$0xff]  ;;  %12632 = sst [smem:[#allocation227_spill]] %s9946_s0 }
 0x5e7   : > { %4514 = vrot.lane.b32.xlu1 %v4512_v9, %s12538_s11  ;;  %4502 = vrot.lane.b32.xlu0 %v4500_v19, %s12538_s11  ;;  %v4580_v9 = vmul.f32 %v4579_v16, %v9536_v28  ;;  %v4607_v19 = vstv %s9569_s18  ;;  %s9670_s18 = sld [smem:[#allocation7 + $0x5c]]  ;;  %v12597_v60 = vld [vmem:[#allocation131_spill] sm:$0xff]  ;;  %s10106_s0 = sld [smem:[#allocation7 + $0x7b]] }
 0x5e9   : > { %v9572_v54 = vpop.permute.xlu1 %3903  ;;  %v9575_v17 = vpop.permute.xlu0 %3901  ;;  %v6823_v12 = vrot.slane %v4580_v9, 10  ;;  %v4663_v9 = vstv %s6834_s26  ;;  %s9703_s26 = sld [smem:[#allocation7 + $0x60]] }
 0x5ea   : > { %12541 = vst [vmem:[#allocation59_spill] sm:$0xff] %v9572_v54  ;;  %12542 = vst [vmem:[#allocation62_spill] sm:$0xff] %v9575_v17 }
 0x5eb   : > { %4542 = vrot.lane.b32.xlu1 %v6817_v23, %s12538_s11  ;;  %4528 = vrot.lane.b32.xlu0 %v6815_v1, %s12538_s11  ;;  %v4608_v1 = vmul.f32 %v4607_v19, %v9536_v28 }
 0x5ed   : > { %v9582_v50 = vpop.permute.xlu1 %3925  ;;  %v9585_v57 = vpop.permute.xlu0 %3923  ;;  %v6827_v44 = vrot.slane %v4608_v1, 10  ;;  %v4664_v1 = vmul.f32 %v4663_v9, %v9536_v28  ;;  %12560 = sst [smem:[#allocation195_spill]] %s9670_s18 }
 0x5ee   : > { %12543 = vst [vmem:[#allocation64_spill] sm:$0xff] %v9582_v50  ;;  %12544 = vst [vmem:[#allocation42_spill] sm:$0xff] %v9585_v57  ;;  %s12671_s19 = sld [smem:[#allocation195_spill]] }
 0x5ef   : > { %4570 = vrot.lane.b32.xlu1 %v6821_v40, %s12538_s11  ;;  %4556 = vrot.lane.b32.xlu0 %v6819_v33, %s12538_s11  ;;  %v6829_v40 = vrot.slane %v4622_v45, 10  ;;  %v4650_v33 = vmul.f32 %v4649_v7, %v9536_v28  ;;  %v4691_v45 = vld [vmem:[#allocation2 + $0xc] sm:$0xf]  ;;  %v6831_v7 = vrot.slane %v4636_v21, 11  ;;  %v6835_v9 = vrot.slane %v4664_v1, 11  ;;  %12568 = sst [smem:[#allocation199_spill]] %s9703_s26 }
 0x5f1   : > { %v9592_v37 = vpop.permute.xlu1 %3947  ;;  %v9595_v23 = vpop.permute.xlu0 %3945 }
 0x5f2   : > { %12545 = vst [vmem:[#allocation43_spill] sm:$0xff] %v9592_v37  ;;  %12546 = vst [vmem:[#allocation45_spill] sm:$0xff] %v9595_v23  ;;  %v12575_v37 = vstv %s9657_s27  ;;  %s9927_s27 = sld [smem:[#allocation7 + $0x5]] }
 0x5f3   : > { %4598 = vrot.lane.b32.xlu1 %v6825_v3, %s12538_s11  ;;  %4584 = vrot.lane.b32.xlu0 %v6823_v12, %s12538_s11  ;;  %v6833_v3 = vrot.slane %v4650_v33, 11  ;;  %v4678_v12 = vmul.f32 %v4677_v49, %v9536_v28 }
 0x5f5   : > { %v9600_v16 = vpop.permute.xlu1 %3969  ;;  %v9603_v58 = vpop.permute.xlu0 %3967  ;;  %v6837_v49 = vrot.slane %v4678_v12, 11  ;;  %v4712_v12 = vstv %s9614_s29  ;;  %s9714_s29 = sld [smem:[#allocation7 + $0x62]] }
 0x5f6   : > { %12547 = vst [vmem:[#allocation67_spill] sm:$0xff] %v9600_v16  ;;  %12548 = vst [vmem:[#allocation69_spill] sm:$0xff] %v9603_v58 }
 0x5f7   : > { %4626 = vrot.lane.b32.xlu1 %v6829_v40, %s12538_s11  ;;  %4612 = vrot.lane.b32.xlu0 %v6827_v44, %s12538_s11  ;;  %v12551_v40 = vld [vmem:[#allocation93_spill] sm:$0xff] }
 0x5f8   : > { %v9621_v44 = vmul.f32 %v4691_v45, %v12551_v40  ;;  %12625 = sst [smem:[#allocation224_spill]] %s9927_s27  ;;  %s10108_s27 = sld [smem:[#allocation7 + $0x7a]] }
 0x5f9   : > { %v9608_v19 = vpop.permute.xlu1 %3991  ;;  %v9611_v16 = vpop.permute.xlu0 %3989 }
 0x5fa   : > { %12549 = vst [vmem:[#allocation46_spill] sm:$0xff] %v9608_v19  ;;  %12550 = vst [vmem:[#allocation48_spill] sm:$0xff] %v9611_v16  ;;  %v12553_v19 = vld [vmem:[#allocation94_spill] sm:$0xff]  ;;  %v4695_v16 = vstv %s6838_s28  ;;  %v4714_v40 = vmul.f32 %v4712_v12, %v9621_v44  ;;  %s9712_s28 = sld [smem:[#allocation7 + $0x61]] }
 0x5fb   : > { %4654 = vrot.lane.b32.xlu1 %v6833_v3, %s12538_s11  ;;  %4640 = vrot.lane.b32.xlu0 %v6831_v7, %s12538_s11  ;;  %v9627_v21 = vmul.f32 %v9616_v47, %v12553_v19  ;;  %v4697_v45 = vmul.f32 %v4695_v16, %v9621_v44  ;;  %12570 = sst [smem:[#allocation201_spill]] %s9714_s29 }
 0x5fd   : > { %v9623_v33 = vpop.permute.xlu1 %4013  ;;  %v9629_v28 = vpop.permute.xlu0 %4011  ;;  %v4696_v19 = vmul.f32 %v4695_v16, %v9627_v21 }
 0x5fe   : > { %12552 = vst [vmem:[#allocation72_spill] sm:$0xff] %v9623_v33  ;;  %12554 = vst [vmem:[#allocation74_spill] sm:$0xff] %v9629_v28 }
 0x5ff   : > { %4682 = vrot.lane.b32.xlu1 %v6837_v49, %s12538_s11  ;;  %4668 = vrot.lane.b32.xlu0 %v6835_v9, %s12538_s11  ;;  %v4713_v49 = vmul.f32 %v4712_v12, %v9627_v21  ;;  %v4729_v9 = vstv %s9631_s30  ;;  %s9720_s30 = sld [smem:[#allocation7 + $0x63]]  ;;  %s9839_s11 = sld [smem:[#allocation7 + $0x82]] }
 0x600   : > { %12569 = sst [smem:[#allocation200_spill]] %s9712_s28 }
 0x601   : > { %v9635_v3 = vpop.permute.xlu1 %4035  ;;  %v9638_v7 = vpop.permute.xlu0 %4033 }
 0x602   : > { %12555 = vst [vmem:[#allocation50_spill] sm:$0xff] %v9635_v3  ;;  %12556 = vst [vmem:[#allocation77_spill] sm:$0xff] %v9638_v7  ;;  %v4805_v7 = vstv %s9650_s16  ;;  %s9758_s16 = sld [smem:[#allocation7 + $0x67]] }
 0x603   : > { %4702 = vrot.lane.b32.xlu1 %v4697_v45, %s12557_s12  ;;  %4700 = vrot.lane.b32.xlu0 %v4696_v19, %s12557_s12  ;;  %v4731_v19 = vmul.f32 %v4729_v9, %v9621_v44 }
 0x605   : > { %v9654_v1 = vpop.permute.xlu1 %4057  ;;  %v9661_v16 = vpop.permute.xlu0 %4055  ;;  %12571 = sst [smem:[#allocation202_spill]] %s9720_s30 }
 0x606   : > { %12558 = vst [vmem:[#allocation51_spill] sm:$0xff] %v9654_v1  ;;  %12559 = vst [vmem:[#allocation53_spill] sm:$0xff] %v9661_v16  ;;  %v4746_v16 = vstv %s9642_s8  ;;  %v4763_v1 = vstv %s9644_s10  ;;  %s9722_s8 = sld [smem:[#allocation7 + $0x64]]  ;;  %s9741_s10 = sld [smem:[#allocation7 + $0x65]] }
 0x607   : > { %4719 = vrot.lane.b32.xlu1 %v4714_v40, %s12557_s12  ;;  %4717 = vrot.lane.b32.xlu0 %v4713_v49, %s12557_s12  ;;  %v4730_v40 = vmul.f32 %v4729_v9, %v9627_v21  ;;  %v4784_v49 = vstv %s9647_s15  ;;  %v9708_v9 = vmul.f32 %v4805_v7, %v9621_v44  ;;  %s9743_s15 = sld [smem:[#allocation7 + $0x66]]  ;;  %12604 = sst [smem:[#allocation218_spill]] %s9839_s11 }
 0x608   : > { %v4786_v28 = vmul.f32 %v4784_v49, %v9621_v44  ;;  %12582 = sst [smem:[#allocation206_spill]] %s9758_s16 }
 0x609   : > { %v9679_v45 = vpop.permute.xlu1 %4079  ;;  %v9682_v12 = vpop.permute.xlu0 %4077 }
 0x60a   : > { %12564 = vst [vmem:[#allocation79_spill] sm:$0xff] %v9679_v45  ;;  %12565 = vst [vmem:[#allocation82_spill] sm:$0xff] %v9682_v12  ;;  %v4748_v45 = vmul.f32 %v4746_v16, %v9621_v44  ;;  %v4765_v12 = vmul.f32 %v4763_v1, %v9621_v44 }
 0x60b   : > { %4736 = vrot.lane.b32.xlu1 %v4731_v19, %s12557_s12  ;;  %4734 = vrot.lane.b32.xlu0 %v4730_v40, %s12557_s12  ;;  %v4747_v19 = vmul.f32 %v4746_v16, %v9627_v21  ;;  %v4764_v40 = vmul.f32 %v4763_v1, %v9627_v21  ;;  %v12576_v16 = vstv %s9659_s9  ;;  %s9994_s9 = sld [smem:[#allocation8 + $0x2]] }
 0x60c   : > { %12572 = sst [smem:[#allocation203_spill]] %s9722_s8  ;;  %v6844_v58 = vrot.slane %v4765_v12, 9 }
 0x60d   : > { %v9691_v3 = vpop.permute.xlu1 %4101  ;;  %v9697_v33 = vpop.permute.xlu0 %4099  ;;  %12577 = sst [smem:[#allocation204_spill]] %s9741_s10  ;;  %v6843_v12 = vrot.slane %v4764_v40, 9  ;;  %v6850_v40 = vrot.slane %v9708_v9, 9  ;;  %v12589_v9 = vstv %s9677_s24  ;;  %s9869_s24 = sld [smem:[#allocation7 + $0x86]] }
 0x60e   : > { %12566 = vst [vmem:[#allocation84_spill] sm:$0xff] %v9691_v3  ;;  %12567 = vst [vmem:[#allocation55_spill] sm:$0xff] %v9697_v33  ;;  %v12574_v3 = vstv %s9652_s17  ;;  %12578 = sst [smem:[#allocation205_spill]] %s9743_s15  ;;  %v9787_v54 = vmul.f32 %v12589_v9, %v9621_v44 }
 0x60f   : > { %4753 = vrot.lane.b32.xlu1 %v4748_v45, %s12557_s12  ;;  %4751 = vrot.lane.b32.xlu0 %v4747_v19, %s12557_s12  ;;  %v9729_v33 = vmul.f32 %v12574_v3, %v9621_v44  ;;  %v9734_v19 = vmul.f32 %v12575_v37, %v9621_v44  ;;  %v9739_v45 = vmul.f32 %v12576_v16, %v9621_v44  ;;  %v12581_v37 = vstv %s9667_s22 }
 0x610   : > { %v4785_v3 = vmul.f32 %v4784_v49, %v9627_v21  ;;  %v9756_v50 = vmul.f32 %v12581_v37, %v9621_v44  ;;  %v6847_v16 = vrot.slane %v4786_v28, 9  ;;  %v5015_v37 = vld [vmem:[#allocation2 + $0xc] sm:$0xf]  ;;  %v12735_v31 = vrot.slane %v9787_v54, 11 }
 0x611   : > { %v9724_v23 = vpop.permute.xlu1 %4123  ;;  %v9745_v1 = vpop.permute.xlu0 %4121 }
 0x612   : > { %12573 = vst [vmem:[#allocation87_spill] sm:$0xff] %v9724_v23  ;;  %12579 = vst [vmem:[#allocation56_spill] sm:$0xff] %v9745_v1  ;;  %v12580_v23 = vstv %s9665_s13  ;;  %v12584_v1 = vstv %s9670_s18  ;;  %s10019_s18 = sld [smem:[#allocation7 + $0xf]] }
 0x613   : > { %v9751_v57 = vmul.f32 %v12580_v23, %v9621_v44  ;;  %4774 = vrot.lane.b32.xlu1 %v6844_v58, %s12557_s12  ;;  %v9767_v49 = vmul.f32 %v12584_v1, %v9621_v44  ;;  %v12585_v23 = vstv %s9672_s14  ;;  %4772 = vrot.lane.b32.xlu0 %v6843_v12, %s12557_s12  ;;  %v12588_v58 = vstv %s9675_s23  ;;  %12611 = sst [smem:[#allocation222_spill]] %s9869_s24  ;;  %s9871_s23 = sld [smem:[#allocation7]] }
 0x614   : > { %v9772_v17 = vmul.f32 %v12585_v23, %v9621_v44  ;;  %v9782_v28 = vmul.f32 %v12588_v58, %v9621_v44  ;;  %v6846_v44 = vrot.slane %v4785_v3, 9  ;;  %v4806_v58 = vmul.f32 %v4805_v7, %v9627_v21  ;;  %s9873_s14 = sld [smem:[#allocation7 + $0x4]]  ;;  %s10070_s24 = sld [smem:[#allocation7 + $0x75]] }
 0x615   : > { %v9793_v1 = vpop.permute.xlu1 %4145  ;;  %v9801_v12 = vpop.permute.xlu0 %4143  ;;  %v12602_v23 = vstv %s9652_s17  ;;  %v12605_v7 = vstv %s9722_s8  ;;  %s9850_s17 = sld [smem:[#allocation7 + $0x85]]  ;;  %v12609_v3 = vstv %s9743_s15  ;;  %s9867_s8 = sld [smem:[#allocation7 + $0x87]] }
 0x616   : > { %12592 = vst [vmem:[#allocation89_spill] sm:$0xff] %v9793_v1  ;;  %12595 = vst [vmem:[#allocation58_spill] sm:$0xff] %v9801_v12  ;;  %v9809_v1 = vmul.f32 %v5015_v37, %v12597_v60  ;;  %v6849_v9 = vrot.slane %v4806_v58, 9  ;;  %v4827_v48 = vmul.f32 %v12602_v23, %v9627_v21  ;;  %v12608_v23 = vstv %s9741_s10  ;;  %s9889_s15 = sld [smem:[#allocation7 + $0x8]]  ;;  %s9891_s10 = sld [smem:[#allocation7 + $0xc]] }
 0x617   : > { %4795 = vrot.lane.b32.xlu1 %v6847_v16, %s12557_s12  ;;  %4793 = vrot.lane.b32.xlu0 %v6846_v44, %s12557_s12  ;;  %v11986_v16 = vstv %s9758_s16  ;;  %s9906_s16 = sld [smem:[#allocation7 + $0x1]] }
 0x618   : > { %v9846_v12 = vmul.f32 %v12605_v7, %v9809_v1  ;;  %v9863_v60 = vmul.f32 %v12609_v3, %v9809_v1  ;;  %v9880_v3 = vmul.f32 %v11986_v16, %v9809_v1  ;;  %v4848_v16 = vmul.f32 %v12615_v11, %v9627_v21  ;;  %12652 = sst [smem:[#allocation233_spill]] %s10019_s18  ;;  %s10033_s18 = sld [smem:[#allocation7 + $0x70]] }
 0x619   : > { %v9820_v37 = vpop.permute.xlu1 %4163  ;;  %v9830_v44 = vpop.permute.xlu0 %4161  ;;  %v12623_v7 = vstv %s9789_s1  ;;  %v12629_v11 = vstv %s9797_s3  ;;  %s9944_s1 = sld [smem:[#allocation8 + $0x1]]  ;;  %v9960_v36 = vmul.f32 %v12635_v14, %v9809_v1  ;;  %s9962_s3 = sld [smem:[#allocation7 + $0x2]]  ;;  %v12643_v14 = vld [vmem:[#allocation193_spill] sm:$0xff] }
 0x61a   : > { %12598 = vst [vmem:[#allocation92_spill] sm:$0xff] %v9820_v37  ;;  %12601 = vst [vmem:[#allocation60_spill] sm:$0xff] %v9830_v44  ;;  %v5339_v37 = vld [vmem:[#allocation2 + $0xc] sm:$0xf]  ;;  %v12619_v44 = vrot.slane %v9729_v33, 9  ;;  %v9925_v15 = vmul.f32 %v12623_v7, %v9809_v1  ;;  %v9942_v7 = vmul.f32 %v12629_v11, %v9809_v1 }
 0x61b   : > { %4816 = vrot.lane.b32.xlu1 %v6850_v40, %s12557_s12  ;;  %12606 = sst [smem:[#allocation219_spill]] %s9850_s17  ;;  %4814 = vrot.lane.b32.xlu0 %v6849_v9, %s12557_s12  ;;  %v9858_v40 = vmul.f32 %v12608_v23, %v9809_v1  ;;  %v12613_v23 = vstv %s9760_s20  ;;  %s9904_s20 = sld [smem:[#allocation8]]  ;;  %12636 = vst [vmem:[#allocation99_spill] sm:$0xff] %v9960_v36  ;;  %v9978_v34 = vmul.f32 %v5339_v37, %v12643_v14  ;;  %v12660_v36 = vstv %s9837_s25 }
 0x61c   : > { %12610 = sst [smem:[#allocation221_spill]] %s9867_s8  ;;  %v9885_v58 = vmul.f32 %v12613_v23, %v9809_v1  ;;  %v9901_v23 = vmul.f32 %v12616_v63, %v9809_v1  ;;  %v9920_v63 = vmul.f32 %v12621_v26, %v9809_v1  ;;  %12624 = vst [vmem:[#allocation97_spill] sm:$0xff] %v9925_v15  ;;  %12630 = vst [vmem:[#allocation98_spill] sm:$0xff] %v9942_v7  ;;  %s10072_s25 = sld [smem:[#allocation7 + $0x74]] }
 0x61d   : > { %v9875_v9 = vpop.permute.xlu1 %4181  ;;  %v9893_v59 = vpop.permute.xlu0 %4179  ;;  %12618 = sst [smem:[#allocation223_spill]] %s9906_s16  ;;  %12644 = vst [vmem:[#allocation70_spill] sm:$0xff] %v9978_v34  ;;  %s12675_s16 = sld [smem:[#allocation233_spill]] }
 0x61e   : > { %12612 = vst [vmem:[#allocation95_spill] sm:$0xff] %v9875_v9  ;;  %12614 = vst [vmem:[#allocation61_spill] sm:$0xff] %v9893_v59  ;;  %v6852_v9 = vrot.slane %v4827_v48, 9  ;;  %v12620_v48 = vstv %s9703_s26  ;;  %s10009_s26 = sld [smem:[#allocation7 + $0xb]] }
 0x61f   : > { %12617 = vst [vmem:[#allocation96_spill] sm:$0xff] %v9901_v23  ;;  %4837 = vrot.lane.b32.xlu1 %v12619_v44, %s12557_s12  ;;  %v9914_v59 = vmul.f32 %v12620_v48, %v9809_v1  ;;  %12622 = vst [vmem:[#allocation63_spill] sm:$0xff] %v9920_v63  ;;  %v12627_v48 = vstv %s9791_s2  ;;  %12631 = sst [smem:[#allocation226_spill]] %s9944_s1  ;;  %s9964_s2 = sld [smem:[#allocation7 + $0x6]]  ;;  %v12734_v23 = vstv %s9994_s9 }
 0x620   : > { %4835 = vrot.lane.b32.xlu0 %v6852_v9, %s12557_s12  ;;  %v9937_v26 = vmul.f32 %v12627_v48, %v9809_v1  ;;  %v12634_v9 = vstv %s9712_s28  ;;  %12637 = sst [smem:[#allocation228_spill]] %s9962_s3  ;;  %v12641_v48 = vstv %s9806_s5  ;;  %s9982_s28 = sld [smem:[#allocation7 + $0xe]] }
 0x621   : > { %v9948_v46 = vpop.permute.xlu1 %4199  ;;  %v9953_v33 = vmul.f32 %v12634_v9, %v9809_v1  ;;  %v9966_v11 = vpop.permute.xlu0 %4197  ;;  %v4869_v9 = vmul.f32 %v12640_v38, %v9627_v21  ;;  %v9975_v52 = vmul.f32 %v12641_v48, %v9809_v1  ;;  %v12647_v38 = vstv %s9714_s29  ;;  %s9996_s5 = sld [smem:[#allocation7 + $0x3]]  ;;  %s10007_s29 = sld [smem:[#allocation7 + $0x7]] }
 0x622   : > { %12628 = vst [vmem:[#allocation65_spill] sm:$0xff] %v9937_v26  ;;  %12633 = vst [vmem:[#allocation66_spill] sm:$0xff] %v9948_v46  ;;  %v6855_v46 = vrot.slane %v4848_v16, 10  ;;  %v12646_v16 = vrot.slane %v9734_v19, 10  ;;  %v9990_v44 = vmul.f32 %v12647_v38, %v9809_v1  ;;  %v12648_v19 = vstv %s9720_s30  ;;  %s10017_s30 = sld [smem:[#allocation8 + $0x3]]  ;;  %s10123_s1 = sld [smem:[#allocation7 + $0x7c]] }
 0x623   : > { %12639 = vst [vmem:[#allocation68_spill] sm:$0xff] %v9966_v11  ;;  %12642 = vst [vmem:[#allocation100_spill] sm:$0xff] %v9975_v52  ;;  %v10002_v14 = vmul.f32 %v12648_v19, %v9809_v1  ;;  %v12654_v11 = vstv %s9665_s13  ;;  %v3262_v1 = vld [vmem:[#allocation2 + $0x8] sm:$0xf]  ;;  %v12655_v19 = vrot.slane %v9739_v45, 10  ;;  %s10045_s13 = sld [smem:[#allocation7 + $0x73]]  ;;  %v12658_v45 = vstv %s9828_s6 }
 0x624   : > { %4858 = vrot.lane.b32.xlu1 %v12646_v16, %s12557_s12  ;;  %4856 = vrot.lane.b32.xlu0 %v6855_v46, %s12557_s12  ;;  %12649 = sst [smem:[#allocation231_spill]] %s10009_s26  ;;  %v6858_v16 = vrot.slane %v4869_v9, 10  ;;  %s10047_s26 = sld [smem:[#allocation7 + $0x72]]  ;;  %v12667_v46 = vstv %s9667_s22 }
 0x625   : > { %12638 = sst [smem:[#allocation229_spill]] %s9964_s2  ;;  %v10011_v37 = vpop.permute.xlu1 %4221  ;;  %v10021_v38 = vpop.permute.xlu0 %4219  ;;  %s10085_s6 = sld [smem:[#allocation7 + $0x76]] }
 0x626   : > { %12645 = sst [smem:[#allocation230_spill]] %s9982_s28  ;;  %12650 = vst [vmem:[#allocation101_spill] sm:$0xff] %v10011_v37  ;;  %12653 = vst [vmem:[#allocation71_spill] sm:$0xff] %v10021_v38  ;;  %v4890_v37 = vmul.f32 %v12654_v11, %v9627_v21  ;;  %v12656_v11 = vstv %s9826_s21  ;;  %v12662_v38 = vstv %s9839_s11  ;;  %s10083_s11 = sld [smem:[#allocation7 + $0x77]] }
 0x627   : > { %v10038_v9 = vmul.f32 %v12656_v11, %v9978_v34  ;;  %v10057_v11 = vmul.f32 %v12660_v36, %v9978_v34  ;;  %v10062_v48 = vmul.f32 %v12662_v38, %v9978_v34  ;;  %v12665_v36 = vld [vmem:[#allocation175_spill] sm:$0xff]  ;;  %s10093_s21 = sld [smem:[#allocation7 + $0x79]]  ;;  %s10095_s22 = sld [smem:[#allocation7 + $0x78]] }
 0x628   : > { %12651 = sst [smem:[#allocation232_spill]] %s10017_s30  ;;  %4879 = vrot.lane.b32.xlu1 %v12655_v19, %s12557_s12  ;;  %s10031_s30 = sld [smem:[#allocation7 + $0x71]]  ;;  %4877 = vrot.lane.b32.xlu0 %v6858_v16, %s12557_s12  ;;  %v10052_v19 = vmul.f32 %v12658_v45, %v9978_v34  ;;  %v10075_v45 = vmul.f32 %v3262_v1, %v12665_v36  ;;  %v6861_v16 = vrot.slane %v4890_v37, 10  ;;  %v12668_v36 = vrot.slane %v9751_v57, 10 }
 0x629   : > { %12657 = vst [vmem:[#allocation102_spill] sm:$0xff] %v10038_v9  ;;  %12661 = vst [vmem:[#allocation103_spill] sm:$0xff] %v10057_v11  ;;  %v10068_v7 = vpop.permute.xlu1 %4243  ;;  %v4911_v9 = vmul.f32 %v12667_v46, %v9627_v21  ;;  %v12669_v37 = vstv %s9850_s17  ;;  %v12672_v57 = vstv %s9852_s7  ;;  %s12674_s17 = sld [smem:[#allocation231_spill]]  ;;  %s12676_s3 = sld [smem:[#allocation232_spill]] }
 0x62a   : > { %12659 = vst [vmem:[#allocation73_spill] sm:$0xff] %v10052_v19  ;;  %12663 = vst [vmem:[#allocation75_spill] sm:$0xff] %v10062_v48  ;;  %v10078_v48 = vpop.permute.xlu0 %4241  ;;  %v10100_v46 = vmul.f32 %v12669_v37, %v9978_v34  ;;  %s10121_s2 = sld [smem:[#allocation7 + $0x7d]]  ;;  %v12681_v37 = vstv %s12671_s19  ;;  %s10145_s7 = sld [smem:[#allocation7 + $0x7f]] }
 0x62b   : > { %12664 = vst [vmem:[#allocation104_spill] sm:$0xff] %v10068_v7  ;;  %12666 = vst [vmem:[#allocation76_spill] sm:$0xff] %v10078_v48  ;;  %v6864_v11 = vrot.slane %v4911_v9, 10  ;;  %v4932_v38 = vmul.f32 %v12681_v37, %v9627_v21  ;;  %s12685_s28 = sld [smem:[#allocation196_spill]]  ;;  %s10162_s19 = sld [smem:[#allocation7 + $0x7e]]  ;;  %v12693_v9 = vstv %s9873_s14 }
 0x62c   : > { %4900 = vrot.lane.b32.xlu1 %v12668_v36, %s12557_s12  ;;  %12670 = vst [vmem:[#allocation105_spill] sm:$0xff] %v10100_v46  ;;  %4898 = vrot.lane.b32.xlu0 %v6861_v16, %s12557_s12  ;;  %v10113_v36 = vmul.f32 %v12672_v57, %v9978_v34  ;;  %v12678_v16 = vstv %s9871_s23  ;;  %v12679_v57 = vstv %s9873_s14  ;;  %v7073_v46 = vld [vmem:[#allocation2] sm:$0xff]  ;;  %s12699_s14 = sld [smem:[#allocation224_spill]]  ;;  %s12706_s23 = sld [smem:[#allocation198_spill]] }
 0x62d   : > { %v10119_v19 = vpop.permute.xlu1 %4265  ;;  %v3268_v52 = vmul.f32 %v12678_v16, %v10075_v45  ;;  %v3292_v1 = vmul.f32 %v12679_v57, %v10075_v45  ;;  %v12683_v57 = vrot.slane %v9756_v50, 10  ;;  %v6867_v7 = vrot.slane %v4932_v38, 11  ;;  %s12761_s9 = sld [smem:[#allocation205_spill]] }
 0x62e   : > { %12673 = vst [vmem:[#allocation78_spill] sm:$0xff] %v10113_v36  ;;  %12677 = vst [vmem:[#allocation106_spill] sm:$0xff] %v10119_v19  ;;  %v10131_v36 = vpop.permute.xlu0 %4263  ;;  %v12682_v19 = vld [vmem:[#allocation178_spill] sm:$0xff]  ;;  %v12692_v50 = vmov %v12678_v16  ;;  %v12696_v38 = vstv %s9889_s15  ;;  %s12708_s15 = sld [smem:[#allocation226_spill]] }
 0x62f   : > { %12680 = vst [vmem:[#allocation80_spill] sm:$0xff] %v10131_v36  ;;  %v10137_v48 = vmul.f32 %v7073_v46, %v12682_v19  ;;  %v12686_v19 = vstv %s9867_s8  ;;  %v6656_v37 = vrot.slane %v3292_v1, 9  ;;  %s12695_s8 = sld [smem:[#allocation197_spill]]  ;;  %v12739_v54 = vstv %s12676_s3  ;;  %s12756_s3 = sld [smem:[#allocation201_spill]] }
 0x630   : > { %4921 = vrot.lane.b32.xlu1 %v12683_v57, %s12557_s12  ;;  %12684 = sst [smem:[#allocation195_spill]] %s10145_s7  ;;  %4919 = vrot.lane.b32.xlu0 %v6864_v11, %s12557_s12  ;;  %v10154_v46 = vmul.f32 %v12686_v19, %v9978_v34  ;;  %v12689_v11 = vstv %s9904_s20  ;;  %s12712_s20 = sld [smem:[#allocation229_spill]] }
 0x631   : > { %v10156_v26 = vpop.permute.xlu1 %4287  ;;  %v3270_v36 = vadd.f32 %v3268_v52, %v12689_v11  ;;  %v3267_v16 = vmul.f32 %v12692_v50, %v10137_v48  ;;  %v3291_v34 = vmul.f32 %v12693_v9, %v10137_v48  ;;  %v12694_v52 = vrot.slane %v9767_v49, 11  ;;  %s12714_s7 = sld [smem:[#allocation225_spill]] }
 0x632   : > { %12687 = vst [vmem:[#allocation107_spill] sm:$0xff] %v10154_v46  ;;  %12688 = vst [vmem:[#allocation81_spill] sm:$0xff] %v10156_v26  ;;  %v10166_v19 = vpop.permute.xlu0 %4285  ;;  %v12691_v46 = vstv %s12685_s28  ;;  %s12697_s28 = sld [smem:[#allocation223_spill]]  ;;  %v12698_v9 = vstv %s9891_s10  ;;  %v12703_v63 = vmov %v12689_v11  ;;  %v12707_v1 = vstv %s12699_s14 }
 0x633   : > { %12690 = vst [vmem:[#allocation108_spill] sm:$0xff] %v10166_v19  ;;  %v4953_v57 = vmul.f32 %v12691_v46, %v9627_v21  ;;  %v3348_v19 = vmul.f32 %v12696_v38, %v10075_v45  ;;  %v3404_v15 = vmul.f32 %v12698_v9, %v10075_v45  ;;  %v3302_v2 = vadd.f32 %v6656_v37, %v3270_v36  ;;  %s12764_s14 = sld [smem:[#allocation207_spill]] }
 0x634   : > { %4942 = vrot.lane.b32.xlu1 %v12694_v52, %s12557_s12  ;;  %4940 = vrot.lane.b32.xlu0 %v6867_v7, %s12557_s12  ;;  %v10200_v7 = vmul.f32 %v12696_v38, %v10137_v48  ;;  %v6655_v8 = vrot.slane %v3291_v34, 9  ;;  %v12705_v36 = vrot.slane %v9772_v17, 11  ;;  %v12711_v34 = vmov %v12707_v1 }
 0x635   : > { %v10192_v49 = vpop.permute.xlu1 %4309  ;;  %v6870_v26 = vrot.slane %v4953_v57, 11  ;;  %v12702_v46 = vstv %s12695_s8  ;;  %v6668_v38 = vrot.slane %v3348_v19, 10  ;;  %v3306_v57 = vmul.f32 %v12707_v1, %v10075_v45  ;;  %s12710_s8 = sld [smem:[#allocation228_spill]] }
 0x636   : > { %12700 = vst [vmem:[#allocation83_spill] sm:$0xff] %v10192_v49  ;;  %v10202_v50 = vpop.permute.xlu0 %4307  ;;  %v4974_v9 = vmul.f32 %v12702_v46, %v9627_v21  ;;  %v3269_v49 = vadd.f32 %v3267_v16, %v12703_v63  ;;  %v3305_v63 = vmul.f32 %v12711_v34, %v10137_v48  ;;  %v12713_v16 = vld [vmem:[#allocation132_spill] sm:$0xff]  ;;  %v6680_v19 = vrot.slane %v3404_v15, 11 }
 0x637   : > { %12701 = vst [vmem:[#allocation109_spill] sm:$0xff] %v10202_v50  ;;  %v10228_v17 = vmul.f32 %v9616_v47, %v12713_v16  ;;  %v3358_v37 = vadd.f32 %v6668_v38, %v3302_v2  ;;  %v6667_v34 = vrot.slane %v10200_v7, 10  ;;  %v12718_v5 = vstv %s12706_s23  ;;  %s12765_s23 = sld [smem:[#allocation208_spill]] }
 0x638   : > { %v12704_v52 = vstv %s12697_s28  ;;  %4963 = vrot.lane.b32.xlu1 %v12705_v36, %s12557_s12  ;;  %4961 = vrot.lane.b32.xlu0 %v6870_v26, %s12557_s12  ;;  %v6873_v16 = vrot.slane %v4974_v9, 11  ;;  %v4995_v15 = vmul.f32 %v12718_v5, %v9627_v21  ;;  %v3301_v25 = vadd.f32 %v6655_v8, %v3269_v49  ;;  %s12762_s28 = sld [smem:[#allocation206_spill]] }
 0x639   : > { %v3274_v11 = vmul.f32 %v12704_v52, %v10075_v45  ;;  %v12709_v50 = vmov %v12704_v52  ;;  %v12715_v52 = vstv %s9891_s10  ;;  %v10235_v36 = vpop.permute.xlu1 %4331  ;;  %v12719_v53 = vstv %s12708_s15  ;;  %s12726_s10 = sld [smem:[#allocation227_spill]]  ;;  %s12769_s15 = sld [smem:[#allocation210_spill]] }
 0x63a   : > { %v3273_v46 = vmul.f32 %v12709_v50, %v10137_v48  ;;  %v10233_v1 = vmul.f32 %v12715_v52, %v10137_v48  ;;  %12716 = vst [vmem:[#allocation85_spill] sm:$0xff] %v10235_v36  ;;  %v10239_v26 = vpop.permute.xlu0 %4329  ;;  %v12721_v38 = vstv %s12712_s20  ;;  %v12722_v50 = vrot.slane %v9782_v28, 11  ;;  %s12775_s20 = sld [smem:[#allocation211_spill]] }
 0x63b   : > { %12717 = vst [vmem:[#allocation110_spill] sm:$0xff] %v10239_v26  ;;  %v3276_v52 = vadd.f32 %v3274_v11, %v12719_v53  ;;  %v12720_v36 = vstv %s12710_s8  ;;  %v3320_v7 = vmul.f32 %v12721_v38, %v10075_v45  ;;  %v6659_v9 = vrot.slane %v3306_v57, 9  ;;  %s12773_s8 = sld [smem:[#allocation202_spill]] }
 0x63c   : > { %v3280_v2 = vmul.f32 %v12720_v36, %v10075_v45  ;;  %4984 = vrot.lane.b32.xlu1 %v12722_v50, %s12557_s12  ;;  %v12723_v26 = vstv %s12714_s7  ;;  %v12724_v8 = vmov %v12719_v53  ;;  %v6658_v53 = vrot.slane %v3305_v63, 9  ;;  %4982 = vrot.lane.b32.xlu0 %v6873_v16, %s12557_s12 }
 0x63d   : > { %v3362_v5 = vmul.f32 %v12723_v26, %v10075_v45  ;;  %v3275_v21 = vadd.f32 %v3273_v46, %v12724_v8  ;;  %v6679_v11 = vrot.slane %v10233_v1, 11  ;;  %v12725_v49 = vmov %v12720_v36  ;;  %v10271_v6 = vpop.permute.xlu1 %4353 }
 0x63e   : > { %v3279_v36 = vmul.f32 %v12725_v49, %v10137_v48  ;;  %v3319_v28 = vmul.f32 %v12721_v38, %v10137_v48  ;;  %v12727_v57 = vstv %s9996_s5  ;;  %12728 = vst [vmem:[#allocation86_spill] sm:$0xff] %v10271_v6  ;;  %v12729_v26 = vstv %s10007_s29  ;;  %v10282_v49 = vpop.permute.xlu0 %4351  ;;  %s12736_s5 = sld [smem:[#allocation199_spill]]  ;;  %s12748_s29 = sld [smem:[#allocation200_spill]] }
 0x63f   : > { %v3286_v50 = vmul.f32 %v12727_v57, %v10075_v45  ;;  %v3334_v46 = vmul.f32 %v12729_v26, %v10075_v45  ;;  %v12730_v63 = vmov %v12727_v57  ;;  %v12731_v16 = vmov %v12729_v26  ;;  %12732 = vst [vmem:[#allocation111_spill] sm:$0xff] %v10282_v49 }
 0x640   : > { %v3285_v1 = vmul.f32 %v12730_v63, %v10137_v48  ;;  %v3333_v8 = vmul.f32 %v12731_v16, %v10137_v48  ;;  %v6876_v38 = vrot.slane %v4995_v15, 11  ;;  %v10284_v55 = vadd.f32 %v6680_v19, %v3358_v37  ;;  %5005 = vrot.lane.b32.xlu1 %v12735_v31, %s12557_s12 }
 0x641   : > { %v12733_v57 = vstv %s12714_s7  ;;  %v3282_v18 = vadd.f32 %v3280_v2, %v12734_v23  ;;  %v6662_v26 = vrot.slane %v3320_v7, 9  ;;  %v3316_v63 = vadd.f32 %v6659_v9, %v3276_v52  ;;  %v10305_v52 = vpop.permute.xlu1 %4375  ;;  %s12742_s7 = sld [smem:[#allocation230_spill]] }
 0x642   : > { %v3361_v6 = vmul.f32 %v12733_v57, %v10137_v48  ;;  %v6671_v16 = vrot.slane %v3362_v5, 10  ;;  %v12737_v49 = vstv %s12726_s10  ;;  %v3315_v37 = vadd.f32 %v6658_v53, %v3275_v21  ;;  %5003 = vrot.lane.b32.xlu0 %v6876_v38, %s12557_s12  ;;  %12740 = vst [vmem:[#allocation88_spill] sm:$0xff] %v10305_v52  ;;  %v10309_v21 = vpop.permute.xlu0 %4373  ;;  %s12747_s12 = smov 96  }
 0x643   : > { %v3418_v15 = vmul.f32 %v12737_v49, %v10075_v45  ;;  %v12738_v19 = vstv %s9980_s4  ;;  %v3281_v2 = vadd.f32 %v3279_v36, %v12734_v23  ;;  %v6661_v7 = vrot.slane %v3319_v28, 9  ;;  %12743 = vst [vmem:[#allocation112_spill] sm:$0xff] %v10309_v21  ;;  %s12758_s4 = sld [smem:[#allocation203_spill]] }
 0x644   : > { %v3376_v57 = vmul.f32 %v12738_v19, %v10075_v45  ;;  %v3288_v31 = vadd.f32 %v3286_v50, %v12739_v54  ;;  %v6665_v9 = vrot.slane %v3334_v46, 9  ;;  %v12741_v5 = vmov %v12739_v54  ;;  %5026 = vrot.lane.b32.xlu1 %v9914_v59, %s12747_s12 }
 0x645   : > { %v3287_v10 = vadd.f32 %v3285_v1, %v12741_v5  ;;  %v6664_v49 = vrot.slane %v3333_v8, 9  ;;  %v12744_v53 = vstv %s12736_s5  ;;  %v6670_v19 = vrot.slane %v3361_v6, 10  ;;  %v10332_v59 = vpop.permute.xlu1 %4397  ;;  %s12781_s5 = sld [smem:[#allocation213_spill]] }
 0x646   : > { %v5020_v38 = vmul.f32 %v12744_v53, %v10228_v17  ;;  %v12745_v36 = vstv %s12726_s10  ;;  %v3330_v28 = vadd.f32 %v6662_v26, %v3282_v18  ;;  %v3375_v50 = vmul.f32 %v12746_v41, %v10137_v48  ;;  %12752 = vst [vmem:[#allocation90_spill] sm:$0xff] %v10332_v59  ;;  %s12779_s10 = sld [smem:[#allocation212_spill]] }
 0x647   : > { %v3417_v23 = vmul.f32 %v12745_v36, %v10137_v48  ;;  %v3357_v46 = vadd.f32 %v6667_v34, %v3301_v25  ;;  %v6683_v1 = vrot.slane %v3418_v15, 11  ;;  %v12749_v8 = vstv %s12674_s17  ;;  %s12760_s17 = sld [smem:[#allocation204_spill]] }
 0x648   : > { %v3390_v54 = vmul.f32 %v12749_v8, %v10075_v45  ;;  %v12750_v5 = vmov %v12749_v8  ;;  %5024 = vrot.lane.b32.xlu0 %v5020_v38, %s12747_s12  ;;  %v3372_v53 = vadd.f32 %v6671_v16, %v3316_v63  ;;  %v3371_v18 = vadd.f32 %v6670_v19, %v3315_v37  ;;  %v10334_v8 = vpop.permute.xlu0 %4395  ;;  %5043 = vrot.lane.b32.xlu1 %v9953_v33, %s12747_s12 }
 0x649   : > { %v3389_v6 = vmul.f32 %v12750_v5, %v10137_v48  ;;  %v6674_v26 = vrot.slane %v3376_v57, 10  ;;  %v12751_v41 = vstv %s12742_s7  ;;  %v3329_v25 = vadd.f32 %v6661_v7, %v3281_v2  ;;  %12753 = vst [vmem:[#allocation113_spill] sm:$0xff] %v10334_v8  ;;  %s12783_s7 = sld [smem:[#allocation214_spill]] }
 0x64a   : > { %v3432_v36 = vmul.f32 %v12751_v41, %v10075_v45  ;;  %v3344_v34 = vadd.f32 %v6665_v9, %v3288_v31  ;;  %v3343_v15 = vadd.f32 %v6664_v49, %v3287_v10  ;;  %v12754_v21 = vstv %s12748_s29  ;;  %s12809_s29 = sld [smem:[#allocation195_spill]] }
 0x64b   : > { %v5037_v5 = vmul.f32 %v12754_v21, %v10228_v17  ;;  %v6682_v52 = vrot.slane %v3417_v23, 11  ;;  %v3386_v38 = vadd.f32 %v6674_v26, %v3330_v28  ;;  %v6673_v63 = vrot.slane %v3375_v50, 10  ;;  %v10357_v23 = vpop.permute.xlu1 %4419 }
 0x64c   : > { %v12755_v16 = vmov %v12751_v41  ;;  %v6677_v57 = vrot.slane %v3390_v54, 10  ;;  %v12757_v2 = vstv %s12675_s16  ;;  %v6676_v10 = vrot.slane %v3389_v6, 10  ;;  %12763 = vst [vmem:[#allocation91_spill] sm:$0xff] %v10357_v23  ;;  %s12766_s16 = sld [smem:[#allocation209_spill]]  ;;  %5060 = vrot.lane.b32.xlu1 %v9990_v44, %s12747_s12 }
 0x64d   : > { %v3431_v37 = vmul.f32 %v12755_v16, %v10137_v48  ;;  %v3446_v7 = vmul.f32 %v12757_v2, %v10075_v45  ;;  %v12759_v31 = vmov %v12757_v2  ;;  %5041 = vrot.lane.b32.xlu0 %v5037_v5, %s12747_s12  ;;  %v10351_v49 = vadd.f32 %v6679_v11, %v3357_v46 }
 0x64e   : > { %v3445_v9 = vmul.f32 %v12759_v31, %v10137_v48  ;;  %v10353_v21 = vadd.f32 %v6683_v1, %v3372_v53  ;;  %v10355_v19 = vadd.f32 %v6682_v52, %v3371_v18  ;;  %v6686_v33 = vrot.slane %v3432_v36, 11  ;;  %v10359_v48 = vpop.permute.xlu0 %4417 }
 0x64f   : > { %v3385_v45 = vadd.f32 %v6673_v63, %v3329_v25  ;;  %v3400_v28 = vadd.f32 %v6677_v57, %v3344_v34  ;;  %v3399_v50 = vadd.f32 %v6676_v10, %v3343_v15  ;;  %12767 = vst [vmem:[#allocation114_spill] sm:$0xff] %v10359_v48  ;;  %v12768_v54 = vstv %s12756_s3  ;;  %v10387_v15 = vpop.permute.xlu1 %4441  ;;  %s12828_s3 = sld [smem:[#allocation215_spill]] }
 0x650   : > { %v5054_v11 = vmul.f32 %v12768_v54, %v10228_v17  ;;  %v6685_v46 = vrot.slane %v3431_v37, 11  ;;  %v12770_v52 = vstv %s12758_s4  ;;  %v12771_v6 = vstv %s12760_s17  ;;  %12776 = vst [vmem:[#allocation115_spill] sm:$0xff] %v10387_v15  ;;  %5077 = vrot.lane.b32.xlu1 %v10002_v14, %s12747_s12  ;;  %s12829_s4 = sld [smem:[#allocation219_spill]]  ;;  %s12830_s17 = sld [smem:[#allocation220_spill]] }
 0x651   : > { %v5088_v1 = vmul.f32 %v12770_v52, %v10228_v17  ;;  %v10372_v53 = vmul.f32 %v12771_v6, %v10228_v17  ;;  %v12772_v18 = vstv %s12761_s9  ;;  %v10379_v41 = vadd.f32 %v6686_v33, %v3386_v38  ;;  %s12834_s9 = sld [smem:[#allocation216_spill]] }
 0x652   : > { %v10377_v26 = vmul.f32 %v12772_v18, %v10228_v17  ;;  %v6689_v36 = vrot.slane %v3446_v7, 11  ;;  %v6688_v25 = vrot.slane %v3445_v9, 11  ;;  %5058 = vrot.lane.b32.xlu0 %v5054_v11, %s12747_s12  ;;  %v12774_v44 = vstv %s12762_s28  ;;  %v10415_v33 = vpop.permute.xlu0 %4439  ;;  %s12836_s28 = sld [smem:[#allocation217_spill]] }
 0x653   : > { %v10385_v34 = vmul.f32 %v12774_v44, %v10228_v17  ;;  %v12777_v5 = vstv %s12764_s14  ;;  %v12778_v16 = vstv %s12765_s23  ;;  %v12780_v37 = vstv %s12766_s16  ;;  %12784 = vst [vmem:[#allocation116_spill] sm:$0xff] %v10415_v33  ;;  %s12839_s14 = sld [smem:[#allocation218_spill]]  ;;  %s12842_s23 = sld [smem:[#allocation221_spill]] }
 0x654   : > { %v10392_v63 = vmul.f32 %v12777_v5, %v10228_v17  ;;  %v10397_v38 = vmul.f32 %v12778_v16, %v10228_v17  ;;  %v10402_v57 = vmul.f32 %v12780_v37, %v10228_v17  ;;  %v12782_v2 = vstv %s12769_s15  ;;  %s12844_s16 = sld [smem:[#allocation222_spill]] }
 0x655   : > { %v10407_v7 = vmul.f32 %v12782_v2, %v10228_v17  ;;  %v10409_v10 = vadd.f32 %v6685_v46, %v3385_v45  ;;  %v10411_v31 = vadd.f32 %v6689_v36, %v3400_v28  ;;  %v10413_v9 = vadd.f32 %v6688_v25, %v3399_v50  ;;  %v10446_v25 = vpop.permute.xlu1 %4463 }
 0x656   : > { %v12785_v54 = vstv %s12773_s8  ;;  %v6883_v52 = vrot.slane %v5088_v1, 9  ;;  %v6886_v6 = vrot.slane %v10372_v53, 9  ;;  %v6889_v45 = vrot.slane %v10377_v26, 9  ;;  %12792 = vst [vmem:[#allocation118_spill] sm:$0xff] %v10446_v25  ;;  %v10452_v2 = vpop.permute.xlu0 %4461  ;;  %s13100_s8 = sld [smem:[#allocation240_spill]] }
 0x657   : > { %v5071_v11 = vmul.f32 %v12785_v54, %v10228_v17  ;;  %v12786_v28 = vstv %s12775_s20  ;;  %v12787_v18 = vstv %s12779_s10  ;;  %v12788_v1 = vstv %s12781_s5  ;;  %12793 = vst [vmem:[#allocation119_spill] sm:$0xff] %v10452_v2 }
 0x658   : > { %v10427_v50 = vmul.f32 %v12786_v28, %v10228_v17  ;;  %v10434_v14 = vmul.f32 %v12787_v18, %v10228_v17  ;;  %v10439_v53 = vmul.f32 %v12788_v1, %v10228_v17  ;;  %v12790_v26 = vstv %s12783_s7 }
 0x659   : > { %5075 = vrot.lane.b32.xlu0 %v5071_v11, %s12747_s12  ;;  %v10444_v36 = vmul.f32 %v12790_v26, %v10228_v17  ;;  %v12794_v54 = vstv %s10031_s30  ;;  %v12796_v17 = vstv %s10070_s24  ;;  %v12798_v18 = vstv %s10072_s25 }
 0x65a   : > { %12789 = vst [vmem:[#allocation133_spill] sm:$0xff] %v10439_v53  ;;  %v10457_v11 = vmul.f32 %v12794_v54, %v9616_v47  ;;  %v10462_v28 = vmul.f32 %v12796_v17, %v9616_v47  ;;  %v10467_v1 = vmul.f32 %v12798_v18, %v9616_v47  ;;  %v12800_v26 = vstv %s10083_s11  ;;  %v10502_v54 = vpop.permute.xlu1 %4490 }
 0x65b   : > { %12791 = vst [vmem:[#allocation117_spill] sm:$0xff] %v10444_v36  ;;  %v10472_v37 = vmul.f32 %v12800_v26, %v9616_v47  ;;  %v12802_v16 = vrot.slane %v9846_v12, 9  ;;  %v12803_v5 = vstv %s10033_s18  ;;  %v12805_v44 = vstv %s10045_s13  ;;  %12811 = vst [vmem:[#allocation122_spill] sm:$0xff] %v10502_v54 }
 0x65c   : > { %12795 = vst [vmem:[#allocation120_spill] sm:$0xff] %v10457_v11  ;;  %12797 = vst [vmem:[#allocation134_spill] sm:$0xff] %v10462_v28  ;;  %v10481_v17 = vmul.f32 %v12803_v5, %v9616_v47  ;;  %v10486_v46 = vmul.f32 %v12805_v44, %v9616_v47  ;;  %v12807_v18 = vstv %s10047_s26  ;;  %v12810_v26 = vstv %s10085_s6 }
 0x65d   : > { %12799 = vst [vmem:[#allocation135_spill] sm:$0xff] %v10467_v1  ;;  %12801 = vst [vmem:[#allocation136_spill] sm:$0xff] %v10472_v37  ;;  %5098 = vrot.lane.b32.xlu1 %v12802_v16, %s12747_s12  ;;  %v10491_v2 = vmul.f32 %v12807_v18, %v9616_v47  ;;  %5096 = vrot.lane.b32.xlu0 %v6883_v52, %s12747_s12  ;;  %v10500_v44 = vmul.f32 %v12810_v26, %v9616_v47  ;;  %v12812_v18 = vstv %s10093_s21  ;;  %v10524_v26 = vpop.permute.xlu0 %4478 }
 0x65e   : > { %12804 = vst [vmem:[#allocation137_spill] sm:$0xff] %v10481_v17  ;;  %12806 = vst [vmem:[#allocation121_spill] sm:$0xff] %v10486_v46  ;;  %v10507_v25 = vmul.f32 %v12812_v18, %v9616_v47  ;;  %v12813_v52 = vstv %s10095_s22  ;;  %v12814_v12 = vstv %s10106_s0  ;;  %v12815_v5 = vstv %s10108_s27  ;;  %v12826_v18 = vld [vmem:[#allocation194_spill] sm:$0xff] }
 0x65f   : > { %12808 = vst [vmem:[#allocation138_spill] sm:$0xff] %v10491_v2  ;;  %v10512_v33 = vmul.f32 %v12813_v52, %v9616_v47  ;;  %v10517_v16 = vmul.f32 %v12814_v12, %v9616_v47  ;;  %v10522_v15 = vmul.f32 %v12815_v5, %v9616_v47  ;;  %12816 = vst [vmem:[#allocation123_spill] sm:$0xff] %v10524_v26  ;;  %v12817_v23 = vstv %s10121_s2 }
 0x660   : > { %v10532_v52 = vmul.f32 %v12817_v23, %v9616_v47  ;;  %v12819_v12 = vrot.slane %v9858_v40, 9  ;;  %v12820_v8 = vstv %s10123_s1  ;;  %v12822_v26 = vstv %s12809_s29 }
 0x661   : > { %v10540_v5 = vmul.f32 %v12820_v8, %v9616_v47  ;;  %v10545_v59 = vmul.f32 %v12822_v26, %v9616_v47  ;;  %v12824_v48 = vstv %s10162_s19  ;;  %v10554_v23 = vmul.f32 %v9616_v47, %v12826_v18  ;;  %5117 = vrot.lane.b32.xlu0 %v6886_v6, %s12747_s12  ;;  %v10565_v18 = vpop.permute.xlu1 %4514  ;;  %v10567_v28 = vpop.permute.xlu0 %4502 }
 0x662   : > { %12818 = vst [vmem:[#allocation124_spill] sm:$0xff] %v10532_v52  ;;  %5119 = vrot.lane.b32.xlu1 %v12819_v12, %s12747_s12  ;;  %v10550_v54 = vmul.f32 %v12824_v48, %v9616_v47  ;;  %v3470_v37 = vrot.slane %v9381_v42, 4  ;;  %v3469_v40 = vrot.slane %v9384_v39, 4  ;;  %v3488_v12 = vrot.slane %v9389_v43, 4  ;;  %12831 = vst [vmem:[#allocation142_spill] sm:$0xff] %v10565_v18 }
 0x663   : > { %12821 = vst [vmem:[#allocation125_spill] sm:$0xff] %v10540_v5  ;;  %12823 = vst [vmem:[#allocation139_spill] sm:$0xff] %v10545_v59  ;;  %v3487_v8 = vrot.slane %v9392_v0, 4  ;;  %v3506_v26 = vrot.slane %v9400_v51, 4  ;;  %v3505_v1 = vrot.slane %v9406_v62, 4  ;;  %v3524_v48 = vrot.slane %v9410_v30, 4 }
 0x664   : > { %12825 = vst [vmem:[#allocation140_spill] sm:$0xff] %v10550_v54  ;;  %12827 = vst [vmem:[#allocation141_spill] sm:$0xff] %v10554_v23  ;;  %v3523_v47 = vrot.slane %v9413_v24, 4  ;;  %v12833_v11 = vrot.slane %v9863_v60, 9  ;;  %v12835_v6 = vstv %s12828_s3  ;;  %v12838_v60 = vstv %s12829_s4 }
 0x665   : > { %12832 = vst [vmem:[#allocation126_spill] sm:$0xff] %v10567_v28  ;;  %5138 = vrot.lane.b32.xlu0 %v6889_v45, %s12747_s12  ;;  %v10585_v17 = vmul.f32 %v12835_v6, %v10554_v23  ;;  %v12841_v53 = vstv %s12830_s17  ;;  %v3471_v45 = vsel %vm550_vm5, %v3469_v40, %v3470_v37  ;;  %v3489_v28 = vsel %vm550_vm5, %v3487_v8, %v3488_v12  ;;  %v10601_v6 = vpop.permute.xlu1 %4542  ;;  %v10607_v54 = vpop.permute.xlu0 %4528 }
 0x666   : > { %5140 = vrot.lane.b32.xlu1 %v12833_v11, %s12747_s12  ;;  %v10590_v11 = vmul.f32 %v12838_v60, %v10554_v23  ;;  %v10595_v18 = vmul.f32 %v12841_v53, %v10554_v23  ;;  %v3507_v46 = vsel %vm550_vm5, %v3505_v1, %v3506_v26  ;;  %v3525_v36 = vsel %vm550_vm5, %v3523_v47, %v3524_v48 }
 0x667   : > { %12837 = vst [vmem:[#allocation127_spill] sm:$0xff] %v10585_v17  ;;  %v3546_v2 = vrot.slane %v9418_v61, 4  ;;  %v3545_v60 = vrot.slane %v9421_v22, 4  ;;  %v3568_v17 = vrot.slane %v9426_v20, 4  ;;  %v3567_v53 = vrot.slane %v9429_v27, 4 }
 0x668   : > { %12840 = vst [vmem:[#allocation128_spill] sm:$0xff] %v10590_v11  ;;  %12843 = vst [vmem:[#allocation129_spill] sm:$0xff] %v10595_v18  ;;  %v12845_v37 = vrot.slane %v9880_v3, 9  ;;  %v12846_v1 = vstv %s12834_s9  ;;  %v12848_v12 = vstv %s12836_s28  ;;  %v12850_v26 = vstv %s12839_s14 }
 0x669   : > { %v10615_v40 = vmul.f32 %v12846_v1, %v10554_v23  ;;  %v10620_v8 = vmul.f32 %v12848_v12, %v10554_v23  ;;  %v10625_v48 = vmul.f32 %v12850_v26, %v10554_v23  ;;  %v12852_v47 = vstv %s12842_s23 }
 0x66a   : > { %5161 = vrot.lane.b32.xlu1 %v12845_v37, %s12747_s12  ;;  %v10630_v59 = vmul.f32 %v12852_v47, %v10554_v23  ;;  %v3476_v3 = vadd.f32 %v9381_v42, %v10284_v55  ;;  %v12854_v37 = vrot.slane %v10385_v34, 9  ;;  %v3472_v26 = vsel %vm552_vm1, %v9384_v39, %v3471_v45  ;;  %v10652_v34 = vpop.permute.xlu1 %4570  ;;  %v10658_v39 = vpop.permute.xlu0 %4556 }
 0x66b   : > { %12847 = vst [vmem:[#allocation143_spill] sm:$0xff] %v10615_v40  ;;  %12849 = vst [vmem:[#allocation144_spill] sm:$0xff] %v10620_v8  ;;  %v12855_v8 = vstv %s12844_s16  ;;  %v3490_v47 = vsel %vm552_vm1, %v9392_v0, %v3489_v28  ;;  %v3508_v42 = vsel %vm552_vm1, %v9406_v62, %v3507_v46  ;;  %v3526_v55 = vsel %vm552_vm1, %v9413_v24, %v3525_v36  ;;  %v12859_v36 = vld [vmem:[#allocation20_spill] sm:$0xff] }
 0x66c   : > { %12851 = vst [vmem:[#allocation145_spill] sm:$0xff] %v10625_v48  ;;  %12853 = vst [vmem:[#allocation130_spill] sm:$0xff] %v10630_v59  ;;  %5159 = vrot.lane.b32.xlu0 %v12854_v37, %s12747_s12  ;;  %v10642_v40 = vmul.f32 %v12855_v8, %v10554_v23  ;;  %v3547_v37 = vsel %vm550_vm5, %v3545_v60, %v3546_v2  ;;  %v3569_v12 = vsel %vm550_vm5, %v3567_v53, %v3568_v17  ;;  %v12860_v17 = vld [vmem:[#allocation21_spill] sm:$0xff]  ;;  %v12861_v60 = vld [vmem:[#allocation22_spill] sm:$0xff] }
 0x66d   : > { %v3590_v8 = vrot.slane %v9434_v13, 4  ;;  %v3589_v1 = vrot.slane %v9438_v32, 4  ;;  %12857 = vst [vmem:[#allocation149_spill] sm:$0xff] %v10658_v39  ;;  %v3612_v0 = vrot.slane %v9444_v4, 4  ;;  %v3611_v28 = vrot.slane %v9447_v35, 4  ;;  %v12862_v23 = vld [vmem:[#allocation23_spill] sm:$0xff] }
 0x66e   : > { %12856 = vst [vmem:[#allocation146_spill] sm:$0xff] %v10642_v40  ;;  %v3634_v62 = vrot.slane %v9452_v29, 4  ;;  %v3633_v24 = vrot.slane %v9455_v56, 4  ;;  %v12858_v46 = vrot.slane %v9885_v58, 10  ;;  %v3656_v2 = vrot.slane %v12859_v36, 4 }
 0x66f   : > { %v3655_v45 = vrot.slane %v12860_v17, 4  ;;  %v3678_v53 = vrot.slane %v12861_v60, 4  ;;  %v3677_v18 = vrot.slane %v12862_v23, 4  ;;  %v12863_v40 = vrot.slane %v10392_v63, 10 }
 0x670   : > { %5182 = vrot.lane.b32.xlu1 %v12858_v46, %s12747_s12  ;;  %v3475_v11 = vadd.f32 %v3472_v26, %v10351_v49  ;;  %v3494_v48 = vadd.f32 %v9389_v43, %v10353_v21  ;;  %v3512_v58 = vadd.f32 %v9400_v51, %v10379_v41  ;;  %v10679_v46 = vpop.permute.xlu1 %4598  ;;  %v3493_v52 = vadd.f32 %v3490_v47, %v10355_v19  ;;  %v10687_v49 = vpop.permute.xlu0 %4584  ;;  %v12864_v19 = vld [vmem:[#allocation96_spill] sm:$0xff]  ;;  %v12869_v26 = vld [vmem:[#allocation27_spill] sm:$0xff] }
 0x671   : > { %5180 = vrot.lane.b32.xlu0 %v12863_v40, %s12747_s12  ;;  %v3511_v39 = vadd.f32 %v3508_v42, %v10409_v10  ;;  %v3530_v63 = vadd.f32 %v9410_v30, %v10411_v31  ;;  %v3552_v40 = vadd.f32 %v9418_v61, %v3476_v3  ;;  %v3529_v43 = vadd.f32 %v3526_v55, %v10413_v9  ;;  %v12867_v3 = vld [vmem:[#allocation24_spill] sm:$0xff]  ;;  %v12870_v42 = vld [vmem:[#allocation26_spill] sm:$0xff] }
 0x672   : > { %v3548_v51 = vsel %vm552_vm1, %v9421_v22, %v3547_v37  ;;  %v3570_v21 = vsel %vm552_vm1, %v9429_v27, %v3569_v12  ;;  %v3591_v41 = vsel %vm550_vm5, %v3589_v1, %v3590_v8  ;;  %v12865_v10 = vrot.slane %v12864_v19, 10  ;;  %v12868_v12 = vld [vmem:[#allocation25_spill] sm:$0xff] }
 0x673   : > { %v3613_v30 = vsel %vm550_vm5, %v3611_v28, %v3612_v0  ;;  %v3635_v61 = vsel %vm550_vm5, %v3633_v24, %v3634_v62  ;;  %v3657_v31 = vsel %vm550_vm5, %v3655_v45, %v3656_v2  ;;  %v3679_v9 = vsel %vm550_vm5, %v3677_v18, %v3678_v53  ;;  %v12872_v2 = vld [vmem:[#allocation29_spill] sm:$0xff] }
 0x674   : > { %5203 = vrot.lane.b32.xlu1 %v12865_v10, %s12747_s12  ;;  %v12866_v22 = vrot.slane %v10397_v38, 10  ;;  %v3700_v27 = vrot.slane %v12867_v3, 4  ;;  %v3699_v1 = vrot.slane %v12868_v12, 4  ;;  %v3722_v47 = vrot.slane %v12869_v26, 4  ;;  %v10709_v37 = vpop.permute.xlu1 %4626  ;;  %v10713_v62 = vpop.permute.xlu0 %4612  ;;  %v12873_v53 = vld [vmem:[#allocation33_spill] sm:$0xff]  ;;  %v12874_v10 = vld [vmem:[#allocation63_spill] sm:$0xff] }
 0x675   : > { %v3721_v55 = vrot.slane %v12870_v42, 4  ;;  %v3551_v8 = vadd.f32 %v3548_v51, %v3475_v11  ;;  %v3574_v0 = vadd.f32 %v9426_v20, %v3494_v48  ;;  %v3573_v28 = vadd.f32 %v3570_v21, %v3493_v52  ;;  %12871 = vst [vmem:[#allocation150_spill] sm:$0xff] %v10713_v62 }
 0x676   : > { %5201 = vrot.lane.b32.xlu0 %v12866_v22, %s12747_s12  ;;  %v3596_v18 = vadd.f32 %v9434_v13, %v3512_v58  ;;  %v3592_v38 = vsel %vm552_vm1, %v9438_v32, %v3591_v41  ;;  %v3618_v24 = vadd.f32 %v9444_v4, %v3530_v63  ;;  %v3744_v45 = vrot.slane %v12872_v2, 4  ;;  %v12877_v58 = vld [vmem:[#allocation44_spill] sm:$0xff] }
 0x677   : > { %v3743_v19 = vrot.slane %v12873_v53, 4  ;;  %v12875_v22 = vrot.slane %v12874_v10, 10  ;;  %v3614_v20 = vsel %vm552_vm1, %v9447_v35, %v3613_v30  ;;  %v3636_v13 = vsel %vm552_vm1, %v9455_v56, %v3635_v61  ;;  %v12878_v35 = vld [vmem:[#allocation34_spill] sm:$0xff]  ;;  %v12880_v56 = vld [vmem:[#allocation47_spill] sm:$0xff]  ;;  %v12882_v61 = vld [vmem:[#allocation49_spill] sm:$0xff] }
 0x678   : > { %v3658_v52 = vsel %vm552_vm1, %v12860_v17, %v3657_v31  ;;  %v3680_v32 = vsel %vm552_vm1, %v12862_v23, %v3679_v9  ;;  %v12876_v4 = vrot.slane %v10402_v57, 10  ;;  %v3701_v11 = vsel %vm550_vm5, %v3699_v1, %v3700_v27  ;;  %v10738_v21 = vpop.permute.xlu1 %4654  ;;  %v12881_v17 = vld [vmem:[#allocation35_spill] sm:$0xff]  ;;  %v12883_v31 = vld [vmem:[#allocation36_spill] sm:$0xff]  ;;  %v10744_v57 = vpop.permute.xlu0 %4640 }
 0x679   : > { %5224 = vrot.lane.b32.xlu1 %v12875_v22, %s12747_s12  ;;  %v3723_v48 = vsel %vm550_vm5, %v3721_v55, %v3722_v47  ;;  %v3766_v63 = vrot.slane %v12877_v58, 4  ;;  %v3765_v51 = vrot.slane %v12878_v35, 4  ;;  %12879 = vst [vmem:[#allocation151_spill] sm:$0xff] %v10738_v21  ;;  %v3788_v41 = vrot.slane %v12880_v56, 4  ;;  %v12884_v55 = vld [vmem:[#allocation97_spill] sm:$0xff] }
 0x67a   : > { %5222 = vrot.lane.b32.xlu0 %v12876_v4, %s12747_s12  ;;  %v3787_v30 = vrot.slane %v12881_v17, 4  ;;  %v3808_v23 = vrot.slane %v12882_v61, 4  ;;  %v3807_v9 = vrot.slane %v12883_v31, 4  ;;  %v3595_v10 = vadd.f32 %v3592_v38, %v3511_v39 }
 0x67b   : > { %v3617_v27 = vadd.f32 %v3614_v20, %v3529_v43  ;;  %v3640_v1 = vadd.f32 %v9452_v29, %v3552_v40  ;;  %v3745_v47 = vsel %vm550_vm5, %v3743_v19, %v3744_v45  ;;  %v12885_v22 = vrot.slane %v12884_v55, 10  ;;  %v12892_v19 = vld [vmem:[#allocation65_spill] sm:$0xff] }
 0x67c   : > { %v3639_v4 = vadd.f32 %v3636_v13, %v3551_v8  ;;  %v3662_v5 = vadd.f32 %v12859_v36, %v3574_v0  ;;  %v3661_v59 = vadd.f32 %v3658_v52, %v3573_v28  ;;  %v3684_v21 = vadd.f32 %v12861_v60, %v3596_v18  ;;  %v10761_v38 = vpop.permute.xlu1 %4682  ;;  %v10768_v0 = vpop.permute.xlu0 %4668  ;;  %v12889_v18 = vld [vmem:[#allocation38_spill] sm:$0xff]  ;;  %v12895_v52 = vld [vmem:[#allocation37_spill] sm:$0xff] }
 0x67d   : > { %5245 = vrot.lane.b32.xlu1 %v12885_v22, %s12747_s12  ;;  %v12886_v62 = vrot.slane %v10407_v7, 10  ;;  %v3683_v39 = vadd.f32 %v3680_v32, %v3595_v10  ;;  %v3706_v43 = vadd.f32 %v12867_v3, %v3618_v24  ;;  %v3702_v29 = vsel %vm552_vm1, %v12868_v12, %v3701_v11  ;;  %12887 = vst [vmem:[#allocation147_spill] sm:$0xff] %v10768_v0  ;;  %v12888_v3 = vld [vmem:[#allocation52_spill] sm:$0xff] }
 0x67e   : > { %v3724_v40 = vsel %vm552_vm1, %v12870_v42, %v3723_v48  ;;  %v3746_v36 = vsel %vm552_vm1, %v12873_v53, %v3745_v47  ;;  %v3767_v60 = vsel %vm550_vm5, %v3765_v51, %v3766_v63  ;;  %v3789_v8 = vsel %vm550_vm5, %v3787_v30, %v3788_v41  ;;  %v12891_v42 = vld [vmem:[#allocation39_spill] sm:$0xff]  ;;  %v12894_v53 = vld [vmem:[#allocation57_spill] sm:$0xff]  ;;  %v12896_v11 = vld [vmem:[#allocation40_spill] sm:$0xff] }
 0x67f   : > { %5243 = vrot.lane.b32.xlu0 %v12886_v62, %s12747_s12  ;;  %v3809_v7 = vsel %vm550_vm5, %v3807_v9, %v3808_v23  ;;  %v3826_v28 = vrot.slane %v12888_v3, 4  ;;  %v3825_v12 = vrot.slane %v12889_v18, 4  ;;  %v12890_v62 = vld [vmem:[#allocation54_spill] sm:$0xff]  ;;  %v3843_v45 = vrot.slane %v12891_v42, 4  ;;  %v12897_v63 = vld [vmem:[#allocation41_spill] sm:$0xff] }
 0x680   : > { %v3844_v24 = vrot.slane %v12890_v62, 4  ;;  %v12893_v20 = vrot.slane %v12892_v19, 11  ;;  %v3862_v13 = vrot.slane %v12894_v53, 4  ;;  %v3861_v32 = vrot.slane %v12895_v52, 4  ;;  %v10786_v47 = vpop.permute.xlu1 %4702  ;;  %v10792_v0 = vpop.permute.xlu0 %4700 }
 0x681   : > { %v3884_v48 = vrot.slane %v12896_v11, 4  ;;  %v3883_v51 = vrot.slane %v12897_v63, 4  ;;  %v12898_v41 = vrot.slane %v10427_v50, 11  ;;  %v3705_v30 = vadd.f32 %v3702_v29, %v3617_v27  ;;  %12899 = vst [vmem:[#allocation148_spill] sm:$0xff] %v10786_v47  ;;  %12900 = vst [vmem:[#allocation165_spill] sm:$0xff] %v10792_v0  ;;  %v12907_v29 = vld [vmem:[#allocation42_spill] sm:$0xff] }
 0x682   : > { %5266 = vrot.lane.b32.xlu1 %v12893_v20, %s12747_s12  ;;  %v3728_v23 = vadd.f32 %v12869_v26, %v3640_v1  ;;  %v3727_v9 = vadd.f32 %v3724_v40, %v3639_v4  ;;  %v3750_v10 = vadd.f32 %v12872_v2, %v3662_v5  ;;  %v3749_v55 = vadd.f32 %v3746_v36, %v3661_v59  ;;  %v12901_v59 = vld [vmem:[#allocation98_spill] sm:$0xff]  ;;  %v12908_v36 = vld [vmem:[#allocation43_spill] sm:$0xff] }
 0x683   : > { %5264 = vrot.lane.b32.xlu0 %v12898_v41, %s12747_s12  ;;  %v3772_v22 = vadd.f32 %v12877_v58, %v3684_v21  ;;  %v3768_v19 = vsel %vm552_vm1, %v12878_v35, %v3767_v60  ;;  %v3794_v20 = vadd.f32 %v12880_v56, %v3706_v43  ;;  %v3790_v50 = vsel %vm552_vm1, %v12881_v17, %v3789_v8  ;;  %v12903_v56 = vld [vmem:[#allocation59_spill] sm:$0xff]  ;;  %v12904_v1 = vld [vmem:[#allocation62_spill] sm:$0xff]  ;;  %v12909_v8 = vld [vmem:[#allocation45_spill] sm:$0xff] }
 0x684   : > { %v3810_v26 = vsel %vm908_vm7, %v12883_v31, %v3809_v7  ;;  %v3827_v5 = vsel %vm550_vm5, %v3825_v12, %v3826_v28  ;;  %v3845_v2 = vsel %vm550_vm5, %v3843_v45, %v3844_v24  ;;  %v12902_v58 = vrot.slane %v12901_v59, 11  ;;  %v12906_v31 = vld [vmem:[#allocation64_spill] sm:$0xff]  ;;  %v10814_v28 = vpop.permute.xlu1 %4719  ;;  %v12911_v45 = vld [vmem:[#allocation67_spill] sm:$0xff] }
 0x685   : > { %v3863_v35 = vsel %vm550_vm5, %v3861_v32, %v3862_v13  ;;  %v3885_v21 = vsel %vm550_vm5, %v3883_v51, %v3884_v48  ;;  %v3906_v27 = vrot.slane %v12903_v56, 4  ;;  %v3905_v4 = vrot.slane %v12904_v1, 4  ;;  %12910 = vst [vmem:[#allocation167_spill] sm:$0xff] %v10814_v28  ;;  %v12912_v32 = vld [vmem:[#allocation69_spill] sm:$0xff]  ;;  %v10819_v51 = vpop.permute.xlu0 %4717 }
 0x686   : > { %5287 = vrot.lane.b32.xlu1 %v12902_v58, %s12747_s12  ;;  %v12905_v17 = vrot.slane %v10434_v14, 11  ;;  %v3928_v43 = vrot.slane %v12906_v31, 4  ;;  %v3927_v40 = vrot.slane %v12907_v29, 4  ;;  %v3950_v60 = vrot.slane %v12908_v36, 4  ;;  %12913 = vst [vmem:[#allocation152_spill] sm:$0xff] %v10819_v51 }
 0x687   : > { %v3949_v7 = vrot.slane %v12909_v8, 4  ;;  %v3771_v12 = vadd.f32 %v3768_v19, %v3683_v39  ;;  %v3814_v24 = vadd.f32 %v12882_v61, %v3728_v23  ;;  %v3972_v13 = vrot.slane %v12911_v45, 4 }
 0x688   : > { %5285 = vrot.lane.b32.xlu0 %v12905_v17, %s12747_s12  ;;  %v3971_v48 = vrot.slane %v12912_v32, 4  ;;  %v3793_v14 = vadd.f32 %v3790_v50, %v3705_v30  ;;  %v3813_v41 = vadd.f32 %v3810_v26, %v3727_v9  ;;  %v3832_v59 = vadd.f32 %v12888_v3, %v3750_v10  ;;  %v12914_v17 = vld [vmem:[#allocation133_spill] sm:$0xff]  ;;  %v12919_v50 = vld [vmem:[#allocation48_spill] sm:$0xff]  ;;  %v10841_v26 = vpop.permute.xlu1 %4736 }
 0x689   : > { %v3828_v58 = vsel %vm908_vm7, %v12889_v18, %v3827_v5  ;;  %v12915_v47 = vrot.slane %v12914_v17, 11  ;;  %v3846_v61 = vsel %vm908_vm7, %v12891_v42, %v3845_v2  ;;  %v3864_v39 = vsel %vm908_vm7, %v12895_v52, %v3863_v35  ;;  %v12916_v3 = vld [vmem:[#allocation117_spill] sm:$0xff]  ;;  %12920 = vst [vmem:[#allocation153_spill] sm:$0xff] %v10841_v26  ;;  %v10846_v35 = vpop.permute.xlu0 %4734 }
 0x68a   : > { %v3886_v23 = vsel %vm908_vm7, %v12897_v63, %v3885_v21  ;;  %v3907_v30 = vsel %vm550_vm5, %v3905_v4, %v3906_v27  ;;  %v12917_v9 = vrot.slane %v12916_v3, 11  ;;  %v3929_v18 = vsel %vm550_vm5, %v3927_v40, %v3928_v43  ;;  %12921 = vst [vmem:[#allocation170_spill] sm:$0xff] %v10846_v35  ;;  %v12922_v40 = vld [vmem:[#allocation99_spill] sm:$0xff]  ;;  %v12932_v17 = vld [vmem:[#allocation53_spill] sm:$0xff] }
 0x68b   : > { %5327 = vrot.lane.b32.xlu1 %v12915_v47, %s12747_s12  ;;  %v3951_v10 = vsel %vm550_vm5, %v3949_v7, %v3950_v60  ;;  %v12918_v47 = vld [vmem:[#allocation46_spill] sm:$0xff]  ;;  %v3993_v42 = vrot.slane %v12919_v50, 4  ;;  %v3831_v52 = vadd.f32 %v3828_v58, %v3749_v55  ;;  %v3850_v5 = vadd.f32 %v12890_v62, %v3772_v22  ;;  %v12924_v22 = vld [vmem:[#allocation100_spill] sm:$0xff] }
 0x68c   : > { %5306 = vrot.lane.b32.xlu0 %v12917_v9, %s12747_s12  ;;  %v3994_v19 = vrot.slane %v12918_v47, 4  ;;  %v3868_v63 = vadd.f32 %v12894_v53, %v3794_v20  ;;  %v3973_v2 = vsel %vm550_vm5, %v3971_v48, %v3972_v13  ;;  %v3849_v21 = vadd.f32 %v3846_v61, %v3771_v12  ;;  %v12926_v12 = vld [vmem:[#allocation72_spill] sm:$0xff]  ;;  %v12927_v13 = vld [vmem:[#allocation74_spill] sm:$0xff] }
 0x68d   : > { %v3867_v27 = vadd.f32 %v3864_v39, %v3793_v14  ;;  %v3890_v4 = vadd.f32 %v12896_v11, %v3814_v24  ;;  %v3912_v43 = vadd.f32 %v12903_v56, %v3832_v59  ;;  %v12923_v60 = vrot.slane %v12922_v40, 11  ;;  %v12929_v14 = vld [vmem:[#allocation50_spill] sm:$0xff]  ;;  %v10873_v39 = vpop.permute.xlu0 %4751  ;;  %v12935_v9 = vld [vmem:[#allocation84_spill] sm:$0xff] }
 0x68e   : > { %v3889_v7 = vadd.f32 %v3886_v23, %v3813_v41  ;;  %v3908_v62 = vsel %vm908_vm7, %v12904_v1, %v3907_v30  ;;  %v3930_v53 = vsel %vm908_vm7, %v12907_v29, %v3929_v18  ;;  %v3952_v55 = vsel %vm908_vm7, %v12909_v8, %v3951_v10  ;;  %v10867_v1 = vpop.permute.xlu1 %4753  ;;  %v12930_v41 = vld [vmem:[#allocation77_spill] sm:$0xff]  ;;  %v12931_v8 = vld [vmem:[#allocation51_spill] sm:$0xff]  ;;  %v12934_v30 = vld [vmem:[#allocation82_spill] sm:$0xff] }
 0x68f   : > { %5329 = vrot.lane.b32.xlu1 %v12923_v60, %s12747_s12  ;;  %v12925_v20 = vrot.slane %v12924_v22, 11  ;;  %v3974_v11 = vsel %vm908_vm7, %v12912_v32, %v3973_v2  ;;  %v3995_v56 = vsel %vm550_vm5, %v3993_v42, %v3994_v19  ;;  %v4016_v24 = vrot.slane %v12926_v12, 4  ;;  %12928 = vst [vmem:[#allocation154_spill] sm:$0xff] %v10867_v1  ;;  %v12933_v23 = vld [vmem:[#allocation79_spill] sm:$0xff]  ;;  %v12938_v42 = vld [vmem:[#allocation120_spill] sm:$0xff] }
 0x690   : > { %v4015_v48 = vrot.slane %v12927_v13, 4  ;;  %v4038_v29 = vrot.slane %v12929_v14, 4  ;;  %v4037_v59 = vrot.slane %v12930_v41, 4  ;;  %v4060_v58 = vrot.slane %v12931_v8, 4  ;;  %v12936_v10 = vld [vmem:[#allocation55_spill] sm:$0xff] }
 0x691   : > { %5308 = vrot.lane.b32.xlu0 %v12925_v20, %s12747_s12  ;;  %v4059_v61 = vrot.slane %v12932_v17, 4  ;;  %v4082_v32 = vrot.slane %v12933_v23, 4  ;;  %v4081_v3 = vrot.slane %v12934_v30, 4  ;;  %v4104_v18 = vrot.slane %v12935_v9, 4  ;;  %s12937_s12 = smov 95   ;;  %v12939_v20 = vld [vmem:[#allocation137_spill] sm:$0xff] }
 0x692   : > { %v4103_v19 = vrot.slane %v12936_v10, 4  ;;  %v3911_v2 = vadd.f32 %v3908_v62, %v3831_v52  ;;  %v3934_v40 = vadd.f32 %v12906_v31, %v3850_v5  ;;  %v3933_v60 = vadd.f32 %v3930_v53, %v3849_v21  ;;  %v10887_v51 = vpop.permute.xlu1 %4774  ;;  %v12945_v62 = vld [vmem:[#allocation87_spill] sm:$0xff] }
 0x693   : > { %5363 = vrot.lane.b32.xlu1 %v12938_v42, %s12937_s12  ;;  %v3956_v22 = vadd.f32 %v12908_v36, %v3868_v63  ;;  %v3955_v26 = vadd.f32 %v3952_v55, %v3867_v27  ;;  %v3978_v28 = vadd.f32 %v12911_v45, %v3890_v4  ;;  %v3977_v1 = vadd.f32 %v3974_v11, %v3889_v7  ;;  %v10894_v63 = vpop.permute.xlu0 %4772  ;;  %v12942_v27 = vld [vmem:[#allocation121_spill] sm:$0xff]  ;;  %v12946_v55 = vld [vmem:[#allocation56_spill] sm:$0xff] }
 0x694   : > { %v4000_v35 = vadd.f32 %v12918_v47, %v3912_v43  ;;  %12940 = vst [vmem:[#allocation155_spill] sm:$0xff] %v10887_v51  ;;  %v3996_v52 = vsel %vm908_vm7, %v12919_v50, %v3995_v56  ;;  %v4017_v31 = vsel %vm550_vm5, %v4015_v48, %v4016_v24  ;;  %v4039_v36 = vsel %vm550_vm5, %v4037_v59, %v4038_v29  ;;  %v10900_v47 = vld [vmem:[#allocation2 + $0xc] sm:$0xf]  ;;  %v12947_v56 = vld [vmem:[#allocation89_spill] sm:$0xff]  ;;  %v12948_v48 = vld [vmem:[#allocation58_spill] sm:$0xff] }
 0x695   : > { %5346 = vrot.lane.b32.xlu0 %v12939_v20, %s12937_s12  ;;  %v4061_v5 = vsel %vm550_vm5, %v4059_v61, %v4060_v58  ;;  %12941 = vst [vmem:[#allocation156_spill] sm:$0xff] %v10894_v63  ;;  %v4083_v21 = vsel %vm550_vm5, %v4081_v3, %v4082_v32  ;;  %v4105_v45 = vsel %vm550_vm5, %v4103_v19, %v4104_v18  ;;  %v12943_v4 = vstv %s10031_s30  ;;  %v12949_v59 = vld [vmem:[#allocation138_spill] sm:$0xff]  ;;  %v12950_v32 = vld [vmem:[#allocation92_spill] sm:$0xff]  ;;  %s13095_s30 = smov 111  }
 0x696   : > { %v5360_v50 = vmul.f32 %v10900_v47, %v12943_v4  ;;  %v12944_v43 = vstv %s10033_s18  ;;  %v4126_v53 = vrot.slane %v12945_v62, 4  ;;  %v4125_v11 = vrot.slane %v12946_v55, 4  ;;  %v12951_v18 = vld [vmem:[#allocation60_spill] sm:$0xff]  ;;  %v10917_v42 = vpop.permute.xlu1 %4795  ;;  %s11575_s18 = sld [smem:[#allocation7 + $0x8f]] }
 0x697   : > { %5397 = vrot.lane.b32.xlu1 %v12942_v27, %s12937_s12  ;;  %v5343_v7 = vmul.f32 %v10900_v47, %v12944_v43  ;;  %v4148_v24 = vrot.slane %v12947_v56, 4  ;;  %v4147_v29 = vrot.slane %v12948_v48, 4  ;;  %v3999_v58 = vadd.f32 %v3996_v52, %v3911_v2  ;;  %12952 = vst [vmem:[#allocation172_spill] sm:$0xff] %v10917_v42  ;;  %v10926_v2 = vpop.permute.xlu0 %4793 }
 0x698   : > { %v4022_v61 = vadd.f32 %v12926_v12, %v3934_v40  ;;  %v4166_v3 = vrot.slane %v12950_v32, 4  ;;  %v4165_v19 = vrot.slane %v12951_v18, 4  ;;  %v4018_v20 = vsel %vm908_vm7, %v12927_v13, %v4017_v31  ;;  %12953 = vst [vmem:[#allocation176_spill] sm:$0xff] %v10926_v2  ;;  %v12956_v31 = vld [vmem:[#allocation95_spill] sm:$0xff] }
 0x699   : > { %5380 = vrot.lane.b32.xlu0 %v12949_v59, %s12937_s12  ;;  %v4044_v27 = vadd.f32 %v12929_v14, %v3956_v22  ;;  %v4040_v4 = vsel %vm908_vm7, %v12930_v41, %v4039_v36  ;;  %v4062_v43 = vsel %vm908_vm7, %v12932_v17, %v4061_v5  ;;  %v4084_v12 = vsel %vm908_vm7, %v12934_v30, %v4083_v21  ;;  %v12957_v5 = vld [vmem:[#allocation61_spill] sm:$0xff] }
 0x69a   : > { %v4106_v40 = vsel %vm908_vm7, %v12936_v10, %v4105_v45  ;;  %v12954_v52 = vstv %s10045_s13  ;;  %v12955_v14 = vstv %s10047_s26  ;;  %v4127_v41 = vsel %vm550_vm5, %v4125_v11, %v4126_v53  ;;  %s13093_s26 = sld [smem:[#allocation16_spill]]  ;;  %s13098_s13 = smov 17  }
 0x69b   : > { %5365 = vrot.lane.b32.xlu1 %v5360_v50, %s12937_s12  ;;  %v5394_v13 = vmul.f32 %v10900_v47, %v12954_v52  ;;  %v5377_v22 = vmul.f32 %v10900_v47, %v12955_v14  ;;  %v4149_v17 = vsel %vm550_vm5, %v4147_v29, %v4148_v24  ;;  %v4184_v36 = vrot.slane %v12956_v31, 4  ;;  %v10946_v50 = vpop.permute.xlu1 %4816  ;;  %v10950_v24 = vpop.permute.xlu0 %4814 }
 0x69c   : > { %v4183_v59 = vrot.slane %v12957_v5, 4  ;;  %v4021_v30 = vadd.f32 %v4018_v20, %v3933_v60  ;;  %v4043_v10 = vadd.f32 %v4040_v4, %v3955_v26  ;;  %v4066_v21 = vadd.f32 %v12931_v8, %v3978_v28  ;;  %12958 = vst [vmem:[#allocation179_spill] sm:$0xff] %v10946_v50  ;;  %12959 = vst [vmem:[#allocation182_spill] sm:$0xff] %v10950_v24  ;;  %v12960_v8 = vld [vmem:[#allocation66_spill] sm:$0xff] }
 0x69d   : > { %5348 = vrot.lane.b32.xlu0 %v5343_v7, %s12937_s12  ;;  %v4167_v45 = vsel %vm550_vm5, %v4165_v19, %v4166_v3  ;;  %v4065_v52 = vadd.f32 %v4062_v43, %v3977_v1  ;;  %v4088_v14 = vadd.f32 %v12933_v23, %v4000_v35  ;;  %v4087_v53 = vadd.f32 %v4084_v12, %v3999_v58  ;;  %v12962_v7 = vld [vmem:[#allocation101_spill] sm:$0xff]  ;;  %v12964_v58 = vld [vmem:[#allocation104_spill] sm:$0xff] }
 0x69e   : > { %v4110_v11 = vadd.f32 %v12935_v9, %v4022_v61  ;;  %v4109_v29 = vadd.f32 %v4106_v40, %v4021_v30  ;;  %v4132_v42 = vadd.f32 %v12945_v62, %v4044_v27  ;;  %v4128_v26 = vsel %vm908_vm7, %v12946_v55, %v4127_v41  ;;  %v12961_v9 = vld [vmem:[#allocation68_spill] sm:$0xff]  ;;  %v12963_v55 = vld [vmem:[#allocation71_spill] sm:$0xff] }
 0x69f   : > { %v4150_v28 = vsel %vm1255_vm8, %v12948_v48, %v4149_v17  ;;  %5399 = vrot.lane.b32.xlu1 %v5394_v13, %s12937_s12  ;;  %v4168_v35 = vsel %vm1255_vm8, %v12951_v18, %v4167_v45  ;;  %v4185_v1 = vsel %vm550_vm5, %v4183_v59, %v4184_v36  ;;  %v4202_v23 = vrot.slane %v12960_v8, 4  ;;  %v12965_v3 = vld [vmem:[#allocation76_spill] sm:$0xff]  ;;  %v10968_v20 = vpop.permute.xlu1 %4837  ;;  %v10971_v4 = vpop.permute.xlu0 %4835  ;;  %v12970_v17 = vld [vmem:[#allocation134_spill] sm:$0xff] }
 0x6a0   : > { %v4201_v60 = vrot.slane %v12961_v9, 4  ;;  %v4224_v62 = vrot.slane %v12962_v7, 4  ;;  %v4223_v48 = vrot.slane %v12963_v55, 4  ;;  %v4246_v61 = vrot.slane %v12964_v58, 4  ;;  %12966 = vst [vmem:[#allocation157_spill] sm:$0xff] %v10968_v20  ;;  %12967 = vst [vmem:[#allocation158_spill] sm:$0xff] %v10971_v4 }
 0x6a1   : > { %5382 = vrot.lane.b32.xlu0 %v5377_v22, %s12937_s12  ;;  %v4245_v19 = vrot.slane %v12965_v3, 4  ;;  %v4131_v18 = vadd.f32 %v4128_v26, %v4043_v10  ;;  %v4154_v27 = vadd.f32 %v12947_v56, %v4066_v21  ;;  %v12968_v43 = vstv %s10070_s24  ;;  %s11577_s24 = sld [smem:[#allocation7 + $0x8e]] }
 0x6a2   : > { %v5432_v12 = vmul.f32 %v10900_v47, %v12968_v43  ;;  %v12969_v40 = vstv %s10072_s25  ;;  %v4153_v22 = vadd.f32 %v4150_v28, %v4065_v52  ;;  %v4172_v41 = vadd.f32 %v12950_v32, %v4088_v14  ;;  %v12974_v32 = vld [vmem:[#allocation135_spill] sm:$0xff]  ;;  %s11562_s25 = sld [smem:[#allocation7 + $0x8d]] }
 0x6a3   : > { %v5411_v13 = vmul.f32 %v10900_v47, %v12969_v40  ;;  %v12971_v36 = vrot.slane %v12970_v17, 9  ;;  %v12972_v59 = vstv %s10083_s11  ;;  %v12973_v10 = vstv %s10085_s6  ;;  %v12976_v40 = vld [vmem:[#allocation106_spill] sm:$0xff]  ;;  %s11515_s6 = sld [smem:[#allocation7 + $0x8b]]  ;;  %s11564_s11 = sld [smem:[#allocation7 + $0x8c]] }
 0x6a4   : > { %v5474_v30 = vmul.f32 %v10900_v47, %v12972_v59  ;;  %v10989_v56 = vmul.f32 %v10900_v47, %v12973_v10  ;;  %v4171_v21 = vadd.f32 %v4168_v35, %v4087_v53  ;;  %v4190_v45 = vadd.f32 %v12956_v31, %v4110_v11  ;;  %v11002_v53 = vpop.permute.xlu1 %4858  ;;  %v12979_v31 = vld [vmem:[#allocation81_spill] sm:$0xff]  ;;  %v12980_v35 = vld [vmem:[#allocation108_spill] sm:$0xff] }
 0x6a5   : > { %5439 = vrot.lane.b32.xlu1 %v12971_v36, %s12937_s12  ;;  %v4186_v26 = vsel %vm1255_vm8, %v12957_v5, %v4185_v1  ;;  %v4203_v52 = vsel %vm550_vm5, %v4201_v60, %v4202_v23  ;;  %v12975_v14 = vrot.slane %v12974_v32, 9  ;;  %v4225_v28 = vsel %vm550_vm5, %v4223_v48, %v4224_v62  ;;  %v12977_v36 = vld [vmem:[#allocation80_spill] sm:$0xff]  ;;  %12978 = vst [vmem:[#allocation159_spill] sm:$0xff] %v11002_v53  ;;  %v11006_v1 = vpop.permute.xlu0 %4856 }
 0x6a6   : > { %v4247_v43 = vsel %vm550_vm5, %v4245_v19, %v4246_v61  ;;  %v4268_v17 = vrot.slane %v12976_v40, 4  ;;  %v4267_v59 = vrot.slane %v12977_v36, 4  ;;  %v4290_v11 = vrot.slane %v12979_v31, 4  ;;  %12981 = vst [vmem:[#allocation184_spill] sm:$0xff] %v11006_v1  ;;  %v12982_v48 = vld [vmem:[#allocation136_spill] sm:$0xff] }
 0x6a7   : > { %5418 = vrot.lane.b32.xlu0 %v12975_v14, %s12937_s12  ;;  %v4289_v5 = vrot.slane %v12980_v35, 4  ;;  %v6927_v23 = vrot.slane %v5432_v12, 9  ;;  %v6924_v60 = vrot.slane %v5411_v13, 9  ;;  %v4189_v10 = vadd.f32 %v4186_v26, %v4109_v29  ;;  %v12985_v13 = vld [vmem:[#allocation83_spill] sm:$0xff] }
 0x6a8   : > { %v4208_v62 = vadd.f32 %v12960_v8, %v4132_v42  ;;  %v12983_v61 = vrot.slane %v12982_v48, 9  ;;  %v6933_v19 = vrot.slane %v5474_v30, 9  ;;  %v6930_v32 = vrot.slane %v10989_v56, 9  ;;  %v12986_v56 = vld [vmem:[#allocation109_spill] sm:$0xff]  ;;  %v11026_v26 = vpop.permute.xlu1 %4879 }
 0x6a9   : > { %v4204_v14 = vsel %vm1255_vm8, %v12961_v9, %v4203_v52  ;;  %v4230_v50 = vadd.f32 %v12962_v7, %v4154_v27  ;;  %v4226_v12 = vsel %vm1255_vm8, %v12963_v55, %v4225_v28  ;;  %v4248_v42 = vsel %vm1255_vm8, %v12965_v3, %v4247_v43  ;;  %12987 = vst [vmem:[#allocation160_spill] sm:$0xff] %v11026_v26  ;;  %v12989_v3 = vld [vmem:[#allocation85_spill] sm:$0xff]  ;;  %v12990_v28 = vld [vmem:[#allocation110_spill] sm:$0xff]  ;;  %v11036_v43 = vpop.permute.xlu0 %4877 }
 0x6aa   : > { %5481 = vrot.lane.b32.xlu1 %v12983_v61, %s12937_s12  ;;  %v12984_v29 = vrot.slane %v10500_v44, 9  ;;  %v4269_v8 = vsel %vm550_vm5, %v4267_v59, %v4268_v17  ;;  %v4312_v30 = vrot.slane %v12985_v13, 4  ;;  %v4311_v9 = vrot.slane %v12986_v56, 4  ;;  %12991 = vst [vmem:[#allocation161_spill] sm:$0xff] %v11036_v43 }
 0x6ab   : > { %v12988_v7 = vstv %s10093_s21  ;;  %v4291_v27 = vsel %vm550_vm5, %v4289_v5, %v4290_v11  ;;  %v4334_v52 = vrot.slane %v12989_v3, 4  ;;  %v4333_v44 = vrot.slane %v12990_v28, 4  ;;  %s11517_s21 = sld [smem:[#allocation7 + $0x8a]] }
 0x6ac   : > { %5460 = vrot.lane.b32.xlu0 %v12984_v29, %s12937_s12  ;;  %v11031_v55 = vmul.f32 %v10900_v47, %v12988_v7  ;;  %v12992_v48 = vstv %s10095_s22  ;;  %v4207_v59 = vadd.f32 %v4204_v14, %v4131_v18  ;;  %v4252_v61 = vadd.f32 %v12964_v58, %v4172_v41  ;;  %v12995_v41 = vld [vmem:[#allocation86_spill] sm:$0xff]  ;;  %v12996_v14 = vld [vmem:[#allocation111_spill] sm:$0xff] }
 0x6ad   : > { %v11041_v17 = vmul.f32 %v10900_v47, %v12992_v48  ;;  %v12993_v29 = vstv %s10106_s0  ;;  %v12994_v11 = vstv %s10108_s27  ;;  %v4229_v26 = vadd.f32 %v4226_v12, %v4153_v22  ;;  %s13049_s0 = smov 94   ;;  %s13097_s27 = sld [smem:[#allocation15_spill]] }
 0x6ae   : > { %5441 = vrot.lane.b32.xlu1 %v6927_v23, %s12937_s12  ;;  %v11048_v7 = vmul.f32 %v10900_v47, %v12993_v29  ;;  %v11053_v5 = vmul.f32 %v10900_v47, %v12994_v11  ;;  %v4251_v53 = vadd.f32 %v4248_v42, %v4171_v21  ;;  %v4274_v51 = vadd.f32 %v12976_v40, %v4190_v45  ;;  %v11064_v11 = vpop.permute.xlu1 %4900  ;;  %v11068_v45 = vpop.permute.xlu0 %4898  ;;  %v13009_v42 = vld [vmem:[#allocation115_spill] sm:$0xff]  ;;  %v13011_v40 = vld [vmem:[#allocation118_spill] sm:$0xff] }
 0x6af   : > { %v4270_v48 = vsel %vm1255_vm8, %v12977_v36, %v4269_v8  ;;  %v4292_v58 = vsel %vm1255_vm8, %v12980_v35, %v4291_v27  ;;  %v4313_v18 = vsel %vm550_vm5, %v4311_v9, %v4312_v30  ;;  %v4356_v23 = vrot.slane %v12995_v41, 4  ;;  %12997 = vst [vmem:[#allocation187_spill] sm:$0xff] %v11064_v11  ;;  %12998 = vst [vmem:[#allocation162_spill] sm:$0xff] %v11068_v45  ;;  %v12999_v8 = vld [vmem:[#allocation88_spill] sm:$0xff] }
 0x6b0   : > { %5420 = vrot.lane.b32.xlu0 %v6924_v60, %s12937_s12  ;;  %v4355_v29 = vrot.slane %v12996_v14, 4  ;;  %v4296_v22 = vadd.f32 %v12979_v31, %v4208_v62  ;;  %v4335_v21 = vsel %vm550_vm5, %v4333_v44, %v4334_v52  ;;  %v4273_v35 = vadd.f32 %v4270_v48, %v4189_v10  ;;  %v13000_v9 = vld [vmem:[#allocation112_spill] sm:$0xff] }
 0x6b1   : > { %v4318_v60 = vadd.f32 %v12985_v13, %v4230_v50  ;;  %v4295_v31 = vadd.f32 %v4292_v58, %v4207_v59  ;;  %v4314_v62 = vsel %vm1255_vm8, %v12986_v56, %v4313_v18  ;;  %v4378_v30 = vrot.slane %v12999_v8, 4  ;;  %v13004_v59 = vld [vmem:[#allocation90_spill] sm:$0xff]  ;;  %v13006_v18 = vld [vmem:[#allocation91_spill] sm:$0xff]  ;;  %v13010_v36 = vld [vmem:[#allocation116_spill] sm:$0xff] }
 0x6b2   : > { %5483 = vrot.lane.b32.xlu1 %v6933_v19, %s12937_s12  ;;  %v4377_v27 = vrot.slane %v13000_v9, 4  ;;  %v4336_v10 = vsel %vm1255_vm8, %v12990_v28, %v4335_v21  ;;  %v4357_v50 = vsel %vm550_vm5, %v4355_v29, %v4356_v23  ;;  %v11084_v19 = vpop.permute.xlu1 %4921  ;;  %v13002_v13 = vstv %s10121_s2  ;;  %v13007_v21 = vld [vmem:[#allocation114_spill] sm:$0xff]  ;;  %v11100_v29 = vpop.permute.xlu0 %4919  ;;  %s11481_s2 = sld [smem:[#allocation7 + $0x88]] }
 0x6b3   : > { %13001 = vst [vmem:[#allocation163_spill] sm:$0xff] %v11084_v19  ;;  %v11089_v52 = vmul.f32 %v10900_v47, %v13002_v13  ;;  %v13003_v44 = vstv %s10123_s1  ;;  %v4400_v48 = vrot.slane %v13004_v59, 4  ;;  %v4422_v28 = vrot.slane %v13006_v18, 4  ;;  %13008 = vst [vmem:[#allocation164_spill] sm:$0xff] %v11100_v29  ;;  %v13012_v19 = vld [vmem:[#allocation119_spill] sm:$0xff]  ;;  %s11475_s1 = sld [smem:[#allocation7 + $0x89]] }
 0x6b4   : > { %5462 = vrot.lane.b32.xlu0 %v6930_v32, %s12937_s12  ;;  %v11094_v56 = vmul.f32 %v10900_v47, %v13003_v44  ;;  %v13005_v32 = vld [vmem:[#allocation113_spill] sm:$0xff]  ;;  %v4421_v23 = vrot.slane %v13007_v21, 4  ;;  %v4444_v12 = vrot.slane %v13009_v42, 4  ;;  %v4443_v13 = vrot.slane %v13010_v36, 4  ;;  %s13099_s22 = sshll.u32 %s13097_s27, 3 }
 0x6b5   : > { %v4399_v58 = vrot.slane %v13005_v32, 4  ;;  %v4466_v11 = vrot.slane %v13011_v40, 4  ;;  %v4465_v20 = vrot.slane %v13012_v19, 4  ;;  %v13013_v44 = vrot.slane %v10507_v25, 10  ;;  %s303_s20 = scalar_lea.vmem %s13100_s8, %s13099_s22 }
 0x6b6   : > { %v4340_v45 = vadd.f32 %v12989_v3, %v4252_v61  ;;  %v4379_v24 = vsel %vm550_vm5, %v4377_v27, %v4378_v30  ;;  %v13014_v43 = vrot.slane %v10512_v33, 10  ;;  %v13015_v2 = vstv %s12809_s29  ;;  %v11127_v61 = vpop.permute.xlu1 %4942  ;;  %v11131_v30 = vpop.permute.xlu0 %4940 }
 0x6b7   : > { %5523 = vrot.lane.b32.xlu1 %v13013_v44, %s12937_s12  ;;  %v11117_v1 = vmul.f32 %v10900_v47, %v13015_v2  ;;  %v13016_v29 = vstv %s10162_s19  ;;  %v4317_v4 = vadd.f32 %v4314_v62, %v4229_v26  ;;  %v4339_v0 = vadd.f32 %v4336_v10, %v4251_v53 }
 0x6b8   : > { %5502 = vrot.lane.b32.xlu0 %v13014_v43, %s12937_s12  ;;  %v11122_v63 = vmul.f32 %v10900_v47, %v13016_v29  ;;  %v4362_v25 = vadd.f32 %v12995_v41, %v4274_v51  ;;  %v4358_v3 = vsel %vm1255_vm8, %v12996_v14, %v4357_v50  ;;  %v4401_v33 = vsel %vm550_vm5, %v4399_v58, %v4400_v48  ;;  %v13017_v41 = vld [vmem:[#allocation122_spill] sm:$0xff] }
 0x6b9   : > { %v4423_v43 = vsel %vm550_vm5, %v4421_v23, %v4422_v28  ;;  %v6951_v2 = vrot.slane %v11089_v52, 11  ;;  %v6948_v47 = vrot.slane %v11094_v56, 11  ;;  %v4380_v53 = vsel %vm1255_vm8, %v13000_v9, %v4379_v24  ;;  %v13021_v58 = vld [vmem:[#allocation142_spill] sm:$0xff] }
 0x6ba   : > { %v4445_v51 = vsel %vm550_vm5, %v4443_v13, %v4444_v12  ;;  %v4467_v26 = vsel %vm550_vm5, %v4465_v20, %v4466_v11  ;;  %v4492_v14 = vrot.slane %v13017_v41, 4  ;;  %v13018_v62 = vrot.slane %v10517_v16, 10  ;;  %v13020_v11 = vld [vmem:[#allocation123_spill] sm:$0xff]  ;;  %v11155_v9 = vpop.permute.xlu1 %4963 }
 0x6bb   : > { %v4361_v27 = vadd.f32 %v4358_v3, %v4273_v35  ;;  %v4384_v10 = vadd.f32 %v12999_v8, %v4296_v22  ;;  %v13019_v50 = vrot.slane %v10522_v15, 10  ;;  %v6957_v48 = vrot.slane %v11117_v1, 11 }
 0x6bc   : > { %5565 = vrot.lane.b32.xlu1 %v13018_v62, %s12937_s12  ;;  %v6954_v24 = vrot.slane %v11122_v63, 11  ;;  %v4406_v12 = vadd.f32 %v13004_v59, %v4318_v60  ;;  %v4402_v20 = vsel %vm1255_vm8, %v13005_v32, %v4401_v33  ;;  %v4424_v16 = vsel %vm1255_vm8, %v13007_v21, %v4423_v43  ;;  %v11162_v60 = vpop.permute.xlu0 %4961  ;;  %v13022_v21 = vld [vmem:[#allocation126_spill] sm:$0xff] }
 0x6bd   : > { %5544 = vrot.lane.b32.xlu0 %v13019_v50, %s12937_s12  ;;  %v4480_v35 = vrot.slane %v13020_v11, 4  ;;  %v4383_v22 = vadd.f32 %v4380_v53, %v4295_v31  ;;  %v4446_v15 = vsel %vm1255_vm8, %v13010_v36, %v4445_v51  ;;  %v4468_v8 = vsel %vm1255_vm8, %v13012_v19, %v4467_v26  ;;  %v13025_v51 = vld [vmem:[#allocation149_spill] sm:$0xff] }
 0x6be   : > { %v4516_v28 = vrot.slane %v13021_v58, 4  ;;  %v4428_v59 = vadd.f32 %v13006_v18, %v4340_v45  ;;  %v4493_v32 = vsel %vm338_vm4, %v4492_v14, %v13017_v41  ;;  %v4504_v23 = vrot.slane %v13022_v21, 4  ;;  %v11180_v53 = vpop.permute.xlu1 %4984 }
 0x6bf   : > { %v4544_v29 = vrot.slane %v10601_v6, 4  ;;  %v13023_v31 = vrot.slane %v11031_v55, 10  ;;  %v4405_v36 = vadd.f32 %v4402_v20, %v4317_v4  ;;  %v4427_v13 = vadd.f32 %v4424_v16, %v4339_v0 }
 0x6c0   : > { %v4450_v19 = vadd.f32 %v13009_v42, %v4362_v25  ;;  %v4472_v44 = vadd.f32 %v13011_v40, %v4384_v10  ;;  %v13024_v45 = vrot.slane %v11041_v17, 10  ;;  %v4449_v18 = vadd.f32 %v4446_v15, %v4361_v27  ;;  %v11185_v42 = vpop.permute.xlu0 %4982 }
 0x6c1   : > { %5525 = vrot.lane.b32.xlu1 %v13023_v31, %s12937_s12  ;;  %v4471_v3 = vadd.f32 %v4468_v8, %v4383_v22  ;;  %v4481_v33 = vsel %vm338_vm4, %v4480_v35, %v13020_v11  ;;  %v4530_v43 = vrot.slane %v10607_v54, 4  ;;  %v4496_v55 = vadd.f32 %v4493_v32, %v4427_v13 }
 0x6c2   : > { %5504 = vrot.lane.b32.xlu0 %v13024_v45, %s12937_s12  ;;  %v4497_v4 = vadd.f32 %v4492_v14, %v4428_v59  ;;  %v4517_v0 = vsel %vm338_vm4, %v4516_v28, %v13021_v58  ;;  %v4572_v40 = vrot.slane %v10652_v34, 4  ;;  %v4505_v17 = vsel %vm338_vm4, %v4504_v23, %v13022_v21  ;;  %v11203_v15 = vpop.permute.xlu1 %5005  ;;  %v13029_v21 = vld [vmem:[#allocation124_spill] sm:$0xff] }
 0x6c3   : > { %v4545_v25 = vsel %vm338_vm4, %v4544_v29, %v10601_v6  ;;  %v4558_v26 = vrot.slane %v13025_v51, 4  ;;  %v4600_v41 = vrot.slane %v10679_v46, 4  ;;  %v13026_v14 = vrot.slane %v11048_v7, 10 }
 0x6c4   : > { %v4484_v62 = vadd.f32 %v4481_v33, %v4405_v36  ;;  %v4485_v27 = vadd.f32 %v4480_v35, %v4406_v12  ;;  %v4521_v10 = vadd.f32 %v4516_v28, %v4472_v44  ;;  %v4586_v50 = vrot.slane %v10687_v49, 4  ;;  %v11207_v35 = vpop.permute.xlu0 %5003  ;;  %v13031_v36 = vld [vmem:[#allocation151_spill] sm:$0xff] }
 0x6c5   : > { %5567 = vrot.lane.b32.xlu1 %v13026_v14, %s12937_s12  ;;  %v13027_v20 = vrot.slane %v11053_v5, 10  ;;  %v4520_v16 = vadd.f32 %v4517_v0, %v4471_v3  ;;  %v4509_v11 = vadd.f32 %v4504_v23, %v4450_v19  ;;  %v4531_v6 = vsel %vm338_vm4, %v4530_v43, %v10607_v54  ;;  %v13028_v54 = vld [vmem:[#allocation150_spill] sm:$0xff]  ;;  %v13032_v19 = vld [vmem:[#allocation125_spill] sm:$0xff] }
 0x6c6   : > { %v4628_v22 = vrot.slane %v10709_v37, 4  ;;  %v4508_v7 = vadd.f32 %v4505_v17, %v4449_v18  ;;  %v4548_v8 = vadd.f32 %v4545_v25, %v4496_v55  ;;  %v4549_v58 = vadd.f32 %v4544_v29, %v4497_v4  ;;  %v11227_v33 = vpop.permute.xlu1 %5026 }
 0x6c7   : > { %5546 = vrot.lane.b32.xlu0 %v13027_v20, %s12937_s12  ;;  %v4573_v12 = vsel %vm338_vm4, %v4572_v40, %v10652_v34  ;;  %v4535_v28 = vadd.f32 %v4530_v43, %v4485_v27  ;;  %v4559_v5 = vsel %vm338_vm4, %v4558_v26, %v13025_v51  ;;  %v4601_v59 = vsel %vm338_vm4, %v4600_v41, %v10679_v46  ;;  %v13037_v20 = vld [vmem:[#allocation140_spill] sm:$0xff] }
 0x6c8   : > { %v4614_v32 = vrot.slane %v13028_v54, 4  ;;  %v13030_v23 = vrot.slane %v13029_v21, 11  ;;  %v4534_v31 = vadd.f32 %v4531_v6, %v4484_v62  ;;  %v4577_v29 = vadd.f32 %v4572_v40, %v4521_v10  ;;  %v11229_v0 = vpop.permute.xlu0 %5024  ;;  %v13036_v10 = vld [vmem:[#allocation147_spill] sm:$0xff]  ;;  %v13039_v6 = vld [vmem:[#allocation165_spill] sm:$0xff] }
 0x6c9   : > { %v4587_v34 = vsel %vm338_vm4, %v4586_v50, %v10687_v49  ;;  %v4656_v13 = vrot.slane %v13031_v36, 4  ;;  %v13033_v44 = vrot.slane %v13032_v19, 11  ;;  %v4576_v45 = vadd.f32 %v4573_v12, %v4520_v16 }
 0x6ca   : > { %5607 = vrot.lane.b32.xlu1 %v13030_v23, %s12937_s12  ;;  %v4629_v46 = vsel %vm338_vm4, %v4628_v22, %v10709_v37  ;;  %v4642_v18 = vrot.slane %v10744_v57, 4  ;;  %v4684_v3 = vrot.slane %v10761_v38, 4  ;;  %v4562_v43 = vadd.f32 %v4559_v5, %v4508_v7  ;;  %v13034_v37 = vld [vmem:[#allocation139_spill] sm:$0xff] }
 0x6cb   : > { %5586 = vrot.lane.b32.xlu0 %v13033_v44, %s12937_s12  ;;  %v4563_v55 = vadd.f32 %v4558_v26, %v4509_v11  ;;  %v4604_v4 = vadd.f32 %v4601_v59, %v4548_v8  ;;  %v4605_v49 = vadd.f32 %v4600_v41, %v4549_v58  ;;  %v4590_v40 = vadd.f32 %v4587_v34, %v4534_v31  ;;  %v13040_v8 = vld [vmem:[#allocation158_spill] sm:$0xff]  ;;  %v13041_v59 = vld [vmem:[#allocation152_spill] sm:$0xff] }
 0x6cc   : > { %v4591_v17 = vadd.f32 %v4586_v50, %v4535_v28  ;;  %v4615_v25 = vsel %vm338_vm4, %v4614_v32, %v13028_v54  ;;  %v4755_v51 = vrot.slane %v10873_v39, 4  ;;  %v13035_v14 = vrot.slane %v13034_v37, 11  ;;  %v11256_v21 = vpop.permute.xlu0 %5041 }
 0x6cd   : > { %v4632_v62 = vadd.f32 %v4629_v46, %v4576_v45  ;;  %v4633_v27 = vadd.f32 %v4628_v22, %v4577_v29  ;;  %v4657_v26 = vsel %vm338_vm4, %v4656_v13, %v13031_v36  ;;  %v4670_v41 = vrot.slane %v13036_v10, 4  ;;  %v11249_v22 = vpop.permute.xlu1 %5043  ;;  %v13043_v29 = vld [vmem:[#allocation164_spill] sm:$0xff] }
 0x6ce   : > { %5649 = vrot.lane.b32.xlu1 %v13035_v14, %s12937_s12  ;;  %v13038_v16 = vrot.slane %v13037_v20, 11  ;;  %v4643_v50 = vsel %vm338_vm4, %v4642_v18, %v10744_v57  ;;  %v4685_v11 = vsel %vm338_vm4, %v4684_v3, %v10761_v38  ;;  %v4704_v7 = vrot.slane %v13039_v6, 4  ;;  %v13042_v38 = vld [vmem:[#allocation156_spill] sm:$0xff] }
 0x6cf   : > { %v4839_v58 = vrot.slane %v13040_v8, 4  ;;  %v4618_v12 = vadd.f32 %v4615_v25, %v4562_v43  ;;  %v11251_v28 = vadd.f32 %v4614_v32, %v4563_v55  ;;  %v11253_v5 = vadd.f32 %v4656_v13, %v4605_v49 }
 0x6d0   : > { %5628 = vrot.lane.b32.xlu0 %v13038_v16, %s12937_s12  ;;  %v4721_v54 = vrot.slane %v13041_v59, 4  ;;  %v4660_v23 = vadd.f32 %v4657_v26, %v4604_v4  ;;  %v4756_v57 = vsel %vm1818_vm9, %v4755_v51, %v10873_v39  ;;  %v4776_v31 = vrot.slane %v13042_v38, 4  ;;  %v13046_v4 = vld [vmem:[#allocation176_spill] sm:$0xff] }
 0x6d1   : > { %v4923_v34 = vrot.slane %v13043_v29, 4  ;;  %v4646_v32 = vadd.f32 %v4643_v50, %v4590_v40  ;;  %v11267_v36 = vadd.f32 %v4642_v18, %v4591_v17  ;;  %v4688_v13 = vadd.f32 %v4685_v11, %v4632_v62  ;;  %v11286_v18 = vpop.permute.xlu1 %5060  ;;  %v11294_v40 = vpop.permute.xlu0 %5058 }
 0x6d2   : > { %5609 = vrot.lane.b32.xlu1 %v6951_v2, %s12937_s12  ;;  %v4671_v19 = vsel %vm338_vm4, %v4670_v41, %v13036_v10  ;;  %v4705_v44 = vsel %vm1818_vm9, %v4704_v7, %v13039_v6  ;;  %v4840_v52 = vsel %vm1818_vm9, %v4839_v58, %v13040_v8  ;;  %v13044_v2 = vld [vmem:[#allocation184_spill] sm:$0xff]  ;;  %v12124_v46 = vrot.slane %v11207_v35, 4 }
 0x6d3   : > { %v12125_v45 = vrot.slane %v13044_v2, 4  ;;  %v4722_v56 = vsel %vm1818_vm9, %v4721_v54, %v13041_v59  ;;  %v4760_v55 = vadd.f32 %v4756_v57, %v4688_v13  ;;  %v12120_v49 = vrot.slane %v13046_v4, 4 }
 0x6d4   : > { %5588 = vrot.lane.b32.xlu0 %v6948_v47, %s12937_s12  ;;  %v13045_v47 = vld [vmem:[#allocation170_spill] sm:$0xff]  ;;  %v11296_v17 = vadd.f32 %v4684_v3, %v4633_v27  ;;  %v4777_v25 = vsel %vm1818_vm9, %v4776_v31, %v13042_v38  ;;  %v4924_v37 = vsel %vm1818_vm9, %v4923_v34, %v13043_v29  ;;  %v12121_v14 = vrot.slane %v11131_v30, 4  ;;  %v13047_v27 = vld [vmem:[#allocation161_spill] sm:$0xff] }
 0x6d5   : > { %v12122_v43 = vrot.slane %v13045_v47, 4  ;;  %v4674_v62 = vadd.f32 %v4671_v19, %v4618_v12  ;;  %v4709_v26 = vadd.f32 %v4705_v44, %v4646_v32  ;;  %v4844_v3 = vadd.f32 %v4840_v52, %v4760_v55  ;;  %v5078_v11 = vpop.permute.xlu1 %5077  ;;  %v5076_v57 = vpop.permute.xlu0 %5075  ;;  %v13048_v32 = vld [vmem:[#allocation182_spill] sm:$0xff] }
 0x6d6   : > { %5651 = vrot.lane.b32.xlu1 %v6957_v48, %s12937_s12  ;;  %v12123_v20 = vrot.slane %v13047_v27, 4  ;;  %v4726_v16 = vadd.f32 %v4722_v56, %v4660_v23  ;;  %v4861_v50 = vsel %vm1818_vm9, %v12125_v45, %v13044_v2  ;;  %v5008_v1 = vsel %vm1818_vm9, %v12124_v46, %v11207_v35  ;;  %v13050_v56 = vld [vmem:[#allocation127_spill] sm:$0xff] }
 0x6d7   : > { %v5028_v48 = vrot.slane %v11229_v0, 4  ;;  %v4739_v63 = vsel %vm1818_vm9, %v12122_v43, %v13045_v47  ;;  %v4798_v12 = vsel %vm1818_vm9, %v12120_v49, %v13046_v4  ;;  %v4928_v23 = vadd.f32 %v4924_v37, %v4844_v3  ;;  %v13051_v37 = vld [vmem:[#allocation162_spill] sm:$0xff]  ;;  %v13052_v49 = vld [vmem:[#allocation143_spill] sm:$0xff] }
 0x6d8   : > { %5630 = vrot.lane.b32.xlu0 %v6954_v24, %s12937_s12  ;;  %v4781_v24 = vadd.f32 %v4777_v25, %v4709_v26  ;;  %v4818_v13 = vrot.slane %v13048_v32, 4  ;;  %v4945_v19 = vsel %vm1818_vm9, %v12121_v14, %v11131_v30  ;;  %v12128_v44 = vrot.slane %v11162_v60, 4 }
 0x6d9   : > { %v5079_v52 = vrot.slane %v5076_v57, 4  ;;  %v4882_v25 = vsel %vm1818_vm9, %v12123_v20, %v13047_v27  ;;  %v12126_v26 = vrot.slane %v13051_v37, 4  ;;  %v5012_v3 = vadd.f32 %v5008_v1, %v4928_v23  ;;  %v5097_v23 = vpop.permute.xlu0 %5096 }
 0x6da   : > { %5685 = vrot.lane.b32.xlu1 %v13050_v56, %s13049_s0  ;;  %v4865_v55 = vadd.f32 %v4861_v50, %v4781_v24  ;;  %v5029_v14 = vsel %vm2150_vm10, %v5028_v48, %v11229_v0  ;;  %v12127_v43 = vrot.slane %v11256_v21, 4  ;;  %v5099_v56 = vpop.permute.xlu1 %5098  ;;  %v4743_v20 = vadd.f32 %v4739_v63, %v4674_v62  ;;  %v13053_v62 = vld [vmem:[#allocation144_spill] sm:$0xff] }
 0x6db   : > { %v5080_v50 = vsel %vm2150_vm10, %v5079_v52, %v5076_v57  ;;  %v11353_v24 = vsel %vm2150_vm10, %v5079_v52, %v5078_v11  ;;  %v4802_v46 = vadd.f32 %v4798_v12, %v4726_v16  ;;  %v4966_v57 = vsel %vm1818_vm9, %v12128_v44, %v11162_v60  ;;  %v13054_v16 = vld [vmem:[#allocation154_spill] sm:$0xff]  ;;  %v13057_v44 = vld [vmem:[#allocation157_spill] sm:$0xff] }
 0x6dc   : > { %5668 = vrot.lane.b32.xlu0 %v13052_v49, %s13049_s0  ;;  %v4949_v45 = vadd.f32 %v4945_v19, %v4865_v55  ;;  %v11355_v1 = vadd.f32 %v5080_v50, %v5012_v3  ;;  %v4819_v49 = vsel %vm1818_vm9, %v4818_v13, %v13048_v32  ;;  %v4986_v11 = vrot.slane %v11185_v42, 4  ;;  %v13055_v3 = vld [vmem:[#allocation145_spill] sm:$0xff]  ;;  %v13082_v32 = vld [vmem:[#allocation187_spill] sm:$0xff] }
 0x6dd   : > { %v5100_v52 = vrot.slane %v5097_v23, 4  ;;  %v4757_v63 = vsel %vm1818_vm9, %v4755_v51, %v13054_v16  ;;  %v4886_v12 = vadd.f32 %v4882_v25, %v4802_v46  ;;  %v4903_v19 = vsel %vm1818_vm9, %v12126_v26, %v13051_v37  ;;  %v13056_v26 = vld [vmem:[#allocation148_spill] sm:$0xff] }
 0x6de   : > { %5719 = vrot.lane.b32.xlu1 %v13053_v62, %s13049_s0  ;;  %v5033_v55 = vadd.f32 %v5029_v14, %v4949_v45  ;;  %v5046_v50 = vsel %vm2150_vm10, %v12127_v43, %v11256_v21  ;;  %v5062_v62 = vrot.slane %v11294_v40, 4  ;;  %v5120_v46 = vpop.permute.xlu1 %5119  ;;  %v4675_v45 = vadd.f32 %v4670_v41, %v11251_v28  ;;  %v13058_v28 = vld [vmem:[#allocation102_spill] sm:$0xff] }
 0x6df   : > { %v5101_v39 = vsel %vm2150_vm10, %v5100_v52, %v5097_v23  ;;  %v11385_v51 = vsel %vm2150_vm10, %v5100_v52, %v5099_v56  ;;  %v4823_v14 = vadd.f32 %v4819_v49, %v4743_v20  ;;  %v4970_v25 = vadd.f32 %v4966_v57, %v4886_v12  ;;  %v13059_v23 = vld [vmem:[#allocation155_spill] sm:$0xff] }
 0x6e0   : > { %5702 = vrot.lane.b32.xlu0 %v13055_v3, %s13049_s0  ;;  %v11390_v16 = vadd.f32 %v5101_v39, %v5033_v55  ;;  %v5118_v3 = vpop.permute.xlu0 %5117  ;;  %v4706_v43 = vsel %vm1818_vm9, %v4704_v7, %v13056_v26  ;;  %v4841_v56 = vsel %vm1818_vm9, %v4839_v58, %v13057_v44  ;;  %v4987_v10 = vsel %vm1818_vm9, %v4986_v11, %v11185_v42  ;;  %v13060_v58 = vld [vmem:[#allocation73_spill] sm:$0xff]  ;;  %v13061_v44 = vld [vmem:[#allocation163_spill] sm:$0xff] }
 0x6e1   : > { %v5121_v41 = vrot.slane %v5118_v3, 4  ;;  %v4761_v20 = vadd.f32 %v4757_v63, %v11296_v17  ;;  %v4778_v6 = vsel %vm1818_vm9, %v4776_v31, %v13059_v23  ;;  %v4907_v7 = vadd.f32 %v4903_v19, %v4823_v14  ;;  %v13062_v19 = vld [vmem:[#allocation167_spill] sm:$0xff] }
 0x6e2   : > { %5687 = vrot.lane.b32.xlu1 %v13058_v28, %s13049_s0  ;;  %v5050_v8 = vadd.f32 %v5046_v50, %v4970_v25  ;;  %v4925_v26 = vsel %vm1818_vm9, %v4923_v34, %v13061_v44  ;;  %v5063_v17 = vsel %vm2150_vm10, %v5062_v62, %v11294_v40  ;;  %v5141_v31 = vpop.permute.xlu1 %5140  ;;  %v4710_v57 = vadd.f32 %v4706_v43, %v11267_v36  ;;  %v13063_v55 = vld [vmem:[#allocation159_spill] sm:$0xff]  ;;  %v13067_v25 = vld [vmem:[#allocation153_spill] sm:$0xff] }
 0x6e3   : > { %v5122_v49 = vsel %vm2150_vm10, %v5121_v41, %v5118_v3  ;;  %v11423_v38 = vsel %vm2150_vm10, %v5121_v41, %v5120_v46  ;;  %v4845_v52 = vadd.f32 %v4841_v56, %v4761_v20  ;;  %v4991_v63 = vadd.f32 %v4987_v10, %v4907_v7  ;;  %v13066_v14 = vld [vmem:[#allocation103_spill] sm:$0xff]  ;;  %v13070_v41 = vld [vmem:[#allocation172_spill] sm:$0xff] }
 0x6e4   : > { %5670 = vrot.lane.b32.xlu0 %v13060_v58, %s13049_s0  ;;  %v11426_v12 = vadd.f32 %v5122_v49, %v5050_v8  ;;  %v5139_v29 = vpop.permute.xlu0 %5138  ;;  %v4723_v34 = vsel %vm1818_vm9, %v4721_v54, %v13062_v19  ;;  %v13064_v50 = vrot.slane %v13044_v2, 4  ;;  %v13065_v46 = vrot.slane %v11207_v35, 4  ;;  %v13069_v2 = vld [vmem:[#allocation75_spill] sm:$0xff] }
 0x6e5   : > { %v5142_v43 = vrot.slane %v5139_v29, 4  ;;  %v13068_v3 = vrot.slane %v13045_v47, 4  ;;  %v4782_v54 = vadd.f32 %v4778_v6, %v4710_v57  ;;  %v4929_v56 = vadd.f32 %v4925_v26, %v4845_v52  ;;  %v13073_v26 = vld [vmem:[#allocation160_spill] sm:$0xff] }
 0x6e6   : > { %v4862_v39 = vsel %vm1818_vm9, %v13064_v50, %v13063_v55  ;;  %v5009_v36 = vsel %vm1818_vm9, %v13065_v46, %v11203_v15  ;;  %5721 = vrot.lane.b32.xlu1 %v13066_v14, %s13049_s0  ;;  %v5067_v10 = vadd.f32 %v5063_v17, %v4991_v63  ;;  %v13071_v35 = vrot.slane %v13046_v4, 4  ;;  %v5162_v6 = vpop.permute.xlu1 %5161 }
 0x6e7   : > { %v4740_v59 = vsel %vm1818_vm9, %v13068_v3, %v13067_v25  ;;  %v13072_v28 = vrot.slane %v11131_v30, 4  ;;  %v5143_v47 = vsel %vm2150_vm10, %v5142_v43, %v5139_v29  ;;  %v11458_v23 = vsel %vm2150_vm10, %v5142_v43, %v5141_v31  ;;  %v13075_v31 = vld [vmem:[#allocation128_spill] sm:$0xff] }
 0x6e8   : > { %5704 = vrot.lane.b32.xlu0 %v13069_v2, %s13049_s0  ;;  %v4799_v15 = vsel %vm1818_vm9, %v13071_v35, %v13070_v41  ;;  %v4727_v7 = vadd.f32 %v4723_v34, %v11253_v5  ;;  %v4866_v8 = vadd.f32 %v4862_v39, %v4782_v54  ;;  %v5013_v58 = vadd.f32 %v5009_v36, %v4929_v56  ;;  %v5160_v4 = vpop.permute.xlu0 %5159  ;;  %v13077_v5 = vld [vmem:[#allocation146_spill] sm:$0xff]  ;;  %v13078_v34 = vld [vmem:[#allocation129_spill] sm:$0xff] }
 0x6e9   : > { %v4946_v20 = vsel %vm1818_vm9, %v13072_v28, %v11127_v61  ;;  %v11461_v44 = vadd.f32 %v5143_v47, %v5067_v10  ;;  %v13074_v17 = vrot.slane %v13047_v27, 4  ;;  %v5030_v61 = vsel %vm2150_vm10, %v5028_v48, %v11227_v33  ;;  %v13080_v33 = vld [vmem:[#allocation179_spill] sm:$0xff]  ;;  %v13085_v54 = vld [vmem:[#allocation130_spill] sm:$0xff] }
 0x6ea   : > { %v5163_v49 = vrot.slane %v5160_v4, 4  ;;  %v13076_v57 = vrot.slane %v13075_v31, 9  ;;  %v6969_v52 = vrot.slane %v13077_v5, 9  ;;  %v4744_v63 = vadd.f32 %v4740_v59, %v4675_v45  ;;  %v5183_v39 = vpop.permute.xlu1 %5182  ;;  %v13090_v47 = vld [vmem:[#allocation78_spill] sm:$0xff] }
 0x6eb   : > { %v4883_v30 = vsel %vm1818_vm9, %v13074_v17, %v13073_v26  ;;  %v4803_v29 = vadd.f32 %v4799_v15, %v4727_v7  ;;  %v4950_v19 = vadd.f32 %v4946_v20, %v4866_v8  ;;  %v5085_v27 = vadd.f32 %v11353_v24, %v5013_v58 }
 0x6ec   : > { %5761 = vrot.lane.b32.xlu1 %v13076_v57, %s13049_s0  ;;  %v13079_v55 = vrot.slane %v13078_v34, 9  ;;  %v4820_v0 = vsel %vm1818_vm9, %v4818_v13, %v13080_v33  ;;  %v13081_v48 = vrot.slane %v11162_v60, 4  ;;  %v5164_v50 = vsel %vm2150_vm10, %v5163_v49, %v5160_v4  ;;  %v5181_v14 = vpop.permute.xlu0 %5180 }
 0x6ed   : > { %v5165_v24 = vsel %vm2150_vm10, %v5163_v49, %v5162_v6  ;;  %v4887_v46 = vadd.f32 %v4883_v30, %v4803_v29  ;;  %v5034_v36 = vadd.f32 %v5030_v61, %v4950_v19  ;;  %v11494_v43 = vadd.f32 %v5164_v50, %v11355_v1  ;;  %v13087_v1 = vld [vmem:[#allocation70_spill] sm:$0xff]  ;;  %v13091_v61 = vld [vmem:[#allocation107_spill] sm:$0xff] }
 0x6ee   : > { %5740 = vrot.lane.b32.xlu0 %v13079_v55, %s13049_s0  ;;  %v4967_v45 = vsel %vm1818_vm9, %v13081_v48, %v11155_v9  ;;  %v11496_v25 = vadd.f32 %v5165_v24, %v5085_v27  ;;  %v13083_v13 = vrot.slane %v13051_v37, 4  ;;  %v13084_v9 = vrot.slane %v11256_v21, 4  ;;  %v13089_v37 = vld [vmem:[#allocation105_spill] sm:$0xff] }
 0x6ef   : > { %v5184_v59 = vrot.slane %v5181_v14, 4  ;;  %v13086_v56 = vrot.slane %v13085_v54, 9  ;;  %v13088_v10 = vstv %s12844_s16  ;;  %v4824_v41 = vadd.f32 %v4820_v0, %v4744_v63 }
 0x6f0   : > { %v4904_v60 = vsel %vm1818_vm9, %v13083_v13, %v13082_v32  ;;  %v5047_v3 = vsel %vm2150_vm10, %v13084_v9, %v11249_v22  ;;  %v5775_v2 = vmul.f32 %v13088_v10, %v13087_v1  ;;  %v4971_v35 = vadd.f32 %v4967_v45, %v4887_v46  ;;  %v5202_v4 = vpop.permute.xlu0 %5201 }
 0x6f1   : > { %5803 = vrot.lane.b32.xlu1 %v13086_v56, %s13049_s0  ;;  %v5106_v15 = vadd.f32 %v11385_v51, %v5034_v36  ;;  %v6967_v28 = vrot.slane %v13089_v37, 9  ;;  %v4988_v22 = vsel %vm1818_vm9, %v4986_v11, %v11180_v53  ;;  %v5185_v21 = vsel %vm2150_vm10, %v5184_v59, %v5181_v14  ;;  %v5204_v51 = vpop.permute.xlu1 %5203 }
 0x6f2   : > { %5782 = vrot.lane.b32.xlu0 %v6969_v52, %s13049_s0  ;;  %v5186_v20 = vsel %vm2150_vm10, %v5184_v59, %v5183_v39  ;;  %v6964_v6 = vrot.slane %v13090_v47, 9  ;;  %v4908_v7 = vadd.f32 %v4904_v60, %v4824_v41  ;;  %v5051_v8 = vadd.f32 %v5047_v3, %v4971_v35 }
 0x6f3   : > { %v11527_v58 = vadd.f32 %v5185_v21, %v11390_v16  ;;  %v11529_v26 = vadd.f32 %v5186_v20, %v5106_v15  ;;  %v5064_v53 = vsel %vm2150_vm10, %v5062_v62, %v11286_v18  ;;  %v5205_v42 = vrot.slane %v5202_v4, 4  ;;  %v13092_v62 = vld [vmem:[#allocation141_spill] sm:$0xff] }
 0x6f4   : > { %v5836_v11 = vstv %s11475_s1  ;;  %v4992_v17 = vadd.f32 %v4988_v22, %v4908_v7  ;;  %v5127_v30 = vadd.f32 %v11423_v38, %v5051_v8  ;;  %v6973_v16 = vrot.slane %v13091_v61, 9  ;;  %v5223_v63 = vpop.permute.xlu0 %5222 }
 0x6f5   : > { %5763 = vrot.lane.b32.xlu1 %v6967_v28, %s13049_s0  ;;  %v5815_v49 = vstv %s11481_s2  ;;  %v5206_v31 = vsel %vm2150_vm10, %v5205_v42, %v5202_v4  ;;  %v5207_v40 = vsel %vm2150_vm10, %v5205_v42, %v5204_v51  ;;  %v5225_v57 = vpop.permute.xlu1 %5224  ;;  %v6970_v18 = vrot.slane %v5775_v2, 9 }
 0x6f6   : > { %5742 = vrot.lane.b32.xlu0 %v6964_v6, %s13049_s0  ;;  %v5837_v5 = vmul.f32 %v5836_v11, %v13092_v62  ;;  %v11545_v52 = vadd.f32 %v5206_v31, %v11426_v12  ;;  %v5816_v38 = vmul.f32 %v5815_v49, %v13092_v62  ;;  %v5068_v29 = vadd.f32 %v5064_v53, %v4992_v17 }
 0x6f7   : > { %v5211_v19 = vadd.f32 %v5207_v40, %v5127_v30  ;;  %v5226_v27 = vrot.slane %v5223_v63, 4  ;;  %v5878_v34 = vstv %s11515_s6  ;;  %v5857_v55 = vstv %s11517_s21 }
 0x6f8   : > { %v5148_v33 = vadd.f32 %v11458_v23, %v5068_v29  ;;  %v6978_v45 = vrot.slane %v5837_v5, 10  ;;  %v5879_v12 = vmul.f32 %v5878_v34, %v13092_v62  ;;  %v5244_v39 = vpop.permute.xlu0 %5243  ;;  %v6975_v46 = vrot.slane %v5816_v38, 10 }
 0x6f9   : > { %5805 = vrot.lane.b32.xlu1 %v6973_v16, %s13049_s0  ;;  %v5227_v0 = vsel %vm2150_vm10, %v5226_v27, %v5223_v63  ;;  %v5246_v48 = vpop.permute.xlu1 %5245  ;;  %v5228_v50 = vsel %vm2150_vm10, %v5226_v27, %v5225_v57  ;;  %v5858_v36 = vmul.f32 %v5857_v55, %v13092_v62  ;;  %v5247_v32 = vrot.slane %v5244_v39, 4 }
 0x6fa   : > { %5784 = vrot.lane.b32.xlu0 %v6970_v18, %s13049_s0  ;;  %v5231_v24 = vadd.f32 %v5227_v0, %v11461_v44  ;;  %v11558_v14 = vadd.f32 %v5228_v50, %v5148_v33  ;;  %v6984_v60 = vrot.slane %v5879_v12, 10  ;;  %v5838_v44 = vmul.f32 %v5836_v11, %v13087_v1 }
 0x6fb   : > { %v5248_v23 = vsel %vm2150_vm10, %v5247_v32, %v5244_v39  ;;  %v5249_v9 = vsel %vm2150_vm10, %v5247_v32, %v5246_v48  ;;  %v6981_v54 = vrot.slane %v5858_v36, 10  ;;  %v5817_v56 = vmul.f32 %v5815_v49, %v13087_v1 }
 0x6fc   : > { %v5252_v3 = vadd.f32 %v5248_v23, %v11494_v43  ;;  %v5265_v59 = vpop.permute.xlu0 %5264  ;;  %v5253_v10 = vadd.f32 %v5249_v9, %v11496_v25  ;;  %v5880_v41 = vmul.f32 %v5878_v34, %v13087_v1  ;;  %v6979_v15 = vrot.slane %v5838_v44, 10 }
 0x6fd   : > { %5845 = vrot.lane.b32.xlu1 %v6978_v45, %s13049_s0  ;;  %v5267_v13 = vpop.permute.xlu1 %5266  ;;  %v5268_v2 = vrot.slane %v5265_v59, 4  ;;  %v5859_v37 = vmul.f32 %v5857_v55, %v13087_v1  ;;  %v6976_v21 = vrot.slane %v5817_v56, 10  ;;  %v5920_v6 = vstv %s11562_s25 }
 0x6fe   : > { %5824 = vrot.lane.b32.xlu0 %v6975_v46, %s13049_s0  ;;  %v6985_v47 = vrot.slane %v5880_v41, 10  ;;  %v5899_v7 = vstv %s11564_s11  ;;  %v5962_v31 = vstv %s11575_s18  ;;  %v5941_v40 = vstv %s11577_s24 }
 0x6ff   : > { %v5269_v43 = vsel %vm2150_vm10, %v5268_v2, %v5265_v59  ;;  %v5270_v25 = vsel %vm2150_vm10, %v5268_v2, %v5267_v13  ;;  %v6982_v53 = vrot.slane %v5859_v37, 10  ;;  %v5900_v30 = vmul.f32 %v5899_v7, %v13092_v62  ;;  %v6998_v37 = vld [vmem:[%s13093_s26 + $0x1] ss:$4 sm:$0x3] }
 0x700   : > { %v5273_v28 = vadd.f32 %v5269_v43, %v11527_v58  ;;  %v5286_v22 = vpop.permute.xlu0 %5285  ;;  %v11584_v20 = vadd.f32 %v5270_v25, %v11529_v26  ;;  %v5921_v58 = vmul.f32 %v5920_v6, %v13092_v62  ;;  %v5942_v34 = vmul.f32 %v5941_v40, %v13092_v62  ;;  %v13094_v43 = vld [vmem:[#allocation14_spill] sm:$0xff] }
 0x701   : > { %5887 = vrot.lane.b32.xlu1 %v6984_v60, %s13049_s0  ;;  %v5288_v35 = vpop.permute.xlu1 %5287  ;;  %v5289_v51 = vrot.slane %v5286_v22, 4  ;;  %v6987_v27 = vrot.slane %v5900_v30, 11  ;;  %v7173_v0 = vmov 286326784   ;;  %v5943_v2 = vmul.f32 %v5941_v40, %v13087_v1 }
 0x702   : > { %5866 = vrot.lane.b32.xlu0 %v6981_v54, %s13049_s0  ;;  %v6990_v63 = vrot.slane %v5921_v58, 11  ;;  %v5985_v48 = vunpack.c.l.s4 %v7173_v0  ;;  %v6993_v36 = vrot.slane %v5942_v34, 11 }
 0x703   : > { %v5290_v8 = vsel %vm2150_vm10, %v5289_v51, %v5286_v22  ;;  %v5291_v42 = vsel %vm2150_vm10, %v5289_v51, %v5288_v35  ;;  %v5982_v51 = vld [vmem:[%s13093_s26] ss:$4 sm:$0x3] }
 0x704   : > { %v5294_v26 = vadd.f32 %v5290_v8, %v11545_v52  ;;  %v5307_v17 = vpop.permute.xlu0 %5306  ;;  %v5295_v61 = vadd.f32 %v5291_v42, %v5211_v19  ;;  %v5963_v52 = vmul.f32 %v5962_v31, %v13092_v62  ;;  %v5901_v62 = vmul.f32 %v5899_v7, %v13087_v1 }
 0x705   : > { %5847 = vrot.lane.b32.xlu1 %v6979_v15, %s13049_s0  ;;  %v5328_v4 = vpop.permute.xlu1 %5327  ;;  %v5310_v16 = vrot.slane %v5307_v17, 4  ;;  %v5986_v23 = vunpack.c.0.s8 %v5985_v48  ;;  %v6994_v7 = vrot.slane %v5943_v2, 11 }
 0x706   : > { %5826 = vrot.lane.b32.xlu0 %v6976_v21, %s13049_s0  ;;  %v5331_v11 = vrot.slane %v5328_v4, 4  ;;  %v6996_v50 = vrot.slane %v5963_v52, 11 }
 0x707   : > { %v5311_v18 = vsel %vm2150_vm10, %v5310_v16, %v5307_v17  ;;  %v5989_v35 = vsub.s32 %v5986_v23, %v13094_v43  ;;  %v7000_v17 = vld [vmem:[%s13093_s26 + $0x2] ss:$4 sm:$0x3] }
 0x708   : > { %v5332_v49 = vsel %vm2150_vm10, %v5331_v11, %v5328_v4  ;;  %v5315_v38 = vadd.f32 %v5311_v18, %v5231_v24  ;;  %v5309_v19 = vpop.permute.xlu0 %5308  ;;  %v5922_v24 = vmul.f32 %v5920_v6, %v13087_v1 }
 0x709   : > { %5889 = vrot.lane.b32.xlu1 %v6985_v47, %s13049_s0  ;;  %v5336_v57 = vadd.f32 %v5332_v49, %v5252_v3  ;;  %v5330_v5 = vpop.permute.xlu1 %5329  ;;  %v5312_v33 = vsel %vm2150_vm10, %v5310_v16, %v5309_v19  ;;  %v5964_v3 = vmul.f32 %v5962_v31, %v13087_v1  ;;  %v5990_v42 = vrot.slane %v5982_v51, %v5989_v35 }
 0x70a   : > { %5868 = vrot.lane.b32.xlu0 %v6982_v53, %s13049_s0  ;;  %v5333_v29 = vsel %vm2150_vm10, %v5331_v11, %v5330_v5  ;;  %v5316_v45 = vadd.f32 %v5312_v33, %v11558_v14  ;;  %v6991_v9 = vrot.slane %v5922_v24, 11  ;;  %v6040_v53 = vrot.slane %v6998_v37, %v5989_v35 }
 0x70b   : > { %v5337_v55 = vadd.f32 %v5333_v29, %v5253_v10  ;;  %v6988_v10 = vrot.slane %v5901_v62, 11  ;;  %v6997_v21 = vrot.slane %v5964_v3, 11 }
 0x70c   : > { %v5347_v46 = vpop.permute.xlu0 %5346 }
 0x70d   : > { %5929 = vrot.lane.b32.xlu1 %v6990_v63, %s13049_s0  ;;  %v5364_v12 = vpop.permute.xlu1 %5363  ;;  %v5350_v32 = vrot.slane %v5347_v46, 4 }
 0x70e   : > { %5908 = vrot.lane.b32.xlu0 %v6987_v27, %s13049_s0  ;;  %v5367_v39 = vrot.slane %v5364_v12, 4 }
 0x70f   : > { %v5351_v60 = vsel %vm2473_vm11, %v5350_v32, %v5347_v46 }
 0x710   : > { %v5368_v13 = vsel %vm2473_vm11, %v5367_v39, %v5364_v12  ;;  %v5355_v59 = vadd.f32 %v5351_v60, %v5273_v28  ;;  %v5381_v56 = vpop.permute.xlu0 %5380 }
 0x711   : > { %5971 = vrot.lane.b32.xlu1 %v6996_v50, %s13049_s0  ;;  %v5372_v14 = vadd.f32 %v5368_v13, %v5294_v26  ;;  %v5398_v44 = vpop.permute.xlu1 %5397  ;;  %v5384_v41 = vrot.slane %v5381_v56, 4  ;;  %v7002_v26 = vld [vmem:[%s13093_s26 + $0x3] ss:$4 sm:$0x3] }
 0x712   : > { %5950 = vrot.lane.b32.xlu0 %v6993_v36, %s13049_s0  ;;  %v5401_v54 = vrot.slane %v5398_v44, 4 }
 0x713   : > { %v5385_v22 = vsel %vm2473_vm11, %v5384_v41, %v5381_v56 }
 0x714   : > { %v5402_v15 = vsel %vm2473_vm11, %v5401_v54, %v5398_v44  ;;  %v5389_v47 = vadd.f32 %v5385_v22, %v5315_v38  ;;  %v5349_v6 = vpop.permute.xlu0 %5348 }
 0x715   : > { %5931 = vrot.lane.b32.xlu1 %v6991_v9, %s13049_s0  ;;  %v5406_v25 = vadd.f32 %v5402_v15, %v5336_v57  ;;  %v5366_v28 = vpop.permute.xlu1 %5365  ;;  %v5352_v4 = vsel %vm2473_vm11, %v5350_v32, %v5349_v6  ;;  %v6091_v57 = vrot.slane %v7000_v17, %v5989_v35 }
 0x716   : > { %5910 = vrot.lane.b32.xlu0 %v6988_v10, %s13049_s0  ;;  %v5369_v1 = vsel %vm2473_vm11, %v5367_v39, %v5366_v28  ;;  %v5356_v58 = vadd.f32 %v5352_v4, %v11584_v20 }
 0x717   : > { %v5373_v8 = vadd.f32 %v5369_v1, %v5295_v61  ;;  %v6142_v61 = vrot.slane %v7002_v26, %v5989_v35 }
 0x718   : > { %v5383_v16 = vpop.permute.xlu0 %5382 }
 0x719   : > { %5973 = vrot.lane.b32.xlu1 %v6997_v21, %s13049_s0  ;;  %v5400_v11 = vpop.permute.xlu1 %5399  ;;  %v5386_v31 = vsel %vm2473_vm11, %v5384_v41, %v5383_v16 }
 0x71a   : > { %5952 = vrot.lane.b32.xlu0 %v6994_v7, %s13049_s0  ;;  %v5403_v30 = vsel %vm2473_vm11, %v5401_v54, %v5400_v11  ;;  %v5390_v40 = vadd.f32 %v5386_v31, %v5316_v45 }
 0x71b   : > { %v5407_v49 = vadd.f32 %v5403_v30, %v5337_v55 }
 0x71c   : > { %v5419_v5 = vpop.permute.xlu0 %5418 }
 0x71d   : > { %6041 = vrot.lane.b32.xlu1 %v6040_v53, %s13095_s30  ;;  %v5440_v20 = vpop.permute.xlu1 %5439  ;;  %v5422_v63 = vrot.slane %v5419_v5, 4 }
 0x71e   : > { %5991 = vrot.lane.b32.xlu0 %v5990_v42, %s13095_s30  ;;  %v5443_v18 = vrot.slane %v5440_v20, 4 }
 0x71f   : > { %v5423_v29 = vsel %vm2473_vm11, %v5422_v63, %v5419_v5 }
 0x720   : > { %v5444_v52 = vsel %vm2473_vm11, %v5443_v18, %v5440_v20  ;;  %v5427_v27 = vadd.f32 %v5423_v29, %v5355_v59  ;;  %v5461_v55 = vpop.permute.xlu0 %5460 }
 0x721   : > { %6143 = vrot.lane.b32.xlu1 %v6142_v61, %s13095_s30  ;;  %v5448_v38 = vadd.f32 %v5444_v52, %v5372_v14  ;;  %v5482_v19 = vpop.permute.xlu1 %5481  ;;  %v5464_v33 = vrot.slane %v5461_v55, 4 }
 0x722   : > { %6092 = vrot.lane.b32.xlu0 %v6091_v57, %s13095_s30  ;;  %v5485_v34 = vrot.slane %v5482_v19, 4 }
 0x723   : > { %v5465_v45 = vsel %vm2473_vm11, %v5464_v33, %v5461_v55 }
 0x724   : > { %v5486_v0 = vsel %vm2473_vm11, %v5485_v34, %v5482_v19  ;;  %v5469_v50 = vadd.f32 %v5465_v45, %v5389_v47  ;;  %v5421_v39 = vpop.permute.xlu0 %5420 }
 0x725   : > { %v5490_v48 = vadd.f32 %v5486_v0, %v5406_v25  ;;  %v5442_v12 = vpop.permute.xlu1 %5441  ;;  %v5424_v36 = vsel %vm2473_vm11, %v5422_v63, %v5421_v39 }
 0x726   : > { %v5445_v24 = vsel %vm2473_vm11, %v5443_v18, %v5442_v12  ;;  %v5428_v62 = vadd.f32 %v5424_v36, %v5356_v58 }
 0x727   : > { %v5449_v46 = vadd.f32 %v5445_v24, %v5373_v8 }
 0x728   : > { %v5463_v13 = vpop.permute.xlu0 %5462 }
 0x729   : > { %v5484_v32 = vpop.permute.xlu1 %5483  ;;  %v5466_v60 = vsel %vm2473_vm11, %v5464_v33, %v5463_v13 }
 0x72a   : > { %v5487_v23 = vsel %vm2473_vm11, %v5485_v34, %v5484_v32  ;;  %v5470_v44 = vadd.f32 %v5466_v60, %v5390_v40 }
 0x72b   : > { %v5491_v14 = vadd.f32 %v5487_v23, %v5407_v49 }
 0x72c   : > { %v5503_v59 = vpop.permute.xlu0 %5502 }
 0x72d   : > { %v5524_v9 = vpop.permute.xlu1 %5523  ;;  %v5506_v54 = vrot.slane %v5503_v59, 4 }
 0x72e   : > { %v5527_v3 = vrot.slane %v5524_v9, 4 }
 0x72f   : > { %v5507_v2 = vsel %vm2473_vm11, %v5506_v54, %v5503_v59 }
 0x730   : > { %v5528_v56 = vsel %vm2473_vm11, %v5527_v3, %v5524_v9  ;;  %v5511_v43 = vadd.f32 %v5507_v2, %v5427_v27  ;;  %v5545_v15 = vpop.permute.xlu0 %5544 }
 0x731   : > { %v5532_v10 = vadd.f32 %v5528_v56, %v5448_v38  ;;  %v5566_v41 = vpop.permute.xlu1 %5565  ;;  %v5548_v37 = vrot.slane %v5545_v15, 4 }
 0x732   : > { %v5569_v35 = vrot.slane %v5566_v41, 4 }
 0x733   : > { %v5549_v28 = vsel %vm2473_vm11, %v5548_v37, %v5545_v15 }
 0x734   : > { %v5570_v25 = vsel %vm2473_vm11, %v5569_v35, %v5566_v41  ;;  %v5553_v51 = vadd.f32 %v5549_v28, %v5469_v50  ;;  %v5505_v1 = vpop.permute.xlu0 %5504 }
 0x735   : > { %v5574_v22 = vadd.f32 %v5570_v25, %v5490_v48  ;;  %v5526_v21 = vpop.permute.xlu1 %5525  ;;  %v5508_v7 = vsel %vm2473_vm11, %v5506_v54, %v5505_v1 }
 0x736   : > { %v5529_v47 = vsel %vm2473_vm11, %v5527_v3, %v5526_v21  ;;  %v5512_v8 = vadd.f32 %v5508_v7, %v5428_v62 }
 0x737   : > { %v5533_v6 = vadd.f32 %v5529_v47, %v5449_v46 }
 0x739   : > { %v5568_v4 = vpop.permute.xlu1 %5567  ;;  %v5547_v58 = vpop.permute.xlu0 %5546 }
 0x73a   : > { %v5571_v53 = vsel %vm2473_vm11, %v5569_v35, %v5568_v4  ;;  %v5550_v26 = vsel %vm2473_vm11, %v5548_v37, %v5547_v58 }
 0x73b   : > { %v5575_v42 = vadd.f32 %v5571_v53, %v5491_v14  ;;  %v5554_v11 = vadd.f32 %v5550_v26, %v5470_v44 }
 0x73d   : > { %v5608_v17 = vpop.permute.xlu1 %5607  ;;  %v5587_v16 = vpop.permute.xlu0 %5586 }
 0x73e   : > { %v5611_v30 = vrot.slane %v5608_v17, 4  ;;  %v5590_v49 = vrot.slane %v5587_v16, 4 }
 0x740   : > { %v5612_v31 = vsel %vm2473_vm11, %v5611_v30, %v5608_v17  ;;  %v5591_v40 = vsel %vm2473_vm11, %v5590_v49, %v5587_v16 }
 0x741   : > { %v11653_v61 = vadd.f32 %v5612_v31, %v5532_v10  ;;  %v5650_v57 = vpop.permute.xlu1 %5649  ;;  %v5595_v20 = vadd.f32 %v5591_v40, %v5511_v43 }
 0x742   : > { %v5653_v18 = vrot.slane %v5650_v57, 4  ;;  %v5629_v5 = vpop.permute.xlu0 %5628 }
 0x743   : > { %v5632_v63 = vrot.slane %v5629_v5, 4 }
 0x744   : > { %v5654_v52 = vsel %vm2473_vm11, %v5653_v18, %v5650_v57 }
 0x745   : > { %v5658_v38 = vadd.f32 %v5654_v52, %v5574_v22  ;;  %v5633_v29 = vsel %vm2473_vm11, %v5632_v63, %v5629_v5  ;;  %v5610_v19 = vpop.permute.xlu1 %5609 }
 0x746   : > { %v5637_v27 = vadd.f32 %v5633_v29, %v5553_v51  ;;  %v5613_v34 = vsel %vm2473_vm11, %v5611_v30, %v5610_v19  ;;  %v5589_v55 = vpop.permute.xlu0 %5588 }
 0x747   : > { %v5617_v33 = vadd.f32 %v5613_v34, %v5533_v6  ;;  %v5592_v0 = vsel %vm2473_vm11, %v5590_v49, %v5589_v55 }
 0x748   : > { %v5596_v48 = vadd.f32 %v5592_v0, %v5512_v8 }
 0x749   : > { %v5652_v45 = vpop.permute.xlu1 %5651 }
 0x74a   : > { %v5655_v12 = vsel %vm2473_vm11, %v5653_v18, %v5652_v45  ;;  %v5631_v50 = vpop.permute.xlu0 %5630 }
 0x74b   : > { %v5659_v24 = vadd.f32 %v5655_v12, %v5575_v42  ;;  %v5634_v39 = vsel %vm2473_vm11, %v5632_v63, %v5631_v50 }
 0x74c   : > { %v5638_v46 = vadd.f32 %v5634_v39, %v5554_v11 }
 0x74d   : > { %v5686_v36 = vpop.permute.xlu1 %5685 }
 0x74e   : > { %v5669_v62 = vpop.permute.xlu0 %5668  ;;  %v5689_v28 = vrot.slane %v5686_v36, 4 }
 0x74f   : > { %v5672_v21 = vrot.slane %v5669_v62, 4 }
 0x750   : > { %v5690_v7 = vsel %vm2803_vm12, %v5689_v28, %v5686_v36 }
 0x751   : > { %v5720_v32 = vpop.permute.xlu1 %5719  ;;  %v5673_v8 = vsel %vm2803_vm12, %v5672_v21, %v5669_v62  ;;  %v5694_v40 = vadd.f32 %v5690_v7, %v11653_v61 }
 0x752   : > { %v5703_v23 = vpop.permute.xlu0 %5702  ;;  %v5723_v51 = vrot.slane %v5720_v32, 4  ;;  %v5677_v57 = vadd.f32 %v5673_v8, %v5595_v20 }
 0x753   : > { %v5706_v1 = vrot.slane %v5703_v23, 4 }
 0x754   : > { %v5724_v4 = vsel %vm2803_vm12, %v5723_v51, %v5720_v32 }
 0x755   : > { %v5688_v13 = vpop.permute.xlu1 %5687  ;;  %v5707_v58 = vsel %vm2803_vm12, %v5706_v1, %v5703_v23  ;;  %v5728_v18 = vadd.f32 %v5724_v4, %v5658_v38 }
 0x756   : > { %v5671_v14 = vpop.permute.xlu0 %5670  ;;  %v5691_v42 = vsel %vm2803_vm12, %v5689_v28, %v5688_v13  ;;  %v5711_v5 = vadd.f32 %v5707_v58, %v5637_v27 }
 0x757   : > { %v5674_v26 = vsel %vm2803_vm12, %v5672_v21, %v5671_v14  ;;  %v5695_v63 = vadd.f32 %v5691_v42, %v5617_v33 }
 0x758   : > { %v5678_v52 = vadd.f32 %v5674_v26, %v5596_v48 }
 0x759   : > { %v5722_v60 = vpop.permute.xlu1 %5721 }
 0x75a   : > { %v5705_v44 = vpop.permute.xlu0 %5704  ;;  %v5725_v30 = vsel %vm2803_vm12, %v5723_v51, %v5722_v60 }
 0x75b   : > { %v5729_v19 = vadd.f32 %v5725_v30, %v5659_v24  ;;  %v5708_v34 = vsel %vm2803_vm12, %v5706_v1, %v5705_v44 }
 0x75c   : > { %v5712_v24 = vadd.f32 %v5708_v34, %v5638_v46 }
 0x75e   : > { %v5762_v9 = vpop.permute.xlu1 %5761 }
 0x75f   : > { %v5765_v11 = vrot.slane %v5762_v9, 4 }
 0x760   : > { %v5741_v3 = vpop.permute.xlu0 %5740 }
 0x761   : > { %v5744_v16 = vrot.slane %v5741_v3, 4  ;;  %v5766_v55 = vsel %vm2803_vm12, %v5765_v11, %v5762_v9 }
 0x762   : > { %v5770_v39 = vadd.f32 %v5766_v55, %v5694_v40 }
 0x763   : > { %v5804_v59 = vpop.permute.xlu1 %5803  ;;  %v5745_v12 = vsel %vm2803_vm12, %v5744_v16, %v5741_v3 }
 0x764   : > { %v5783_v54 = vpop.permute.xlu0 %5782  ;;  %v5807_v49 = vrot.slane %v5804_v59, 4  ;;  %v5749_v23 = vadd.f32 %v5745_v12, %v5677_v57 }
 0x765   : > { %v5786_v31 = vrot.slane %v5783_v54, 4 }
 0x766   : > { %v5808_v50 = vsel %vm2803_vm12, %v5807_v49, %v5804_v59 }
 0x767   : > { %v5764_v56 = vpop.permute.xlu1 %5763  ;;  %v5787_v61 = vsel %vm2803_vm12, %v5786_v31, %v5783_v54  ;;  %v5812_v13 = vadd.f32 %v5808_v50, %v5728_v18 }
 0x768   : > { %v5743_v10 = vpop.permute.xlu0 %5742  ;;  %v5767_v20 = vsel %vm2803_vm12, %v5765_v11, %v5764_v56  ;;  %v5791_v14 = vadd.f32 %v5787_v61, %v5711_v5 }
 0x769   : > { %v5746_v38 = vsel %vm2803_vm12, %v5744_v16, %v5743_v10  ;;  %v5771_v9 = vadd.f32 %v5767_v20, %v5695_v63 }
 0x76a   : > { %v5750_v3 = vadd.f32 %v5746_v38, %v5678_v52 }
 0x76b   : > { %v5806_v2 = vpop.permute.xlu1 %5805 }
 0x76c   : > { %v5785_v41 = vpop.permute.xlu0 %5784  ;;  %v5809_v27 = vsel %vm2803_vm12, %v5807_v49, %v5806_v2 }
 0x76d   : > { %v5788_v36 = vsel %vm2803_vm12, %v5786_v31, %v5785_v41  ;;  %v5813_v59 = vadd.f32 %v5809_v27, %v5729_v19 }
 0x76e   : > { %v5792_v56 = vadd.f32 %v5788_v36, %v5712_v24 }
 0x76f   : > { %v11662_v43 = vpop.permute.xlu1 %5845 }
 0x770   : > { %v11664_v35 = vpop.permute.xlu0 %5824  ;;  %v5849_v0 = vrot.slane %v11662_v43, 4 }
 0x771   : > { %v5828_v33 = vrot.slane %v11664_v35, 4 }
 0x772   : > { %v5850_v60 = vsel %vm2803_vm12, %v5849_v0, %v11662_v43 }
 0x773   : > { %v11666_v15 = vpop.permute.xlu1 %5887  ;;  %v5829_v46 = vsel %vm2803_vm12, %v5828_v33, %v11664_v35  ;;  %v5854_v41 = vadd.f32 %v5850_v60, %v5770_v39 }
 0x774   : > { %v11668_v37 = vpop.permute.xlu0 %5866  ;;  %v5891_v48 = vrot.slane %v11666_v15, 4 }
 0x775   : > { %v5870_v62 = vrot.slane %v11668_v37, 4 }
 0x776   : > { %v5892_v10 = vsel %vm2803_vm12, %v5891_v48, %v11666_v15  ;;  %v5833_v15 = vadd.f32 %v5829_v46, %v5749_v23 }
 0x777   : > { %v5848_v25 = vpop.permute.xlu1 %5847  ;;  %v5871_v28 = vsel %vm2803_vm12, %v5870_v62, %v11668_v37  ;;  %v5896_v58 = vadd.f32 %v5892_v10, %v5812_v13 }
 0x778   : > { %v11670_v22 = vpop.permute.xlu0 %5826  ;;  %v5851_v43 = vsel %vm2803_vm12, %v5849_v0, %v5848_v25  ;;  %v5875_v25 = vadd.f32 %v5871_v28, %v5791_v14 }
 0x779   : > { %v5830_v1 = vsel %vm2803_vm12, %v5828_v33, %v11670_v22  ;;  %v5855_v26 = vadd.f32 %v5851_v43, %v5771_v9 }
 0x77a   : > { %v5834_v22 = vadd.f32 %v5830_v1, %v5750_v3 }
 0x77b   : > { %v5890_v47 = vpop.permute.xlu1 %5889 }
 0x77c   : > { %v5869_v6 = vpop.permute.xlu0 %5868  ;;  %v5893_v7 = vsel %vm2803_vm12, %v5891_v48, %v5890_v47 }
 0x77d   : > { %v5872_v35 = vsel %vm2803_vm12, %v5870_v62, %v5869_v6  ;;  %v5897_v16 = vadd.f32 %v5893_v7, %v5813_v59 }
 0x77e   : > { %v5876_v47 = vadd.f32 %v5872_v35, %v5792_v56 }
 0x77f   : > { %v11675_v53 = vpop.permute.xlu1 %5929 }
 0x780   : > { %v5909_v17 = vpop.permute.xlu0 %5908  ;;  %v5933_v54 = vrot.slane %v11675_v53, 4 }
 0x781   : > { %v5912_v2 = vrot.slane %v5909_v17, 4 }
 0x782   : > { %v5934_v42 = vsel %vm2803_vm12, %v5933_v54, %v11675_v53 }
 0x783   : > { %v11682_v29 = vpop.permute.xlu1 %5971  ;;  %v5913_v11 = vsel %vm2803_vm12, %v5912_v2, %v5909_v17  ;;  %v5938_v31 = vadd.f32 %v5934_v42, %v5854_v41 }
 0x784   : > { %v5951_v45 = vpop.permute.xlu0 %5950  ;;  %v5975_v21 = vrot.slane %v11682_v29, 4  ;;  %v5917_v5 = vadd.f32 %v5913_v11, %v5833_v15 }
 0x785   : > { %v5954_v8 = vrot.slane %v5951_v45, 4 }
 0x786   : > { %v5976_v6 = vsel %vm2803_vm12, %v5975_v21, %v11682_v29 }
 0x787   : > { %v5932_v32 = vpop.permute.xlu1 %5931  ;;  %v5955_v40 = vsel %vm2803_vm12, %v5954_v8, %v5951_v45  ;;  %v5980_v19 = vadd.f32 %v5976_v6, %v5896_v58 }
 0x788   : > { %v5911_v44 = vpop.permute.xlu0 %5910  ;;  %v5935_v37 = vsel %vm2803_vm12, %v5933_v54, %v5932_v32  ;;  %v5959_v12 = vadd.f32 %v5955_v40, %v5875_v25  ;;  %v13096_v32 = vld [vmem:[#allocation191_spill] sm:$0xff] }
 0x789   : > { %v5914_v30 = vsel %vm2803_vm12, %v5912_v2, %v5911_v44  ;;  %v5939_v57 = vadd.f32 %v5935_v37, %v5855_v26 }
 0x78a   : > { %v5918_v63 = vadd.f32 %v5914_v30, %v5834_v22 }
 0x78b   : > { %v5974_v51 = vpop.permute.xlu1 %5973 }
 0x78c   : > { %v5953_v4 = vpop.permute.xlu0 %5952  ;;  %v5977_v52 = vsel %vm2803_vm12, %v5975_v21, %v5974_v51 }
 0x78d   : > { %v5956_v34 = vsel %vm2803_vm12, %v5954_v8, %v5953_v4  ;;  %v5981_v20 = vadd.f32 %v5977_v52, %v5897_v16 }
 0x78e   : > { %v5960_v24 = vadd.f32 %v5956_v34, %v5876_v47 }
 0x78f   : > { %v6042_v49 = vpop.permute.xlu1 %6041 }
 0x790   : > { %v6043_v53 = vrot.slane %v6042_v49, 4  ;;  %v5992_v18 = vpop.permute.xlu0 %5991 }
 0x791   : > { %v5993_v17 = vrot.slane %v5992_v18, 4 }
 0x792   : > { %v6044_v55 = vsel %vm338_vm4, %v6043_v53, %v6042_v49  ;;  %v6048_v0 = vadd.f32 %v6043_v53, %v5939_v57 }
 0x793   : > { %v6047_v29 = vadd.f32 %v6044_v55, %v5938_v31  ;;  %v5994_v50 = vsel %vm338_vm4, %v5993_v17, %v5992_v18  ;;  %v5998_v61 = vadd.f32 %v5993_v17, %v5918_v63  ;;  %v6144_v45 = vpop.permute.xlu1 %6143 }
 0x794   : > { %v6050_v38 = vmax.f32 %v6048_v0, 0.0  ;;  %v5997_v27 = vadd.f32 %v5994_v50, %v5917_v5  ;;  %v6145_v33 = vrot.slane %v6144_v45, 4  ;;  %v6093_v48 = vpop.permute.xlu0 %6092 }
 0x795   : > { %v6049_v39 = vmax.f32 %v6047_v29, 0.0  ;;  %v6000_v36 = vmax.f32 %v5998_v61, 0.0  ;;  %v6094_v62 = vrot.slane %v6093_v48, 4 }
 0x796   : > { %v6066_v23 = vrot.slane %v6050_v38, %v13096_v32  ;;  %v5999_v13 = vmax.f32 %v5997_v27, 0.0  ;;  %v6146_v14 = vsel %vm338_vm4, %v6145_v33, %v6144_v45  ;;  %v6150_v60 = vadd.f32 %v6145_v33, %v5981_v20 }
 0x797   : > { %v6059_v44 = vrot.slane %v6049_v39, %v13096_v32  ;;  %v6016_v9 = vrot.slane %v6000_v36, %v13096_v32  ;;  %v6149_v3 = vadd.f32 %v6146_v14, %v5980_v19  ;;  %v6095_v59 = vsel %vm338_vm4, %v6094_v62, %v6093_v48 }
 0x798   : > { %v6009_v54 = vrot.slane %v5999_v13, %v13096_v32  ;;  %v6152_v56 = vmax.f32 %v6150_v60, 0.0  ;;  %v6098_v46 = vadd.f32 %v6095_v59, %v5959_v12  ;;  %v6099_v10 = vadd.f32 %v6094_v62, %v5960_v24 }
 0x799   : > { %v6067_v2 = vcombine.low %v6059_v44, %v6066_v23  ;;  %v6151_v41 = vmax.f32 %v6149_v3, 0.0 }
 0x79a   : > { %v6017_v28 = vcombine.low %v6009_v54, %v6016_v9  ;;  %v6168_v43 = vrot.slane %v6152_v56, %v13096_v32  ;;  %v6100_v21 = vmax.f32 %v6098_v46, 0.0  ;;  %v6101_v51 = vmax.f32 %v6099_v10, 0.0 }
 0x79b   : > { %v6161_v1 = vrot.slane %v6151_v41, %v13096_v32  ;;  %v6074_v7 = vrot.slane %v6067_v2, %v13096_v32 }
 0x79c   : > { %v6110_v35 = vrot.slane %v6100_v21, %v13096_v32  ;;  %v6117_v8 = vrot.slane %v6101_v51, %v13096_v32  ;;  %v6024_v4 = vrot.slane %v6017_v28, %v13096_v32 }
 0x79d   : > { %v6169_v15 = vcombine.low %v6161_v1, %v6168_v43  ;;  %6075 = vrot.lane.b32.xlu1 %v6074_v7, %s13098_s13 }
 0x79e   : > { %v6118_v58 = vcombine.low %v6110_v35, %v6117_v8  ;;  %6025 = vrot.lane.b32.xlu0 %v6024_v4, %s13098_s13 }
 0x79f   : > { %v6176_v42 = vrot.slane %v6169_v15, %v13096_v32 }
 0x7a0   : > { %v6125_v37 = vrot.slane %v6118_v58, %v13096_v32 }
 0x7a1   : > { %6177 = vrot.lane.b32.xlu1 %v6176_v42, %s13098_s13 }
 0x7a2   : > { %6126 = vrot.lane.b32.xlu0 %v6125_v37, %s13098_s13 }
 0x80f   : > { %v6076_v25 = vpop.permute.xlu1 %6075 }
 0x810   : > { %v6077_v26 = vrot.slane %v6076_v25, 1  ;;  %v6026_v11 = vpop.permute.xlu0 %6025 }
 0x811   : > { %v6027_v30 = vrot.slane %v6026_v11, 1 }
 0x812   : > { %v6078_v22 = vsel %vm2786_vm6, %v6076_v25, %v6077_v26 }
 0x813   : > { %6999 = vst.msk [vmem:[%s303_s20 + $0x1] ss:$4 sm:$0x3] %vm9235_vm13, %v6078_v22  ;;  %v6028_v47 = vsel %vm2786_vm6, %v6026_v11, %v6027_v30  ;;  %v6178_v6 = vpop.permute.xlu1 %6177 }
 0x814   : > { %6030 = vst.msk [vmem:[%s303_s20] ss:$4 sm:$0x3] %vm9235_vm13, %v6028_v47  ;;  %v6179_v49 = vrot.slane %v6178_v6, 1  ;;  %v6127_v31 = vpop.permute.xlu0 %6126 }
 0x815   : > { %v6128_v40 = vrot.slane %v6127_v31, 1 }
 0x816   : > { %v6180_v57 = vsel %vm2786_vm6, %v6178_v6, %v6179_v49 }
 0x817   : > { %7003 = vst.msk [vmem:[%s303_s20 + $0x3] ss:$4 sm:$0x3] %vm9235_vm13, %v6180_v57  ;;  %v6129_v53 = vsel %vm2786_vm6, %v6127_v31, %v6128_v40 }
 0x818   : > { %7001 = vst.msk [vmem:[%s303_s20 + $0x2] ss:$4 sm:$0x3] %vm9235_vm13, %v6129_v53 }
 0x819 PF: > { %s13102_s10 = sld [smem:[#allocation13_spill]] }
 0x81f   : > { %s19_s21 = sadd.s32 1, %s13102_s10  }
 0x820   : > { %p16_p2 = scmp.ge.s32.totalorder %s19_s21, 4  }
 0x822   :  { %18 = sbr.rel (!%p16_p2) target bundleno = 11 (0xb), region = 102 }
 0x829   :  { %6205 = vsyncpa [#allocation4], 1 }
 0x82a   :  { %6207 = vsyncpa [#allocation4 + $0x1], 1 }
 0x82b   :  { %6208 = vsyncpa [#allocation6], 1 }
 0x82c   :  { %6209 = vsyncpa [#allocation9], 1 }

</bundles_post_ra>
